<compile_context>
chip_gen: v6e
topology: v6e:2x2x1
jax: 0.10.0
libtpu: 0.0.40
codegen_flags: <defaults>
</compile_context>

<pallas_src>
import functools

import jax
import jax.numpy as jnp
import numpy as np
from jax import lax
from jax.experimental import pallas as pl
from jax.experimental.pallas import tpu as pltpu

LANE = 128          # lane width: output channels padded to this
SUB_BF16 = 16       # bf16 sublane packing granule: input channels padded to this


def _round_up(v, m):
  return ((v + m - 1) // m) * m


def _basic_block_kernel(x_ref, w1_ref, w2_ref, b1_ref, b2_ref, out_ref,
                        xflat_ref, midflat_ref, *,
                        H, W, CK, CP, Wqp, base, Mtot, CH):
  """conv3x3 -> BN -> ReLU -> conv3x3 -> BN -> +residual -> ReLU (1 batch elem).

  x_ref       : (1, H, W, CK)  f32   unpadded NHWC input (CK = round_up(cin,16))
  w1/w2_ref   : (9*CK, CP)     bf16  tap-major conv weights, BN scale folded in
  b1/b2_ref   : (1, CP)        f32   folded BN biases
  out_ref     : (1, H, W, CP)  bf16  lane-dense NHWC output
  xflat_ref   : (Mtot, CK)     bf16  flattened spatially zero-padded input
  midflat_ref : (Mtot, CK)     bf16  flattened zero-padded conv1 output

  Flat layout: real row y lives at flat rows [base + y*Wqp, base + y*Wqp + W);
  the prefix [0, base), per-row tails [.. + W, .. + Wqp) and the bottom halo
  are zero, so the 3x3 tap (ky, kx) of output pixel m = y*Wqp + x is simply
  flat[base + m + (ky-1)*Wqp + (kx-1)]  ->  conv == 9 accumulating matmuls on
  contiguous row slices, no im2col copies.
  """
  f32 = jnp.float32
  bf16 = jnp.bfloat16

  # ---- per-step zeroing of halo / tail regions (parallel-axis safe) ----
  zpre = jnp.zeros((base, CK), bf16)
  ztail = jnp.zeros((Wqp - W, CK), bf16)
  zbot = jnp.zeros((Mtot - base - H * Wqp, CK), bf16)

  def zero_halo(ref):
    ref[0:base, :] = zpre
    for y in range(H):
      rs = base + y * Wqp
      ref[rs + W:rs + Wqp, :] = ztail
    ref[base + H * Wqp:Mtot, :] = zbot

  zero_halo(xflat_ref)
  zero_halo(midflat_ref)

  # ---- stage the unpadded input into the flat padded layout (bf16 cast here,
  #      not in the wrapper) ----
  for y in range(H):
    rs = base + y * Wqp
    xflat_ref[rs:rs + W, :] = x_ref[0, y].astype(bf16)

  rows = CH * Wqp  # flattened rows per accumulator chunk

  def conv3x3(src_ref, w_ref, m0):
    """3x3 conv for output rows [m0, m0 + rows): 9 accumulating MXU matmuls."""
    acc = jnp.zeros((rows, CP), f32)
    for ky in range(3):
      for kx in range(3):
        t = ky * 3 + kx
        off = base + m0 + (ky - 1) * Wqp + (kx - 1)
        acc = acc + jnp.dot(src_ref[off:off + rows, :],
                            w_ref[t * CK:(t + 1) * CK, :],
                            preferred_element_type=f32)
    return acc

  # ---- phase 1: conv1 + BN1 + ReLU -> midflat (only real CK channels kept) ----
  for y0 in range(0, H, CH):
    acc = conv3x3(xflat_ref, w1_ref, y0 * Wqp)
    out1 = jnp.maximum(acc + b1_ref[...], 0.0)
    for yy in range(CH):
      rs = base + (y0 + yy) * Wqp
      r = yy * Wqp
      midflat_ref[rs:rs + W, :] = out1[r:r + W, :CK].astype(bf16)

  # ---- phase 2: conv2 + BN2 + exact-f32 residual + ReLU -> output ----
  res_pad = jnp.zeros((W, CP - CK), f32) if CP > CK else None
  for y0 in range(0, H, CH):
    acc = conv3x3(midflat_ref, w2_ref, y0 * Wqp)
    out2 = acc + b2_ref[...]
    for yy in range(CH):
      y = y0 + yy
      res = x_ref[0, y]                                   # (W, CK) f32, exact
      if res_pad is not None:
        res = jnp.concatenate([res, res_pad], axis=-1)    # (W, CP)
      else:
        res = res[:, :CP]
      row = out2[yy * Wqp:yy * Wqp + W, :] + res
      out_ref[0, y] = jnp.maximum(row, 0.0).astype(out_ref.dtype)


def basic_block_forward(x_nchw, w1, w2, bn1, bn2, eps=1e-5):
  """x_nchw: (B, Cin, H, W) f32.  w*: (Cout, Cin, 3, 3) PyTorch layout."""
  B, cin, H, W = x_nchw.shape
  cout = w1.shape[0]
  assert cin == cout, "stride=1, downsample=None requires inplanes == planes"
  C = cout

  CK = _round_up(max(C, SUB_BF16), SUB_BF16)     # K-dim channel pad (16 granule)
  CP = _round_up(max(C, LANE), LANE)             # N-dim (lane-dense) channel pad
  Wqp = _round_up(W + 2, 8)                      # padded row width, 8-aligned
  base = Wqp + 8                                 # zero prefix; keeps rows aligned
  Mtot = base + (H + 1) * Wqp + 8                # flat scratch rows

  # Largest divisor of H keeping the f32 accumulator chunk <= ~256 flat rows.
  CH = 1
  for d in range(1, H + 1):
    if H % d == 0 and d * Wqp <= 256:
      CH = d

  # ---- fold BatchNorm (inference / running stats) into weights + bias ----
  def fold(bn):
    gamma, beta, mean, var = bn
    scale = gamma * lax.rsqrt(var + eps)
    return scale, beta - mean * scale

  s1, bias1 = fold(bn1)
  s2, bias2 = fold(bn2)

  def prep_w(w, scale):
    # (Cout, Cin, 3, 3) -> (ky, kx, ci, co), fold BN scale over co,
    # pad ci -> CK (16 granule), co -> CP (128), flatten taps -> (9*CK, CP).
    wt = jnp.transpose(w, (2, 3, 1, 0)) * scale[None, None, None, :]
    wt = jnp.pad(wt, ((0, 0), (0, 0), (0, CK - C), (0, CP - C)))
    return wt.reshape(9 * CK, CP).astype(jnp.bfloat16)

  w1_p = prep_w(w1, s1)
  w2_p = prep_w(w2, s2)
  b1_p = jnp.pad(bias1, (0, CP - C)).reshape(1, CP).astype(jnp.float32)
  b2_p = jnp.pad(bias2, (0, CP - C)).reshape(1, CP).astype(jnp.float32)

  # NCHW -> NHWC + minimal channel pad to CK; stays f32 (exact residual).
  # Spatial halo padding and the bf16 cast happen inside the kernel.
  x = jnp.transpose(x_nchw, (0, 2, 3, 1))
  x = jnp.pad(x, ((0, 0), (0, 0), (0, 0), (0, CK - C)))

  kernel = functools.partial(
      _basic_block_kernel, H=H, W=W, CK=CK, CP=CP, Wqp=Wqp, base=base,
      Mtot=Mtot, CH=CH)

  flops = 2 * (2 * B * H * W * (9 * CK) * CP)          # two convs
  bytes_accessed = (B * H * W * CK * 4                  # input (f32)
                    + 2 * 9 * CK * CP * 2               # weights (bf16)
                    + 2 * CP * 4                        # biases
                    + B * H * W * CP * 2)               # output (bf16)
  cost = pl.CostEstimate(flops=flops, transcendentals=0,
                         bytes_accessed=bytes_accessed)

  out = pl.pallas_call(
      kernel,
      out_shape=jax.ShapeDtypeStruct((B, H, W, CP), jnp.bfloat16),
      grid_spec=pltpu.PrefetchScalarGridSpec(
          num_scalar_prefetch=0,
          grid=(B,),
          in_specs=[
              pl.BlockSpec((1, H, W, CK), lambda b: (b, 0, 0, 0)),
              pl.BlockSpec((9 * CK, CP), lambda b: (0, 0)),
              pl.BlockSpec((9 * CK, CP), lambda b: (0, 0)),
              pl.BlockSpec((1, CP), lambda b: (0, 0)),
              pl.BlockSpec((1, CP), lambda b: (0, 0)),
          ],
          out_specs=pl.BlockSpec((1, H, W, CP), lambda b: (b, 0, 0, 0)),
          scratch_shapes=[
              pltpu.VMEM((Mtot, CK), jnp.bfloat16),   # flat padded input
              pltpu.VMEM((Mtot, CK), jnp.bfloat16),   # flat padded conv1 output
          ],
      ),
      compiler_params=pltpu.CompilerParams(
          dimension_semantics=("parallel",),
          vmem_limit_bytes=32 * 1024 * 1024),
      cost_estimate=cost,
  )(x, w1_p, w2_p, b1_p, b2_p)

  # (B, H, W, CP) bf16 -> real channels -> NCHW f32, only to match the
  # PyTorch-style reference interface.  Stacked blocks would keep NHWC bf16.
  return jnp.transpose(out[..., :C], (0, 3, 1, 2)).astype(jnp.float32)


def _reference_forward(x, w1, w2, bn1, bn2, eps=1e-5):
  """Pure-JAX reference (NCHW, like PyTorch) for validation."""
  def conv(inp, w):
    return lax.conv_general_dilated(
        inp, w, window_strides=(1, 1), padding=((1, 1), (1, 1)),
        dimension_numbers=("NCHW", "OIHW", "NCHW"))

  def bn(inp, p):
    gamma, beta, mean, var = [v.reshape(1, -1, 1, 1) for v in p]
    return (inp - mean) / jnp.sqrt(var + eps) * gamma + beta

  out = jnp.maximum(bn(conv(x, w1), bn1), 0.0)
  out = bn(conv(out, w2), bn2) + x
  return jnp.maximum(out, 0.0)


if __name__ == "__main__":
  B, C, H, W = 2, 4, 16, 16   # inplanes == planes == 4, stride=1, no downsample
  key = jax.random.PRNGKey(0)
  k_x, k_w1, k_w2, k_g1, k_b1, k_m1, k_v1, k_g2, k_b2, k_m2, k_v2 = (
      jax.random.split(key, 11))

  x = jax.random.normal(k_x, (B, C, H, W), jnp.float32)
  w1 = jax.random.normal(k_w1, (C, C, 3, 3), jnp.float32) * 0.1
  w2 = jax.random.normal(k_w2, (C, C, 3, 3), jnp.float32) * 0.1
  bn1 = (1.0 + 0.1 * jax.random.normal(k_g1, (C,), jnp.float32),
         0.1 * jax.random.normal(k_b1, (C,), jnp.float32),
         0.1 * jax.random.normal(k_m1, (C,), jnp.float32),
         1.0 + 0.1 * jax.nn.softplus(jax.random.normal(k_v1, (C,), jnp.float32)))
  bn2 = (1.0 + 0.1 * jax.random.normal(k_g2, (C,), jnp.float32),
         0.1 * jax.random.normal(k_b2, (C,), jnp.float32),
         0.1 * jax.random.normal(k_m2, (C,), jnp.float32),
         1.0 + 0.1 * jax.nn.softplus(jax.random.normal(k_v2, (C,), jnp.float32)))

  out = jax.block_until_ready(basic_block_forward(x, w1, w2, bn1, bn2))
  ref = jax.block_until_ready(_reference_forward(x, w1, w2, bn1, bn2))

  # bf16 MXU operands + bf16 output -> bf16-appropriate tolerance.
  np.testing.assert_allclose(np.asarray(out), np.asarray(ref),
                             rtol=2e-2, atol=2e-2)
  print("KERNEL_OK")
</pallas_src>

<mosaic_0001>
module attributes {stable_mosaic.version = 11 : i64} {
  func.func @_basic_block_kernel(%arg0: i32, %arg1: memref<1x16x16x16xf32, #tpu.memory_space<vmem>>, %arg2: memref<144x128xbf16, #tpu.memory_space<vmem>>, %arg3: memref<144x128xbf16, #tpu.memory_space<vmem>>, %arg4: memref<1x128xf32, #tpu.memory_space<vmem>>, %arg5: memref<1x128xf32, #tpu.memory_space<vmem>>, %arg6: memref<1x16x16x128xbf16, #tpu.memory_space<vmem>>, %arg7: memref<448x16xbf16, #tpu.memory_space<vmem>>, %arg8: memref<448x16xbf16, #tpu.memory_space<vmem>>) attributes {dimension_semantics = [#tpu.dimension_semantics<parallel>], iteration_bounds = array<i64: 2>, scalar_prefetch = 0 : i64, scratch_operands = 2 : i64, tpu.core_type = #tpu.core_type<tc>, window_params = [{transform_indices = @transform_0, window_bounds = array<i64: 1, 16, 16, 16>}, {pipeline_mode = #tpu.pipeline_mode<synchronous>, transform_indices = @transform_1, window_bounds = array<i64: 144, 128>}, {pipeline_mode = #tpu.pipeline_mode<synchronous>, transform_indices = @transform_2, window_bounds = array<i64: 144, 128>}, {pipeline_mode = #tpu.pipeline_mode<synchronous>, transform_indices = @transform_3, window_bounds = array<i64: 1, 128>}, {pipeline_mode = #tpu.pipeline_mode<synchronous>, transform_indices = @transform_4, window_bounds = array<i64: 1, 128>}, {transform_indices = @transform_5, window_bounds = array<i64: 1, 16, 16, 128>}]} {
    %cst = arith.constant 0.000000e+00 : bf16
    %0 = vector.broadcast %cst : bf16 to vector<32x16xbf16>
    %cst_0 = arith.constant 0.000000e+00 : bf16
    %1 = vector.broadcast %cst_0 : bf16 to vector<8x16xbf16>
    %cst_1 = arith.constant 0.000000e+00 : bf16
    %2 = vector.broadcast %cst_1 : bf16 to vector<32x16xbf16>
    %c0 = arith.constant 0 : index
    %c0_2 = arith.constant 0 : index
    %3 = vector.load %arg7[%c0, %c0_2] : memref<448x16xbf16, #tpu.memory_space<vmem>>, vector<32x16xbf16>
    tpu.vector_store %arg7[%c0, %c0_2], %0 {strides = array<i32>} : memref<448x16xbf16, #tpu.memory_space<vmem>>, vector<32x16xbf16>,
    %c48 = arith.constant 48 : index
    %c0_3 = arith.constant 0 : index
    %4 = vector.load %arg7[%c48, %c0_3] : memref<448x16xbf16, #tpu.memory_space<vmem>>, vector<8x16xbf16>
    tpu.vector_store %arg7[%c48, %c0_3], %1 {strides = array<i32>} : memref<448x16xbf16, #tpu.memory_space<vmem>>, vector<8x16xbf16>,
    %c72 = arith.constant 72 : index
    %c0_4 = arith.constant 0 : index
    %5 = vector.load %arg7[%c72, %c0_4] : memref<448x16xbf16, #tpu.memory_space<vmem>>, vector<8x16xbf16>
    tpu.vector_store %arg7[%c72, %c0_4], %1 {strides = array<i32>} : memref<448x16xbf16, #tpu.memory_space<vmem>>, vector<8x16xbf16>,
    %c96 = arith.constant 96 : index
    %c0_5 = arith.constant 0 : index
    %6 = vector.load %arg7[%c96, %c0_5] : memref<448x16xbf16, #tpu.memory_space<vmem>>, vector<8x16xbf16>
    tpu.vector_store %arg7[%c96, %c0_5], %1 {strides = array<i32>} : memref<448x16xbf16, #tpu.memory_space<vmem>>, vector<8x16xbf16>,
    %c120 = arith.constant 120 : index
    %c0_6 = arith.constant 0 : index
    %7 = vector.load %arg7[%c120, %c0_6] : memref<448x16xbf16, #tpu.memory_space<vmem>>, vector<8x16xbf16>
    tpu.vector_store %arg7[%c120, %c0_6], %1 {strides = array<i32>} : memref<448x16xbf16, #tpu.memory_space<vmem>>, vector<8x16xbf16>,
    %c144 = arith.constant 144 : index
    %c0_7 = arith.constant 0 : index
    %8 = vector.load %arg7[%c144, %c0_7] : memref<448x16xbf16, #tpu.memory_space<vmem>>, vector<8x16xbf16>
    tpu.vector_store %arg7[%c144, %c0_7], %1 {strides = array<i32>} : memref<448x16xbf16, #tpu.memory_space<vmem>>, vector<8x16xbf16>,
    %c168 = arith.constant 168 : index
    %c0_8 = arith.constant 0 : index
    %9 = vector.load %arg7[%c168, %c0_8] : memref<448x16xbf16, #tpu.memory_space<vmem>>, vector<8x16xbf16>
    tpu.vector_store %arg7[%c168, %c0_8], %1 {strides = array<i32>} : memref<448x16xbf16, #tpu.memory_space<vmem>>, vector<8x16xbf16>,
    %c192 = arith.constant 192 : index
    %c0_9 = arith.constant 0 : index
    %10 = vector.load %arg7[%c192, %c0_9] : memref<448x16xbf16, #tpu.memory_space<vmem>>, vector<8x16xbf16>
    tpu.vector_store %arg7[%c192, %c0_9], %1 {strides = array<i32>} : memref<448x16xbf16, #tpu.memory_space<vmem>>, vector<8x16xbf16>,
    %c216 = arith.constant 216 : index
    %c0_10 = arith.constant 0 : index
    %11 = vector.load %arg7[%c216, %c0_10] : memref<448x16xbf16, #tpu.memory_space<vmem>>, vector<8x16xbf16>
    tpu.vector_store %arg7[%c216, %c0_10], %1 {strides = array<i32>} : memref<448x16xbf16, #tpu.memory_space<vmem>>, vector<8x16xbf16>,
    %c240 = arith.constant 240 : index
    %c0_11 = arith.constant 0 : index
    %12 = vector.load %arg7[%c240, %c0_11] : memref<448x16xbf16, #tpu.memory_space<vmem>>, vector<8x16xbf16>
    tpu.vector_store %arg7[%c240, %c0_11], %1 {strides = array<i32>} : memref<448x16xbf16, #tpu.memory_space<vmem>>, vector<8x16xbf16>,
    %c264 = arith.constant 264 : index
    %c0_12 = arith.constant 0 : index
    %13 = vector.load %arg7[%c264, %c0_12] : memref<448x16xbf16, #tpu.memory_space<vmem>>, vector<8x16xbf16>
    tpu.vector_store %arg7[%c264, %c0_12], %1 {strides = array<i32>} : memref<448x16xbf16, #tpu.memory_space<vmem>>, vector<8x16xbf16>,
    %c288 = arith.constant 288 : index
    %c0_13 = arith.constant 0 : index
    %14 = vector.load %arg7[%c288, %c0_13] : memref<448x16xbf16, #tpu.memory_space<vmem>>, vector<8x16xbf16>
    tpu.vector_store %arg7[%c288, %c0_13], %1 {strides = array<i32>} : memref<448x16xbf16, #tpu.memory_space<vmem>>, vector<8x16xbf16>,
    %c312 = arith.constant 312 : index
    %c0_14 = arith.constant 0 : index
    %15 = vector.load %arg7[%c312, %c0_14] : memref<448x16xbf16, #tpu.memory_space<vmem>>, vector<8x16xbf16>
    tpu.vector_store %arg7[%c312, %c0_14], %1 {strides = array<i32>} : memref<448x16xbf16, #tpu.memory_space<vmem>>, vector<8x16xbf16>,
    %c336 = arith.constant 336 : index
    %c0_15 = arith.constant 0 : index
    %16 = vector.load %arg7[%c336, %c0_15] : memref<448x16xbf16, #tpu.memory_space<vmem>>, vector<8x16xbf16>
    tpu.vector_store %arg7[%c336, %c0_15], %1 {strides = array<i32>} : memref<448x16xbf16, #tpu.memory_space<vmem>>, vector<8x16xbf16>,
    %c360 = arith.constant 360 : index
    %c0_16 = arith.constant 0 : index
    %17 = vector.load %arg7[%c360, %c0_16] : memref<448x16xbf16, #tpu.memory_space<vmem>>, vector<8x16xbf16>
    tpu.vector_store %arg7[%c360, %c0_16], %1 {strides = array<i32>} : memref<448x16xbf16, #tpu.memory_space<vmem>>, vector<8x16xbf16>,
    %c384 = arith.constant 384 : index
    %c0_17 = arith.constant 0 : index
    %18 = vector.load %arg7[%c384, %c0_17] : memref<448x16xbf16, #tpu.memory_space<vmem>>, vector<8x16xbf16>
    tpu.vector_store %arg7[%c384, %c0_17], %1 {strides = array<i32>} : memref<448x16xbf16, #tpu.memory_space<vmem>>, vector<8x16xbf16>,
    %c408 = arith.constant 408 : index
    %c0_18 = arith.constant 0 : index
    %19 = vector.load %arg7[%c408, %c0_18] : memref<448x16xbf16, #tpu.memory_space<vmem>>, vector<8x16xbf16>
    tpu.vector_store %arg7[%c408, %c0_18], %1 {strides = array<i32>} : memref<448x16xbf16, #tpu.memory_space<vmem>>, vector<8x16xbf16>,
    %c416 = arith.constant 416 : index
    %c0_19 = arith.constant 0 : index
    %20 = vector.load %arg7[%c416, %c0_19] : memref<448x16xbf16, #tpu.memory_space<vmem>>, vector<32x16xbf16>
    tpu.vector_store %arg7[%c416, %c0_19], %2 {strides = array<i32>} : memref<448x16xbf16, #tpu.memory_space<vmem>>, vector<32x16xbf16>,
    %c0_20 = arith.constant 0 : index
    %c0_21 = arith.constant 0 : index
    %21 = vector.load %arg8[%c0_20, %c0_21] : memref<448x16xbf16, #tpu.memory_space<vmem>>, vector<32x16xbf16>
    tpu.vector_store %arg8[%c0_20, %c0_21], %0 {strides = array<i32>} : memref<448x16xbf16, #tpu.memory_space<vmem>>, vector<32x16xbf16>,
    %c48_22 = arith.constant 48 : index
    %c0_23 = arith.constant 0 : index
    %22 = vector.load %arg8[%c48_22, %c0_23] : memref<448x16xbf16, #tpu.memory_space<vmem>>, vector<8x16xbf16>
    tpu.vector_store %arg8[%c48_22, %c0_23], %1 {strides = array<i32>} : memref<448x16xbf16, #tpu.memory_space<vmem>>, vector<8x16xbf16>,
    %c72_24 = arith.constant 72 : index
    %c0_25 = arith.constant 0 : index
    %23 = vector.load %arg8[%c72_24, %c0_25] : memref<448x16xbf16, #tpu.memory_space<vmem>>, vector<8x16xbf16>
    tpu.vector_store %arg8[%c72_24, %c0_25], %1 {strides = array<i32>} : memref<448x16xbf16, #tpu.memory_space<vmem>>, vector<8x16xbf16>,
    %c96_26 = arith.constant 96 : index
    %c0_27 = arith.constant 0 : index
    %24 = vector.load %arg8[%c96_26, %c0_27] : memref<448x16xbf16, #tpu.memory_space<vmem>>, vector<8x16xbf16>
    tpu.vector_store %arg8[%c96_26, %c0_27], %1 {strides = array<i32>} : memref<448x16xbf16, #tpu.memory_space<vmem>>, vector<8x16xbf16>,
    %c120_28 = arith.constant 120 : index
    %c0_29 = arith.constant 0 : index
    %25 = vector.load %arg8[%c120_28, %c0_29] : memref<448x16xbf16, #tpu.memory_space<vmem>>, vector<8x16xbf16>
    tpu.vector_store %arg8[%c120_28, %c0_29], %1 {strides = array<i32>} : memref<448x16xbf16, #tpu.memory_space<vmem>>, vector<8x16xbf16>,
    %c144_30 = arith.constant 144 : index
    %c0_31 = arith.constant 0 : index
    %26 = vector.load %arg8[%c144_30, %c0_31] : memref<448x16xbf16, #tpu.memory_space<vmem>>, vector<8x16xbf16>
    tpu.vector_store %arg8[%c144_30, %c0_31], %1 {strides = array<i32>} : memref<448x16xbf16, #tpu.memory_space<vmem>>, vector<8x16xbf16>,
    %c168_32 = arith.constant 168 : index
    %c0_33 = arith.constant 0 : index
    %27 = vector.load %arg8[%c168_32, %c0_33] : memref<448x16xbf16, #tpu.memory_space<vmem>>, vector<8x16xbf16>
    tpu.vector_store %arg8[%c168_32, %c0_33], %1 {strides = array<i32>} : memref<448x16xbf16, #tpu.memory_space<vmem>>, vector<8x16xbf16>,
    %c192_34 = arith.constant 192 : index
    %c0_35 = arith.constant 0 : index
    %28 = vector.load %arg8[%c192_34, %c0_35] : memref<448x16xbf16, #tpu.memory_space<vmem>>, vector<8x16xbf16>
    tpu.vector_store %arg8[%c192_34, %c0_35], %1 {strides = array<i32>} : memref<448x16xbf16, #tpu.memory_space<vmem>>, vector<8x16xbf16>,
    %c216_36 = arith.constant 216 : index
    %c0_37 = arith.constant 0 : index
    %29 = vector.load %arg8[%c216_36, %c0_37] : memref<448x16xbf16, #tpu.memory_space<vmem>>, vector<8x16xbf16>
    tpu.vector_store %arg8[%c216_36, %c0_37], %1 {strides = array<i32>} : memref<448x16xbf16, #tpu.memory_space<vmem>>, vector<8x16xbf16>,
    %c240_38 = arith.constant 240 : index
    %c0_39 = arith.constant 0 : index
    %30 = vector.load %arg8[%c240_38, %c0_39] : memref<448x16xbf16, #tpu.memory_space<vmem>>, vector<8x16xbf16>
    tpu.vector_store %arg8[%c240_38, %c0_39], %1 {strides = array<i32>} : memref<448x16xbf16, #tpu.memory_space<vmem>>, vector<8x16xbf16>,
    %c264_40 = arith.constant 264 : index
    %c0_41 = arith.constant 0 : index
    %31 = vector.load %arg8[%c264_40, %c0_41] : memref<448x16xbf16, #tpu.memory_space<vmem>>, vector<8x16xbf16>
    tpu.vector_store %arg8[%c264_40, %c0_41], %1 {strides = array<i32>} : memref<448x16xbf16, #tpu.memory_space<vmem>>, vector<8x16xbf16>,
    %c288_42 = arith.constant 288 : index
    %c0_43 = arith.constant 0 : index
    %32 = vector.load %arg8[%c288_42, %c0_43] : memref<448x16xbf16, #tpu.memory_space<vmem>>, vector<8x16xbf16>
    tpu.vector_store %arg8[%c288_42, %c0_43], %1 {strides = array<i32>} : memref<448x16xbf16, #tpu.memory_space<vmem>>, vector<8x16xbf16>,
    %c312_44 = arith.constant 312 : index
    %c0_45 = arith.constant 0 : index
    %33 = vector.load %arg8[%c312_44, %c0_45] : memref<448x16xbf16, #tpu.memory_space<vmem>>, vector<8x16xbf16>
    tpu.vector_store %arg8[%c312_44, %c0_45], %1 {strides = array<i32>} : memref<448x16xbf16, #tpu.memory_space<vmem>>, vector<8x16xbf16>,
    %c336_46 = arith.constant 336 : index
    %c0_47 = arith.constant 0 : index
    %34 = vector.load %arg8[%c336_46, %c0_47] : memref<448x16xbf16, #tpu.memory_space<vmem>>, vector<8x16xbf16>
    tpu.vector_store %arg8[%c336_46, %c0_47], %1 {strides = array<i32>} : memref<448x16xbf16, #tpu.memory_space<vmem>>, vector<8x16xbf16>,
    %c360_48 = arith.constant 360 : index
    %c0_49 = arith.constant 0 : index
    %35 = vector.load %arg8[%c360_48, %c0_49] : memref<448x16xbf16, #tpu.memory_space<vmem>>, vector<8x16xbf16>
    tpu.vector_store %arg8[%c360_48, %c0_49], %1 {strides = array<i32>} : memref<448x16xbf16, #tpu.memory_space<vmem>>, vector<8x16xbf16>,
    %c384_50 = arith.constant 384 : index
    %c0_51 = arith.constant 0 : index
    %36 = vector.load %arg8[%c384_50, %c0_51] : memref<448x16xbf16, #tpu.memory_space<vmem>>, vector<8x16xbf16>
    tpu.vector_store %arg8[%c384_50, %c0_51], %1 {strides = array<i32>} : memref<448x16xbf16, #tpu.memory_space<vmem>>, vector<8x16xbf16>,
    %c408_52 = arith.constant 408 : index
    %c0_53 = arith.constant 0 : index
    %37 = vector.load %arg8[%c408_52, %c0_53] : memref<448x16xbf16, #tpu.memory_space<vmem>>, vector<8x16xbf16>
    tpu.vector_store %arg8[%c408_52, %c0_53], %1 {strides = array<i32>} : memref<448x16xbf16, #tpu.memory_space<vmem>>, vector<8x16xbf16>,
    %c416_54 = arith.constant 416 : index
    %c0_55 = arith.constant 0 : index
    %38 = vector.load %arg8[%c416_54, %c0_55] : memref<448x16xbf16, #tpu.memory_space<vmem>>, vector<32x16xbf16>
    tpu.vector_store %arg8[%c416_54, %c0_55], %2 {strides = array<i32>} : memref<448x16xbf16, #tpu.memory_space<vmem>>, vector<32x16xbf16>,
    %c0_56 = arith.constant 0 : index
    %c0_57 = arith.constant 0 : index
    %c0_58 = arith.constant 0 : index
    %c0_59 = arith.constant 0 : index
    %39 = vector.load %arg1[%c0_56, %c0_57, %c0_58, %c0_59] : memref<1x16x16x16xf32, #tpu.memory_space<vmem>>, vector<1x1x16x16xf32>
    %40 = vector.shape_cast %39 : vector<1x1x16x16xf32> to vector<16x16xf32>
    %41 = arith.truncf %40 : vector<16x16xf32> to vector<16x16xbf16>
    %c32 = arith.constant 32 : index
    %c0_60 = arith.constant 0 : index
    %42 = vector.load %arg7[%c32, %c0_60] : memref<448x16xbf16, #tpu.memory_space<vmem>>, vector<16x16xbf16>
    tpu.vector_store %arg7[%c32, %c0_60], %41 {strides = array<i32>} : memref<448x16xbf16, #tpu.memory_space<vmem>>, vector<16x16xbf16>,
    %c0_61 = arith.constant 0 : index
    %c1 = arith.constant 1 : index
    %c0_62 = arith.constant 0 : index
    %c0_63 = arith.constant 0 : index
    %43 = vector.load %arg1[%c0_61, %c1, %c0_62, %c0_63] : memref<1x16x16x16xf32, #tpu.memory_space<vmem>>, vector<1x1x16x16xf32>
    %44 = vector.shape_cast %43 : vector<1x1x16x16xf32> to vector<16x16xf32>
    %45 = arith.truncf %44 : vector<16x16xf32> to vector<16x16xbf16>
    %c56 = arith.constant 56 : index
    %c0_64 = arith.constant 0 : index
    %46 = vector.load %arg7[%c56, %c0_64] : memref<448x16xbf16, #tpu.memory_space<vmem>>, vector<16x16xbf16>
    tpu.vector_store %arg7[%c56, %c0_64], %45 {strides = array<i32>} : memref<448x16xbf16, #tpu.memory_space<vmem>>, vector<16x16xbf16>,
    %c0_65 = arith.constant 0 : index
    %c2 = arith.constant 2 : index
    %c0_66 = arith.constant 0 : index
    %c0_67 = arith.constant 0 : index
    %47 = vector.load %arg1[%c0_65, %c2, %c0_66, %c0_67] : memref<1x16x16x16xf32, #tpu.memory_space<vmem>>, vector<1x1x16x16xf32>
    %48 = vector.shape_cast %47 : vector<1x1x16x16xf32> to vector<16x16xf32>
    %49 = arith.truncf %48 : vector<16x16xf32> to vector<16x16xbf16>
    %c80 = arith.constant 80 : index
    %c0_68 = arith.constant 0 : index
    %50 = vector.load %arg7[%c80, %c0_68] : memref<448x16xbf16, #tpu.memory_space<vmem>>, vector<16x16xbf16>
    tpu.vector_store %arg7[%c80, %c0_68], %49 {strides = array<i32>} : memref<448x16xbf16, #tpu.memory_space<vmem>>, vector<16x16xbf16>,
    %c0_69 = arith.constant 0 : index
    %c3 = arith.constant 3 : index
    %c0_70 = arith.constant 0 : index
    %c0_71 = arith.constant 0 : index
    %51 = vector.load %arg1[%c0_69, %c3, %c0_70, %c0_71] : memref<1x16x16x16xf32, #tpu.memory_space<vmem>>, vector<1x1x16x16xf32>
    %52 = vector.shape_cast %51 : vector<1x1x16x16xf32> to vector<16x16xf32>
    %53 = arith.truncf %52 : vector<16x16xf32> to vector<16x16xbf16>
    %c104 = arith.constant 104 : index
    %c0_72 = arith.constant 0 : index
    %54 = vector.load %arg7[%c104, %c0_72] : memref<448x16xbf16, #tpu.memory_space<vmem>>, vector<16x16xbf16>
    tpu.vector_store %arg7[%c104, %c0_72], %53 {strides = array<i32>} : memref<448x16xbf16, #tpu.memory_space<vmem>>, vector<16x16xbf16>,
    %c0_73 = arith.constant 0 : index
    %c4 = arith.constant 4 : index
    %c0_74 = arith.constant 0 : index
    %c0_75 = arith.constant 0 : index
    %55 = vector.load %arg1[%c0_73, %c4, %c0_74, %c0_75] : memref<1x16x16x16xf32, #tpu.memory_space<vmem>>, vector<1x1x16x16xf32>
    %56 = vector.shape_cast %55 : vector<1x1x16x16xf32> to vector<16x16xf32>
    %57 = arith.truncf %56 : vector<16x16xf32> to vector<16x16xbf16>
    %c128 = arith.constant 128 : index
    %c0_76 = arith.constant 0 : index
    %58 = vector.load %arg7[%c128, %c0_76] : memref<448x16xbf16, #tpu.memory_space<vmem>>, vector<16x16xbf16>
    tpu.vector_store %arg7[%c128, %c0_76], %57 {strides = array<i32>} : memref<448x16xbf16, #tpu.memory_space<vmem>>, vector<16x16xbf16>,
    %c0_77 = arith.constant 0 : index
    %c5 = arith.constant 5 : index
    %c0_78 = arith.constant 0 : index
    %c0_79 = arith.constant 0 : index
    %59 = vector.load %arg1[%c0_77, %c5, %c0_78, %c0_79] : memref<1x16x16x16xf32, #tpu.memory_space<vmem>>, vector<1x1x16x16xf32>
    %60 = vector.shape_cast %59 : vector<1x1x16x16xf32> to vector<16x16xf32>
    %61 = arith.truncf %60 : vector<16x16xf32> to vector<16x16xbf16>
    %c152 = arith.constant 152 : index
    %c0_80 = arith.constant 0 : index
    %62 = vector.load %arg7[%c152, %c0_80] : memref<448x16xbf16, #tpu.memory_space<vmem>>, vector<16x16xbf16>
    tpu.vector_store %arg7[%c152, %c0_80], %61 {strides = array<i32>} : memref<448x16xbf16, #tpu.memory_space<vmem>>, vector<16x16xbf16>,
    %c0_81 = arith.constant 0 : index
    %c6 = arith.constant 6 : index
    %c0_82 = arith.constant 0 : index
    %c0_83 = arith.constant 0 : index
    %63 = vector.load %arg1[%c0_81, %c6, %c0_82, %c0_83] : memref<1x16x16x16xf32, #tpu.memory_space<vmem>>, vector<1x1x16x16xf32>
    %64 = vector.shape_cast %63 : vector<1x1x16x16xf32> to vector<16x16xf32>
    %65 = arith.truncf %64 : vector<16x16xf32> to vector<16x16xbf16>
    %c176 = arith.constant 176 : index
    %c0_84 = arith.constant 0 : index
    %66 = vector.load %arg7[%c176, %c0_84] : memref<448x16xbf16, #tpu.memory_space<vmem>>, vector<16x16xbf16>
    tpu.vector_store %arg7[%c176, %c0_84], %65 {strides = array<i32>} : memref<448x16xbf16, #tpu.memory_space<vmem>>, vector<16x16xbf16>,
    %c0_85 = arith.constant 0 : index
    %c7 = arith.constant 7 : index
    %c0_86 = arith.constant 0 : index
    %c0_87 = arith.constant 0 : index
    %67 = vector.load %arg1[%c0_85, %c7, %c0_86, %c0_87] : memref<1x16x16x16xf32, #tpu.memory_space<vmem>>, vector<1x1x16x16xf32>
    %68 = vector.shape_cast %67 : vector<1x1x16x16xf32> to vector<16x16xf32>
    %69 = arith.truncf %68 : vector<16x16xf32> to vector<16x16xbf16>
    %c200 = arith.constant 200 : index
    %c0_88 = arith.constant 0 : index
    %70 = vector.load %arg7[%c200, %c0_88] : memref<448x16xbf16, #tpu.memory_space<vmem>>, vector<16x16xbf16>
    tpu.vector_store %arg7[%c200, %c0_88], %69 {strides = array<i32>} : memref<448x16xbf16, #tpu.memory_space<vmem>>, vector<16x16xbf16>,
    %c0_89 = arith.constant 0 : index
    %c8 = arith.constant 8 : index
    %c0_90 = arith.constant 0 : index
    %c0_91 = arith.constant 0 : index
    %71 = vector.load %arg1[%c0_89, %c8, %c0_90, %c0_91] : memref<1x16x16x16xf32, #tpu.memory_space<vmem>>, vector<1x1x16x16xf32>
    %72 = vector.shape_cast %71 : vector<1x1x16x16xf32> to vector<16x16xf32>
    %73 = arith.truncf %72 : vector<16x16xf32> to vector<16x16xbf16>
    %c224 = arith.constant 224 : index
    %c0_92 = arith.constant 0 : index
    %74 = vector.load %arg7[%c224, %c0_92] : memref<448x16xbf16, #tpu.memory_space<vmem>>, vector<16x16xbf16>
    tpu.vector_store %arg7[%c224, %c0_92], %73 {strides = array<i32>} : memref<448x16xbf16, #tpu.memory_space<vmem>>, vector<16x16xbf16>,
    %c0_93 = arith.constant 0 : index
    %c9 = arith.constant 9 : index
    %c0_94 = arith.constant 0 : index
    %c0_95 = arith.constant 0 : index
    %75 = vector.load %arg1[%c0_93, %c9, %c0_94, %c0_95] : memref<1x16x16x16xf32, #tpu.memory_space<vmem>>, vector<1x1x16x16xf32>
    %76 = vector.shape_cast %75 : vector<1x1x16x16xf32> to vector<16x16xf32>
    %77 = arith.truncf %76 : vector<16x16xf32> to vector<16x16xbf16>
    %c248 = arith.constant 248 : index
    %c0_96 = arith.constant 0 : index
    %78 = vector.load %arg7[%c248, %c0_96] : memref<448x16xbf16, #tpu.memory_space<vmem>>, vector<16x16xbf16>
    tpu.vector_store %arg7[%c248, %c0_96], %77 {strides = array<i32>} : memref<448x16xbf16, #tpu.memory_space<vmem>>, vector<16x16xbf16>,
    %c0_97 = arith.constant 0 : index
    %c10 = arith.constant 10 : index
    %c0_98 = arith.constant 0 : index
    %c0_99 = arith.constant 0 : index
    %79 = vector.load %arg1[%c0_97, %c10, %c0_98, %c0_99] : memref<1x16x16x16xf32, #tpu.memory_space<vmem>>, vector<1x1x16x16xf32>
    %80 = vector.shape_cast %79 : vector<1x1x16x16xf32> to vector<16x16xf32>
    %81 = arith.truncf %80 : vector<16x16xf32> to vector<16x16xbf16>
    %c272 = arith.constant 272 : index
    %c0_100 = arith.constant 0 : index
    %82 = vector.load %arg7[%c272, %c0_100] : memref<448x16xbf16, #tpu.memory_space<vmem>>, vector<16x16xbf16>
    tpu.vector_store %arg7[%c272, %c0_100], %81 {strides = array<i32>} : memref<448x16xbf16, #tpu.memory_space<vmem>>, vector<16x16xbf16>,
    %c0_101 = arith.constant 0 : index
    %c11 = arith.constant 11 : index
    %c0_102 = arith.constant 0 : index
    %c0_103 = arith.constant 0 : index
    %83 = vector.load %arg1[%c0_101, %c11, %c0_102, %c0_103] : memref<1x16x16x16xf32, #tpu.memory_space<vmem>>, vector<1x1x16x16xf32>
    %84 = vector.shape_cast %83 : vector<1x1x16x16xf32> to vector<16x16xf32>
    %85 = arith.truncf %84 : vector<16x16xf32> to vector<16x16xbf16>
    %c296 = arith.constant 296 : index
    %c0_104 = arith.constant 0 : index
    %86 = vector.load %arg7[%c296, %c0_104] : memref<448x16xbf16, #tpu.memory_space<vmem>>, vector<16x16xbf16>
    tpu.vector_store %arg7[%c296, %c0_104], %85 {strides = array<i32>} : memref<448x16xbf16, #tpu.memory_space<vmem>>, vector<16x16xbf16>,
    %c0_105 = arith.constant 0 : index
    %c12 = arith.constant 12 : index
    %c0_106 = arith.constant 0 : index
    %c0_107 = arith.constant 0 : index
    %87 = vector.load %arg1[%c0_105, %c12, %c0_106, %c0_107] : memref<1x16x16x16xf32, #tpu.memory_space<vmem>>, vector<1x1x16x16xf32>
    %88 = vector.shape_cast %87 : vector<1x1x16x16xf32> to vector<16x16xf32>
    %89 = arith.truncf %88 : vector<16x16xf32> to vector<16x16xbf16>
    %c320 = arith.constant 320 : index
    %c0_108 = arith.constant 0 : index
    %90 = vector.load %arg7[%c320, %c0_108] : memref<448x16xbf16, #tpu.memory_space<vmem>>, vector<16x16xbf16>
    tpu.vector_store %arg7[%c320, %c0_108], %89 {strides = array<i32>} : memref<448x16xbf16, #tpu.memory_space<vmem>>, vector<16x16xbf16>,
    %c0_109 = arith.constant 0 : index
    %c13 = arith.constant 13 : index
    %c0_110 = arith.constant 0 : index
    %c0_111 = arith.constant 0 : index
    %91 = vector.load %arg1[%c0_109, %c13, %c0_110, %c0_111] : memref<1x16x16x16xf32, #tpu.memory_space<vmem>>, vector<1x1x16x16xf32>
    %92 = vector.shape_cast %91 : vector<1x1x16x16xf32> to vector<16x16xf32>
    %93 = arith.truncf %92 : vector<16x16xf32> to vector<16x16xbf16>
    %c344 = arith.constant 344 : index
    %c0_112 = arith.constant 0 : index
    %94 = vector.load %arg7[%c344, %c0_112] : memref<448x16xbf16, #tpu.memory_space<vmem>>, vector<16x16xbf16>
    tpu.vector_store %arg7[%c344, %c0_112], %93 {strides = array<i32>} : memref<448x16xbf16, #tpu.memory_space<vmem>>, vector<16x16xbf16>,
    %c0_113 = arith.constant 0 : index
    %c14 = arith.constant 14 : index
    %c0_114 = arith.constant 0 : index
    %c0_115 = arith.constant 0 : index
    %95 = vector.load %arg1[%c0_113, %c14, %c0_114, %c0_115] : memref<1x16x16x16xf32, #tpu.memory_space<vmem>>, vector<1x1x16x16xf32>
    %96 = vector.shape_cast %95 : vector<1x1x16x16xf32> to vector<16x16xf32>
    %97 = arith.truncf %96 : vector<16x16xf32> to vector<16x16xbf16>
    %c368 = arith.constant 368 : index
    %c0_116 = arith.constant 0 : index
    %98 = vector.load %arg7[%c368, %c0_116] : memref<448x16xbf16, #tpu.memory_space<vmem>>, vector<16x16xbf16>
    tpu.vector_store %arg7[%c368, %c0_116], %97 {strides = array<i32>} : memref<448x16xbf16, #tpu.memory_space<vmem>>, vector<16x16xbf16>,
    %c0_117 = arith.constant 0 : index
    %c15 = arith.constant 15 : index
    %c0_118 = arith.constant 0 : index
    %c0_119 = arith.constant 0 : index
    %99 = vector.load %arg1[%c0_117, %c15, %c0_118, %c0_119] : memref<1x16x16x16xf32, #tpu.memory_space<vmem>>, vector<1x1x16x16xf32>
    %100 = vector.shape_cast %99 : vector<1x1x16x16xf32> to vector<16x16xf32>
    %101 = arith.truncf %100 : vector<16x16xf32> to vector<16x16xbf16>
    %c392 = arith.constant 392 : index
    %c0_120 = arith.constant 0 : index
    %102 = vector.load %arg7[%c392, %c0_120] : memref<448x16xbf16, #tpu.memory_space<vmem>>, vector<16x16xbf16>
    tpu.vector_store %arg7[%c392, %c0_120], %101 {strides = array<i32>} : memref<448x16xbf16, #tpu.memory_space<vmem>>, vector<16x16xbf16>,
    %cst_121 = arith.constant 0.000000e+00 : f32
    %103 = vector.broadcast %cst_121 : f32 to vector<192x128xf32>
    %c7_122 = arith.constant 7 : index
    %c0_123 = arith.constant 0 : index
    %104 = vector.load %arg7[%c7_122, %c0_123] : memref<448x16xbf16, #tpu.memory_space<vmem>>, vector<192x16xbf16>
    %c0_124 = arith.constant 0 : index
    %c0_125 = arith.constant 0 : index
    %105 = vector.load %arg2[%c0_124, %c0_125] : memref<144x128xbf16, #tpu.memory_space<vmem>>, vector<16x128xbf16>
    %cst_126 = arith.constant dense<0.000000e+00> : vector<192x128xf32>
    %106 = tpu.matmul %104, %105, %cst_126 {dimension_numbers = #tpu.dot_dimension_numbers<[1], [0], [0], [1], [0, 0, 1, 1], [], []>} : vector<192x16xbf16>, vector<16x128xbf16>, vector<192x128xf32> -> vector<192x128xf32>
    %107 = arith.addf %103, %106 : vector<192x128xf32>
    %c8_127 = arith.constant 8 : index
    %c0_128 = arith.constant 0 : index
    %108 = vector.load %arg7[%c8_127, %c0_128] : memref<448x16xbf16, #tpu.memory_space<vmem>>, vector<192x16xbf16>
    %c16 = arith.constant 16 : index
    %c0_129 = arith.constant 0 : index
    %109 = vector.load %arg2[%c16, %c0_129] : memref<144x128xbf16, #tpu.memory_space<vmem>>, vector<16x128xbf16>
    %cst_130 = arith.constant dense<0.000000e+00> : vector<192x128xf32>
    %110 = tpu.matmul %108, %109, %cst_130 {dimension_numbers = #tpu.dot_dimension_numbers<[1], [0], [0], [1], [0, 0, 1, 1], [], []>} : vector<192x16xbf16>, vector<16x128xbf16>, vector<192x128xf32> -> vector<192x128xf32>
    %111 = arith.addf %107, %110 : vector<192x128xf32>
    %c9_131 = arith.constant 9 : index
    %c0_132 = arith.constant 0 : index
    %112 = vector.load %arg7[%c9_131, %c0_132] : memref<448x16xbf16, #tpu.memory_space<vmem>>, vector<192x16xbf16>
    %c32_133 = arith.constant 32 : index
    %c0_134 = arith.constant 0 : index
    %113 = vector.load %arg2[%c32_133, %c0_134] : memref<144x128xbf16, #tpu.memory_space<vmem>>, vector<16x128xbf16>
    %cst_135 = arith.constant dense<0.000000e+00> : vector<192x128xf32>
    %114 = tpu.matmul %112, %113, %cst_135 {dimension_numbers = #tpu.dot_dimension_numbers<[1], [0], [0], [1], [0, 0, 1, 1], [], []>} : vector<192x16xbf16>, vector<16x128xbf16>, vector<192x128xf32> -> vector<192x128xf32>
    %115 = arith.addf %111, %114 : vector<192x128xf32>
    %c31 = arith.constant 31 : index
    %c0_136 = arith.constant 0 : index
    %116 = vector.load %arg7[%c31, %c0_136] : memref<448x16xbf16, #tpu.memory_space<vmem>>, vector<192x16xbf16>
    %c48_137 = arith.constant 48 : index
    %c0_138 = arith.constant 0 : index
    %117 = vector.load %arg2[%c48_137, %c0_138] : memref<144x128xbf16, #tpu.memory_space<vmem>>, vector<16x128xbf16>
    %cst_139 = arith.constant dense<0.000000e+00> : vector<192x128xf32>
    %118 = tpu.matmul %116, %117, %cst_139 {dimension_numbers = #tpu.dot_dimension_numbers<[1], [0], [0], [1], [0, 0, 1, 1], [], []>} : vector<192x16xbf16>, vector<16x128xbf16>, vector<192x128xf32> -> vector<192x128xf32>
    %119 = arith.addf %115, %118 : vector<192x128xf32>
    %c32_140 = arith.constant 32 : index
    %c0_141 = arith.constant 0 : index
    %120 = vector.load %arg7[%c32_140, %c0_141] : memref<448x16xbf16, #tpu.memory_space<vmem>>, vector<192x16xbf16>
    %c64 = arith.constant 64 : index
    %c0_142 = arith.constant 0 : index
    %121 = vector.load %arg2[%c64, %c0_142] : memref<144x128xbf16, #tpu.memory_space<vmem>>, vector<16x128xbf16>
    %cst_143 = arith.constant dense<0.000000e+00> : vector<192x128xf32>
    %122 = tpu.matmul %120, %121, %cst_143 {dimension_numbers = #tpu.dot_dimension_numbers<[1], [0], [0], [1], [0, 0, 1, 1], [], []>} : vector<192x16xbf16>, vector<16x128xbf16>, vector<192x128xf32> -> vector<192x128xf32>
    %123 = arith.addf %119, %122 : vector<192x128xf32>
    %c33 = arith.constant 33 : index
    %c0_144 = arith.constant 0 : index
    %124 = vector.load %arg7[%c33, %c0_144] : memref<448x16xbf16, #tpu.memory_space<vmem>>, vector<192x16xbf16>
    %c80_145 = arith.constant 80 : index
    %c0_146 = arith.constant 0 : index
    %125 = vector.load %arg2[%c80_145, %c0_146] : memref<144x128xbf16, #tpu.memory_space<vmem>>, vector<16x128xbf16>
    %cst_147 = arith.constant dense<0.000000e+00> : vector<192x128xf32>
    %126 = tpu.matmul %124, %125, %cst_147 {dimension_numbers = #tpu.dot_dimension_numbers<[1], [0], [0], [1], [0, 0, 1, 1], [], []>} : vector<192x16xbf16>, vector<16x128xbf16>, vector<192x128xf32> -> vector<192x128xf32>
    %127 = arith.addf %123, %126 : vector<192x128xf32>
    %c55 = arith.constant 55 : index
    %c0_148 = arith.constant 0 : index
    %128 = vector.load %arg7[%c55, %c0_148] : memref<448x16xbf16, #tpu.memory_space<vmem>>, vector<192x16xbf16>
    %c96_149 = arith.constant 96 : index
    %c0_150 = arith.constant 0 : index
    %129 = vector.load %arg2[%c96_149, %c0_150] : memref<144x128xbf16, #tpu.memory_space<vmem>>, vector<16x128xbf16>
    %cst_151 = arith.constant dense<0.000000e+00> : vector<192x128xf32>
    %130 = tpu.matmul %128, %129, %cst_151 {dimension_numbers = #tpu.dot_dimension_numbers<[1], [0], [0], [1], [0, 0, 1, 1], [], []>} : vector<192x16xbf16>, vector<16x128xbf16>, vector<192x128xf32> -> vector<192x128xf32>
    %131 = arith.addf %127, %130 : vector<192x128xf32>
    %c56_152 = arith.constant 56 : index
    %c0_153 = arith.constant 0 : index
    %132 = vector.load %arg7[%c56_152, %c0_153] : memref<448x16xbf16, #tpu.memory_space<vmem>>, vector<192x16xbf16>
    %c112 = arith.constant 112 : index
    %c0_154 = arith.constant 0 : index
    %133 = vector.load %arg2[%c112, %c0_154] : memref<144x128xbf16, #tpu.memory_space<vmem>>, vector<16x128xbf16>
    %cst_155 = arith.constant dense<0.000000e+00> : vector<192x128xf32>
    %134 = tpu.matmul %132, %133, %cst_155 {dimension_numbers = #tpu.dot_dimension_numbers<[1], [0], [0], [1], [0, 0, 1, 1], [], []>} : vector<192x16xbf16>, vector<16x128xbf16>, vector<192x128xf32> -> vector<192x128xf32>
    %135 = arith.addf %131, %134 : vector<192x128xf32>
    %c57 = arith.constant 57 : index
    %c0_156 = arith.constant 0 : index
    %136 = vector.load %arg7[%c57, %c0_156] : memref<448x16xbf16, #tpu.memory_space<vmem>>, vector<192x16xbf16>
    %c128_157 = arith.constant 128 : index
    %c0_158 = arith.constant 0 : index
    %137 = vector.load %arg2[%c128_157, %c0_158] : memref<144x128xbf16, #tpu.memory_space<vmem>>, vector<16x128xbf16>
    %cst_159 = arith.constant dense<0.000000e+00> : vector<192x128xf32>
    %138 = tpu.matmul %136, %137, %cst_159 {dimension_numbers = #tpu.dot_dimension_numbers<[1], [0], [0], [1], [0, 0, 1, 1], [], []>} : vector<192x16xbf16>, vector<16x128xbf16>, vector<192x128xf32> -> vector<192x128xf32>
    %139 = arith.addf %135, %138 : vector<192x128xf32>
    %c0_160 = arith.constant 0 : index
    %c0_161 = arith.constant 0 : index
    %140 = vector.load %arg4[%c0_160, %c0_161] : memref<1x128xf32, #tpu.memory_space<vmem>>, vector<1x128xf32>
    %141 = vector.broadcast %140 : vector<1x128xf32> to vector<192x128xf32>
    %142 = arith.addf %139, %141 : vector<192x128xf32>
    %cst_162 = arith.constant 0.000000e+00 : f32
    %143 = vector.broadcast %cst_162 : f32 to vector<192x128xf32>
    %144 = arith.maximumf %142, %143 : vector<192x128xf32>
    %145 = vector.extract_strided_slice %144 {offsets = [0, 0], sizes = [16, 16], strides = [1, 1]} : vector<192x128xf32> to vector<16x16xf32>
    %146 = arith.truncf %145 : vector<16x16xf32> to vector<16x16xbf16>
    %c32_163 = arith.constant 32 : index
    %c0_164 = arith.constant 0 : index
    %147 = vector.load %arg8[%c32_163, %c0_164] : memref<448x16xbf16, #tpu.memory_space<vmem>>, vector<16x16xbf16>
    tpu.vector_store %arg8[%c32_163, %c0_164], %146 {strides = array<i32>} : memref<448x16xbf16, #tpu.memory_space<vmem>>, vector<16x16xbf16>,
    %148 = vector.extract_strided_slice %144 {offsets = [24, 0], sizes = [16, 16], strides = [1, 1]} : vector<192x128xf32> to vector<16x16xf32>
    %149 = arith.truncf %148 : vector<16x16xf32> to vector<16x16xbf16>
    %c56_165 = arith.constant 56 : index
    %c0_166 = arith.constant 0 : index
    %150 = vector.load %arg8[%c56_165, %c0_166] : memref<448x16xbf16, #tpu.memory_space<vmem>>, vector<16x16xbf16>
    tpu.vector_store %arg8[%c56_165, %c0_166], %149 {strides = array<i32>} : memref<448x16xbf16, #tpu.memory_space<vmem>>, vector<16x16xbf16>,
    %151 = vector.extract_strided_slice %144 {offsets = [48, 0], sizes = [16, 16], strides = [1, 1]} : vector<192x128xf32> to vector<16x16xf32>
    %152 = arith.truncf %151 : vector<16x16xf32> to vector<16x16xbf16>
    %c80_167 = arith.constant 80 : index
    %c0_168 = arith.constant 0 : index
    %153 = vector.load %arg8[%c80_167, %c0_168] : memref<448x16xbf16, #tpu.memory_space<vmem>>, vector<16x16xbf16>
    tpu.vector_store %arg8[%c80_167, %c0_168], %152 {strides = array<i32>} : memref<448x16xbf16, #tpu.memory_space<vmem>>, vector<16x16xbf16>,
    %154 = vector.extract_strided_slice %144 {offsets = [72, 0], sizes = [16, 16], strides = [1, 1]} : vector<192x128xf32> to vector<16x16xf32>
    %155 = arith.truncf %154 : vector<16x16xf32> to vector<16x16xbf16>
    %c104_169 = arith.constant 104 : index
    %c0_170 = arith.constant 0 : index
    %156 = vector.load %arg8[%c104_169, %c0_170] : memref<448x16xbf16, #tpu.memory_space<vmem>>, vector<16x16xbf16>
    tpu.vector_store %arg8[%c104_169, %c0_170], %155 {strides = array<i32>} : memref<448x16xbf16, #tpu.memory_space<vmem>>, vector<16x16xbf16>,
    %157 = vector.extract_strided_slice %144 {offsets = [96, 0], sizes = [16, 16], strides = [1, 1]} : vector<192x128xf32> to vector<16x16xf32>
    %158 = arith.truncf %157 : vector<16x16xf32> to vector<16x16xbf16>
    %c128_171 = arith.constant 128 : index
    %c0_172 = arith.constant 0 : index
    %159 = vector.load %arg8[%c128_171, %c0_172] : memref<448x16xbf16, #tpu.memory_space<vmem>>, vector<16x16xbf16>
    tpu.vector_store %arg8[%c128_171, %c0_172], %158 {strides = array<i32>} : memref<448x16xbf16, #tpu.memory_space<vmem>>, vector<16x16xbf16>,
    %160 = vector.extract_strided_slice %144 {offsets = [120, 0], sizes = [16, 16], strides = [1, 1]} : vector<192x128xf32> to vector<16x16xf32>
    %161 = arith.truncf %160 : vector<16x16xf32> to vector<16x16xbf16>
    %c152_173 = arith.constant 152 : index
    %c0_174 = arith.constant 0 : index
    %162 = vector.load %arg8[%c152_173, %c0_174] : memref<448x16xbf16, #tpu.memory_space<vmem>>, vector<16x16xbf16>
    tpu.vector_store %arg8[%c152_173, %c0_174], %161 {strides = array<i32>} : memref<448x16xbf16, #tpu.memory_space<vmem>>, vector<16x16xbf16>,
    %163 = vector.extract_strided_slice %144 {offsets = [144, 0], sizes = [16, 16], strides = [1, 1]} : vector<192x128xf32> to vector<16x16xf32>
    %164 = arith.truncf %163 : vector<16x16xf32> to vector<16x16xbf16>
    %c176_175 = arith.constant 176 : index
    %c0_176 = arith.constant 0 : index
    %165 = vector.load %arg8[%c176_175, %c0_176] : memref<448x16xbf16, #tpu.memory_space<vmem>>, vector<16x16xbf16>
    tpu.vector_store %arg8[%c176_175, %c0_176], %164 {strides = array<i32>} : memref<448x16xbf16, #tpu.memory_space<vmem>>, vector<16x16xbf16>,
    %166 = vector.extract_strided_slice %144 {offsets = [168, 0], sizes = [16, 16], strides = [1, 1]} : vector<192x128xf32> to vector<16x16xf32>
    %167 = arith.truncf %166 : vector<16x16xf32> to vector<16x16xbf16>
    %c200_177 = arith.constant 200 : index
    %c0_178 = arith.constant 0 : index
    %168 = vector.load %arg8[%c200_177, %c0_178] : memref<448x16xbf16, #tpu.memory_space<vmem>>, vector<16x16xbf16>
    tpu.vector_store %arg8[%c200_177, %c0_178], %167 {strides = array<i32>} : memref<448x16xbf16, #tpu.memory_space<vmem>>, vector<16x16xbf16>,
    %cst_179 = arith.constant 0.000000e+00 : f32
    %169 = vector.broadcast %cst_179 : f32 to vector<192x128xf32>
    %c199 = arith.constant 199 : index
    %c0_180 = arith.constant 0 : index
    %170 = vector.load %arg7[%c199, %c0_180] : memref<448x16xbf16, #tpu.memory_space<vmem>>, vector<192x16xbf16>
    %c0_181 = arith.constant 0 : index
    %c0_182 = arith.constant 0 : index
    %171 = vector.load %arg2[%c0_181, %c0_182] : memref<144x128xbf16, #tpu.memory_space<vmem>>, vector<16x128xbf16>
    %cst_183 = arith.constant dense<0.000000e+00> : vector<192x128xf32>
    %172 = tpu.matmul %170, %171, %cst_183 {dimension_numbers = #tpu.dot_dimension_numbers<[1], [0], [0], [1], [0, 0, 1, 1], [], []>} : vector<192x16xbf16>, vector<16x128xbf16>, vector<192x128xf32> -> vector<192x128xf32>
    %173 = arith.addf %169, %172 : vector<192x128xf32>
    %c200_184 = arith.constant 200 : index
    %c0_185 = arith.constant 0 : index
    %174 = vector.load %arg7[%c200_184, %c0_185] : memref<448x16xbf16, #tpu.memory_space<vmem>>, vector<192x16xbf16>
    %c16_186 = arith.constant 16 : index
    %c0_187 = arith.constant 0 : index
    %175 = vector.load %arg2[%c16_186, %c0_187] : memref<144x128xbf16, #tpu.memory_space<vmem>>, vector<16x128xbf16>
    %cst_188 = arith.constant dense<0.000000e+00> : vector<192x128xf32>
    %176 = tpu.matmul %174, %175, %cst_188 {dimension_numbers = #tpu.dot_dimension_numbers<[1], [0], [0], [1], [0, 0, 1, 1], [], []>} : vector<192x16xbf16>, vector<16x128xbf16>, vector<192x128xf32> -> vector<192x128xf32>
    %177 = arith.addf %173, %176 : vector<192x128xf32>
    %c201 = arith.constant 201 : index
    %c0_189 = arith.constant 0 : index
    %178 = vector.load %arg7[%c201, %c0_189] : memref<448x16xbf16, #tpu.memory_space<vmem>>, vector<192x16xbf16>
    %c32_190 = arith.constant 32 : index
    %c0_191 = arith.constant 0 : index
    %179 = vector.load %arg2[%c32_190, %c0_191] : memref<144x128xbf16, #tpu.memory_space<vmem>>, vector<16x128xbf16>
    %cst_192 = arith.constant dense<0.000000e+00> : vector<192x128xf32>
    %180 = tpu.matmul %178, %179, %cst_192 {dimension_numbers = #tpu.dot_dimension_numbers<[1], [0], [0], [1], [0, 0, 1, 1], [], []>} : vector<192x16xbf16>, vector<16x128xbf16>, vector<192x128xf32> -> vector<192x128xf32>
    %181 = arith.addf %177, %180 : vector<192x128xf32>
    %c223 = arith.constant 223 : index
    %c0_193 = arith.constant 0 : index
    %182 = vector.load %arg7[%c223, %c0_193] : memref<448x16xbf16, #tpu.memory_space<vmem>>, vector<192x16xbf16>
    %c48_194 = arith.constant 48 : index
    %c0_195 = arith.constant 0 : index
    %183 = vector.load %arg2[%c48_194, %c0_195] : memref<144x128xbf16, #tpu.memory_space<vmem>>, vector<16x128xbf16>
    %cst_196 = arith.constant dense<0.000000e+00> : vector<192x128xf32>
    %184 = tpu.matmul %182, %183, %cst_196 {dimension_numbers = #tpu.dot_dimension_numbers<[1], [0], [0], [1], [0, 0, 1, 1], [], []>} : vector<192x16xbf16>, vector<16x128xbf16>, vector<192x128xf32> -> vector<192x128xf32>
    %185 = arith.addf %181, %184 : vector<192x128xf32>
    %c224_197 = arith.constant 224 : index
    %c0_198 = arith.constant 0 : index
    %186 = vector.load %arg7[%c224_197, %c0_198] : memref<448x16xbf16, #tpu.memory_space<vmem>>, vector<192x16xbf16>
    %c64_199 = arith.constant 64 : index
    %c0_200 = arith.constant 0 : index
    %187 = vector.load %arg2[%c64_199, %c0_200] : memref<144x128xbf16, #tpu.memory_space<vmem>>, vector<16x128xbf16>
    %cst_201 = arith.constant dense<0.000000e+00> : vector<192x128xf32>
    %188 = tpu.matmul %186, %187, %cst_201 {dimension_numbers = #tpu.dot_dimension_numbers<[1], [0], [0], [1], [0, 0, 1, 1], [], []>} : vector<192x16xbf16>, vector<16x128xbf16>, vector<192x128xf32> -> vector<192x128xf32>
    %189 = arith.addf %185, %188 : vector<192x128xf32>
    %c225 = arith.constant 225 : index
    %c0_202 = arith.constant 0 : index
    %190 = vector.load %arg7[%c225, %c0_202] : memref<448x16xbf16, #tpu.memory_space<vmem>>, vector<192x16xbf16>
    %c80_203 = arith.constant 80 : index
    %c0_204 = arith.constant 0 : index
    %191 = vector.load %arg2[%c80_203, %c0_204] : memref<144x128xbf16, #tpu.memory_space<vmem>>, vector<16x128xbf16>
    %cst_205 = arith.constant dense<0.000000e+00> : vector<192x128xf32>
    %192 = tpu.matmul %190, %191, %cst_205 {dimension_numbers = #tpu.dot_dimension_numbers<[1], [0], [0], [1], [0, 0, 1, 1], [], []>} : vector<192x16xbf16>, vector<16x128xbf16>, vector<192x128xf32> -> vector<192x128xf32>
    %193 = arith.addf %189, %192 : vector<192x128xf32>
    %c247 = arith.constant 247 : index
    %c0_206 = arith.constant 0 : index
    %194 = vector.load %arg7[%c247, %c0_206] : memref<448x16xbf16, #tpu.memory_space<vmem>>, vector<192x16xbf16>
    %c96_207 = arith.constant 96 : index
    %c0_208 = arith.constant 0 : index
    %195 = vector.load %arg2[%c96_207, %c0_208] : memref<144x128xbf16, #tpu.memory_space<vmem>>, vector<16x128xbf16>
    %cst_209 = arith.constant dense<0.000000e+00> : vector<192x128xf32>
    %196 = tpu.matmul %194, %195, %cst_209 {dimension_numbers = #tpu.dot_dimension_numbers<[1], [0], [0], [1], [0, 0, 1, 1], [], []>} : vector<192x16xbf16>, vector<16x128xbf16>, vector<192x128xf32> -> vector<192x128xf32>
    %197 = arith.addf %193, %196 : vector<192x128xf32>
    %c248_210 = arith.constant 248 : index
    %c0_211 = arith.constant 0 : index
    %198 = vector.load %arg7[%c248_210, %c0_211] : memref<448x16xbf16, #tpu.memory_space<vmem>>, vector<192x16xbf16>
    %c112_212 = arith.constant 112 : index
    %c0_213 = arith.constant 0 : index
    %199 = vector.load %arg2[%c112_212, %c0_213] : memref<144x128xbf16, #tpu.memory_space<vmem>>, vector<16x128xbf16>
    %cst_214 = arith.constant dense<0.000000e+00> : vector<192x128xf32>
    %200 = tpu.matmul %198, %199, %cst_214 {dimension_numbers = #tpu.dot_dimension_numbers<[1], [0], [0], [1], [0, 0, 1, 1], [], []>} : vector<192x16xbf16>, vector<16x128xbf16>, vector<192x128xf32> -> vector<192x128xf32>
    %201 = arith.addf %197, %200 : vector<192x128xf32>
    %c249 = arith.constant 249 : index
    %c0_215 = arith.constant 0 : index
    %202 = vector.load %arg7[%c249, %c0_215] : memref<448x16xbf16, #tpu.memory_space<vmem>>, vector<192x16xbf16>
    %c128_216 = arith.constant 128 : index
    %c0_217 = arith.constant 0 : index
    %203 = vector.load %arg2[%c128_216, %c0_217] : memref<144x128xbf16, #tpu.memory_space<vmem>>, vector<16x128xbf16>
    %cst_218 = arith.constant dense<0.000000e+00> : vector<192x128xf32>
    %204 = tpu.matmul %202, %203, %cst_218 {dimension_numbers = #tpu.dot_dimension_numbers<[1], [0], [0], [1], [0, 0, 1, 1], [], []>} : vector<192x16xbf16>, vector<16x128xbf16>, vector<192x128xf32> -> vector<192x128xf32>
    %205 = arith.addf %201, %204 : vector<192x128xf32>
    %c0_219 = arith.constant 0 : index
    %c0_220 = arith.constant 0 : index
    %206 = vector.load %arg4[%c0_219, %c0_220] : memref<1x128xf32, #tpu.memory_space<vmem>>, vector<1x128xf32>
    %207 = vector.broadcast %206 : vector<1x128xf32> to vector<192x128xf32>
    %208 = arith.addf %205, %207 : vector<192x128xf32>
    %cst_221 = arith.constant 0.000000e+00 : f32
    %209 = vector.broadcast %cst_221 : f32 to vector<192x128xf32>
    %210 = arith.maximumf %208, %209 : vector<192x128xf32>
    %211 = vector.extract_strided_slice %210 {offsets = [0, 0], sizes = [16, 16], strides = [1, 1]} : vector<192x128xf32> to vector<16x16xf32>
    %212 = arith.truncf %211 : vector<16x16xf32> to vector<16x16xbf16>
    %c224_222 = arith.constant 224 : index
    %c0_223 = arith.constant 0 : index
    %213 = vector.load %arg8[%c224_222, %c0_223] : memref<448x16xbf16, #tpu.memory_space<vmem>>, vector<16x16xbf16>
    tpu.vector_store %arg8[%c224_222, %c0_223], %212 {strides = array<i32>} : memref<448x16xbf16, #tpu.memory_space<vmem>>, vector<16x16xbf16>,
    %214 = vector.extract_strided_slice %210 {offsets = [24, 0], sizes = [16, 16], strides = [1, 1]} : vector<192x128xf32> to vector<16x16xf32>
    %215 = arith.truncf %214 : vector<16x16xf32> to vector<16x16xbf16>
    %c248_224 = arith.constant 248 : index
    %c0_225 = arith.constant 0 : index
    %216 = vector.load %arg8[%c248_224, %c0_225] : memref<448x16xbf16, #tpu.memory_space<vmem>>, vector<16x16xbf16>
    tpu.vector_store %arg8[%c248_224, %c0_225], %215 {strides = array<i32>} : memref<448x16xbf16, #tpu.memory_space<vmem>>, vector<16x16xbf16>,
    %217 = vector.extract_strided_slice %210 {offsets = [48, 0], sizes = [16, 16], strides = [1, 1]} : vector<192x128xf32> to vector<16x16xf32>
    %218 = arith.truncf %217 : vector<16x16xf32> to vector<16x16xbf16>
    %c272_226 = arith.constant 272 : index
    %c0_227 = arith.constant 0 : index
    %219 = vector.load %arg8[%c272_226, %c0_227] : memref<448x16xbf16, #tpu.memory_space<vmem>>, vector<16x16xbf16>
    tpu.vector_store %arg8[%c272_226, %c0_227], %218 {strides = array<i32>} : memref<448x16xbf16, #tpu.memory_space<vmem>>, vector<16x16xbf16>,
    %220 = vector.extract_strided_slice %210 {offsets = [72, 0], sizes = [16, 16], strides = [1, 1]} : vector<192x128xf32> to vector<16x16xf32>
    %221 = arith.truncf %220 : vector<16x16xf32> to vector<16x16xbf16>
    %c296_228 = arith.constant 296 : index
    %c0_229 = arith.constant 0 : index
    %222 = vector.load %arg8[%c296_228, %c0_229] : memref<448x16xbf16, #tpu.memory_space<vmem>>, vector<16x16xbf16>
    tpu.vector_store %arg8[%c296_228, %c0_229], %221 {strides = array<i32>} : memref<448x16xbf16, #tpu.memory_space<vmem>>, vector<16x16xbf16>,
    %223 = vector.extract_strided_slice %210 {offsets = [96, 0], sizes = [16, 16], strides = [1, 1]} : vector<192x128xf32> to vector<16x16xf32>
    %224 = arith.truncf %223 : vector<16x16xf32> to vector<16x16xbf16>
    %c320_230 = arith.constant 320 : index
    %c0_231 = arith.constant 0 : index
    %225 = vector.load %arg8[%c320_230, %c0_231] : memref<448x16xbf16, #tpu.memory_space<vmem>>, vector<16x16xbf16>
    tpu.vector_store %arg8[%c320_230, %c0_231], %224 {strides = array<i32>} : memref<448x16xbf16, #tpu.memory_space<vmem>>, vector<16x16xbf16>,
    %226 = vector.extract_strided_slice %210 {offsets = [120, 0], sizes = [16, 16], strides = [1, 1]} : vector<192x128xf32> to vector<16x16xf32>
    %227 = arith.truncf %226 : vector<16x16xf32> to vector<16x16xbf16>
    %c344_232 = arith.constant 344 : index
    %c0_233 = arith.constant 0 : index
    %228 = vector.load %arg8[%c344_232, %c0_233] : memref<448x16xbf16, #tpu.memory_space<vmem>>, vector<16x16xbf16>
    tpu.vector_store %arg8[%c344_232, %c0_233], %227 {strides = array<i32>} : memref<448x16xbf16, #tpu.memory_space<vmem>>, vector<16x16xbf16>,
    %229 = vector.extract_strided_slice %210 {offsets = [144, 0], sizes = [16, 16], strides = [1, 1]} : vector<192x128xf32> to vector<16x16xf32>
    %230 = arith.truncf %229 : vector<16x16xf32> to vector<16x16xbf16>
    %c368_234 = arith.constant 368 : index
    %c0_235 = arith.constant 0 : index
    %231 = vector.load %arg8[%c368_234, %c0_235] : memref<448x16xbf16, #tpu.memory_space<vmem>>, vector<16x16xbf16>
    tpu.vector_store %arg8[%c368_234, %c0_235], %230 {strides = array<i32>} : memref<448x16xbf16, #tpu.memory_space<vmem>>, vector<16x16xbf16>,
    %232 = vector.extract_strided_slice %210 {offsets = [168, 0], sizes = [16, 16], strides = [1, 1]} : vector<192x128xf32> to vector<16x16xf32>
    %233 = arith.truncf %232 : vector<16x16xf32> to vector<16x16xbf16>
    %c392_236 = arith.constant 392 : index
    %c0_237 = arith.constant 0 : index
    %234 = vector.load %arg8[%c392_236, %c0_237] : memref<448x16xbf16, #tpu.memory_space<vmem>>, vector<16x16xbf16>
    tpu.vector_store %arg8[%c392_236, %c0_237], %233 {strides = array<i32>} : memref<448x16xbf16, #tpu.memory_space<vmem>>, vector<16x16xbf16>,
    %cst_238 = arith.constant 0.000000e+00 : f32
    %235 = vector.broadcast %cst_238 : f32 to vector<16x112xf32>
    %cst_239 = arith.constant 0.000000e+00 : f32
    %236 = vector.broadcast %cst_239 : f32 to vector<192x128xf32>
    %c7_240 = arith.constant 7 : index
    %c0_241 = arith.constant 0 : index
    %237 = vector.load %arg8[%c7_240, %c0_241] : memref<448x16xbf16, #tpu.memory_space<vmem>>, vector<192x16xbf16>
    %c0_242 = arith.constant 0 : index
    %c0_243 = arith.constant 0 : index
    %238 = vector.load %arg3[%c0_242, %c0_243] : memref<144x128xbf16, #tpu.memory_space<vmem>>, vector<16x128xbf16>
    %cst_244 = arith.constant dense<0.000000e+00> : vector<192x128xf32>
    %239 = tpu.matmul %237, %238, %cst_244 {dimension_numbers = #tpu.dot_dimension_numbers<[1], [0], [0], [1], [0, 0, 1, 1], [], []>} : vector<192x16xbf16>, vector<16x128xbf16>, vector<192x128xf32> -> vector<192x128xf32>
    %240 = arith.addf %236, %239 : vector<192x128xf32>
    %c8_245 = arith.constant 8 : index
    %c0_246 = arith.constant 0 : index
    %241 = vector.load %arg8[%c8_245, %c0_246] : memref<448x16xbf16, #tpu.memory_space<vmem>>, vector<192x16xbf16>
    %c16_247 = arith.constant 16 : index
    %c0_248 = arith.constant 0 : index
    %242 = vector.load %arg3[%c16_247, %c0_248] : memref<144x128xbf16, #tpu.memory_space<vmem>>, vector<16x128xbf16>
    %cst_249 = arith.constant dense<0.000000e+00> : vector<192x128xf32>
    %243 = tpu.matmul %241, %242, %cst_249 {dimension_numbers = #tpu.dot_dimension_numbers<[1], [0], [0], [1], [0, 0, 1, 1], [], []>} : vector<192x16xbf16>, vector<16x128xbf16>, vector<192x128xf32> -> vector<192x128xf32>
    %244 = arith.addf %240, %243 : vector<192x128xf32>
    %c9_250 = arith.constant 9 : index
    %c0_251 = arith.constant 0 : index
    %245 = vector.load %arg8[%c9_250, %c0_251] : memref<448x16xbf16, #tpu.memory_space<vmem>>, vector<192x16xbf16>
    %c32_252 = arith.constant 32 : index
    %c0_253 = arith.constant 0 : index
    %246 = vector.load %arg3[%c32_252, %c0_253] : memref<144x128xbf16, #tpu.memory_space<vmem>>, vector<16x128xbf16>
    %cst_254 = arith.constant dense<0.000000e+00> : vector<192x128xf32>
    %247 = tpu.matmul %245, %246, %cst_254 {dimension_numbers = #tpu.dot_dimension_numbers<[1], [0], [0], [1], [0, 0, 1, 1], [], []>} : vector<192x16xbf16>, vector<16x128xbf16>, vector<192x128xf32> -> vector<192x128xf32>
    %248 = arith.addf %244, %247 : vector<192x128xf32>
    %c31_255 = arith.constant 31 : index
    %c0_256 = arith.constant 0 : index
    %249 = vector.load %arg8[%c31_255, %c0_256] : memref<448x16xbf16, #tpu.memory_space<vmem>>, vector<192x16xbf16>
    %c48_257 = arith.constant 48 : index
    %c0_258 = arith.constant 0 : index
    %250 = vector.load %arg3[%c48_257, %c0_258] : memref<144x128xbf16, #tpu.memory_space<vmem>>, vector<16x128xbf16>
    %cst_259 = arith.constant dense<0.000000e+00> : vector<192x128xf32>
    %251 = tpu.matmul %249, %250, %cst_259 {dimension_numbers = #tpu.dot_dimension_numbers<[1], [0], [0], [1], [0, 0, 1, 1], [], []>} : vector<192x16xbf16>, vector<16x128xbf16>, vector<192x128xf32> -> vector<192x128xf32>
    %252 = arith.addf %248, %251 : vector<192x128xf32>
    %c32_260 = arith.constant 32 : index
    %c0_261 = arith.constant 0 : index
    %253 = vector.load %arg8[%c32_260, %c0_261] : memref<448x16xbf16, #tpu.memory_space<vmem>>, vector<192x16xbf16>
    %c64_262 = arith.constant 64 : index
    %c0_263 = arith.constant 0 : index
    %254 = vector.load %arg3[%c64_262, %c0_263] : memref<144x128xbf16, #tpu.memory_space<vmem>>, vector<16x128xbf16>
    %cst_264 = arith.constant dense<0.000000e+00> : vector<192x128xf32>
    %255 = tpu.matmul %253, %254, %cst_264 {dimension_numbers = #tpu.dot_dimension_numbers<[1], [0], [0], [1], [0, 0, 1, 1], [], []>} : vector<192x16xbf16>, vector<16x128xbf16>, vector<192x128xf32> -> vector<192x128xf32>
    %256 = arith.addf %252, %255 : vector<192x128xf32>
    %c33_265 = arith.constant 33 : index
    %c0_266 = arith.constant 0 : index
    %257 = vector.load %arg8[%c33_265, %c0_266] : memref<448x16xbf16, #tpu.memory_space<vmem>>, vector<192x16xbf16>
    %c80_267 = arith.constant 80 : index
    %c0_268 = arith.constant 0 : index
    %258 = vector.load %arg3[%c80_267, %c0_268] : memref<144x128xbf16, #tpu.memory_space<vmem>>, vector<16x128xbf16>
    %cst_269 = arith.constant dense<0.000000e+00> : vector<192x128xf32>
    %259 = tpu.matmul %257, %258, %cst_269 {dimension_numbers = #tpu.dot_dimension_numbers<[1], [0], [0], [1], [0, 0, 1, 1], [], []>} : vector<192x16xbf16>, vector<16x128xbf16>, vector<192x128xf32> -> vector<192x128xf32>
    %260 = arith.addf %256, %259 : vector<192x128xf32>
    %c55_270 = arith.constant 55 : index
    %c0_271 = arith.constant 0 : index
    %261 = vector.load %arg8[%c55_270, %c0_271] : memref<448x16xbf16, #tpu.memory_space<vmem>>, vector<192x16xbf16>
    %c96_272 = arith.constant 96 : index
    %c0_273 = arith.constant 0 : index
    %262 = vector.load %arg3[%c96_272, %c0_273] : memref<144x128xbf16, #tpu.memory_space<vmem>>, vector<16x128xbf16>
    %cst_274 = arith.constant dense<0.000000e+00> : vector<192x128xf32>
    %263 = tpu.matmul %261, %262, %cst_274 {dimension_numbers = #tpu.dot_dimension_numbers<[1], [0], [0], [1], [0, 0, 1, 1], [], []>} : vector<192x16xbf16>, vector<16x128xbf16>, vector<192x128xf32> -> vector<192x128xf32>
    %264 = arith.addf %260, %263 : vector<192x128xf32>
    %c56_275 = arith.constant 56 : index
    %c0_276 = arith.constant 0 : index
    %265 = vector.load %arg8[%c56_275, %c0_276] : memref<448x16xbf16, #tpu.memory_space<vmem>>, vector<192x16xbf16>
    %c112_277 = arith.constant 112 : index
    %c0_278 = arith.constant 0 : index
    %266 = vector.load %arg3[%c112_277, %c0_278] : memref<144x128xbf16, #tpu.memory_space<vmem>>, vector<16x128xbf16>
    %cst_279 = arith.constant dense<0.000000e+00> : vector<192x128xf32>
    %267 = tpu.matmul %265, %266, %cst_279 {dimension_numbers = #tpu.dot_dimension_numbers<[1], [0], [0], [1], [0, 0, 1, 1], [], []>} : vector<192x16xbf16>, vector<16x128xbf16>, vector<192x128xf32> -> vector<192x128xf32>
    %268 = arith.addf %264, %267 : vector<192x128xf32>
    %c57_280 = arith.constant 57 : index
    %c0_281 = arith.constant 0 : index
    %269 = vector.load %arg8[%c57_280, %c0_281] : memref<448x16xbf16, #tpu.memory_space<vmem>>, vector<192x16xbf16>
    %c128_282 = arith.constant 128 : index
    %c0_283 = arith.constant 0 : index
    %270 = vector.load %arg3[%c128_282, %c0_283] : memref<144x128xbf16, #tpu.memory_space<vmem>>, vector<16x128xbf16>
    %cst_284 = arith.constant dense<0.000000e+00> : vector<192x128xf32>
    %271 = tpu.matmul %269, %270, %cst_284 {dimension_numbers = #tpu.dot_dimension_numbers<[1], [0], [0], [1], [0, 0, 1, 1], [], []>} : vector<192x16xbf16>, vector<16x128xbf16>, vector<192x128xf32> -> vector<192x128xf32>
    %272 = arith.addf %268, %271 : vector<192x128xf32>
    %c0_285 = arith.constant 0 : index
    %c0_286 = arith.constant 0 : index
    %273 = vector.load %arg5[%c0_285, %c0_286] : memref<1x128xf32, #tpu.memory_space<vmem>>, vector<1x128xf32>
    %274 = vector.broadcast %273 : vector<1x128xf32> to vector<192x128xf32>
    %275 = arith.addf %272, %274 : vector<192x128xf32>
    %c0_287 = arith.constant 0 : index
    %c0_288 = arith.constant 0 : index
    %c0_289 = arith.constant 0 : index
    %c0_290 = arith.constant 0 : index
    %276 = vector.load %arg1[%c0_287, %c0_288, %c0_289, %c0_290] : memref<1x16x16x16xf32, #tpu.memory_space<vmem>>, vector<1x1x16x16xf32>
    %277 = vector.shape_cast %276 : vector<1x1x16x16xf32> to vector<16x16xf32>
    %278 = tpu.concatenate %277, %235 in 1 : vector<16x16xf32>, vector<16x112xf32> -> vector<16x128xf32>
    %279 = vector.extract_strided_slice %275 {offsets = [0, 0], sizes = [16, 128], strides = [1, 1]} : vector<192x128xf32> to vector<16x128xf32>
    %280 = arith.addf %279, %278 : vector<16x128xf32>
    %cst_291 = arith.constant 0.000000e+00 : f32
    %281 = vector.broadcast %cst_291 : f32 to vector<16x128xf32>
    %282 = arith.maximumf %280, %281 : vector<16x128xf32>
    %283 = arith.truncf %282 : vector<16x128xf32> to vector<16x128xbf16>
    %c0_292 = arith.constant 0 : index
    %c0_293 = arith.constant 0 : index
    %c0_294 = arith.constant 0 : index
    %c0_295 = arith.constant 0 : index
    %284 = vector.load %arg6[%c0_292, %c0_293, %c0_294, %c0_295] : memref<1x16x16x128xbf16, #tpu.memory_space<vmem>>, vector<1x1x16x128xbf16>
    %285 = vector.shape_cast %284 : vector<1x1x16x128xbf16> to vector<16x128xbf16>
    %286 = vector.shape_cast %283 : vector<16x128xbf16> to vector<1x1x16x128xbf16>
    tpu.vector_store %arg6[%c0_292, %c0_293, %c0_294, %c0_295], %286 {strides = array<i32>} : memref<1x16x16x128xbf16, #tpu.memory_space<vmem>>, vector<1x1x16x128xbf16>,
    %c0_296 = arith.constant 0 : index
    %c1_297 = arith.constant 1 : index
    %c0_298 = arith.constant 0 : index
    %c0_299 = arith.constant 0 : index
    %287 = vector.load %arg1[%c0_296, %c1_297, %c0_298, %c0_299] : memref<1x16x16x16xf32, #tpu.memory_space<vmem>>, vector<1x1x16x16xf32>
    %288 = vector.shape_cast %287 : vector<1x1x16x16xf32> to vector<16x16xf32>
    %289 = tpu.concatenate %288, %235 in 1 : vector<16x16xf32>, vector<16x112xf32> -> vector<16x128xf32>
    %290 = vector.extract_strided_slice %275 {offsets = [24, 0], sizes = [16, 128], strides = [1, 1]} : vector<192x128xf32> to vector<16x128xf32>
    %291 = arith.addf %290, %289 : vector<16x128xf32>
    %cst_300 = arith.constant 0.000000e+00 : f32
    %292 = vector.broadcast %cst_300 : f32 to vector<16x128xf32>
    %293 = arith.maximumf %291, %292 : vector<16x128xf32>
    %294 = arith.truncf %293 : vector<16x128xf32> to vector<16x128xbf16>
    %c0_301 = arith.constant 0 : index
    %c1_302 = arith.constant 1 : index
    %c0_303 = arith.constant 0 : index
    %c0_304 = arith.constant 0 : index
    %295 = vector.load %arg6[%c0_301, %c1_302, %c0_303, %c0_304] : memref<1x16x16x128xbf16, #tpu.memory_space<vmem>>, vector<1x1x16x128xbf16>
    %296 = vector.shape_cast %295 : vector<1x1x16x128xbf16> to vector<16x128xbf16>
    %297 = vector.shape_cast %294 : vector<16x128xbf16> to vector<1x1x16x128xbf16>
    tpu.vector_store %arg6[%c0_301, %c1_302, %c0_303, %c0_304], %297 {strides = array<i32>} : memref<1x16x16x128xbf16, #tpu.memory_space<vmem>>, vector<1x1x16x128xbf16>,
    %c0_305 = arith.constant 0 : index
    %c2_306 = arith.constant 2 : index
    %c0_307 = arith.constant 0 : index
    %c0_308 = arith.constant 0 : index
    %298 = vector.load %arg1[%c0_305, %c2_306, %c0_307, %c0_308] : memref<1x16x16x16xf32, #tpu.memory_space<vmem>>, vector<1x1x16x16xf32>
    %299 = vector.shape_cast %298 : vector<1x1x16x16xf32> to vector<16x16xf32>
    %300 = tpu.concatenate %299, %235 in 1 : vector<16x16xf32>, vector<16x112xf32> -> vector<16x128xf32>
    %301 = vector.extract_strided_slice %275 {offsets = [48, 0], sizes = [16, 128], strides = [1, 1]} : vector<192x128xf32> to vector<16x128xf32>
    %302 = arith.addf %301, %300 : vector<16x128xf32>
    %cst_309 = arith.constant 0.000000e+00 : f32
    %303 = vector.broadcast %cst_309 : f32 to vector<16x128xf32>
    %304 = arith.maximumf %302, %303 : vector<16x128xf32>
    %305 = arith.truncf %304 : vector<16x128xf32> to vector<16x128xbf16>
    %c0_310 = arith.constant 0 : index
    %c2_311 = arith.constant 2 : index
    %c0_312 = arith.constant 0 : index
    %c0_313 = arith.constant 0 : index
    %306 = vector.load %arg6[%c0_310, %c2_311, %c0_312, %c0_313] : memref<1x16x16x128xbf16, #tpu.memory_space<vmem>>, vector<1x1x16x128xbf16>
    %307 = vector.shape_cast %306 : vector<1x1x16x128xbf16> to vector<16x128xbf16>
    %308 = vector.shape_cast %305 : vector<16x128xbf16> to vector<1x1x16x128xbf16>
    tpu.vector_store %arg6[%c0_310, %c2_311, %c0_312, %c0_313], %308 {strides = array<i32>} : memref<1x16x16x128xbf16, #tpu.memory_space<vmem>>, vector<1x1x16x128xbf16>,
    %c0_314 = arith.constant 0 : index
    %c3_315 = arith.constant 3 : index
    %c0_316 = arith.constant 0 : index
    %c0_317 = arith.constant 0 : index
    %309 = vector.load %arg1[%c0_314, %c3_315, %c0_316, %c0_317] : memref<1x16x16x16xf32, #tpu.memory_space<vmem>>, vector<1x1x16x16xf32>
    %310 = vector.shape_cast %309 : vector<1x1x16x16xf32> to vector<16x16xf32>
    %311 = tpu.concatenate %310, %235 in 1 : vector<16x16xf32>, vector<16x112xf32> -> vector<16x128xf32>
    %312 = vector.extract_strided_slice %275 {offsets = [72, 0], sizes = [16, 128], strides = [1, 1]} : vector<192x128xf32> to vector<16x128xf32>
    %313 = arith.addf %312, %311 : vector<16x128xf32>
    %cst_318 = arith.constant 0.000000e+00 : f32
    %314 = vector.broadcast %cst_318 : f32 to vector<16x128xf32>
    %315 = arith.maximumf %313, %314 : vector<16x128xf32>
    %316 = arith.truncf %315 : vector<16x128xf32> to vector<16x128xbf16>
    %c0_319 = arith.constant 0 : index
    %c3_320 = arith.constant 3 : index
    %c0_321 = arith.constant 0 : index
    %c0_322 = arith.constant 0 : index
    %317 = vector.load %arg6[%c0_319, %c3_320, %c0_321, %c0_322] : memref<1x16x16x128xbf16, #tpu.memory_space<vmem>>, vector<1x1x16x128xbf16>
    %318 = vector.shape_cast %317 : vector<1x1x16x128xbf16> to vector<16x128xbf16>
    %319 = vector.shape_cast %316 : vector<16x128xbf16> to vector<1x1x16x128xbf16>
    tpu.vector_store %arg6[%c0_319, %c3_320, %c0_321, %c0_322], %319 {strides = array<i32>} : memref<1x16x16x128xbf16, #tpu.memory_space<vmem>>, vector<1x1x16x128xbf16>,
    %c0_323 = arith.constant 0 : index
    %c4_324 = arith.constant 4 : index
    %c0_325 = arith.constant 0 : index
    %c0_326 = arith.constant 0 : index
    %320 = vector.load %arg1[%c0_323, %c4_324, %c0_325, %c0_326] : memref<1x16x16x16xf32, #tpu.memory_space<vmem>>, vector<1x1x16x16xf32>
    %321 = vector.shape_cast %320 : vector<1x1x16x16xf32> to vector<16x16xf32>
    %322 = tpu.concatenate %321, %235 in 1 : vector<16x16xf32>, vector<16x112xf32> -> vector<16x128xf32>
    %323 = vector.extract_strided_slice %275 {offsets = [96, 0], sizes = [16, 128], strides = [1, 1]} : vector<192x128xf32> to vector<16x128xf32>
    %324 = arith.addf %323, %322 : vector<16x128xf32>
    %cst_327 = arith.constant 0.000000e+00 : f32
    %325 = vector.broadcast %cst_327 : f32 to vector<16x128xf32>
    %326 = arith.maximumf %324, %325 : vector<16x128xf32>
    %327 = arith.truncf %326 : vector<16x128xf32> to vector<16x128xbf16>
    %c0_328 = arith.constant 0 : index
    %c4_329 = arith.constant 4 : index
    %c0_330 = arith.constant 0 : index
    %c0_331 = arith.constant 0 : index
    %328 = vector.load %arg6[%c0_328, %c4_329, %c0_330, %c0_331] : memref<1x16x16x128xbf16, #tpu.memory_space<vmem>>, vector<1x1x16x128xbf16>
    %329 = vector.shape_cast %328 : vector<1x1x16x128xbf16> to vector<16x128xbf16>
    %330 = vector.shape_cast %327 : vector<16x128xbf16> to vector<1x1x16x128xbf16>
    tpu.vector_store %arg6[%c0_328, %c4_329, %c0_330, %c0_331], %330 {strides = array<i32>} : memref<1x16x16x128xbf16, #tpu.memory_space<vmem>>, vector<1x1x16x128xbf16>,
    %c0_332 = arith.constant 0 : index
    %c5_333 = arith.constant 5 : index
    %c0_334 = arith.constant 0 : index
    %c0_335 = arith.constant 0 : index
    %331 = vector.load %arg1[%c0_332, %c5_333, %c0_334, %c0_335] : memref<1x16x16x16xf32, #tpu.memory_space<vmem>>, vector<1x1x16x16xf32>
    %332 = vector.shape_cast %331 : vector<1x1x16x16xf32> to vector<16x16xf32>
    %333 = tpu.concatenate %332, %235 in 1 : vector<16x16xf32>, vector<16x112xf32> -> vector<16x128xf32>
    %334 = vector.extract_strided_slice %275 {offsets = [120, 0], sizes = [16, 128], strides = [1, 1]} : vector<192x128xf32> to vector<16x128xf32>
    %335 = arith.addf %334, %333 : vector<16x128xf32>
    %cst_336 = arith.constant 0.000000e+00 : f32
    %336 = vector.broadcast %cst_336 : f32 to vector<16x128xf32>
    %337 = arith.maximumf %335, %336 : vector<16x128xf32>
    %338 = arith.truncf %337 : vector<16x128xf32> to vector<16x128xbf16>
    %c0_337 = arith.constant 0 : index
    %c5_338 = arith.constant 5 : index
    %c0_339 = arith.constant 0 : index
    %c0_340 = arith.constant 0 : index
    %339 = vector.load %arg6[%c0_337, %c5_338, %c0_339, %c0_340] : memref<1x16x16x128xbf16, #tpu.memory_space<vmem>>, vector<1x1x16x128xbf16>
    %340 = vector.shape_cast %339 : vector<1x1x16x128xbf16> to vector<16x128xbf16>
    %341 = vector.shape_cast %338 : vector<16x128xbf16> to vector<1x1x16x128xbf16>
    tpu.vector_store %arg6[%c0_337, %c5_338, %c0_339, %c0_340], %341 {strides = array<i32>} : memref<1x16x16x128xbf16, #tpu.memory_space<vmem>>, vector<1x1x16x128xbf16>,
    %c0_341 = arith.constant 0 : index
    %c6_342 = arith.constant 6 : index
    %c0_343 = arith.constant 0 : index
    %c0_344 = arith.constant 0 : index
    %342 = vector.load %arg1[%c0_341, %c6_342, %c0_343, %c0_344] : memref<1x16x16x16xf32, #tpu.memory_space<vmem>>, vector<1x1x16x16xf32>
    %343 = vector.shape_cast %342 : vector<1x1x16x16xf32> to vector<16x16xf32>
    %344 = tpu.concatenate %343, %235 in 1 : vector<16x16xf32>, vector<16x112xf32> -> vector<16x128xf32>
    %345 = vector.extract_strided_slice %275 {offsets = [144, 0], sizes = [16, 128], strides = [1, 1]} : vector<192x128xf32> to vector<16x128xf32>
    %346 = arith.addf %345, %344 : vector<16x128xf32>
    %cst_345 = arith.constant 0.000000e+00 : f32
    %347 = vector.broadcast %cst_345 : f32 to vector<16x128xf32>
    %348 = arith.maximumf %346, %347 : vector<16x128xf32>
    %349 = arith.truncf %348 : vector<16x128xf32> to vector<16x128xbf16>
    %c0_346 = arith.constant 0 : index
    %c6_347 = arith.constant 6 : index
    %c0_348 = arith.constant 0 : index
    %c0_349 = arith.constant 0 : index
    %350 = vector.load %arg6[%c0_346, %c6_347, %c0_348, %c0_349] : memref<1x16x16x128xbf16, #tpu.memory_space<vmem>>, vector<1x1x16x128xbf16>
    %351 = vector.shape_cast %350 : vector<1x1x16x128xbf16> to vector<16x128xbf16>
    %352 = vector.shape_cast %349 : vector<16x128xbf16> to vector<1x1x16x128xbf16>
    tpu.vector_store %arg6[%c0_346, %c6_347, %c0_348, %c0_349], %352 {strides = array<i32>} : memref<1x16x16x128xbf16, #tpu.memory_space<vmem>>, vector<1x1x16x128xbf16>,
    %c0_350 = arith.constant 0 : index
    %c7_351 = arith.constant 7 : index
    %c0_352 = arith.constant 0 : index
    %c0_353 = arith.constant 0 : index
    %353 = vector.load %arg1[%c0_350, %c7_351, %c0_352, %c0_353] : memref<1x16x16x16xf32, #tpu.memory_space<vmem>>, vector<1x1x16x16xf32>
    %354 = vector.shape_cast %353 : vector<1x1x16x16xf32> to vector<16x16xf32>
    %355 = tpu.concatenate %354, %235 in 1 : vector<16x16xf32>, vector<16x112xf32> -> vector<16x128xf32>
    %356 = vector.extract_strided_slice %275 {offsets = [168, 0], sizes = [16, 128], strides = [1, 1]} : vector<192x128xf32> to vector<16x128xf32>
    %357 = arith.addf %356, %355 : vector<16x128xf32>
    %cst_354 = arith.constant 0.000000e+00 : f32
    %358 = vector.broadcast %cst_354 : f32 to vector<16x128xf32>
    %359 = arith.maximumf %357, %358 : vector<16x128xf32>
    %360 = arith.truncf %359 : vector<16x128xf32> to vector<16x128xbf16>
    %c0_355 = arith.constant 0 : index
    %c7_356 = arith.constant 7 : index
    %c0_357 = arith.constant 0 : index
    %c0_358 = arith.constant 0 : index
    %361 = vector.load %arg6[%c0_355, %c7_356, %c0_357, %c0_358] : memref<1x16x16x128xbf16, #tpu.memory_space<vmem>>, vector<1x1x16x128xbf16>
    %362 = vector.shape_cast %361 : vector<1x1x16x128xbf16> to vector<16x128xbf16>
    %363 = vector.shape_cast %360 : vector<16x128xbf16> to vector<1x1x16x128xbf16>
    tpu.vector_store %arg6[%c0_355, %c7_356, %c0_357, %c0_358], %363 {strides = array<i32>} : memref<1x16x16x128xbf16, #tpu.memory_space<vmem>>, vector<1x1x16x128xbf16>,
    %cst_359 = arith.constant 0.000000e+00 : f32
    %364 = vector.broadcast %cst_359 : f32 to vector<192x128xf32>
    %c199_360 = arith.constant 199 : index
    %c0_361 = arith.constant 0 : index
    %365 = vector.load %arg8[%c199_360, %c0_361] : memref<448x16xbf16, #tpu.memory_space<vmem>>, vector<192x16xbf16>
    %c0_362 = arith.constant 0 : index
    %c0_363 = arith.constant 0 : index
    %366 = vector.load %arg3[%c0_362, %c0_363] : memref<144x128xbf16, #tpu.memory_space<vmem>>, vector<16x128xbf16>
    %cst_364 = arith.constant dense<0.000000e+00> : vector<192x128xf32>
    %367 = tpu.matmul %365, %366, %cst_364 {dimension_numbers = #tpu.dot_dimension_numbers<[1], [0], [0], [1], [0, 0, 1, 1], [], []>} : vector<192x16xbf16>, vector<16x128xbf16>, vector<192x128xf32> -> vector<192x128xf32>
    %368 = arith.addf %364, %367 : vector<192x128xf32>
    %c200_365 = arith.constant 200 : index
    %c0_366 = arith.constant 0 : index
    %369 = vector.load %arg8[%c200_365, %c0_366] : memref<448x16xbf16, #tpu.memory_space<vmem>>, vector<192x16xbf16>
    %c16_367 = arith.constant 16 : index
    %c0_368 = arith.constant 0 : index
    %370 = vector.load %arg3[%c16_367, %c0_368] : memref<144x128xbf16, #tpu.memory_space<vmem>>, vector<16x128xbf16>
    %cst_369 = arith.constant dense<0.000000e+00> : vector<192x128xf32>
    %371 = tpu.matmul %369, %370, %cst_369 {dimension_numbers = #tpu.dot_dimension_numbers<[1], [0], [0], [1], [0, 0, 1, 1], [], []>} : vector<192x16xbf16>, vector<16x128xbf16>, vector<192x128xf32> -> vector<192x128xf32>
    %372 = arith.addf %368, %371 : vector<192x128xf32>
    %c201_370 = arith.constant 201 : index
    %c0_371 = arith.constant 0 : index
    %373 = vector.load %arg8[%c201_370, %c0_371] : memref<448x16xbf16, #tpu.memory_space<vmem>>, vector<192x16xbf16>
    %c32_372 = arith.constant 32 : index
    %c0_373 = arith.constant 0 : index
    %374 = vector.load %arg3[%c32_372, %c0_373] : memref<144x128xbf16, #tpu.memory_space<vmem>>, vector<16x128xbf16>
    %cst_374 = arith.constant dense<0.000000e+00> : vector<192x128xf32>
    %375 = tpu.matmul %373, %374, %cst_374 {dimension_numbers = #tpu.dot_dimension_numbers<[1], [0], [0], [1], [0, 0, 1, 1], [], []>} : vector<192x16xbf16>, vector<16x128xbf16>, vector<192x128xf32> -> vector<192x128xf32>
    %376 = arith.addf %372, %375 : vector<192x128xf32>
    %c223_375 = arith.constant 223 : index
    %c0_376 = arith.constant 0 : index
    %377 = vector.load %arg8[%c223_375, %c0_376] : memref<448x16xbf16, #tpu.memory_space<vmem>>, vector<192x16xbf16>
    %c48_377 = arith.constant 48 : index
    %c0_378 = arith.constant 0 : index
    %378 = vector.load %arg3[%c48_377, %c0_378] : memref<144x128xbf16, #tpu.memory_space<vmem>>, vector<16x128xbf16>
    %cst_379 = arith.constant dense<0.000000e+00> : vector<192x128xf32>
    %379 = tpu.matmul %377, %378, %cst_379 {dimension_numbers = #tpu.dot_dimension_numbers<[1], [0], [0], [1], [0, 0, 1, 1], [], []>} : vector<192x16xbf16>, vector<16x128xbf16>, vector<192x128xf32> -> vector<192x128xf32>
    %380 = arith.addf %376, %379 : vector<192x128xf32>
    %c224_380 = arith.constant 224 : index
    %c0_381 = arith.constant 0 : index
    %381 = vector.load %arg8[%c224_380, %c0_381] : memref<448x16xbf16, #tpu.memory_space<vmem>>, vector<192x16xbf16>
    %c64_382 = arith.constant 64 : index
    %c0_383 = arith.constant 0 : index
    %382 = vector.load %arg3[%c64_382, %c0_383] : memref<144x128xbf16, #tpu.memory_space<vmem>>, vector<16x128xbf16>
    %cst_384 = arith.constant dense<0.000000e+00> : vector<192x128xf32>
    %383 = tpu.matmul %381, %382, %cst_384 {dimension_numbers = #tpu.dot_dimension_numbers<[1], [0], [0], [1], [0, 0, 1, 1], [], []>} : vector<192x16xbf16>, vector<16x128xbf16>, vector<192x128xf32> -> vector<192x128xf32>
    %384 = arith.addf %380, %383 : vector<192x128xf32>
    %c225_385 = arith.constant 225 : index
    %c0_386 = arith.constant 0 : index
    %385 = vector.load %arg8[%c225_385, %c0_386] : memref<448x16xbf16, #tpu.memory_space<vmem>>, vector<192x16xbf16>
    %c80_387 = arith.constant 80 : index
    %c0_388 = arith.constant 0 : index
    %386 = vector.load %arg3[%c80_387, %c0_388] : memref<144x128xbf16, #tpu.memory_space<vmem>>, vector<16x128xbf16>
    %cst_389 = arith.constant dense<0.000000e+00> : vector<192x128xf32>
    %387 = tpu.matmul %385, %386, %cst_389 {dimension_numbers = #tpu.dot_dimension_numbers<[1], [0], [0], [1], [0, 0, 1, 1], [], []>} : vector<192x16xbf16>, vector<16x128xbf16>, vector<192x128xf32> -> vector<192x128xf32>
    %388 = arith.addf %384, %387 : vector<192x128xf32>
    %c247_390 = arith.constant 247 : index
    %c0_391 = arith.constant 0 : index
    %389 = vector.load %arg8[%c247_390, %c0_391] : memref<448x16xbf16, #tpu.memory_space<vmem>>, vector<192x16xbf16>
    %c96_392 = arith.constant 96 : index
    %c0_393 = arith.constant 0 : index
    %390 = vector.load %arg3[%c96_392, %c0_393] : memref<144x128xbf16, #tpu.memory_space<vmem>>, vector<16x128xbf16>
    %cst_394 = arith.constant dense<0.000000e+00> : vector<192x128xf32>
    %391 = tpu.matmul %389, %390, %cst_394 {dimension_numbers = #tpu.dot_dimension_numbers<[1], [0], [0], [1], [0, 0, 1, 1], [], []>} : vector<192x16xbf16>, vector<16x128xbf16>, vector<192x128xf32> -> vector<192x128xf32>
    %392 = arith.addf %388, %391 : vector<192x128xf32>
    %c248_395 = arith.constant 248 : index
    %c0_396 = arith.constant 0 : index
    %393 = vector.load %arg8[%c248_395, %c0_396] : memref<448x16xbf16, #tpu.memory_space<vmem>>, vector<192x16xbf16>
    %c112_397 = arith.constant 112 : index
    %c0_398 = arith.constant 0 : index
    %394 = vector.load %arg3[%c112_397, %c0_398] : memref<144x128xbf16, #tpu.memory_space<vmem>>, vector<16x128xbf16>
    %cst_399 = arith.constant dense<0.000000e+00> : vector<192x128xf32>
    %395 = tpu.matmul %393, %394, %cst_399 {dimension_numbers = #tpu.dot_dimension_numbers<[1], [0], [0], [1], [0, 0, 1, 1], [], []>} : vector<192x16xbf16>, vector<16x128xbf16>, vector<192x128xf32> -> vector<192x128xf32>
    %396 = arith.addf %392, %395 : vector<192x128xf32>
    %c249_400 = arith.constant 249 : index
    %c0_401 = arith.constant 0 : index
    %397 = vector.load %arg8[%c249_400, %c0_401] : memref<448x16xbf16, #tpu.memory_space<vmem>>, vector<192x16xbf16>
    %c128_402 = arith.constant 128 : index
    %c0_403 = arith.constant 0 : index
    %398 = vector.load %arg3[%c128_402, %c0_403] : memref<144x128xbf16, #tpu.memory_space<vmem>>, vector<16x128xbf16>
    %cst_404 = arith.constant dense<0.000000e+00> : vector<192x128xf32>
    %399 = tpu.matmul %397, %398, %cst_404 {dimension_numbers = #tpu.dot_dimension_numbers<[1], [0], [0], [1], [0, 0, 1, 1], [], []>} : vector<192x16xbf16>, vector<16x128xbf16>, vector<192x128xf32> -> vector<192x128xf32>
    %400 = arith.addf %396, %399 : vector<192x128xf32>
    %c0_405 = arith.constant 0 : index
    %c0_406 = arith.constant 0 : index
    %401 = vector.load %arg5[%c0_405, %c0_406] : memref<1x128xf32, #tpu.memory_space<vmem>>, vector<1x128xf32>
    %402 = vector.broadcast %401 : vector<1x128xf32> to vector<192x128xf32>
    %403 = arith.addf %400, %402 : vector<192x128xf32>
    %c0_407 = arith.constant 0 : index
    %c8_408 = arith.constant 8 : index
    %c0_409 = arith.constant 0 : index
    %c0_410 = arith.constant 0 : index
    %404 = vector.load %arg1[%c0_407, %c8_408, %c0_409, %c0_410] : memref<1x16x16x16xf32, #tpu.memory_space<vmem>>, vector<1x1x16x16xf32>
    %405 = vector.shape_cast %404 : vector<1x1x16x16xf32> to vector<16x16xf32>
    %406 = tpu.concatenate %405, %235 in 1 : vector<16x16xf32>, vector<16x112xf32> -> vector<16x128xf32>
    %407 = vector.extract_strided_slice %403 {offsets = [0, 0], sizes = [16, 128], strides = [1, 1]} : vector<192x128xf32> to vector<16x128xf32>
    %408 = arith.addf %407, %406 : vector<16x128xf32>
    %cst_411 = arith.constant 0.000000e+00 : f32
    %409 = vector.broadcast %cst_411 : f32 to vector<16x128xf32>
    %410 = arith.maximumf %408, %409 : vector<16x128xf32>
    %411 = arith.truncf %410 : vector<16x128xf32> to vector<16x128xbf16>
    %c0_412 = arith.constant 0 : index
    %c8_413 = arith.constant 8 : index
    %c0_414 = arith.constant 0 : index
    %c0_415 = arith.constant 0 : index
    %412 = vector.load %arg6[%c0_412, %c8_413, %c0_414, %c0_415] : memref<1x16x16x128xbf16, #tpu.memory_space<vmem>>, vector<1x1x16x128xbf16>
    %413 = vector.shape_cast %412 : vector<1x1x16x128xbf16> to vector<16x128xbf16>
    %414 = vector.shape_cast %411 : vector<16x128xbf16> to vector<1x1x16x128xbf16>
    tpu.vector_store %arg6[%c0_412, %c8_413, %c0_414, %c0_415], %414 {strides = array<i32>} : memref<1x16x16x128xbf16, #tpu.memory_space<vmem>>, vector<1x1x16x128xbf16>,
    %c0_416 = arith.constant 0 : index
    %c9_417 = arith.constant 9 : index
    %c0_418 = arith.constant 0 : index
    %c0_419 = arith.constant 0 : index
    %415 = vector.load %arg1[%c0_416, %c9_417, %c0_418, %c0_419] : memref<1x16x16x16xf32, #tpu.memory_space<vmem>>, vector<1x1x16x16xf32>
    %416 = vector.shape_cast %415 : vector<1x1x16x16xf32> to vector<16x16xf32>
    %417 = tpu.concatenate %416, %235 in 1 : vector<16x16xf32>, vector<16x112xf32> -> vector<16x128xf32>
    %418 = vector.extract_strided_slice %403 {offsets = [24, 0], sizes = [16, 128], strides = [1, 1]} : vector<192x128xf32> to vector<16x128xf32>
    %419 = arith.addf %418, %417 : vector<16x128xf32>
    %cst_420 = arith.constant 0.000000e+00 : f32
    %420 = vector.broadcast %cst_420 : f32 to vector<16x128xf32>
    %421 = arith.maximumf %419, %420 : vector<16x128xf32>
    %422 = arith.truncf %421 : vector<16x128xf32> to vector<16x128xbf16>
    %c0_421 = arith.constant 0 : index
    %c9_422 = arith.constant 9 : index
    %c0_423 = arith.constant 0 : index
    %c0_424 = arith.constant 0 : index
    %423 = vector.load %arg6[%c0_421, %c9_422, %c0_423, %c0_424] : memref<1x16x16x128xbf16, #tpu.memory_space<vmem>>, vector<1x1x16x128xbf16>
    %424 = vector.shape_cast %423 : vector<1x1x16x128xbf16> to vector<16x128xbf16>
    %425 = vector.shape_cast %422 : vector<16x128xbf16> to vector<1x1x16x128xbf16>
    tpu.vector_store %arg6[%c0_421, %c9_422, %c0_423, %c0_424], %425 {strides = array<i32>} : memref<1x16x16x128xbf16, #tpu.memory_space<vmem>>, vector<1x1x16x128xbf16>,
    %c0_425 = arith.constant 0 : index
    %c10_426 = arith.constant 10 : index
    %c0_427 = arith.constant 0 : index
    %c0_428 = arith.constant 0 : index
    %426 = vector.load %arg1[%c0_425, %c10_426, %c0_427, %c0_428] : memref<1x16x16x16xf32, #tpu.memory_space<vmem>>, vector<1x1x16x16xf32>
    %427 = vector.shape_cast %426 : vector<1x1x16x16xf32> to vector<16x16xf32>
    %428 = tpu.concatenate %427, %235 in 1 : vector<16x16xf32>, vector<16x112xf32> -> vector<16x128xf32>
    %429 = vector.extract_strided_slice %403 {offsets = [48, 0], sizes = [16, 128], strides = [1, 1]} : vector<192x128xf32> to vector<16x128xf32>
    %430 = arith.addf %429, %428 : vector<16x128xf32>
    %cst_429 = arith.constant 0.000000e+00 : f32
    %431 = vector.broadcast %cst_429 : f32 to vector<16x128xf32>
    %432 = arith.maximumf %430, %431 : vector<16x128xf32>
    %433 = arith.truncf %432 : vector<16x128xf32> to vector<16x128xbf16>
    %c0_430 = arith.constant 0 : index
    %c10_431 = arith.constant 10 : index
    %c0_432 = arith.constant 0 : index
    %c0_433 = arith.constant 0 : index
    %434 = vector.load %arg6[%c0_430, %c10_431, %c0_432, %c0_433] : memref<1x16x16x128xbf16, #tpu.memory_space<vmem>>, vector<1x1x16x128xbf16>
    %435 = vector.shape_cast %434 : vector<1x1x16x128xbf16> to vector<16x128xbf16>
    %436 = vector.shape_cast %433 : vector<16x128xbf16> to vector<1x1x16x128xbf16>
    tpu.vector_store %arg6[%c0_430, %c10_431, %c0_432, %c0_433], %436 {strides = array<i32>} : memref<1x16x16x128xbf16, #tpu.memory_space<vmem>>, vector<1x1x16x128xbf16>,
    %c0_434 = arith.constant 0 : index
    %c11_435 = arith.constant 11 : index
    %c0_436 = arith.constant 0 : index
    %c0_437 = arith.constant 0 : index
    %437 = vector.load %arg1[%c0_434, %c11_435, %c0_436, %c0_437] : memref<1x16x16x16xf32, #tpu.memory_space<vmem>>, vector<1x1x16x16xf32>
    %438 = vector.shape_cast %437 : vector<1x1x16x16xf32> to vector<16x16xf32>
    %439 = tpu.concatenate %438, %235 in 1 : vector<16x16xf32>, vector<16x112xf32> -> vector<16x128xf32>
    %440 = vector.extract_strided_slice %403 {offsets = [72, 0], sizes = [16, 128], strides = [1, 1]} : vector<192x128xf32> to vector<16x128xf32>
    %441 = arith.addf %440, %439 : vector<16x128xf32>
    %cst_438 = arith.constant 0.000000e+00 : f32
    %442 = vector.broadcast %cst_438 : f32 to vector<16x128xf32>
    %443 = arith.maximumf %441, %442 : vector<16x128xf32>
    %444 = arith.truncf %443 : vector<16x128xf32> to vector<16x128xbf16>
    %c0_439 = arith.constant 0 : index
    %c11_440 = arith.constant 11 : index
    %c0_441 = arith.constant 0 : index
    %c0_442 = arith.constant 0 : index
    %445 = vector.load %arg6[%c0_439, %c11_440, %c0_441, %c0_442] : memref<1x16x16x128xbf16, #tpu.memory_space<vmem>>, vector<1x1x16x128xbf16>
    %446 = vector.shape_cast %445 : vector<1x1x16x128xbf16> to vector<16x128xbf16>
    %447 = vector.shape_cast %444 : vector<16x128xbf16> to vector<1x1x16x128xbf16>
    tpu.vector_store %arg6[%c0_439, %c11_440, %c0_441, %c0_442], %447 {strides = array<i32>} : memref<1x16x16x128xbf16, #tpu.memory_space<vmem>>, vector<1x1x16x128xbf16>,
    %c0_443 = arith.constant 0 : index
    %c12_444 = arith.constant 12 : index
    %c0_445 = arith.constant 0 : index
    %c0_446 = arith.constant 0 : index
    %448 = vector.load %arg1[%c0_443, %c12_444, %c0_445, %c0_446] : memref<1x16x16x16xf32, #tpu.memory_space<vmem>>, vector<1x1x16x16xf32>
    %449 = vector.shape_cast %448 : vector<1x1x16x16xf32> to vector<16x16xf32>
    %450 = tpu.concatenate %449, %235 in 1 : vector<16x16xf32>, vector<16x112xf32> -> vector<16x128xf32>
    %451 = vector.extract_strided_slice %403 {offsets = [96, 0], sizes = [16, 128], strides = [1, 1]} : vector<192x128xf32> to vector<16x128xf32>
    %452 = arith.addf %451, %450 : vector<16x128xf32>
    %cst_447 = arith.constant 0.000000e+00 : f32
    %453 = vector.broadcast %cst_447 : f32 to vector<16x128xf32>
    %454 = arith.maximumf %452, %453 : vector<16x128xf32>
    %455 = arith.truncf %454 : vector<16x128xf32> to vector<16x128xbf16>
    %c0_448 = arith.constant 0 : index
    %c12_449 = arith.constant 12 : index
    %c0_450 = arith.constant 0 : index
    %c0_451 = arith.constant 0 : index
    %456 = vector.load %arg6[%c0_448, %c12_449, %c0_450, %c0_451] : memref<1x16x16x128xbf16, #tpu.memory_space<vmem>>, vector<1x1x16x128xbf16>
    %457 = vector.shape_cast %456 : vector<1x1x16x128xbf16> to vector<16x128xbf16>
    %458 = vector.shape_cast %455 : vector<16x128xbf16> to vector<1x1x16x128xbf16>
    tpu.vector_store %arg6[%c0_448, %c12_449, %c0_450, %c0_451], %458 {strides = array<i32>} : memref<1x16x16x128xbf16, #tpu.memory_space<vmem>>, vector<1x1x16x128xbf16>,
    %c0_452 = arith.constant 0 : index
    %c13_453 = arith.constant 13 : index
    %c0_454 = arith.constant 0 : index
    %c0_455 = arith.constant 0 : index
    %459 = vector.load %arg1[%c0_452, %c13_453, %c0_454, %c0_455] : memref<1x16x16x16xf32, #tpu.memory_space<vmem>>, vector<1x1x16x16xf32>
    %460 = vector.shape_cast %459 : vector<1x1x16x16xf32> to vector<16x16xf32>
    %461 = tpu.concatenate %460, %235 in 1 : vector<16x16xf32>, vector<16x112xf32> -> vector<16x128xf32>
    %462 = vector.extract_strided_slice %403 {offsets = [120, 0], sizes = [16, 128], strides = [1, 1]} : vector<192x128xf32> to vector<16x128xf32>
    %463 = arith.addf %462, %461 : vector<16x128xf32>
    %cst_456 = arith.constant 0.000000e+00 : f32
    %464 = vector.broadcast %cst_456 : f32 to vector<16x128xf32>
    %465 = arith.maximumf %463, %464 : vector<16x128xf32>
    %466 = arith.truncf %465 : vector<16x128xf32> to vector<16x128xbf16>
    %c0_457 = arith.constant 0 : index
    %c13_458 = arith.constant 13 : index
    %c0_459 = arith.constant 0 : index
    %c0_460 = arith.constant 0 : index
    %467 = vector.load %arg6[%c0_457, %c13_458, %c0_459, %c0_460] : memref<1x16x16x128xbf16, #tpu.memory_space<vmem>>, vector<1x1x16x128xbf16>
    %468 = vector.shape_cast %467 : vector<1x1x16x128xbf16> to vector<16x128xbf16>
    %469 = vector.shape_cast %466 : vector<16x128xbf16> to vector<1x1x16x128xbf16>
    tpu.vector_store %arg6[%c0_457, %c13_458, %c0_459, %c0_460], %469 {strides = array<i32>} : memref<1x16x16x128xbf16, #tpu.memory_space<vmem>>, vector<1x1x16x128xbf16>,
    %c0_461 = arith.constant 0 : index
    %c14_462 = arith.constant 14 : index
    %c0_463 = arith.constant 0 : index
    %c0_464 = arith.constant 0 : index
    %470 = vector.load %arg1[%c0_461, %c14_462, %c0_463, %c0_464] : memref<1x16x16x16xf32, #tpu.memory_space<vmem>>, vector<1x1x16x16xf32>
    %471 = vector.shape_cast %470 : vector<1x1x16x16xf32> to vector<16x16xf32>
    %472 = tpu.concatenate %471, %235 in 1 : vector<16x16xf32>, vector<16x112xf32> -> vector<16x128xf32>
    %473 = vector.extract_strided_slice %403 {offsets = [144, 0], sizes = [16, 128], strides = [1, 1]} : vector<192x128xf32> to vector<16x128xf32>
    %474 = arith.addf %473, %472 : vector<16x128xf32>
    %cst_465 = arith.constant 0.000000e+00 : f32
    %475 = vector.broadcast %cst_465 : f32 to vector<16x128xf32>
    %476 = arith.maximumf %474, %475 : vector<16x128xf32>
    %477 = arith.truncf %476 : vector<16x128xf32> to vector<16x128xbf16>
    %c0_466 = arith.constant 0 : index
    %c14_467 = arith.constant 14 : index
    %c0_468 = arith.constant 0 : index
    %c0_469 = arith.constant 0 : index
    %478 = vector.load %arg6[%c0_466, %c14_467, %c0_468, %c0_469] : memref<1x16x16x128xbf16, #tpu.memory_space<vmem>>, vector<1x1x16x128xbf16>
    %479 = vector.shape_cast %478 : vector<1x1x16x128xbf16> to vector<16x128xbf16>
    %480 = vector.shape_cast %477 : vector<16x128xbf16> to vector<1x1x16x128xbf16>
    tpu.vector_store %arg6[%c0_466, %c14_467, %c0_468, %c0_469], %480 {strides = array<i32>} : memref<1x16x16x128xbf16, #tpu.memory_space<vmem>>, vector<1x1x16x128xbf16>,
    %c0_470 = arith.constant 0 : index
    %c15_471 = arith.constant 15 : index
    %c0_472 = arith.constant 0 : index
    %c0_473 = arith.constant 0 : index
    %481 = vector.load %arg1[%c0_470, %c15_471, %c0_472, %c0_473] : memref<1x16x16x16xf32, #tpu.memory_space<vmem>>, vector<1x1x16x16xf32>
    %482 = vector.shape_cast %481 : vector<1x1x16x16xf32> to vector<16x16xf32>
    %483 = tpu.concatenate %482, %235 in 1 : vector<16x16xf32>, vector<16x112xf32> -> vector<16x128xf32>
    %484 = vector.extract_strided_slice %403 {offsets = [168, 0], sizes = [16, 128], strides = [1, 1]} : vector<192x128xf32> to vector<16x128xf32>
    %485 = arith.addf %484, %483 : vector<16x128xf32>
    %cst_474 = arith.constant 0.000000e+00 : f32
    %486 = vector.broadcast %cst_474 : f32 to vector<16x128xf32>
    %487 = arith.maximumf %485, %486 : vector<16x128xf32>
    %488 = arith.truncf %487 : vector<16x128xf32> to vector<16x128xbf16>
    %c0_475 = arith.constant 0 : index
    %c15_476 = arith.constant 15 : index
    %c0_477 = arith.constant 0 : index
    %c0_478 = arith.constant 0 : index
    %489 = vector.load %arg6[%c0_475, %c15_476, %c0_477, %c0_478] : memref<1x16x16x128xbf16, #tpu.memory_space<vmem>>, vector<1x1x16x128xbf16>
    %490 = vector.shape_cast %489 : vector<1x1x16x128xbf16> to vector<16x128xbf16>
    %491 = vector.shape_cast %488 : vector<16x128xbf16> to vector<1x1x16x128xbf16>
    tpu.vector_store %arg6[%c0_475, %c15_476, %c0_477, %c0_478], %491 {strides = array<i32>} : memref<1x16x16x128xbf16, #tpu.memory_space<vmem>>, vector<1x1x16x128xbf16>,
    return
  }
  func.func @transform_0(%arg0: i32) -> (i32, i32, i32, i32) {
    %c0_i32 = arith.constant 0 : i32
    %c0_i32_0 = arith.constant 0 : i32
    %c0_i32_1 = arith.constant 0 : i32
    %c0_i32_2 = arith.constant 0 : i32
    return %arg0, %c0_i32, %c0_i32_0, %c0_i32_1 : i32, i32, i32, i32
  }
  func.func @transform_1(%arg0: i32) -> (i32, i32) {
    %c0_i32 = arith.constant 0 : i32
    %c0_i32_0 = arith.constant 0 : i32
    %c0_i32_1 = arith.constant 0 : i32
    return %c0_i32, %c0_i32_0 : i32, i32
  }
  func.func @transform_2(%arg0: i32) -> (i32, i32) {
    %c0_i32 = arith.constant 0 : i32
    %c0_i32_0 = arith.constant 0 : i32
    %c0_i32_1 = arith.constant 0 : i32
    return %c0_i32, %c0_i32_0 : i32, i32
  }
  func.func @transform_3(%arg0: i32) -> (i32, i32) {
    %c0_i32 = arith.constant 0 : i32
    %c0_i32_0 = arith.constant 0 : i32
    %c0_i32_1 = arith.constant 0 : i32
    return %c0_i32, %c0_i32_0 : i32, i32
  }
  func.func @transform_4(%arg0: i32) -> (i32, i32) {
    %c0_i32 = arith.constant 0 : i32
    %c0_i32_0 = arith.constant 0 : i32
    %c0_i32_1 = arith.constant 0 : i32
    return %c0_i32, %c0_i32_0 : i32, i32
  }
  func.func @transform_5(%arg0: i32) -> (i32, i32, i32, i32) {
    %c0_i32 = arith.constant 0 : i32
    %c0_i32_0 = arith.constant 0 : i32
    %c0_i32_1 = arith.constant 0 : i32
    %c0_i32_2 = arith.constant 0 : i32
    return %arg0, %c0_i32, %c0_i32_0, %c0_i32_1 : i32, i32, i32, i32
  }
}

</mosaic_0001>

<bundles_post_ra>
// kernel: tpu_custom_call.1
= control target key start
LH: loop header
LB: loop body
LE: loop exit
PB: predicated region body
PF: predicated region fallthrough
CT: control target
= control target key end

     0   :  { %10 = vsyncpa [#allocation5], 0  ;;  %s19631_s0 = inlined_call_operand.hbm [shape: f32[2,16,16,16], index: 0, kind: input, shape index: {}]   ;;  %s19632_s1 = inlined_call_operand.hbm [shape: bf16[144,128], index: 1, kind: input, shape index: {}]   ;;  %s19633_s2 = inlined_call_operand.hbm [shape: bf16[144,128], index: 2, kind: input, shape index: {}]   ;;  %s19634_s3 = inlined_call_operand.vmem [shape: f32[1,128], index: 3, kind: input, shape index: {}]   ;;  %s19635_s4 = inlined_call_operand.vmem [shape: f32[1,128], index: 4, kind: input, shape index: {}]   ;;  %s19636_s5 = inlined_call_operand.hbm [shape: bf16[2,16,16,128], index: 5, kind: output, shape index: {}]  }
   0x1   :  { %12 = vsyncpa [#allocation5 + $0x1], 0 }
   0x2   :  { %13 = vsyncpa [#allocation8], 0 }
   0x3   :  { %14 = vsyncpa [#allocation6], 0 }
   0x4   :  { %16 = vsyncpa [#allocation6 + $0x1], 0  ;;  %s15895_s18 = smov 0   ;;  %s15897_s19 = smov 0  }
   0x5   :  { %s15899_s20 = smov 0   ;;  %s15901_s21 = smov 0  }
   0x6 LB: > { %s15916_s22 = sadd.s32 4294967295, %s15852_s21   ;;  %s12461_s23 = sadd.s32 4294967294, %s15852_s21   ;;  %s15852_s21 = sphi %s15901_s21, %s19861_s21   ;;  %s15848_s20 = sphi %s15899_s20, %s19860_s20   ;;  %s15844_s19 = sphi %s15897_s19, %s19859_s19   ;;  %s15840_s18 = sphi %s15895_s18, %s19858_s18  }
   0x7   : > { %p42_p0 = scmp.ne.s32.totalorder %s15844_s19, %s15840_s18  ;;  %p19637_p1 = scmp.eq.s32.totalorder %s15916_s22, 0 }
   0x8   : > { %p156_p3 = scmp.eq.s32.totalorder %s12461_s23, 1  ;;  %p12462_p5 = scmp.ge.s32.totalorder %s15852_s21, 1 }
   0x9   : > { %p15925_p4 = por %p19637_p1, %p42_p0  ;;  %p163_p7 = scmp.lt.s32.totalorder %s15852_s21, 3 }
   0xa   : > { %p15930_p6 = por %p156_p3, %p42_p0  ;;  %s15854_s27 = smov [#allocation7]  }
   0xb   : > { %s19672_s24 = scalar_select %p15925_p4, 1, 0 }
   0xc   : > { %s19673_s25 = scalar_select %p15930_p6, 1, 0 }
   0xd   : > { %p15935_p8 = pnand %p12462_p5, %p163_p7  ;;  %s175_s28 = sshll.u32 %s15854_s27, 4  ;;  %s176_s28 = int_to_ptr.vmem [resolvable:$true] %s175_s28 }
   0xe   : > { %s15855_s30 = smov [#allocation9]   ;;  %s15715_s7 = scalar_lea.vmem %s176_s28, 1152 }
   0xf   : > { %s19674_s26 = scalar_select %p15935_p8, 1, 0 }
  0x10   : > { %p15202_p9 = pneg %p15935_p8  ;;  %s188_s6 = sshll.u32 %s15855_s30, 4  ;;  %s189_s6 = int_to_ptr.vmem [resolvable:$true] %s188_s6 }
  0x11   : > { %p15716_p13 = scmp.ne.s32.totalorder %s176_s28, %s15715_s7  ;;  %p15723_p5 = scmp.lt.s32.totalorder %s176_s28, %s176_s28 }
  0x12   : > { %p15944_p11 = pnand %p15202_p9, %p19637_p1  ;;  %p15724_p7 = scmp.lt.s32.totalorder %s15715_s7, %s15715_s7 }
  0x14   : > { %p15706_p12 = pneg %p15944_p11  ;;  %p15725_p10 = por %p15724_p7, %p15723_p5 }
  0x16   : > { %p15718_p0 = pnand %p15716_p13, %p15706_p12 }
  0x18   : > { %p15719_p3 = pneg %p15718_p0 }
  0x1a   : > { %p15726_p9 = pnand %p15725_p10, %p15719_p3 }
  0x1c   : > { %15729 = shalt.err (!%p15726_p9)
}
  0x1d   : > { %s15856_s8 = smov 64   ;;  %s15857_s9 = smov 4  }
  0x1e   : > { %15205 = dma.hbm_to_vmem [thread:$0]  (!%p15944_p11), %s19632_s1, 1152, %s176_s28, [#allocation8], %s15856_s8, %s15856_s8, %s15857_s9  }
  0x1f   : > { %s15741_s12 = scalar_lea.vmem %s189_s6, 1152  ;;  %p15749_p2 = scmp.lt.s32.totalorder %s189_s6, %s189_s6 }
  0x20   : > { %p15742_p1 = scmp.ne.s32.totalorder %s189_s6, %s15741_s12  ;;  %p15750_p6 = scmp.lt.s32.totalorder %s15741_s12, %s15741_s12 }
  0x22   : > { %p15744_p13 = pnand %p15742_p1, %p15706_p12  ;;  %p15751_p5 = por %p15750_p6, %p15749_p2 }
  0x24   : > { %p15745_p0 = pneg %p15744_p13 }
  0x26   : > { %p15752_p10 = pnand %p15751_p5, %p15745_p0 }
  0x28   : > { %15755 = shalt.err (!%p15752_p10)
}
  0x29   : > { %15208 = dma.hbm_to_vmem [thread:$0]  (!%p15944_p11), %s19633_s2, 1152, %s189_s6, [#allocation8], %s15856_s8, %s15856_s8, %s15857_s9  }
  0x2a   : > { %s15967_s15 = sadd.s32 1, %s15852_s21   ;;  %s29_s16 = sadd.s32 1, %s15848_s20 }
  0x2b   : > { %s26_s17 = ssub.s32 %s15852_s21, %s15967_s15  ;;  %p36_p1 = scmp.ne.s32.totalorder %s15848_s20, %s15844_s19 }
  0x2c   : > { %p27_p2 = scmp.eq.s32.totalorder %s26_s17, 0  ;;  %p37_p6 = scmp.eq.s32.totalorder %s15852_s21, 0 }
  0x2d   : > { %p19676_p12 = scmp.eq.s32.totalorder %s15916_s22, 1  ;;  %p15219_p7 = scmp.lt.s32.totalorder %s15852_s21, 2 }
  0x2e   : > { %s15983_s27 = scalar_select %p27_p2, %s15848_s20, %s29_s16  }
  0x2f   : > { %p15977_p3 = por %p19676_p12, %p36_p1  ;;  %p38_p9 = por %p37_p6, %p36_p1 }
  0x30   : > { %s208_s28 = sand.u32 1, %s15848_s20   ;;  %s13593_s30 = sshll.u32 %s15852_s21, 12 }
  0x31   : > { %s19677_s23 = scalar_select %p15977_p3, 1, 0 }
  0x32   : > { %s12466_s29 = sshll.u32 %s208_s28, 8  ;;  %s15990_s8 = scalar_lea.hbm %s19631_s0, %s13593_s30 }
  0x33   : > { %s212_s9 = scalar_lea.vmem [#allocation4], %s12466_s29  ;;  %p15994_p11 = pnand %p15219_p7, %p38_p9 }
  0x34   : > { %s219_s10 = sshll.u32 %s212_s9, 4  ;;  %s15998_s12 = scalar_lea.sflag [#allocation5], %s208_s28  ;;  %s15992_s10 = int_to_ptr.vmem [resolvable:$true] %s219_s10 }
  0x35   : > { %s15756_s13 = scalar_lea.hbm %s15990_s8, 4096  ;;  %p15758_p0 = pneg %p15994_p11 }
  0x36   : > { %p15757_p13 = scmp.ne.s32.totalorder %s15990_s8, %s15756_s13  ;;  %s15761_s17 = scalar_lea.hbm %s19631_s0, 8192 }
  0x37   : > { %p15762_p1 = scmp.lt.s32.totalorder %s15990_s8, %s19631_s0  ;;  %p15763_p2 = scmp.lt.s32.totalorder %s15761_s17, %s15756_s13 }
  0x38   : > { %p15759_p5 = pnand %p15758_p0, %p15757_p13 }
  0x39   : > { %p15764_p6 = por %p15763_p2, %p15762_p1 }
  0x3a   : > { %p15760_p10 = pneg %p15759_p5 }
  0x3c   : > { %p15765_p12 = pnand %p15764_p6, %p15760_p10 }
  0x3e   : > { %15768 = shalt.err (!%p15765_p12)
}
  0x3f   : > { %s15769_s28 = scalar_lea.vmem %s15992_s10, 4096  ;;  %s15858_s6 = smov [#allocation4]  }
  0x40   : > { %p15770_p7 = scmp.ne.s32.totalorder %s15992_s10, %s15769_s28  ;;  %s15774_s7 = sshll.u32 %s15858_s6, 4  ;;  %s15775_s7 = int_to_ptr.vmem [resolvable:$false] %s15774_s7 }
  0x41   : > { %s15776_s9 = scalar_lea.vmem %s15775_s7, 8192  ;;  %p15777_p5 = scmp.lt.s32.totalorder %s15992_s10, %s15775_s7 }
  0x42   : > { %p15772_p9 = pnand %p15770_p7, %p15758_p0  ;;  %p15778_p3 = scmp.lt.s32.totalorder %s15776_s9, %s15769_s28 }
  0x44   : > { %p15773_p13 = pneg %p15772_p9  ;;  %p15779_p4 = por %p15778_p3, %p15777_p5 }
  0x46   : > { %p15780_p8 = pnand %p15779_p4, %p15773_p13 }
  0x48   : > { %15783 = shalt.err (!%p15780_p8)
}
  0x49   : > { %s15859_s13 = smov 128   ;;  %s15860_s14 = smov 8  }
  0x4a   : > { %15212 = dma.hbm_to_vmem [thread:$0]  (!%p15994_p11), %s15990_s8, 4096, %s15992_s10, %s15998_s12, %s15859_s13, %s15859_s13, %s15860_s14  }
  0x4b   : > { %p19679_p0 = scmp.ne.s32.totalorder %s19674_s26, 0 }
  0x4d   : > { %231 = sbr.rel (%p19679_p0) target bundleno = 1243 (0x4db), region = 40 }
  0x52   : > { %s16022_s16 = sand.u32 1, %s15844_s19   ;;  %p19680_p4 = scmp.ne.s32.totalorder %s19672_s24, 0 }
  0x53   : > { %s12470_s17 = sshll.u32 %s16022_s16, 8  ;;  %s234_s29 = scalar_lea.sflag [#allocation5], %s16022_s16 }
  0x54   : > { %s16026_s30 = scalar_lea.vmem [#allocation4], %s12470_s17 }
  0x55   : > { %15827 = dma.done.wait (%p19680_p4), %s234_s29, 4096  }
  0x56   : > { %15829 = vsyncadd (%p19680_p4), %s234_s29, 4294963200  ;;  %p19681_p8 = scmp.eq.s32.totalorder %s15916_s22, 0 }
  0x58   : > { %15831 = dma.done.wait (%p19681_p8), [#allocation8], 2304   ;;  %p19682_p3 = pmov %p19681_p8 }
  0x59   : > { %vm273_vm0 = vcmask 125952   ;;  %v15861_v0 = vmov 0   ;;  %v15264_v1 = vld [vmem:[#allocation7 + $0x8] sm:$0xff]   ;;  %v322_v2 = vld [vmem:[%s16026_s30] sm:$0xff]  ;;  %vm624_vm1 = vcmask 130048   ;;  %v15271_v14 = vld [vmem:[#allocation7 + $0x10] sm:$0xff]  }
  0x5a   : > { %15833 = vsyncadd (%p19682_p3), [#allocation8], 4294964992  ;;  %274 = vst.msk [vmem:[#allocation2] sm:$0xf] %vm273_vm0, %v15861_v0  ;;  %v323_v3 = vld [vmem:[%s16026_s30 + $0x8] sm:$0xff]  ;;  %14254 = vmatprep.subr.bf16.mxu0 %v15264_v1  ;;  %v13594_v5 = vpack.c.bf16 %v322_v2, %v322_v2  ;;  %v15270_v13 = vld [vmem:[#allocation7] sm:$0xff]  }
  0x5b   : > { %275 = vst.msk [vmem:[#allocation2 + $0x4] sm:$0xf] %vm273_vm0, %v15861_v0  ;;  %276 = vst.msk [vmem:[#allocation2 + $0x8] sm:$0xf] %vm273_vm0, %v15861_v0  ;;  %v13595_v6 = vpack.c.bf16 %v323_v3, %v323_v3  ;;  %14255 = vmatpush3.bf16.msra.mxu0 %v15264_v1  ;;  %14280 = vmatprep.subr.bf16.mxu1 %v15270_v13  ;;  %v16092_v19 = vld [vmem:[#allocation7 + $0x18] sm:$0xff]   ;;  %v12476_v24 = vld [vmem:[%s16026_s30 + $0x10] sm:$0xff] }
  0x5c   : > { %277 = vst.msk [vmem:[#allocation2 + $0xc] sm:$0xf] %vm273_vm0, %v15861_v0  ;;  %278 = vst.msk [vmem:[#allocation2 + $0x18] sm:$0xf] %vm273_vm0, %v15861_v0  ;;  %14281 = vmatpush3.bf16.msra.mxu1 %v15270_v13  ;;  %14306 = vmatprep.subr.bf16.mxu0 %v15271_v14  ;;  %v12477_v25 = vld [vmem:[%s16026_s30 + $0x18] sm:$0xff]  ;;  %v13596_v26 = vpack.c.bf16 %v12476_v24, %v12476_v24  ;;  %v12480_v28 = vld [vmem:[%s16026_s30 + $0x20] sm:$0xff] }
  0x5d   : > { %279 = vst.msk [vmem:[#allocation2 + $0x24] sm:$0xf] %vm273_vm0, %v15861_v0  ;;  %280 = vst.msk [vmem:[#allocation2 + $0x30] sm:$0xf] %vm273_vm0, %v15861_v0  ;;  %vm797_vm2 = vsmask.f32 4352  ;;  %14332 = vmatprep.subr.bf16.mxu1 %v16092_v19  ;;  %v13597_v27 = vpack.c.bf16 %v12477_v25, %v12477_v25  ;;  %v13598_v33 = vpack.c.bf16 %v12480_v28, %v12480_v28 }
  0x5e   : > { %281 = vst.msk [vmem:[#allocation2 + $0x3c] sm:$0xf] %vm273_vm0, %v15861_v0  ;;  %282 = vst.msk [vmem:[#allocation2 + $0x48] sm:$0xf] %vm273_vm0, %v15861_v0  ;;  %v12481_v29 = vld [vmem:[%s16026_s30 + $0x28] sm:$0xff]  ;;  %v12484_v35 = vld [vmem:[%s16026_s30 + $0x30] sm:$0xff] }
  0x5f   : > { %283 = vst.msk [vmem:[#allocation2 + $0x54] sm:$0xf] %vm273_vm0, %v15861_v0  ;;  %284 = vst.msk [vmem:[#allocation2 + $0x60] sm:$0xf] %vm273_vm0, %v15861_v0  ;;  %v13599_v34 = vpack.c.bf16 %v12481_v29, %v12481_v29  ;;  %v12485_v36 = vld [vmem:[%s16026_s30 + $0x38] sm:$0xff]  ;;  %v13600_v37 = vpack.c.bf16 %v12484_v35, %v12484_v35  ;;  %v12488_v39 = vld [vmem:[%s16026_s30 + $0x40] sm:$0xff] }
  0x60   : > { %285 = vst.msk [vmem:[#allocation2 + $0x6c] sm:$0xf] %vm273_vm0, %v15861_v0  ;;  %286 = vst.msk [vmem:[#allocation2 + $0x78] sm:$0xf] %vm273_vm0, %v15861_v0  ;;  %v13601_v38 = vpack.c.bf16 %v12485_v36, %v12485_v36  ;;  %v12489_v40 = vld [vmem:[%s16026_s30 + $0x48] sm:$0xff]  ;;  %v13602_v44 = vpack.c.bf16 %v12488_v39, %v12488_v39  ;;  %v12492_v49 = vld [vmem:[%s16026_s30 + $0x50] sm:$0xff] }
  0x61   : > { %287 = vst.msk [vmem:[#allocation2 + $0x84] sm:$0xf] %vm273_vm0, %v15861_v0  ;;  %288 = vst.msk [vmem:[#allocation2 + $0x90] sm:$0xf] %vm273_vm0, %v15861_v0  ;;  %v529_v4 = vld [vmem:[#allocation2] sm:$0x8]  ;;  %v13603_v45 = vpack.c.bf16 %v12489_v40, %v12489_v40  ;;  %v13604_v52 = vpack.c.bf16 %v12492_v49, %v12492_v49 }
  0x62   : > { %289 = vst.msk [vmem:[#allocation2 + $0x9c] sm:$0xf] %vm273_vm0, %v15861_v0  ;;  %290 = vst.msk [vmem:[#allocation2 + $0xa8] sm:$0xf] %vm273_vm0, %v15861_v0  ;;  %v530_v7 = vld [vmem:[#allocation2 + $0x4] sm:$0xf] }
  0x63   : > { %291 = vst.msk [vmem:[#allocation2 + $0xb4] sm:$0xf] %vm273_vm0, %v15861_v0  ;;  %292 = vst.msk [vmem:[#allocation2 + $0xc0] sm:$0xf] %vm273_vm0, %v15861_v0  ;;  %v531_v8 = vld [vmem:[#allocation2 + $0x8] sm:$0xf]  ;;  %v12561_v11 = vcombine.low %v529_v4, %v530_v7 }
  0x64   : > { %293 = vst.msk [vmem:[#allocation2 + $0xcc] sm:$0xf] %vm273_vm0, %v15861_v0  ;;  %294 = vst.msk [vmem:[#allocation2 + $0xd0] sm:$0xf] %vm273_vm0, %v15861_v0  ;;  %v16086_v9 = vld [vmem:[#allocation2 + $0xc] sm:$0xf]  ;;  %v12536_v10 = vcombine.low %v530_v7, %v531_v8 }
  0x65   : > { %295 = vst.msk [vmem:[#allocation2 + $0xd4] sm:$0xf] %vm273_vm0, %v15861_v0  ;;  %296 = vst.msk [vmem:[#allocation2 + $0xd8] sm:$0xf] %vm273_vm0, %v15861_v0  ;;  %v12562_v12 = vcombine.low %v531_v8, %v16086_v9  ;;  %v799_v15 = vshrl.u32 %v12561_v11, 16  ;;  %v802_v16 = vshll.u32 %v12561_v11, 16 }
  0x66   : > { %297 = vst.msk [vmem:[#allocation2 + $0xdc] sm:$0xf] %vm273_vm0, %v15861_v0  ;;  %298 = vst.msk [vmem:[#allocation3] sm:$0xf] %vm273_vm0, %v15861_v0  ;;  %14256 = vmatprep.mubr.msk.bf16.mxu0 %vm624_vm1, %v12536_v10  ;;  %v535_v32 = vld [vmem:[#allocation2 + $0x18] sm:$0xf] }
  0x67   : > { %299 = vst.msk [vmem:[#allocation3 + $0x4] sm:$0xf] %vm273_vm0, %v15861_v0  ;;  %300 = vst.msk [vmem:[#allocation3 + $0x8] sm:$0xf] %vm273_vm0, %v15861_v0  ;;  %v807_v17 = vshrl.u32 %v12562_v12, 16  ;;  %v810_v18 = vshll.u32 %v12562_v12, 16 }
  0x68   : > { %301 = vst.msk [vmem:[#allocation3 + $0xc] sm:$0xf] %vm273_vm0, %v15861_v0  ;;  %302 = vst.msk [vmem:[#allocation3 + $0x18] sm:$0xf] %vm273_vm0, %v15861_v0  ;;  %v801_v20 = vrot.slane %v799_v15, 3  ;;  %v804_v21 = vrot.slane %v802_v16, 4 }
  0x69   : > { %303 = vst.msk [vmem:[#allocation3 + $0x24] sm:$0xf] %vm273_vm0, %v15861_v0  ;;  %304 = vst.msk [vmem:[#allocation3 + $0x30] sm:$0xf] %vm273_vm0, %v15861_v0  ;;  %v809_v22 = vrot.slane %v807_v17, 3  ;;  %v812_v23 = vrot.slane %v810_v18, 4 }
  0x6a   : > { %305 = vst.msk [vmem:[#allocation3 + $0x3c] sm:$0xf] %vm273_vm0, %v15861_v0  ;;  %306 = vst.msk [vmem:[#allocation3 + $0x48] sm:$0xf] %vm273_vm0, %v15861_v0  ;;  %v805_v30 = vor.u32 %v804_v21, %v801_v20  ;;  %v12493_v50 = vld [vmem:[%s16026_s30 + $0x58] sm:$0xff]  ;;  %v12496_v51 = vld [vmem:[%s16026_s30 + $0x60] sm:$0xff] }
  0x6b   : > { %307 = vst.msk [vmem:[#allocation3 + $0x54] sm:$0xf] %vm273_vm0, %v15861_v0  ;;  %308 = vst.msk [vmem:[#allocation3 + $0x60] sm:$0xf] %vm273_vm0, %v15861_v0  ;;  %v813_v31 = vor.u32 %v812_v23, %v809_v22  ;;  %v13605_v53 = vpack.c.bf16 %v12493_v50, %v12493_v50  ;;  %v13606_v54 = vpack.c.bf16 %v12496_v51, %v12496_v51  ;;  %v12497_v55 = vld [vmem:[%s16026_s30 + $0x68] sm:$0xff]  ;;  %v16128_v11 = vld [vmem:[#allocation7 + $0x20] sm:$0xff]  }
  0x6c   : > { %309 = vst.msk [vmem:[#allocation3 + $0x6c] sm:$0xf] %vm273_vm0, %v15861_v0  ;;  %310 = vst.msk [vmem:[#allocation3 + $0x78] sm:$0xf] %vm273_vm0, %v15861_v0  ;;  %v13607_v58 = vpack.c.bf16 %v12497_v55, %v12497_v55  ;;  %v538_v59 = vld [vmem:[#allocation2 + $0x24] sm:$0xf] }
  0x6d   : > { %311 = vst.msk [vmem:[#allocation3 + $0x84] sm:$0xf] %vm273_vm0, %v15861_v0  ;;  %312 = vst.msk [vmem:[#allocation3 + $0x90] sm:$0xf] %vm273_vm0, %v15861_v0  ;;  %v814_v43 = vsel %vm797_vm2, %v805_v30, %v813_v31  ;;  %v16126_v10 = vld [vmem:[#allocation2 + $0x3c] sm:$0xf] }
  0x6e   : > { %313 = vst.msk [vmem:[#allocation3 + $0x9c] sm:$0xf] %vm273_vm0, %v15861_v0  ;;  %314 = vst.msk [vmem:[#allocation3 + $0xa8] sm:$0xf] %vm273_vm0, %v15861_v0  ;;  %14282 = vmatprep.mubr.msk.bf16.mxu1 %vm624_vm1, %v814_v43  ;;  %v16131_v17 = vld [vmem:[#allocation7 + $0x28] sm:$0xff]   ;;  %s12473_s28 = sshll.u32 %s16022_s16, 7 }
  0x6f   : > { %315 = vst.msk [vmem:[#allocation3 + $0xb4] sm:$0xf] %vm273_vm0, %v15861_v0  ;;  %316 = vst.msk [vmem:[#allocation3 + $0xc0] sm:$0xf] %vm273_vm0, %v15861_v0  ;;  %v16156_v50 = vld [vmem:[#allocation2 + $0x54] sm:$0xf] }
  0x70   : > { %317 = vst.msk [vmem:[#allocation3 + $0xcc] sm:$0xf] %vm273_vm0, %v15861_v0  ;;  %318 = vst.msk [vmem:[#allocation3 + $0xd0] sm:$0xf] %vm273_vm0, %v15861_v0  ;;  %vm1167_vm3 = vsmask.f32 7424 }
  0x71   : > { %319 = vst.msk [vmem:[#allocation3 + $0xd4] sm:$0xf] %vm273_vm0, %v15861_v0  ;;  %320 = vst.msk [vmem:[#allocation3 + $0xd8] sm:$0xf] %vm273_vm0, %v15861_v0  ;;  %s19178_s6 = scalar_lea.vmem [#allocation10], %s12473_s28  ;;  %s13690_s13 = sshll.u32 %s15916_s22, 11 }
  0x72   : > { %321 = vst.msk [vmem:[#allocation3 + $0xdc] sm:$0xf] %vm273_vm0, %v15861_v0  ;;  %332 = vst.msk [vmem:[#allocation2 + $0x10] sm:$0xf] %vm273_vm0, %v13594_v5  ;;  %v16124_v0 = vld [vmem:[#allocation2 + $0x30] sm:$0xf] }
  0x73   : > { %333 = vst.msk [vmem:[#allocation2 + $0x14] sm:$0xf] %vm273_vm0, %v13595_v6  ;;  %345 = vst.msk [vmem:[#allocation2 + $0x1c] sm:$0xf] %vm273_vm0, %v13596_v26  ;;  %s12369_s14 = sshll.u32 %s19178_s6, 4  ;;  %s12356_s24 = scalar_lea.sflag [#allocation6], %s16022_s16  ;;  %s19587_s14 = int_to_ptr.vmem [resolvable:$true] %s12369_s14 }
  0x74   : > { %346 = vst.msk [vmem:[#allocation2 + $0x20] sm:$0xf] %vm273_vm0, %v13597_v27  ;;  %358 = vst.msk [vmem:[#allocation2 + $0x28] sm:$0xf] %vm273_vm0, %v13598_v33  ;;  %s15784_s26 = scalar_lea.vmem %s19587_s14, 2048  ;;  %p19855_p10 = scmp.ne.s32.totalorder %s19677_s23, 0 }
  0x75   : > { %359 = vst.msk [vmem:[#allocation2 + $0x2c] sm:$0xf] %vm273_vm0, %v13599_v34  ;;  %371 = vst.msk [vmem:[#allocation2 + $0x34] sm:$0xf] %vm273_vm0, %v13600_v37  ;;  %v547_v34 = vld [vmem:[#allocation2 + $0x48] sm:$0xf]  ;;  %p15785_p11 = scmp.ne.s32.totalorder %s19587_s14, %s15784_s26 }
  0x76   : > { %372 = vst.msk [vmem:[#allocation2 + $0x38] sm:$0xf] %vm273_vm0, %v13601_v38  ;;  %384 = vst.msk [vmem:[#allocation2 + $0x40] sm:$0xf] %vm273_vm0, %v13602_v44  ;;  %s15862_s22 = smov [#allocation10]  }
  0x77   : > { %385 = vst.msk [vmem:[#allocation2 + $0x44] sm:$0xf] %vm273_vm0, %v13603_v45  ;;  %397 = vst.msk [vmem:[#allocation2 + $0x4c] sm:$0xf] %vm273_vm0, %v13604_v52  ;;  %p15786_p1 = pnand %p15785_p11, %p19855_p10  ;;  %s15788_s8 = sshll.u32 %s15862_s22, 4  ;;  %s15789_s8 = int_to_ptr.vmem [resolvable:$false] %s15788_s8 }
  0x78   : > { %398 = vst.msk [vmem:[#allocation2 + $0x50] sm:$0xf] %vm273_vm0, %v13605_v53  ;;  %410 = vst.msk [vmem:[#allocation2 + $0x58] sm:$0xf] %vm273_vm0, %v13606_v54  ;;  %s15790_s10 = scalar_lea.vmem %s15789_s8, 4096  ;;  %p15791_p6 = scmp.lt.s32.totalorder %s19587_s14, %s15789_s8 }
  0x79   : > { %v533_v41 = vld [vmem:[#allocation2 + $0x10] sm:$0xf]  ;;  %411 = vst.msk [vmem:[#allocation2 + $0x5c] sm:$0xf] %vm273_vm0, %v13607_v58  ;;  %p15787_p2 = pneg %p15786_p1  ;;  %p15792_p12 = scmp.lt.s32.totalorder %s15790_s10, %s15784_s26 }
  0x7a   : > { %v534_v42 = vld [vmem:[#allocation2 + $0x14] sm:$0xf]  ;;  %v12537_v46 = vcombine.low %v16086_v9, %v533_v41  ;;  %v536_v62 = vld [vmem:[#allocation2 + $0x1c] sm:$0xf] }
  0x7b   : > { %v12563_v47 = vcombine.low %v533_v41, %v534_v42  ;;  %v12538_v48 = vcombine.low %v534_v42, %v535_v32  ;;  %v537_v63 = vld [vmem:[#allocation2 + $0x20] sm:$0xf]  ;;  %v12564_v3 = vcombine.low %v535_v32, %v536_v62  ;;  %v539_v4 = vld [vmem:[#allocation2 + $0x28] sm:$0xf]  ;;  %p15793_p7 = por %p15792_p12, %p15791_p6 }
  0x7c   : > { %14257 = vmatmul.mubr.msk.bf16.vlgmr.msra.gmra.mxu0 %vm624_vm1, %v12537_v46  ;;  %v12539_v2 = vcombine.low %v536_v62, %v537_v63  ;;  %v12565_v5 = vcombine.low %v537_v63, %v538_v59  ;;  %v540_v6 = vld [vmem:[#allocation2 + $0x2c] sm:$0xf]  ;;  %v12540_v7 = vcombine.low %v538_v59, %v539_v4  ;;  %v542_v9 = vld [vmem:[#allocation2 + $0x34] sm:$0xf] }
  0x7d   : > { %v816_v56 = vshrl.u32 %v12563_v47, 16  ;;  %v819_v57 = vshll.u32 %v12563_v47, 16  ;;  %14307 = vmatpush3.bf16.msra.mxu0 %v15271_v14  ;;  %14260 = vmatprep.mubr.msk.bf16.mxu0 %vm624_vm1, %v12538_v48  ;;  %v12566_v8 = vcombine.low %v539_v4, %v540_v6  ;;  %v825_v13 = vshrl.u32 %v12564_v3, 16  ;;  %v543_v16 = vld [vmem:[#allocation2 + $0x38] sm:$0xf]  ;;  %v15283_v4 = vld [vmem:[#allocation2 + $0x4] sm:$0xff]   ;;  %p15794_p9 = pnand %p15793_p7, %p15787_p2 }
  0x7e   : > { %v828_v14 = vshll.u32 %v12564_v3, 16  ;;  %v834_v15 = vshrl.u32 %v12565_v5, 16  ;;  %v837_v18 = vshll.u32 %v12565_v5, 16  ;;  %v16134_v22 = vld [vmem:[#allocation2 + $0x40] sm:$0xf]  ;;  %14358 = vmatprep.subr.bf16.mxu0 %v16128_v11  ;;  %v12567_v26 = vcombine.low %v16124_v0, %v542_v9 }
  0x7f   : > { %v818_v60 = vrot.slane %v816_v56, 3  ;;  %v821_v61 = vrot.slane %v819_v57, 4  ;;  %v843_v20 = vshrl.u32 %v12566_v8, 16  ;;  %v846_v21 = vshll.u32 %v12566_v8, 16  ;;  %v16140_v27 = vld [vmem:[#allocation2 + $0x44] sm:$0xf] }
  0x80   : > { %v827_v23 = vrot.slane %v825_v13, 3  ;;  %v830_v24 = vrot.slane %v828_v14, 4  ;;  %v836_v25 = vrot.slane %v834_v15, 3  ;;  %v839_v28 = vrot.slane %v837_v18, 4  ;;  %v16149_v43 = vld [vmem:[#allocation2 + $0x4c] sm:$0xf] }
  0x81   : > { %v822_v1 = vor.u32 %v821_v61, %v818_v60  ;;  %v845_v29 = vrot.slane %v843_v20, 3  ;;  %v848_v30 = vrot.slane %v846_v21, 4  ;;  %v852_v32 = vshrl.u32 %v12567_v26, 16  ;;  %v16154_v49 = vld [vmem:[#allocation2 + $0x50] sm:$0xf] }
  0x82   : > { %v855_v33 = vshll.u32 %v12567_v26, 16  ;;  %v840_v35 = vor.u32 %v839_v28, %v836_v25  ;;  %v12541_v36 = vcombine.low %v540_v6, %v16124_v0  ;;  %v12569_v38 = vcombine.low %v16134_v22, %v16140_v27  ;;  %v16160_v53 = vld [vmem:[#allocation2 + $0x58] sm:$0xf]  ;;  %v16162_v54 = vld [vmem:[#allocation2 + $0x5c] sm:$0xf] }
  0x83   : > { %v823_v12 = vsel %vm797_vm2, %v813_v31, %v822_v1  ;;  %v831_v31 = vor.u32 %v830_v24, %v827_v23  ;;  %v849_v37 = vor.u32 %v848_v30, %v845_v29  ;;  %v854_v40 = vrot.slane %v852_v32, 3  ;;  %v1447_v21 = vld [vmem:[#allocation2 + $0xc] sm:$0x8]  ;;  %v16188_v23 = vld [vmem:[#allocation2 + $0x14] sm:$0xf] }
  0x84   : > { %14283 = vmatmul.mubr.msk.bf16.vlgmr.msra.gmra.mxu1 %vm624_vm1, %v823_v12  ;;  %14261 = vmatmul.mubr.msk.bf16.gmra.mxu0 %vm624_vm1, %v12539_v2  ;;  %v857_v41 = vrot.slane %v855_v33, 4  ;;  %v12542_v46 = vcombine.low %v542_v9, %v543_v16  ;;  %v12570_v52 = vcombine.low %v547_v34, %v16149_v43  ;;  %v870_v56 = vshrl.u32 %v12569_v38, 16  ;;  %v16172_v2 = vld [vmem:[#allocation2 + $0x60] sm:$0xf]  ;;  %v16190_v24 = vld [vmem:[#allocation2 + $0x18] sm:$0xf] }
  0x85   : > { %14333 = vmatpush3.bf16.msra.mxu1 %v16092_v19  ;;  %14264 = vmatprep.mubr.msk.bf16.mxu0 %vm624_vm1, %v12540_v7  ;;  %v12568_v19 = vcombine.low %v543_v16, %v16126_v10  ;;  %v832_v39 = vsel %vm797_vm2, %v822_v1, %v831_v31  ;;  %v841_v44 = vsel %vm797_vm2, %v831_v31, %v840_v35  ;;  %v873_v57 = vshll.u32 %v12569_v38, 16  ;;  %v16183_v16 = vld [vmem:[#allocation2 + $0xc] sm:$0xff]  }
  0x86   : > { %14384 = vmatprep.subr.bf16.mxu1 %v16131_v17  ;;  %14286 = vmatprep.mubr.msk.bf16.mxu1 %vm624_vm1, %v832_v39  ;;  %v850_v45 = vsel %vm797_vm2, %v840_v35, %v849_v37  ;;  %v858_v55 = vor.u32 %v857_v41, %v854_v40  ;;  %v879_v59 = vshrl.u32 %v12570_v52, 16  ;;  %v882_v60 = vshll.u32 %v12570_v52, 16  ;;  %v15285_v41 = vld [vmem:[#allocation2 + $0x14] sm:$0xff]   ;;  %v16210_v52 = vld [vmem:[#allocation2 + $0x1c] sm:$0xff]  }
  0x87   : > { %v861_v42 = vshrl.u32 %v12568_v19, 16  ;;  %v864_v47 = vshll.u32 %v12568_v19, 16  ;;  %v12543_v61 = vcombine.low %v16126_v10, %v16134_v22  ;;  %v12571_v62 = vcombine.low %v16154_v49, %v16156_v50  ;;  %v16186_v22 = vld [vmem:[#allocation2 + $0x10] sm:$0xf] }
  0x88   : > { %v859_v63 = vsel %vm797_vm2, %v849_v37, %v858_v55  ;;  %v872_v0 = vrot.slane %v870_v56, 3  ;;  %v875_v1 = vrot.slane %v873_v57, 4  ;;  %v12572_v3 = vcombine.low %v16160_v53, %v16162_v54  ;;  %v16216_v56 = vld [vmem:[#allocation2 + $0x24] sm:$0xf]  ;;  %v16218_v57 = vld [vmem:[#allocation2 + $0x28] sm:$0xf] }
  0x89   : > { %v863_v48 = vrot.slane %v861_v42, 3  ;;  %v866_v51 = vrot.slane %v864_v47, 4  ;;  %v12544_v6 = vcombine.low %v16140_v27, %v547_v34  ;;  %v881_v7 = vrot.slane %v879_v59, 3  ;;  %v16205_v42 = vld [vmem:[#allocation2 + $0x1c] sm:$0xf] }
  0x8a   : > { %v884_v8 = vrot.slane %v882_v60, 4  ;;  %v888_v9 = vshrl.u32 %v12571_v62, 16  ;;  %v891_v10 = vshll.u32 %v12571_v62, 16  ;;  %v12573_v12 = vcombine.low %v16172_v2, %v16172_v2 }
  0x8b   : > { %v867_v58 = vor.u32 %v866_v51, %v863_v48  ;;  %v876_v13 = vor.u32 %v875_v1, %v872_v0  ;;  %v897_v14 = vshrl.u32 %v12572_v3, 16  ;;  %v900_v15 = vshll.u32 %v12572_v3, 16 }
  0x8c   : > { %14287 = vmatmul.mubr.msk.bf16.gmra.mxu1 %vm624_vm1, %v841_v44  ;;  %14265 = vmatmul.mubr.msk.bf16.gmra.mxu0 %vm624_vm1, %v12541_v36  ;;  %v1171_v18 = vshll.u32 %v15283_v4, 16  ;;  %v885_v20 = vor.u32 %v884_v8, %v881_v7  ;;  %v890_v25 = vrot.slane %v888_v9, 3  ;;  %v893_v26 = vrot.slane %v891_v10, 4  ;;  %v16228_v9 = vld [vmem:[#allocation2 + $0x2c] sm:$0xf] }
  0x8d   : > { %14290 = vmatprep.mubr.msk.bf16.mxu1 %vm624_vm1, %v850_v45  ;;  %14268 = vmatprep.mubr.msk.bf16.mxu0 %vm624_vm1, %v12542_v46  ;;  %v868_v5 = vsel %vm797_vm2, %v858_v55, %v867_v58  ;;  %v906_v27 = vshrl.u32 %v12573_v12, 16  ;;  %v877_v28 = vsel %vm797_vm2, %v867_v58, %v876_v13  ;;  %v12545_v29 = vcombine.low %v16149_v43, %v16154_v49  ;;  %v16207_v43 = vld [vmem:[#allocation2 + $0x20] sm:$0xf]  ;;  %v16230_v10 = vld [vmem:[#allocation2 + $0x30] sm:$0xf] }
  0x8e   : > { %v899_v30 = vrot.slane %v897_v14, 3  ;;  %v902_v31 = vrot.slane %v900_v15, 4  ;;  %v886_v32 = vsel %vm797_vm2, %v876_v13, %v885_v20  ;;  %v12546_v33 = vcombine.low %v16156_v50, %v16160_v53  ;;  %v16234_v14 = vld [vmem:[#allocation2 + $0x2c] sm:$0xff]   ;;  %v16236_v15 = vld [vmem:[#allocation2 + $0x34] sm:$0xf] }
  0x8f   : > { %v12613_v19 = vcombine.low %v1447_v21, %v16186_v22  ;;  %v12614_v34 = vcombine.low %v16188_v23, %v16190_v24  ;;  %v909_v35 = vshll.u32 %v12573_v12, 16  ;;  %v1169_v36 = vshrl.u32 %v15283_v4, 16  ;;  %v15293_v4 = vld [vmem:[#allocation2 + $0x24] sm:$0xff]  }
  0x90   : > { %v1173_v37 = vrot.slane %v1171_v18, 1  ;;  %v1176_v38 = vshll.u32 %v16183_v16, 16  ;;  %v894_v39 = vor.u32 %v893_v26, %v890_v25  ;;  %v903_v40 = vor.u32 %v902_v31, %v899_v30 }
  0x91   : > { %v1538_v44 = vshrl.u32 %v12613_v19, 16  ;;  %v1541_v45 = vshll.u32 %v12613_v19, 16  ;;  %v1546_v46 = vshrl.u32 %v12614_v34, 16  ;;  %v1549_v47 = vshll.u32 %v12614_v34, 16 }
  0x92   : > { %v908_v48 = vrot.slane %v906_v27, 3  ;;  %v911_v49 = vrot.slane %v909_v35, 4  ;;  %v1174_v50 = vor.u32 %v1173_v37, %v1169_v36  ;;  %v1178_v51 = vrot.slane %v1176_v38, 1  ;;  %v16248_v37 = vld [vmem:[#allocation2 + $0x34] sm:$0xff]  }
  0x93   : > { %v12547_v53 = vcombine.low %v16162_v54, %v16172_v2  ;;  %v12615_v55 = vcombine.low %v16205_v42, %v16207_v43  ;;  %v895_v58 = vsel %vm797_vm2, %v885_v20, %v894_v39  ;;  %v904_v59 = vsel %vm797_vm2, %v894_v39, %v903_v40  ;;  %v16239_v20 = vld [vmem:[#allocation2 + $0x38] sm:$0xf]  ;;  %v16252_v39 = vld [vmem:[#allocation7 + $0x30] sm:$0xff]  }
  0x94   : > { %14291 = vmatmul.mubr.msk.bf16.gmra.mxu1 %vm624_vm1, %v859_v63  ;;  %14269 = vmatmul.mubr.msk.bf16.gmra.mxu0 %vm624_vm1, %v12543_v61  ;;  %v1180_v60 = vshrl.u32 %v16183_v16, 16  ;;  %v1184_v61 = vshll.u32 %v15285_v41, 16  ;;  %v1540_v62 = vrot.slane %v1538_v44, 3  ;;  %v1543_v63 = vrot.slane %v1541_v45, 4 }
  0x95   : > { %14294 = vmatprep.mubr.msk.bf16.mxu1 %vm624_vm1, %v868_v5  ;;  %14272 = vmatprep.mubr.msk.bf16.mxu0 %vm624_vm1, %v12544_v6  ;;  %v1548_v0 = vrot.slane %v1546_v46, 3  ;;  %v1551_v1 = vrot.slane %v1549_v47, 4  ;;  %v1179_v54 = vsel %vm1167_vm3, %v1174_v50, %v1178_v51  ;;  %v1188_v2 = vshrl.u32 %v15285_v41, 16  ;;  %v16256_v46 = vld [vmem:[#allocation2 + $0x3c] sm:$0xf] }
  0x96   : > { %v1192_v3 = vshll.u32 %v16210_v52, 16  ;;  %v12616_v5 = vcombine.low %v16216_v56, %v16218_v57  ;;  %v912_v6 = vor.u32 %v911_v49, %v908_v48  ;;  %v1555_v7 = vshrl.u32 %v12615_v55, 16  ;;  %v16258_v47 = vld [vmem:[#allocation2 + $0x40] sm:$0xf] }
  0x97   : > { %v1558_v8 = vshll.u32 %v12615_v55, 16  ;;  %v1182_v12 = vor.u32 %v1180_v60, %v1178_v51  ;;  %v1186_v13 = vrot.slane %v1184_v61, 1  ;;  %v1544_v16 = vor.u32 %v1543_v63, %v1540_v62  ;;  %v16262_v51 = vld [vmem:[#allocation2 + $0x44] sm:$0xf]  ;;  %v16267_v62 = vld [vmem:[#allocation2 + $0x3c] sm:$0xff]  }
  0x98   : > { %v1552_v18 = vor.u32 %v1551_v1, %v1548_v0  ;;  %v1194_v25 = vrot.slane %v1192_v3, 1  ;;  %v1564_v26 = vshrl.u32 %v12616_v5, 16  ;;  %v1567_v27 = vshll.u32 %v12616_v5, 16  ;;  %v16269_v63 = vld [vmem:[#allocation2 + $0x48] sm:$0xf] }
  0x99   : > { %v1190_v21 = vor.u32 %v1188_v2, %v1186_v13  ;;  %v1560_v30 = vrot.slane %v1558_v8, 4  ;;  %v1187_v31 = vsel %vm1167_vm3, %v1182_v12, %v1186_v13  ;;  %v12617_v19 = vcombine.low %v16228_v9, %v16230_v10 }
  0x9a   : > { %v1553_v34 = vsel %vm797_vm2, %v1544_v16, %v1552_v18  ;;  %v1204_v35 = vshrl.u32 %v15293_v4, 16  ;;  %v1208_v36 = vshll.u32 %v16234_v14, 16  ;;  %v12618_v38 = vcombine.low %v16236_v15, %v16239_v20 }
  0x9b   : > { %v1566_v41 = vrot.slane %v1564_v26, 3  ;;  %v1569_v44 = vrot.slane %v1567_v27, 4  ;;  %v1573_v49 = vshrl.u32 %v12617_v19, 16  ;;  %v1576_v50 = vshll.u32 %v12617_v19, 16  ;;  %v15301_v27 = vld [vmem:[#allocation2 + $0x44] sm:$0xff]  }
  0x9c   : > { %14295 = vmatmul.mubr.msk.bf16.gmra.mxu1 %vm624_vm1, %v877_v28  ;;  %14273 = vmatmul.mubr.msk.bf16.gmra.mxu0 %vm624_vm1, %v12545_v29  ;;  %v913_v28 = vsel %vm797_vm2, %v903_v40, %v912_v6  ;;  %v1557_v29 = vrot.slane %v1555_v7, 3  ;;  %v1195_v40 = vsel %vm1167_vm3, %v1190_v21, %v1194_v25  ;;  %v1582_v55 = vshrl.u32 %v12618_v38, 16  ;;  %v16286_v21 = vld [vmem:[#allocation7 + $0x38] sm:$0xff]  }
  0x9d   : > { %14298 = vmatprep.mubr.msk.bf16.mxu1 %vm624_vm1, %v886_v32  ;;  %14276 = vmatprep.mubr.msk.bf16.mxu0 %vm624_vm1, %v12546_v33  ;;  %v1196_v32 = vshrl.u32 %v16210_v52, 16  ;;  %v1200_v33 = vshll.u32 %v15293_v4, 16  ;;  %v12500_v52 = vld [vmem:[%s16026_s30 + $0x70] sm:$0xff]  ;;  %v1210_v61 = vrot.slane %v1208_v36, 1  ;;  %v1212_v1 = vshrl.u32 %v16234_v14, 16 }
  0x9e   : > { %v1561_v45 = vor.u32 %v1560_v30, %v1557_v29  ;;  %v1575_v2 = vrot.slane %v1573_v49, 3  ;;  %v1578_v3 = vrot.slane %v1576_v50, 4  ;;  %v12619_v4 = vcombine.low %v16256_v46, %v16258_v47  ;;  %v16297_v36 = vld [vmem:[#allocation2 + $0x54] sm:$0xf] }
  0x9f   : > { %v1202_v48 = vrot.slane %v1200_v33, 1  ;;  %v13608_v5 = vpack.c.bf16 %v12500_v52, %v12500_v52  ;;  %v1584_v7 = vrot.slane %v1582_v55, 3  ;;  %v12620_v12 = vcombine.low %v16262_v51, %v16269_v63  ;;  %v16293_v33 = vld [vmem:[#allocation2 + $0x50] sm:$0xf] }
  0xa0   : > { %v1562_v0 = vsel %vm797_vm2, %v1552_v18, %v1561_v45  ;;  %v1220_v16 = vshrl.u32 %v16248_v37, 16  ;;  %v1224_v18 = vshll.u32 %v16267_v62, 16  ;;  %v1579_v29 = vor.u32 %v1578_v3, %v1575_v2 }
  0xa1   : > { %v1206_v60 = vor.u32 %v1204_v35, %v1202_v48  ;;  %423 = vst.msk [vmem:[#allocation2 + $0x64] sm:$0xf] %vm273_vm0, %v13608_v5  ;;  %v1591_v30 = vshrl.u32 %v12619_v4, 16  ;;  %v1603_v35 = vshll.u32 %v12620_v12, 16  ;;  %v1232_v52 = vshll.u32 %v15301_v27, 16 }
  0xa3   : > { %v1211_v14 = vsel %vm1167_vm3, %v1206_v60, %v1210_v61  ;;  %v1593_v49 = vrot.slane %v1591_v30, 3  ;;  %v1234_v3 = vrot.slane %v1232_v52, 1 }
  0xa4   : > { %14299 = vmatmul.mubr.msk.bf16.gmra.mxu1 %vm624_vm1, %v895_v58  ;;  %14277 = vmatmul.mubr.msk.bf16.gmra.mxu0 %vm624_vm1, %v12547_v53  ;;  %v1198_v53 = vor.u32 %v1196_v32, %v1194_v25  ;;  %v1585_v58 = vshll.u32 %v12618_v38, 16  ;;  %v1214_v25 = vor.u32 %v1212_v1, %v1210_v61  ;;  %v16291_v32 = vld [vmem:[#allocation2 + $0x4c] sm:$0xf] }
  0xa5   : > { %14302 = vmatprep.mubr.msk.bf16.mxu1 %vm624_vm1, %v904_v59  ;;  %14308 = vmatprep.mubr.msk.bf16.mxu0 %vm624_vm1, %v1179_v54  ;;  %v1570_v59 = vor.u32 %v1569_v44, %v1566_v41  ;;  %v12501_v54 = vld [vmem:[%s16026_s30 + $0x78] sm:$0xff]  ;;  %v15303_v38 = vld [vmem:[#allocation2 + $0x4c] sm:$0xff]   ;;  %v1228_v44 = vshrl.u32 %v16267_v62, 16 }
  0xa6   : > { %v1203_v6 = vsel %vm1167_vm3, %v1198_v53, %v1202_v48  ;;  %v1587_v8 = vrot.slane %v1585_v58, 4  ;;  %v1605_v58 = vrot.slane %v1603_v35, 4  ;;  %v1240_v1 = vshll.u32 %v15303_v38, 16 }
  0xa7   : > { %v1571_v13 = vsel %vm797_vm2, %v1561_v45, %v1570_v59  ;;  %v12621_v45 = vcombine.low %v16291_v32, %v16293_v33  ;;  %v1580_v48 = vsel %vm797_vm2, %v1570_v59, %v1579_v29 }
  0xa8   : > { %v1588_v19 = vor.u32 %v1587_v8, %v1584_v7  ;;  %v16316_v7 = vld [vmem:[#allocation2 + $0x5c] sm:$0xf]  ;;  %v16318_v8 = vld [vmem:[#allocation2 + $0x60] sm:$0xf] }
  0xa9   : > { %v1609_v62 = vshrl.u32 %v12621_v45, 16  ;;  %v15309_v52 = vld [vmem:[#allocation2 + $0x64] ss:$0 sps:$4 sm:$0x11]  }
  0xaa   : > { %v1589_v53 = vsel %vm797_vm2, %v1579_v29, %v1588_v19 }
  0xac   : > { %14303 = vmatmul.mubr.msk.bf16.gmra.mxu1 %vm624_vm1, %v913_v28  ;;  %14309 = vmatmul.mubr.msk.bf16.vlgmr.msra.gmra.mxu0 %vm624_vm1, %v1187_v31  ;;  %v13609_v28 = vpack.c.bf16 %v12501_v54, %v12501_v54  ;;  %v1594_v31 = vshll.u32 %v12619_v4, 16  ;;  %v15305_v54 = vld [vmem:[#allocation2 + $0x54] sm:$0xff]  }
  0xad   : > { %14334 = vmatprep.mubr.msk.bf16.mxu1 %vm624_vm1, %v1553_v34  ;;  %14359 = vmatpush3.bf16.msra.mxu0 %v16128_v11  ;;  %v1216_v11 = vshll.u32 %v16248_v37, 16  ;;  %v1600_v34 = vshrl.u32 %v12620_v12, 16  ;;  %v1226_v37 = vrot.slane %v1224_v18, 1 }
  0xae   : > { %14312 = vmatprep.mubr.msk.bf16.mxu0 %vm624_vm1, %v1195_v40  ;;  %14410 = vmatprep.subr.bf16.mxu0 %v16252_v39  ;;  %424 = vst.msk [vmem:[#allocation2 + $0x68] sm:$0xf] %vm273_vm0, %v13609_v28  ;;  %v16300_v40 = vld [vmem:[#allocation2 + $0x58] sm:$0xf]  ;;  %v1596_v50 = vrot.slane %v1594_v31, 4  ;;  %v1248_v28 = vshll.u32 %v15305_v54, 16  ;;  %v12623_v31 = vcombine.low %v16316_v7, %v16318_v8 }
  0xaf   : > { %v1218_v26 = vrot.slane %v1216_v11, 1  ;;  %v1602_v55 = vrot.slane %v1600_v34, 3  ;;  %v12622_v60 = vcombine.low %v16297_v36, %v16300_v40  ;;  %v1612_v11 = vshll.u32 %v12621_v45, 16 }
  0xb0   : > { %v1597_v59 = vor.u32 %v1596_v50, %v1593_v49  ;;  %v1230_v2 = vor.u32 %v1228_v44, %v1226_v37  ;;  %v1252_v44 = vshrl.u32 %v15305_v54, 16  ;;  %v1627_v49 = vshrl.u32 %v12623_v31, 16 }
  0xb1   : > { %v1219_v41 = vsel %vm1167_vm3, %v1214_v25, %v1218_v26  ;;  %v1606_v4 = vor.u32 %v1605_v58, %v1602_v55  ;;  %v1618_v5 = vshrl.u32 %v12622_v60, 16  ;;  %v1611_v25 = vrot.slane %v1609_v62, 3 }
  0xb2   : > { %v1598_v29 = vsel %vm797_vm2, %v1588_v19, %v1597_v59  ;;  %v1235_v30 = vsel %vm1167_vm3, %v1230_v2, %v1234_v3  ;;  %v1630_v50 = vshll.u32 %v12623_v31, 16 }
  0xb3   : > { %v1607_v34 = vsel %vm797_vm2, %v1597_v59, %v1606_v4  ;;  %v1620_v35 = vrot.slane %v1618_v5, 3  ;;  %v1629_v59 = vrot.slane %v1627_v49, 3 }
  0xb4   : > { %14335 = vmatmul.mubr.msk.bf16.vlgmr.msra.gmra.mxu1 %vm624_vm1, %v1562_v0  ;;  %14313 = vmatmul.mubr.msk.bf16.gmra.mxu0 %vm624_vm1, %v1203_v6  ;;  %v1236_v0 = vshrl.u32 %v15301_v27, 16  ;;  %v1621_v6 = vshll.u32 %v12622_v60, 16  ;;  %v1244_v27 = vshrl.u32 %v15303_v38, 16  ;;  %v16336_v60 = vld [vmem:[#allocation2 + $0x6c] sm:$0xf]  ;;  %v1632_v2 = vrot.slane %v1630_v50, 4 }
  0xb5   : > { %14385 = vmatpush3.bf16.msra.mxu1 %v16131_v17  ;;  %14338 = vmatprep.mubr.msk.bf16.mxu1 %vm624_vm1, %v1571_v13  ;;  %v1222_v17 = vor.u32 %v1220_v16, %v1218_v26  ;;  %v1242_v13 = vrot.slane %v1240_v1, 1  ;;  %v16320_v16 = vld [vmem:[#allocation2 + $0x64] sm:$0xf]  ;;  %v16322_v18 = vld [vmem:[#allocation2 + $0x68] sm:$0xf]  ;;  %v1614_v26 = vrot.slane %v1612_v11, 4  ;;  %v12625_v5 = vcombine.low %v16336_v60, %v16336_v60 }
  0xb6   : > { %14316 = vmatprep.mubr.msk.bf16.mxu0 %vm624_vm1, %v1211_v14  ;;  %14436 = vmatprep.subr.bf16.mxu1 %v16286_v21  ;;  %v1238_v12 = vor.u32 %v1236_v0, %v1234_v3  ;;  %v15307_v14 = vld [vmem:[#allocation2 + $0x5c] sm:$0xff]   ;;  %v1264_v3 = vshll.u32 %v15309_v52, 16 }
  0xb7   : > { %v1227_v61 = vsel %vm1167_vm3, %v1222_v17, %v1226_v37  ;;  %v1623_v17 = vrot.slane %v1621_v6, 4  ;;  %v12624_v37 = vcombine.low %v16320_v16, %v16322_v18  ;;  %v1256_v45 = vshll.u32 %v15307_v14, 16  ;;  %v12504_v1 = vld [vmem:[%s16026_s30 + $0x80] sm:$0xff]  ;;  %v15313_v6 = vld [vmem:[#allocation2 + $0x10] sm:$0xff]  }
  0xb8   : > { %v1615_v19 = vor.u32 %v1614_v26, %v1611_v25  ;;  %v1246_v38 = vor.u32 %v1244_v27, %v1242_v13  ;;  %v1260_v54 = vshrl.u32 %v15307_v14, 16  ;;  %v13610_v26 = vpack.c.bf16 %v12504_v1, %v12504_v1 }
  0xb9   : > { %v1636_v55 = vshrl.u32 %v12624_v37, 16  ;;  %v1639_v58 = vshll.u32 %v12624_v37, 16  ;;  %v1258_v0 = vrot.slane %v1256_v45, 1  ;;  %v1645_v14 = vshrl.u32 %v12625_v5, 16 }
  0xba   : > { %v1616_v62 = vsel %vm797_vm2, %v1606_v4, %v1615_v19  ;;  %436 = vst.msk [vmem:[#allocation2 + $0x70] sm:$0xf] %vm273_vm0, %v13610_v26  ;;  %v1633_v4 = vor.u32 %v1632_v2, %v1629_v59  ;;  %v1266_v31 = vrot.slane %v1264_v3, 1  ;;  %v16365_v59 = vld [vmem:[#allocation7 + $0x40] sm:$0xff]   ;;  %v15318_v2 = vld [vmem:[#allocation2 + $0x30] sm:$0xff]  }
  0xbb   : > { %v1641_v25 = vrot.slane %v1639_v58, 4 }
  0xbc   : > { %14339 = vmatmul.mubr.msk.bf16.gmra.mxu1 %vm624_vm1, %v1580_v48  ;;  %14317 = vmatmul.mubr.msk.bf16.gmra.mxu0 %vm624_vm1, %v1219_v41  ;;  %v1243_v41 = vsel %vm1167_vm3, %v1238_v12, %v1242_v13  ;;  %v1250_v48 = vrot.slane %v1248_v28, 1  ;;  %v1638_v13 = vrot.slane %v1636_v55, 3  ;;  %v1648_v28 = vshll.u32 %v12625_v5, 16  ;;  %v15319_v5 = vld [vmem:[#allocation2 + $0x38] sm:$0xff]  }
  0xbd   : > { %14342 = vmatprep.mubr.msk.bf16.mxu1 %vm624_vm1, %v1589_v53  ;;  %14320 = vmatprep.mubr.msk.bf16.mxu0 %vm624_vm1, %v1227_v61  ;;  %v1624_v53 = vor.u32 %v1623_v17, %v1620_v35  ;;  %v2118_v35 = vshll.u32 %v15313_v6, 16  ;;  %v12639_v17 = vcombine.low %v16186_v22, %v16188_v23  ;;  %v15316_v22 = vld [vmem:[#allocation2 + $0x20] sm:$0xff]   ;;  %v12640_v55 = vcombine.low %v16190_v24, %v16205_v42  ;;  %v12505_v42 = vld [vmem:[%s16026_s30 + $0x88] sm:$0xff] }
  0xbe   : > { %v1254_v61 = vor.u32 %v1252_v44, %v1250_v48  ;;  %v1251_v11 = vsel %vm1167_vm3, %v1246_v38, %v1250_v48  ;;  %v1650_v44 = vrot.slane %v1648_v28, 4  ;;  %v2116_v48 = vshrl.u32 %v15313_v6, 16  ;;  %v16381_v28 = vld [vmem:[#allocation7 + $0x8] sm:$0xff]  }
  0xbf   : > { %v1625_v12 = vsel %vm797_vm2, %v1615_v19, %v1624_v53  ;;  %v1634_v37 = vsel %vm797_vm2, %v1624_v53, %v1633_v4  ;;  %v2120_v49 = vrot.slane %v2118_v35, 1  ;;  %v15317_v53 = vld [vmem:[#allocation2 + $0x28] sm:$0xff]   ;;  %v2147_v6 = vshll.u32 %v15318_v2, 16 }
  0xc0   : > { %v1259_v27 = vsel %vm1167_vm3, %v1254_v61, %v1258_v0  ;;  %v2143_v26 = vshrl.u32 %v15317_v53, 16 }
  0xc1   : > { %v2121_v23 = vor.u32 %v2120_v49, %v2116_v48  ;;  %v12509_v48 = vld [vmem:[%s16026_s30 + $0x98] sm:$0xff] }
  0xc4   : > { %14343 = vmatmul.mubr.msk.bf16.gmra.mxu1 %vm624_vm1, %v1598_v29  ;;  %14321 = vmatmul.mubr.msk.bf16.gmra.mxu0 %vm624_vm1, %v1235_v30  ;;  %v15314_v29 = vld [vmem:[#allocation2 + $0x18] sm:$0xff]   ;;  %v1262_v30 = vor.u32 %v1260_v54, %v1258_v0  ;;  %v2131_v0 = vshll.u32 %v15316_v22, 16  ;;  %v2139_v54 = vshll.u32 %v15317_v53, 16  ;;  %v13613_v53 = vpack.c.bf16 %v12509_v48, %v12509_v48 }
  0xc5   : > { %14346 = vmatprep.mubr.msk.bf16.mxu1 %vm624_vm1, %v1607_v34  ;;  %14324 = vmatprep.mubr.msk.bf16.mxu0 %vm624_vm1, %v1243_v41  ;;  %v1642_v34 = vor.u32 %v1641_v25, %v1638_v13  ;;  %v1647_v41 = vrot.slane %v1645_v14, 3  ;;  %v2123_v45 = vshll.u32 %v15314_v29, 16  ;;  %v2127_v61 = vshrl.u32 %v15314_v29, 16 }
  0xc6   : > { %v1267_v19 = vsel %vm1167_vm3, %v1262_v30, %v1266_v31  ;;  %v2133_v24 = vrot.slane %v2131_v0, 1  ;;  %v12642_v25 = vcombine.low %v16218_v57, %v16228_v9  ;;  %v2149_v29 = vrot.slane %v2147_v6, 1  ;;  %v15320_v30 = vld [vmem:[#allocation2 + $0x40] sm:$0xff]   ;;  %v12508_v31 = vld [vmem:[%s16026_s30 + $0x90] sm:$0xff]  ;;  %450 = vst.msk [vmem:[#allocation2 + $0x80] sm:$0xf] %vm273_vm0, %v13613_v53 }
  0xc7   : > { %v1643_v38 = vsel %vm797_vm2, %v1633_v4, %v1642_v34  ;;  %v1651_v50 = vor.u32 %v1650_v44, %v1647_v41  ;;  %v2125_v52 = vrot.slane %v2123_v45, 1  ;;  %v2151_v4 = vshrl.u32 %v15318_v2, 16  ;;  %v16424_v6 = vld [vmem:[#allocation2 + $0x60] sm:$0xff]  }
  0xc8   : > { %v12645_v44 = vcombine.low %v16258_v47, %v16262_v51  ;;  %v2167_v45 = vshrl.u32 %v15320_v30, 16  ;;  %v16403_v47 = vld [vmem:[#allocation2 + $0x1c] sm:$0xf]  ;;  %v12512_v51 = vld [vmem:[%s16026_s30 + $0xa0] sm:$0xff]  ;;  %v12647_v2 = vcombine.low %v16293_v33, %v16297_v36 }
  0xc9   : > { %v1652_v58 = vsel %vm797_vm2, %v1642_v34, %v1651_v50  ;;  %v2126_v1 = vsel %vm1167_vm3, %v2121_v23, %v2125_v52  ;;  %v2129_v3 = vor.u32 %v2127_v61, %v2125_v52  ;;  %v2153_v9 = vor.u32 %v2151_v4, %v2149_v29  ;;  %v16399_v50 = vld [vmem:[#allocation2 + $0x58] sm:$0xff]   ;;  %v16407_v23 = vld [vmem:[#allocation2 + $0x20] sm:$0xf]  ;;  %v12513_v61 = vld [vmem:[%s16026_s30 + $0xa8] sm:$0xff] }
  0xca   : > { %v2163_v34 = vshll.u32 %v15320_v30, 16  ;;  %v16436_v4 = vld [vmem:[#allocation2 + $0x28] sm:$0xf] }
  0xcb   : > { %v2134_v13 = vsel %vm1167_vm3, %v2129_v3, %v2133_v24  ;;  %v2187_v3 = vshll.u32 %v16399_v50, 16 }
  0xcc   : > { %14347 = vmatmul.mubr.msk.bf16.gmra.mxu1 %vm624_vm1, %v1616_v62  ;;  %14325 = vmatmul.mubr.msk.bf16.gmra.mxu0 %vm624_vm1, %v1251_v11  ;;  %v12641_v62 = vcombine.low %v16207_v43, %v16216_v56  ;;  %v2135_v11 = vshrl.u32 %v15316_v22, 16  ;;  %v2141_v56 = vrot.slane %v2139_v54, 1  ;;  %v2165_v49 = vrot.slane %v2163_v34, 1 }
  0xcd   : > { %14350 = vmatprep.mubr.msk.bf16.mxu1 %vm624_vm1, %v1625_v12  ;;  %14328 = vmatprep.mubr.msk.bf16.mxu0 %vm624_vm1, %v1259_v27  ;;  %v13611_v12 = vpack.c.bf16 %v12505_v42, %v12505_v42  ;;  %v12643_v27 = vcombine.low %v16230_v10, %v16236_v15  ;;  %v15321_v15 = vld [vmem:[#allocation2 + $0x48] sm:$0xff]   ;;  %v12646_v54 = vcombine.low %v16269_v63, %v16291_v32  ;;  %v12520_v32 = vld [vmem:[%s16026_s30 + $0xc0] sm:$0xff] }
  0xce   : > { %v2137_v43 = vor.u32 %v2135_v11, %v2133_v24  ;;  %v2145_v57 = vor.u32 %v2143_v26, %v2141_v56  ;;  %v2169_v52 = vor.u32 %v2167_v45, %v2165_v49  ;;  %v12517_v24 = vld [vmem:[%s16026_s30 + $0xb8] sm:$0xff]  ;;  %v2189_v26 = vrot.slane %v2187_v3, 1 }
  0xcf   : > { %437 = vst.msk [vmem:[#allocation2 + $0x74] sm:$0xf] %vm273_vm0, %v13611_v12  ;;  %v13617_v12 = vpack.c.bf16 %v12517_v24, %v12517_v24 }
  0xd0   : > { %v2142_v14 = vsel %vm1167_vm3, %v2137_v43, %v2141_v56  ;;  %v2150_v35 = vsel %vm1167_vm3, %v2145_v57, %v2149_v29  ;;  %v13615_v56 = vpack.c.bf16 %v12513_v61, %v12513_v61  ;;  %v16442_v57 = vld [vmem:[#allocation2 + $0x30] sm:$0xf] }
  0xd1   : > { %476 = vst.msk [vmem:[#allocation2 + $0x98] sm:$0xf] %vm273_vm0, %v13617_v12  ;;  %v15327_v61 = vld [vmem:[#allocation2 + $0x70] ss:$0 sps:$4 sm:$0x11]  }
  0xd2   : > { %463 = vst.msk [vmem:[#allocation2 + $0x8c] sm:$0xf] %vm273_vm0, %v13615_v56  ;;  %v16479_v56 = vld [vmem:[#allocation2 + $0x40] sm:$0xf] }
  0xd4   : > { %14351 = vmatmul.mubr.msk.bf16.gmra.mxu1 %vm624_vm1, %v1634_v37  ;;  %14329 = vmatmul.mubr.msk.bf16.gmra.mxu0 %vm624_vm1, %v1267_v19  ;;  %v13612_v37 = vpack.c.bf16 %v12508_v31, %v12508_v31  ;;  %v2171_v19 = vshll.u32 %v15321_v15, 16 }
  0xd5   : > { %14354 = vmatprep.mubr.msk.bf16.mxu1 %vm624_vm1, %v1643_v38  ;;  %14360 = vmatprep.mubr.msk.bf16.mxu0 %vm624_vm1, %v12639_v17  ;;  %v2159_v17 = vshrl.u32 %v15319_v5, 16  ;;  %v15322_v38 = vld [vmem:[#allocation2 + $0x50] sm:$0xff]  }
  0xd6   : > { %449 = vst.msk [vmem:[#allocation2 + $0x7c] sm:$0xf] %vm273_vm0, %v13612_v37  ;;  %v2173_v22 = vrot.slane %v2171_v19, 1  ;;  %v2179_v0 = vshll.u32 %v15322_v38, 16  ;;  %v12649_v37 = vcombine.low %v16318_v8, %v16320_v16  ;;  %v2191_v19 = vshrl.u32 %v16399_v50, 16 }
  0xd8   : > { %v2174_v42 = vsel %vm1167_vm3, %v2169_v52, %v2173_v22  ;;  %v2181_v33 = vrot.slane %v2179_v0, 1  ;;  %v2193_v53 = vor.u32 %v2191_v19, %v2189_v26  ;;  %v16472_v0 = vld [vmem:[#allocation2 + $0x38] sm:$0xf]  ;;  %v12716_v19 = vcombine.low %v16403_v47, %v16407_v23 }
  0xdc   : > { %14355 = vmatmul.mubr.msk.bf16.gmra.mxu1 %vm624_vm1, %v1652_v58  ;;  %14361 = vmatmul.mubr.msk.bf16.vlgmr.msra.gmra.mxu0 %vm624_vm1, %v12640_v55  ;;  %v2175_v55 = vshrl.u32 %v15321_v15, 16  ;;  %v16409_v58 = vld [vmem:[#allocation2 + $0x24] sm:$0xf]  ;;  %v12525_v15 = vld [vmem:[%s16026_s30 + $0xd8] sm:$0xff] }
  0xdd   : > { %14386 = vmatprep.mubr.msk.bf16.mxu1 %vm624_vm1, %v2126_v1  ;;  %14411 = vmatpush3.bf16.msra.mxu0 %v16252_v39  ;;  %v2155_v39 = vshll.u32 %v15319_v5, 16  ;;  %v13614_v1 = vpack.c.bf16 %v12512_v51, %v12512_v51  ;;  %v2183_v5 = vshrl.u32 %v15322_v38, 16  ;;  %v12691_v63 = vcombine.low %v16407_v23, %v16409_v58  ;;  %v16521_v23 = vld [vmem:[#allocation2 + $0x5c] sm:$0xf] }
  0xde   : > { %14364 = vmatprep.mubr.msk.bf16.mxu0 %vm624_vm1, %v12641_v62  ;;  %14462 = vmatprep.subr.bf16.mxu0 %v16365_v59  ;;  %v12516_v62 = vld [vmem:[%s16026_s30 + $0xb0] sm:$0xff]  ;;  %v13621_v48 = vpack.c.bf16 %v12525_v15, %v12525_v15 }
  0xdf   : > { %v2157_v10 = vrot.slane %v2155_v39, 1  ;;  %462 = vst.msk [vmem:[#allocation2 + $0x88] sm:$0xf] %vm273_vm0, %v13614_v1  ;;  %v13616_v36 = vpack.c.bf16 %v12516_v62, %v12516_v62  ;;  %v16438_v39 = vld [vmem:[#allocation2 + $0x2c] sm:$0xf]  ;;  %v2185_v29 = vor.u32 %v2183_v5, %v2181_v33  ;;  %v2493_v34 = vshrl.u32 %v12691_v63, 16 }
  0xe0   : > { %v12692_v8 = vcombine.low %v16436_v4, %v16438_v39  ;;  %502 = vst.msk [vmem:[#allocation2 + $0xb0] sm:$0xf] %vm273_vm0, %v13621_v48 }
  0xe1   : > { %v2158_v41 = vsel %vm1167_vm3, %v2153_v9, %v2157_v10  ;;  %v16444_v9 = vld [vmem:[#allocation2 + $0x34] sm:$0xf]  ;;  %475 = vst.msk [vmem:[#allocation2 + $0x94] sm:$0xf] %vm273_vm0, %v13616_v36  ;;  %v2495_v51 = vrot.slane %v2493_v34, 3  ;;  %v2211_v36 = vshll.u32 %v15327_v61, 16 }
  0xe2   : > { %v12693_v52 = vcombine.low %v16442_v57, %v16444_v9  ;;  %v16497_v34 = vld [vmem:[#allocation2 + $0x48] sm:$0xf] }
  0xe4   : > { %14387 = vmatmul.mubr.msk.bf16.vlgmr.msra.gmra.mxu1 %vm624_vm1, %v2134_v13  ;;  %14365 = vmatmul.mubr.msk.bf16.gmra.mxu0 %vm624_vm1, %v12642_v25  ;;  %v12521_v13 = vld [vmem:[%s16026_s30 + $0xc8] sm:$0xff]  ;;  %v2177_v25 = vor.u32 %v2175_v55, %v2173_v22  ;;  %v2514_v5 = vshll.u32 %v12693_v52, 16 }
  0xe5   : > { %14437 = vmatpush3.bf16.msra.mxu1 %v16286_v21  ;;  %14390 = vmatprep.mubr.msk.bf16.mxu1 %vm624_vm1, %v2142_v14  ;;  %v12644_v21 = vcombine.low %v16239_v20, %v16256_v46  ;;  %v2161_v20 = vor.u32 %v2159_v17, %v2157_v10  ;;  %v2394_v46 = vld [vmem:[#allocation2 + $0x18] sm:$0x8]  ;;  %v12524_v14 = vld [vmem:[%s16026_s30 + $0xd0] sm:$0xff]  ;;  %v13618_v10 = vpack.c.bf16 %v12520_v32, %v12520_v32 }
  0xe6   : > { %14368 = vmatprep.mubr.msk.bf16.mxu0 %vm624_vm1, %v12643_v27  ;;  %14488 = vmatprep.subr.bf16.mxu1 %v16381_v28  ;;  %v12690_v43 = vcombine.low %v2394_v46, %v16403_v47  ;;  %v16434_v27 = vld [vmem:[#allocation2 + $0x68] sm:$0xff]   ;;  %v12648_v17 = vcombine.low %v16300_v40, %v16316_v7  ;;  %v2182_v45 = vsel %vm1167_vm3, %v2177_v25, %v2181_v33  ;;  %v2199_v7 = vshrl.u32 %v16424_v6, 16  ;;  %v16519_v47 = vld [vmem:[#allocation2 + $0x58] sm:$0xf] }
  0xe7   : > { %v2166_v11 = vsel %vm1167_vm3, %v2161_v20, %v2165_v49  ;;  %488 = vst.msk [vmem:[#allocation2 + $0xa0] sm:$0xf] %vm273_vm0, %v13618_v10  ;;  %v2203_v38 = vshll.u32 %v16434_v27, 16  ;;  %v2190_v40 = vsel %vm1167_vm3, %v2185_v29, %v2189_v26  ;;  %v12528_v49 = vld [vmem:[%s16026_s30 + $0xe0] sm:$0xff]  ;;  %v12529_v20 = vld [vmem:[%s16026_s30 + $0xe8] sm:$0xff]  ;;  %v12650_v32 = vcombine.low %v16322_v18, %v16336_v60 }
  0xe8   : > { %v2485_v30 = vshrl.u32 %v12690_v43, 16  ;;  %v2488_v31 = vshll.u32 %v12690_v43, 16  ;;  %v13622_v1 = vpack.c.bf16 %v12528_v49, %v12528_v49  ;;  %v13623_v62 = vpack.c.bf16 %v12529_v20, %v12529_v20  ;;  %v16475_v43 = vld [vmem:[#allocation2 + $0x3c] sm:$0xf] }
  0xe9   : > { %v2205_v55 = vrot.slane %v2203_v38, 1  ;;  %v2207_v33 = vshrl.u32 %v16434_v27, 16  ;;  %v12694_v26 = vcombine.low %v16472_v0, %v16475_v43  ;;  %v2213_v60 = vrot.slane %v2211_v36, 1 }
  0xea   : > { %v2487_v16 = vrot.slane %v2485_v30, 3  ;;  %v2490_v46 = vrot.slane %v2488_v31, 4  ;;  %514 = vst.msk [vmem:[#allocation2 + $0xb8] sm:$0xf] %vm273_vm0, %v13622_v1  ;;  %515 = vst.msk [vmem:[#allocation2 + $0xbc] sm:$0xf] %vm273_vm0, %v13623_v62  ;;  %v12717_v1 = vcombine.low %v16409_v58, %v16436_v4 }
  0xeb   : > { %v2516_v30 = vrot.slane %v2514_v5, 4  ;;  %v2209_v18 = vor.u32 %v2207_v33, %v2205_v55  ;;  %v2520_v15 = vshrl.u32 %v12694_v26, 16  ;;  %v2523_v31 = vshll.u32 %v12694_v26, 16  ;;  %v16530_v62 = vld [vmem:[#allocation2 + $0x64] sm:$0xf]  ;;  %v16540_v58 = vld [vmem:[#allocation7 + $0x10] sm:$0xff]  }
  0xec   : > { %14391 = vmatmul.mubr.msk.bf16.gmra.mxu1 %vm624_vm1, %v2150_v35  ;;  %14369 = vmatmul.mubr.msk.bf16.gmra.mxu0 %vm624_vm1, %v12644_v21  ;;  %v2496_v35 = vshll.u32 %v12691_v63, 16  ;;  %v13619_v21 = vpack.c.bf16 %v12521_v13, %v12521_v13  ;;  %v2491_v3 = vor.u32 %v2490_v46, %v2487_v16  ;;  %v16514_v46 = vld [vmem:[#allocation7] sm:$0xff]   ;;  %v16545_v4 = vld [vmem:[#allocation2 + $0x68] sm:$0xf]  ;;  %v16549_v33 = vld [vmem:[#allocation2 + $0x6c] sm:$0xf] }
  0xed   : > { %14394 = vmatprep.mubr.msk.bf16.mxu1 %vm624_vm1, %v2158_v41  ;;  %14372 = vmatprep.mubr.msk.bf16.mxu0 %vm624_vm1, %v12645_v44  ;;  %v2195_v41 = vshll.u32 %v16424_v6, 16  ;;  %v13620_v44 = vpack.c.bf16 %v12524_v14, %v12524_v14  ;;  %v16481_v6 = vld [vmem:[#allocation2 + $0x44] sm:$0xf]  ;;  %v2522_v48 = vrot.slane %v2520_v15, 3  ;;  %v16556_v26 = vld [vmem:[#allocation2 + $0x74] sm:$0xf] }
  0xee   : > { %489 = vst.msk [vmem:[#allocation2 + $0xa4] sm:$0xf] %vm273_vm0, %v13619_v21  ;;  %v2498_v50 = vrot.slane %v2496_v35, 4  ;;  %v12695_v10 = vcombine.low %v16479_v56, %v16481_v6  ;;  %v16499_v35 = vld [vmem:[#allocation2 + $0x4c] sm:$0xf] }
  0xef   : > { %501 = vst.msk [vmem:[#allocation2 + $0xac] sm:$0xf] %vm273_vm0, %v13620_v44  ;;  %v2197_v22 = vrot.slane %v2195_v41, 1  ;;  %v16501_v41 = vld [vmem:[#allocation2 + $0x50] sm:$0xf] }
  0xf0   : > { %v2499_v24 = vor.u32 %v2498_v50, %v2495_v51  ;;  %v16503_v44 = vld [vmem:[#allocation2 + $0x54] sm:$0xf] }
  0xf1   : > { %v2198_v63 = vsel %vm1167_vm3, %v2193_v53, %v2197_v22  ;;  %v12697_v20 = vcombine.low %v16501_v41, %v16503_v44 }
  0xf2   : > { %v2500_v14 = vsel %vm797_vm2, %v2491_v3, %v2499_v24  ;;  %v12698_v3 = vcombine.low %v16519_v47, %v16521_v23 }
  0xf3   : > { %v2550_v61 = vshll.u32 %v12697_v20, 16 }
  0xf4   : > { %14395 = vmatmul.mubr.msk.bf16.gmra.mxu1 %vm624_vm1, %v2166_v11  ;;  %14373 = vmatmul.mubr.msk.bf16.gmra.mxu0 %vm624_vm1, %v12646_v54  ;;  %v2201_v11 = vor.u32 %v2199_v7, %v2197_v22  ;;  %v2502_v54 = vshrl.u32 %v12692_v8, 16  ;;  %v12696_v7 = vcombine.low %v16497_v34, %v16499_v35  ;;  %v16525_v22 = vld [vmem:[#allocation2 + $0x60] sm:$0xf] }
  0xf5   : > { %14398 = vmatprep.mubr.msk.bf16.mxu1 %vm624_vm1, %v2174_v42  ;;  %14376 = vmatprep.mubr.msk.bf16.mxu0 %vm624_vm1, %v12647_v2  ;;  %v2505_v2 = vshll.u32 %v12692_v8, 16  ;;  %v2511_v42 = vshrl.u32 %v12693_v52, 16  ;;  %v2552_v5 = vrot.slane %v2550_v61, 4  ;;  %v12724_v61 = vcombine.low %v16521_v23, %v16525_v22 }
  0xf6   : > { %v2206_v12 = vsel %vm1167_vm3, %v2201_v11, %v2205_v55  ;;  %v2504_v13 = vrot.slane %v2502_v54, 3  ;;  %v2538_v50 = vshrl.u32 %v12696_v7, 16  ;;  %v2541_v52 = vshll.u32 %v12696_v7, 16 }
  0xf7   : > { %v2507_v25 = vrot.slane %v2505_v2, 4  ;;  %v2513_v29 = vrot.slane %v2511_v42, 3  ;;  %v2547_v55 = vshrl.u32 %v12697_v20, 16 }
  0xf8   : > { %v2540_v54 = vrot.slane %v2538_v50, 3  ;;  %v2543_v2 = vrot.slane %v2541_v52, 4 }
  0xf9   : > { %v2508_v27 = vor.u32 %v2507_v25, %v2504_v13  ;;  %v2517_v21 = vor.u32 %v2516_v30, %v2513_v29  ;;  %v2549_v42 = vrot.slane %v2547_v55, 3  ;;  %v16554_v25 = vld [vmem:[#allocation2 + $0x70] sm:$0xf]  ;;  %v12723_v55 = vcombine.low %v16503_v44, %v16519_v47 }
  0xfb   : > { %v2509_v38 = vsel %vm797_vm2, %v2499_v24, %v2508_v27  ;;  %v2518_v8 = vsel %vm797_vm2, %v2508_v27, %v2517_v21  ;;  %v2553_v36 = vor.u32 %v2552_v5, %v2549_v42  ;;  %v15355_v42 = vld [vmem:[#allocation2 + $0x2c] sm:$0xff]   ;;  %v12725_v5 = vcombine.low %v16530_v62, %v16545_v4 }
  0xfc   : > { %14399 = vmatmul.mubr.msk.bf16.gmra.mxu1 %vm624_vm1, %v2182_v45  ;;  %14377 = vmatmul.mubr.msk.bf16.gmra.mxu0 %vm624_vm1, %v12648_v17  ;;  %v2529_v17 = vshrl.u32 %v12695_v10, 16  ;;  %v2214_v45 = vsel %vm1167_vm3, %v2209_v18, %v2213_v60  ;;  %v12700_v18 = vcombine.low %v16545_v4, %v16549_v33 }
  0xfd   : > { %14402 = vmatprep.mubr.msk.bf16.mxu1 %vm624_vm1, %v2190_v40  ;;  %14380 = vmatprep.mubr.msk.bf16.mxu0 %vm624_vm1, %v12649_v37  ;;  %v2532_v37 = vshll.u32 %v12695_v10, 16  ;;  %v2525_v40 = vrot.slane %v2523_v31, 4 }
  0xfe   : > { %v2531_v16 = vrot.slane %v2529_v17, 3  ;;  %v2577_v31 = vshll.u32 %v12700_v18, 16 }
  0xff   : > { %v2534_v49 = vrot.slane %v2532_v37, 4  ;;  %v2526_v51 = vor.u32 %v2525_v40, %v2522_v48  ;;  %v12722_v48 = vcombine.low %v16499_v35, %v16501_v41  ;;  %v15354_v41 = vld [vmem:[#allocation2 + $0x24] sm:$0xff]  }
 0x101   : > { %v2535_v53 = vor.u32 %v2534_v49, %v2531_v16  ;;  %v2527_v11 = vsel %vm797_vm2, %v2517_v21, %v2526_v51  ;;  %v16571_v21 = vld [vmem:[#allocation2 + $0x78] sm:$0xf]  ;;  %v15353_v49 = vld [vmem:[#allocation2 + $0x1c] sm:$0xff]  }
 0x102   : > { %v12702_v16 = vcombine.low %v16571_v21, %v16571_v21  ;;  %v3065_v52 = vshll.u32 %v15353_v49, 16 }
 0x103   : > { %v2536_v24 = vsel %vm797_vm2, %v2526_v51, %v2535_v53 }
 0x104   : > { %14403 = vmatmul.mubr.msk.bf16.gmra.mxu1 %vm624_vm1, %v2198_v63  ;;  %14381 = vmatmul.mubr.msk.bf16.gmra.mxu0 %vm624_vm1, %v12650_v32  ;;  %v12699_v63 = vcombine.low %v16525_v22, %v16530_v62  ;;  %v2559_v32 = vshll.u32 %v12698_v3, 16  ;;  %v2595_v35 = vshll.u32 %v12702_v16, 16  ;;  %v15362_v22 = vld [vmem:[#allocation2 + $0x34] sm:$0xff]   ;;  %v15363_v62 = vld [vmem:[#allocation2 + $0x3c] sm:$0xff]  }
 0x105   : > { %14406 = vmatprep.mubr.msk.bf16.mxu1 %vm624_vm1, %v2206_v12  ;;  %14412 = vmatprep.mubr.msk.bf16.mxu0 %vm624_vm1, %v2500_v14  ;;  %v12720_v14 = vcombine.low %v16475_v43, %v16479_v56  ;;  %v2574_v56 = vshrl.u32 %v12700_v18, 16  ;;  %v15366_v18 = vld [vmem:[#allocation2 + $0x44] sm:$0xff]  }
 0x106   : > { %v2565_v12 = vshrl.u32 %v12699_v63, 16  ;;  %v2568_v13 = vshll.u32 %v12699_v63, 16  ;;  %v2561_v10 = vrot.slane %v2559_v32, 4  ;;  %v3078_v63 = vshll.u32 %v15355_v42, 16 }
 0x107   : > { %v2576_v7 = vrot.slane %v2574_v56, 3  ;;  %v15368_v56 = vld [vmem:[#allocation2 + $0x4c] sm:$0xff]  }
 0x108   : > { %v2567_v27 = vrot.slane %v2565_v12, 3  ;;  %v2570_v15 = vrot.slane %v2568_v13, 4  ;;  %v3074_v12 = vshrl.u32 %v15354_v41, 16 }
 0x10a   : > { %v2571_v17 = vor.u32 %v2570_v15, %v2567_v27  ;;  %v3094_v15 = vshll.u32 %v15363_v62, 16 }
 0x10c   : > { %14407 = vmatmul.mubr.msk.bf16.gmra.mxu1 %vm624_vm1, %v2214_v45  ;;  %14413 = vmatmul.mubr.msk.bf16.vlgmr.msra.gmra.mxu0 %vm624_vm1, %v2509_v38  ;;  %v12721_v38 = vcombine.low %v16481_v6, %v16497_v34  ;;  %v2592_v34 = vshrl.u32 %v12702_v16, 16 }
 0x10d   : > { %14438 = vmatprep.mubr.msk.bf16.mxu1 %vm624_vm1, %v12716_v19  ;;  %14463 = vmatpush3.bf16.msra.mxu0 %v16365_v59  ;;  %v12718_v59 = vcombine.low %v16438_v39, %v16442_v57  ;;  %v2544_v39 = vor.u32 %v2543_v2, %v2540_v54  ;;  %v2556_v57 = vshrl.u32 %v12698_v3, 16  ;;  %v3063_v2 = vshrl.u32 %v15353_v49, 16 }
 0x10e   : > { %14416 = vmatprep.mubr.msk.bf16.mxu0 %vm624_vm1, %v2518_v8  ;;  %14514 = vmatprep.subr.bf16.mxu0 %v16514_v46  ;;  %v2579_v8 = vrot.slane %v2577_v31, 4  ;;  %v3067_v3 = vrot.slane %v3065_v52, 1  ;;  %v16617_v31 = vld [vmem:[#allocation2 + $0x6c] sm:$0xf] }
 0x10f   : > { %v2545_v29 = vsel %vm797_vm2, %v2535_v53, %v2544_v39  ;;  %v2558_v30 = vrot.slane %v2556_v57, 3  ;;  %v2554_v60 = vsel %vm797_vm2, %v2544_v39, %v2553_v36  ;;  %v12533_v39 = vld [vmem:[%s16026_s30 + $0xf8] sm:$0xff]  ;;  %v12726_v57 = vcombine.low %v16549_v33, %v16554_v25  ;;  %v16610_v33 = vld [vmem:[#allocation2 + $0x68] sm:$0xf] }
 0x110   : > { %v2580_v6 = vor.u32 %v2579_v8, %v2576_v7  ;;  %v3068_v47 = vor.u32 %v3067_v3, %v3063_v2  ;;  %v13625_v32 = vpack.c.bf16 %v12533_v39, %v12533_v39  ;;  %v16633_v7 = vld [vmem:[#allocation2 + $0x74] sm:$0xf]  ;;  %v16652_v3 = vld [vmem:[#allocation2 + $0x80] sm:$0xf] }
 0x111   : > { %v2562_v43 = vor.u32 %v2561_v10, %v2558_v30  ;;  %v16605_v30 = vld [vmem:[#allocation2 + $0x64] sm:$0xf] }
 0x112   : > { %528 = vst.msk [vmem:[#allocation2 + $0xc8] sm:$0xf] %vm273_vm0, %v13625_v32  ;;  %v12784_v27 = vcombine.low %v16605_v30, %v16610_v33 }
 0x113   : > { %v2563_v40 = vsel %vm797_vm2, %v2553_v36, %v2562_v43  ;;  %v2572_v20 = vsel %vm797_vm2, %v2562_v43, %v2571_v17  ;;  %v3098_v43 = vshrl.u32 %v15363_v62, 16 }
 0x114   : > { %14439 = vmatmul.mubr.msk.bf16.vlgmr.msra.gmra.mxu1 %vm624_vm1, %v12717_v1  ;;  %14417 = vmatmul.mubr.msk.bf16.gmra.mxu0 %vm624_vm1, %v2527_v11  ;;  %v2581_v1 = vsel %vm797_vm2, %v2571_v17, %v2580_v6  ;;  %v2597_v11 = vrot.slane %v2595_v35, 4  ;;  %v16619_v17 = vld [vmem:[#allocation2 + $0x70] sm:$0xf] }
 0x115   : > { %14489 = vmatpush3.bf16.msra.mxu1 %v16381_v28  ;;  %14442 = vmatprep.mubr.msk.bf16.mxu1 %vm624_vm1, %v12718_v59  ;;  %v12719_v28 = vcombine.low %v16444_v9, %v16472_v0  ;;  %v12701_v9 = vcombine.low %v16554_v25, %v16556_v26  ;;  %v12532_v0 = vld [vmem:[%s16026_s30 + $0xf0] sm:$0xff]  ;;  %v2594_v59 = vrot.slane %v2592_v34, 3 }
 0x116   : > { %14420 = vmatprep.mubr.msk.bf16.mxu0 %vm624_vm1, %v2536_v24  ;;  %14540 = vmatprep.subr.bf16.mxu1 %v16540_v58  ;;  %v13624_v19 = vpack.c.bf16 %v12532_v0, %v12532_v0  ;;  %v3070_v24 = vshll.u32 %v15354_v41, 16  ;;  %v3090_v0 = vshrl.u32 %v15362_v22, 16 }
 0x117   : > { %v2583_v37 = vshrl.u32 %v12701_v9, 16  ;;  %v2586_v45 = vshll.u32 %v12701_v9, 16  ;;  %v2598_v44 = vor.u32 %v2597_v11, %v2594_v59  ;;  %v16648_v11 = vld [vmem:[#allocation2 + $0x84] sm:$0xf] }
 0x118   : > { %527 = vst.msk [vmem:[#allocation2 + $0xc4] sm:$0xf] %vm273_vm0, %v13624_v19  ;;  %v3072_v23 = vrot.slane %v3070_v24, 1  ;;  %v16622_v19 = vld [vmem:[#allocation7 + $0x18] sm:$0xff]  }
 0x119   : > { %v2585_v51 = vrot.slane %v2583_v37, 3  ;;  %v2588_v50 = vrot.slane %v2586_v45, 4  ;;  %v3102_v45 = vshll.u32 %v15366_v18, 16 }
 0x11a   : > { %v3073_v13 = vsel %vm1167_vm3, %v3068_v47, %v3072_v23  ;;  %v3076_v4 = vor.u32 %v3074_v12, %v3072_v23 }
 0x11b   : > { %v2589_v53 = vor.u32 %v2588_v50, %v2585_v51  ;;  %v3104_v49 = vrot.slane %v3102_v45, 1  ;;  %v12785_v51 = vcombine.low %v16617_v31, %v16619_v17  ;;  %v3110_v50 = vshll.u32 %v15368_v56, 16 }
 0x11c   : > { %14443 = vmatmul.mubr.msk.bf16.gmra.mxu1 %vm624_vm1, %v12719_v28  ;;  %14421 = vmatmul.mubr.msk.bf16.gmra.mxu0 %vm624_vm1, %v2545_v29  ;;  %v3082_v28 = vshrl.u32 %v15355_v42, 16  ;;  %v3080_v29 = vrot.slane %v3078_v63, 1  ;;  %v16660_v63 = vld [vmem:[#allocation2 + $0x64] sm:$0xff]  }
 0x11d   : > { %14446 = vmatprep.mubr.msk.bf16.mxu1 %vm624_vm1, %v12720_v14  ;;  %14424 = vmatprep.mubr.msk.bf16.mxu0 %vm624_vm1, %v2554_v60  ;;  %v2590_v54 = vsel %vm797_vm2, %v2580_v6, %v2589_v53  ;;  %v2599_v36 = vsel %vm797_vm2, %v2589_v53, %v2598_v44  ;;  %v3086_v14 = vshll.u32 %v15362_v22, 16  ;;  %v12727_v60 = vcombine.low %v16556_v26, %v16571_v21  ;;  %v16642_v53 = vld [vmem:[#allocation2 + $0x7c] sm:$0xf]  ;;  %v16656_v44 = vld [vmem:[#allocation2 + $0x88] sm:$0xf] }
 0x11e   : > { %v3084_v25 = vor.u32 %v3082_v28, %v3080_v29  ;;  %v3081_v9 = vsel %vm1167_vm3, %v3076_v4, %v3080_v29  ;;  %v3096_v21 = vrot.slane %v3094_v15, 1  ;;  %v3114_v6 = vshrl.u32 %v15368_v56, 16  ;;  %v15376_v15 = vld [vmem:[#allocation2 + $0x6c] sm:$0xff]   ;;  %v3460_v56 = vld [vmem:[#allocation2 + $0x60] sm:$0x8] }
 0x11f   : > { %v3088_v10 = vrot.slane %v3086_v14, 1  ;;  %v3112_v59 = vrot.slane %v3110_v50, 1  ;;  %v12787_v39 = vcombine.low %v16642_v53, %v16652_v3  ;;  %v12788_v12 = vcombine.low %v16648_v11, %v16656_v44 }
 0x120   : > { %v3100_v16 = vor.u32 %v3098_v43, %v3096_v21  ;;  %v16682_v43 = vld [vmem:[#allocation2 + $0x8c] sm:$0xf]  ;;  %v3142_v50 = vshll.u32 %v15376_v15, 16 }
 0x121   : > { %v3089_v37 = vsel %vm1167_vm3, %v3084_v25, %v3088_v10  ;;  %v3116_v22 = vor.u32 %v3114_v6, %v3112_v59  ;;  %v15381_v6 = vld [vmem:[#allocation2 + $0x7c] ss:$0 sps:$4 sm:$0x11]  }
 0x122   : > { %v3105_v52 = vsel %vm1167_vm3, %v3100_v16, %v3104_v49 }
 0x124   : > { %14447 = vmatmul.mubr.msk.bf16.gmra.mxu1 %vm624_vm1, %v12721_v38  ;;  %14425 = vmatmul.mubr.msk.bf16.gmra.mxu0 %vm624_vm1, %v2563_v40  ;;  %v16627_v38 = vld [vmem:[#allocation2 + $0x78] sm:$0xf]  ;;  %v3092_v40 = vor.u32 %v3090_v0, %v3088_v10  ;;  %v3134_v10 = vshll.u32 %v16660_v63, 16 }
 0x125   : > { %14450 = vmatprep.mubr.msk.bf16.mxu1 %vm624_vm1, %v12722_v48  ;;  %14428 = vmatprep.mubr.msk.bf16.mxu0 %vm624_vm1, %v2572_v20  ;;  %v16629_v48 = vld [vmem:[#allocation2 + $0x54] sm:$0xff]   ;;  %v3106_v20 = vshrl.u32 %v15366_v18, 16 }
 0x126   : > { %v3097_v35 = vsel %vm1167_vm3, %v3092_v40, %v3096_v21  ;;  %v3122_v14 = vshrl.u32 %v16629_v48, 16  ;;  %v16687_v21 = vld [vmem:[#allocation2 + $0x98] sm:$0xf]  ;;  %v3136_v16 = vrot.slane %v3134_v10, 1 }
 0x127   : > { %v3108_v42 = vor.u32 %v3106_v20, %v3104_v49  ;;  %v16691_v49 = vld [vmem:[#allocation2 + $0x74] sm:$0xff]  }
 0x129   : > { %v3113_v28 = vsel %vm1167_vm3, %v3108_v42, %v3112_v59  ;;  %v12810_v59 = vcombine.low %v16610_v33, %v16617_v31  ;;  %v3150_v42 = vshll.u32 %v16691_v49, 16  ;;  %v3158_v33 = vshll.u32 %v15381_v6, 16 }
 0x12c   : > { %14451 = vmatmul.mubr.msk.bf16.gmra.mxu1 %vm624_vm1, %v12723_v55  ;;  %14429 = vmatmul.mubr.msk.bf16.gmra.mxu0 %vm624_vm1, %v2581_v1  ;;  %v3118_v55 = vshll.u32 %v16629_v48, 16 }
 0x12d   : > { %14454 = vmatprep.mubr.msk.bf16.mxu1 %vm624_vm1, %v12724_v61  ;;  %14432 = vmatprep.mubr.msk.bf16.mxu0 %vm624_vm1, %v2590_v54  ;;  %v16645_v61 = vld [vmem:[#allocation7 + $0x20] sm:$0xff]  }
 0x12e   : > { %v15372_v54 = vld [vmem:[#allocation2 + $0x5c] sm:$0xff]  }
 0x12f   : > { %v3130_v25 = vshrl.u32 %v15372_v54, 16 }
 0x134   : > { %14455 = vmatmul.mubr.msk.bf16.gmra.mxu1 %vm624_vm1, %v12725_v5  ;;  %14433 = vmatmul.mubr.msk.bf16.gmra.mxu0 %vm624_vm1, %v2599_v36  ;;  %v3120_v5 = vrot.slane %v3118_v55, 1 }
 0x135   : > { %14458 = vmatprep.mubr.msk.bf16.mxu1 %vm624_vm1, %v12726_v57  ;;  %14464 = vmatprep.mubr.msk.bf16.mxu0 %vm624_vm1, %v3073_v13  ;;  %v3126_v57 = vshll.u32 %v15372_v54, 16 }
 0x136   : > { %v3121_v4 = vsel %vm1167_vm3, %v3116_v22, %v3120_v5  ;;  %v3124_v45 = vor.u32 %v3122_v14, %v3120_v5  ;;  %v16711_v5 = vld [vmem:[#allocation2 + $0xa0] sm:$0xf]  ;;  %v3152_v14 = vrot.slane %v3150_v42, 1 }
 0x13c   : > { %14459 = vmatmul.mubr.msk.bf16.gmra.mxu1 %vm624_vm1, %v12727_v60  ;;  %v14258_v26 = vpop.f32.mrf.mxu0  ;;  %14465 = vmatmul.mubr.msk.bf16.vlgmr.msra.gmra.mxu0 %vm624_vm1, %v3081_v9  ;;  %v16676_v60 = vld [vmem:[#allocation2 + $0x90] sm:$0xf] }
 0x13d   : > { %14490 = vmatprep.mubr.msk.bf16.mxu1 %vm624_vm1, %v12784_v27  ;;  %14515 = vmatpush3.bf16.msra.mxu0 %v16514_v46  ;;  %v12786_v46 = vcombine.low %v16633_v7, %v16627_v38  ;;  %v3128_v27 = vrot.slane %v3126_v57, 1  ;;  %v16685_v26 = vld [vmem:[#allocation2 + $0x94] sm:$0xf] }
 0x13e   : > { %14468 = vmatprep.mubr.msk.bf16.mxu0 %vm624_vm1, %v3089_v37  ;;  %v695_v8 = vpop.f32.mrf.mxu0  ;;  %14566 = vmatprep.subr.bf16.mxu0 %v16622_v19 }
 0x13f   : > { %v3129_v55 = vsel %vm1167_vm3, %v3124_v45, %v3128_v27 }
 0x140   : > { %v14259_v34 = vpop.f32.mrf.mxu0 }
 0x142   : > { %v698_v41 = vpop.f32.mrf.mxu0 }
 0x144   : > { %v14284_v1 = vpop.f32.mrf.mxu1  ;;  %14491 = vmatmul.mubr.msk.bf16.vlgmr.msra.gmra.mxu1 %vm624_vm1, %v12785_v51  ;;  %v14262_v2 = vpop.f32.mrf.mxu0  ;;  %14469 = vmatmul.mubr.msk.bf16.gmra.mxu0 %vm624_vm1, %v3097_v35  ;;  %v12789_v51 = vcombine.low %v16682_v43, %v16676_v60 }
 0x145   : > { %14541 = vmatpush3.bf16.msra.mxu1 %v16540_v58  ;;  %14494 = vmatprep.mubr.msk.bf16.mxu1 %vm624_vm1, %v12786_v46  ;;  %v3138_v1 = vshrl.u32 %v16660_v63, 16  ;;  %v3144_v63 = vrot.slane %v3142_v50, 1 }
 0x146   : > { %v990_v24 = vpop.f32.mrf.mxu1  ;;  %14472 = vmatprep.mubr.msk.bf16.mxu0 %vm624_vm1, %v3105_v52  ;;  %v710_v23 = vpop.f32.mrf.mxu0  ;;  %14592 = vmatprep.subr.bf16.mxu1 %v16645_v61 }
 0x147   : > { %v16658_v47 = vadd.f32 %v990_v24, %v695_v8  ;;  %v3132_v8 = vor.u32 %v3130_v25, %v3128_v27  ;;  %v16705_v24 = vld [vmem:[#allocation2 + $0x9c] sm:$0xf] }
 0x148   : > { %v14285_v58 = vpop.f32.mrf.mxu1  ;;  %v14263_v36 = vpop.f32.mrf.mxu0 }
 0x149   : > { %v16665_v32 = vadd.f32 %v14285_v58, %v14259_v34  ;;  %v12809_v34 = vcombine.low %v3460_v56, %v16605_v30  ;;  %v3146_v30 = vshrl.u32 %v15376_v15, 16  ;;  %v16713_v58 = vld [vmem:[#allocation2 + $0xa8] sm:$0xf]  ;;  %v12812_v15 = vcombine.low %v16627_v38, %v16642_v53 }
 0x14a   : > { %v993_v13 = vpop.f32.mrf.mxu1  ;;  %v713_v62 = vpop.f32.mrf.mxu0 }
 0x14b   : > { %v16671_v29 = vadd.f32 %v993_v13, %v698_v41  ;;  %v12790_v41 = vcombine.low %v16685_v26, %v16687_v21  ;;  %v3728_v57 = vshrl.u32 %v12809_v34, 16  ;;  %v3736_v62 = vshrl.u32 %v12810_v59, 16 }
 0x14c   : > { %v14288_v18 = vpop.f32.mrf.mxu1  ;;  %14495 = vmatmul.mubr.msk.bf16.gmra.mxu1 %vm624_vm1, %v12787_v39  ;;  %v14266_v0 = vpop.f32.mrf.mxu0  ;;  %14473 = vmatmul.mubr.msk.bf16.gmra.mxu0 %vm624_vm1, %v3113_v28  ;;  %v3148_v28 = vor.u32 %v3146_v30, %v3144_v63 }
 0x14d   : > { %v16678_v9 = vadd.f32 %v14288_v18, %v14262_v2  ;;  %14498 = vmatprep.mubr.msk.bf16.mxu1 %vm624_vm1, %v12788_v12  ;;  %14476 = vmatprep.mubr.msk.bf16.mxu0 %vm624_vm1, %v3121_v4  ;;  %v3137_v2 = vsel %vm1167_vm3, %v3132_v8, %v3136_v16  ;;  %v3739_v4 = vshll.u32 %v12810_v59, 16  ;;  %v12791_v18 = vcombine.low %v16705_v24, %v16711_v5  ;;  %v16744_v59 = vld [vmem:[#allocation2 + $0x6c] sm:$0xff]  }
 0x14e   : > { %v1005_v37 = vpop.f32.mrf.mxu1  ;;  %v725_v40 = vpop.f32.mrf.mxu0  ;;  %v3160_v8 = vrot.slane %v3158_v33, 1  ;;  %v3153_v38 = vsel %vm1167_vm3, %v3148_v28, %v3152_v14  ;;  %v3738_v53 = vrot.slane %v3736_v62, 3 }
 0x14f   : > { %v16689_v48 = vadd.f32 %v1005_v37, %v710_v23  ;;  %v12811_v23 = vcombine.low %v16619_v17, %v16633_v7  ;;  %v3140_v17 = vor.u32 %v3138_v1, %v3136_v16  ;;  %v16720_v7 = vld [vmem:[#allocation2 + $0xa4] sm:$0xf]  ;;  %v3154_v37 = vshrl.u32 %v16691_v49, 16  ;;  %v16742_v1 = vld [vmem:[#allocation2 + $0xb8] sm:$0xf] }
 0x150   : > { %v14289_v20 = vpop.f32.mrf.mxu1  ;;  %v14267_v46 = vpop.f32.mrf.mxu0  ;;  %v12792_v56 = vcombine.low %v16720_v7, %v16713_v58  ;;  %v3730_v16 = vrot.slane %v3728_v57, 3 }
 0x151   : > { %v16696_v35 = vadd.f32 %v14289_v20, %v14263_v36  ;;  %v3731_v36 = vshll.u32 %v12809_v34, 16  ;;  %v3745_v25 = vshrl.u32 %v12811_v23, 16  ;;  %v3748_v27 = vshll.u32 %v12811_v23, 16  ;;  %v16732_v34 = vld [vmem:[#allocation2 + $0xac] sm:$0xf] }
 0x152   : > { %v1008_v52 = vpop.f32.mrf.mxu1  ;;  %v727_v54 = vpop.f32.mrf.mxu0  ;;  %v3145_v40 = vsel %vm1167_vm3, %v3140_v17, %v3144_v63  ;;  %v3741_v46 = vrot.slane %v3739_v4, 4  ;;  %v3757_v23 = vshll.u32 %v12812_v15, 16  ;;  %v12814_v17 = vcombine.low %v16656_v44, %v16682_v43 }
 0x153   : > { %v3733_v20 = vrot.slane %v3731_v36, 4  ;;  %v16738_v52 = vld [vmem:[#allocation2 + $0xb0] sm:$0xf]  ;;  %v3747_v30 = vrot.slane %v3745_v25, 3 }
 0x154   : > { %v14292_v22 = vpop.f32.mrf.mxu1  ;;  %14499 = vmatmul.mubr.msk.bf16.gmra.mxu1 %vm624_vm1, %v12789_v51  ;;  %v14270_v39 = vpop.f32.mrf.mxu0  ;;  %14477 = vmatmul.mubr.msk.bf16.gmra.mxu0 %vm624_vm1, %v3129_v55  ;;  %v15387_v51 = vld [vmem:[#allocation2 + $0x64] sm:$0xff]   ;;  %v16740_v55 = vld [vmem:[#allocation2 + $0xb4] sm:$0xf]  ;;  %v3742_v57 = vor.u32 %v3741_v46, %v3738_v53  ;;  %v16776_v46 = vld [vmem:[#allocation2 + $0x7c] sm:$0xff]  }
 0x155   : > { %v16715_v31 = vadd.f32 %v14292_v22, %v14266_v0  ;;  %14502 = vmatprep.mubr.msk.bf16.mxu1 %vm624_vm1, %v12790_v41  ;;  %14480 = vmatprep.mubr.msk.bf16.mxu0 %vm624_vm1, %v3137_v2  ;;  %v12813_v41 = vcombine.low %v16652_v3, %v16648_v11  ;;  %v3156_v2 = vor.u32 %v3154_v37, %v3152_v14  ;;  %v4099_v11 = vshll.u32 %v15387_v51, 16 }
 0x156   : > { %v1020_v12 = vpop.f32.mrf.mxu1  ;;  %v739_v13 = vpop.f32.mrf.mxu0  ;;  %v3754_v3 = vshrl.u32 %v12812_v15, 16  ;;  %v3750_v22 = vrot.slane %v3748_v27, 4  ;;  %v3734_v39 = vor.u32 %v3733_v20, %v3730_v16  ;;  %v12793_v14 = vcombine.low %v16732_v34, %v16738_v52  ;;  %v15390_v16 = vld [vmem:[#allocation2 + $0x74] sm:$0xff]  }
 0x157   : > { %v3763_v36 = vshrl.u32 %v12813_v41, 16  ;;  %v3766_v12 = vshll.u32 %v12813_v41, 16  ;;  %v3161_v25 = vsel %vm1167_vm3, %v3156_v2, %v3160_v8  ;;  %v4101_v27 = vrot.slane %v4099_v11, 1  ;;  %v16767_v8 = vld [vmem:[#allocation2 + $0xc0] sm:$0xf] }
 0x158   : > { %v14293_v10 = vpop.f32.mrf.mxu1  ;;  %v14271_v0 = vpop.f32.mrf.mxu0  ;;  %v4104_v15 = vshll.u32 %v16744_v59, 16  ;;  %v3759_v37 = vrot.slane %v3757_v23, 4  ;;  %v3751_v20 = vor.u32 %v3750_v22, %v3747_v30  ;;  %v3772_v41 = vshrl.u32 %v12814_v17, 16 }
 0x159   : > { %v4097_v10 = vshrl.u32 %v15387_v51, 16  ;;  %v3765_v2 = vrot.slane %v3763_v36, 3  ;;  %v3768_v30 = vrot.slane %v3766_v12, 4  ;;  %v4116_v36 = vshrl.u32 %v15390_v16, 16 }
 0x15a   : > { %v1022_v45 = vpop.f32.mrf.mxu1  ;;  %v742_v6 = vpop.f32.mrf.mxu0 }
 0x15b   : > { %v16730_v50 = vadd.f32 %v1022_v45, %v727_v54  ;;  %v3743_v45 = vsel %vm797_vm2, %v3734_v39, %v3742_v57 }
 0x15c   : > { %v14296_v49 = vpop.f32.mrf.mxu1  ;;  %14503 = vmatmul.mubr.msk.bf16.gmra.mxu1 %vm624_vm1, %v12791_v18  ;;  %v14274_v54 = vpop.f32.mrf.mxu0  ;;  %14481 = vmatmul.mubr.msk.bf16.gmra.mxu0 %vm624_vm1, %v3145_v40 }
 0x15d   : > { %14506 = vmatprep.mubr.msk.bf16.mxu1 %vm624_vm1, %v12792_v56  ;;  %14484 = vmatprep.mubr.msk.bf16.mxu0 %vm624_vm1, %v3153_v38  ;;  %v3756_v56 = vrot.slane %v3754_v3, 3  ;;  %v3775_v49 = vshll.u32 %v12814_v17, 16  ;;  %v4108_v17 = vshrl.u32 %v16744_v59, 16 }
 0x15e   : > { %v1034_v42 = vpop.f32.mrf.mxu1  ;;  %v754_v33 = vpop.f32.mrf.mxu0 }
 0x15f   : > { %v16749_v63 = vadd.f32 %v1034_v42, %v739_v13  ;;  %v12794_v13 = vcombine.low %v16740_v55, %v16742_v1  ;;  %v3760_v11 = vor.u32 %v3759_v37, %v3756_v56  ;;  %v12816_v56 = vcombine.low %v16687_v21, %v16705_v24 }
 0x160   : > { %v14297_v28 = vpop.f32.mrf.mxu1  ;;  %v14275_v4 = vpop.f32.mrf.mxu0 }
 0x161   : > { %v16755_v62 = vadd.f32 %v14297_v28, %v14271_v0  ;;  %v12815_v0 = vcombine.low %v16676_v60, %v16685_v26  ;;  %v4102_v60 = vor.u32 %v4101_v27, %v4097_v10  ;;  %v4106_v26 = vrot.slane %v4104_v15, 1  ;;  %v16788_v15 = vld [vmem:[#allocation7 + $0x28] sm:$0xff]  }
 0x162   : > { %v1037_v18 = vpop.f32.mrf.mxu1  ;;  %v757_v43 = vpop.f32.mrf.mxu0  ;;  %v4112_v28 = vshll.u32 %v15390_v16, 16  ;;  %v4120_v10 = vshll.u32 %v16776_v46, 16  ;;  %v3777_v27 = vrot.slane %v3775_v49, 4  ;;  %v3761_v37 = vsel %vm797_vm2, %v3751_v20, %v3760_v11 }
 0x163   : > { %v16761_v44 = vadd.f32 %v1037_v18, %v742_v6  ;;  %v16772_v6 = vld [vmem:[#allocation2 + $0xbc] sm:$0xf]  ;;  %v3781_v3 = vshrl.u32 %v12815_v0, 16  ;;  %v3784_v23 = vshll.u32 %v12815_v0, 16  ;;  %v3774_v18 = vrot.slane %v3772_v41, 3 }
 0x164   : > { %v14300_v40 = vpop.f32.mrf.mxu1  ;;  %14507 = vmatmul.mubr.msk.bf16.gmra.mxu1 %vm624_vm1, %v12793_v14  ;;  %v14278_v38 = vpop.f32.mrf.mxu0  ;;  %14485 = vmatmul.mubr.msk.bf16.gmra.mxu0 %vm624_vm1, %v3161_v25  ;;  %v12795_v39 = vcombine.low %v16772_v6, %v16767_v8  ;;  %v4114_v43 = vrot.slane %v4112_v28, 1 }
 0x165   : > { %v16769_v51 = vadd.f32 %v14300_v40, %v14274_v54  ;;  %14510 = vmatprep.mubr.msk.bf16.mxu1 %vm624_vm1, %v12794_v13  ;;  %14516 = vmatprep.mubr.msk.bf16.mxu0 %vm624_vm1, %v3743_v45  ;;  %v3752_v13 = vsel %vm797_vm2, %v3742_v57, %v3751_v20  ;;  %v12817_v57 = vcombine.low %v16711_v5, %v16720_v7  ;;  %v15392_v45 = vld [vmem:[#allocation2 + $0x84] sm:$0xff]   ;;  %v3783_v0 = vrot.slane %v3781_v3, 3 }
 0x166   : > { %v1049_v53 = vpop.f32.mrf.mxu1  ;;  %v769_v42 = vpop.f32.mrf.mxu0  ;;  %v3786_v21 = vrot.slane %v3784_v23, 4  ;;  %v3769_v5 = vor.u32 %v3768_v30, %v3765_v2  ;;  %v4118_v7 = vor.u32 %v4116_v36, %v4114_v43  ;;  %v4122_v20 = vrot.slane %v4120_v10, 1 }
 0x167   : > { %v16778_v54 = vadd.f32 %v1049_v53, %v754_v33  ;;  %v4107_v33 = vsel %vm1167_vm3, %v4102_v60, %v4106_v26  ;;  %v4110_v53 = vor.u32 %v4108_v17, %v4106_v26  ;;  %v16802_v60 = vld [vmem:[#allocation2 + $0x8c] sm:$0xff]   ;;  %v3778_v49 = vor.u32 %v3777_v27, %v3774_v18 }
 0x168   : > { %v14301_v22 = vpop.f32.mrf.mxu1  ;;  %v14279_v25 = vpop.f32.mrf.mxu0  ;;  %v3790_v26 = vshrl.u32 %v12816_v56, 16  ;;  %v3793_v42 = vshll.u32 %v12816_v56, 16  ;;  %v3799_v3 = vshrl.u32 %v12817_v57, 16  ;;  %v3802_v23 = vshll.u32 %v12817_v57, 16  ;;  %v16823_v18 = vld [vmem:[#allocation7 + $0x30] sm:$0xff]  }
 0x169   : > { %v16782_v14 = vadd.f32 %v14301_v22, %v14275_v4  ;;  %v4128_v2 = vshll.u32 %v15392_v45, 16  ;;  %v16812_v30 = vcombine.low %v16738_v52, %v16740_v55  ;;  %v4132_v28 = vshrl.u32 %v15392_v45, 16 }
 0x16a   : > { %v1052_v12 = vpop.f32.mrf.mxu1  ;;  %v771_v4 = vpop.f32.mrf.mxu0  ;;  %v3770_v17 = vsel %vm797_vm2, %v3760_v11, %v3769_v5  ;;  %v4123_v36 = vsel %vm1167_vm3, %v4118_v7, %v4122_v20  ;;  %v3779_v52 = vsel %vm797_vm2, %v3769_v5, %v3778_v49  ;;  %v3792_v55 = vrot.slane %v3790_v26, 3  ;;  %v15394_v11 = vld [vmem:[#allocation2 + $0x94] sm:$0xff]  }
 0x16b   : > { %v3795_v10 = vrot.slane %v3793_v42, 4  ;;  %v3801_v56 = vrot.slane %v3799_v3, 3  ;;  %v4140_v26 = vshrl.u32 %v16802_v60, 16  ;;  %v4144_v42 = vshll.u32 %v15394_v11, 16 }
 0x16c   : > { %v14304_v59 = vpop.f32.mrf.mxu1  ;;  %14511 = vmatmul.mubr.msk.bf16.gmra.mxu1 %vm624_vm1, %v12795_v39  ;;  %v14310_v16 = vpop.f32.mrf.mxu0  ;;  %14517 = vmatmul.mubr.msk.bf16.vlgmr.msra.gmra.mxu0 %vm624_vm1, %v3752_v13  ;;  %v12820_v3 = vcombine.low %v16742_v1, %v16772_v6 }
 0x16d   : > { %v16796_v40 = vadd.f32 %v14304_v59, %v14278_v38  ;;  %14542 = vmatprep.mubr.msk.bf16.mxu1 %vm624_vm1, %v4107_v33  ;;  %14567 = vmatpush3.bf16.msra.mxu0 %v16622_v19  ;;  %v16806_v38 = vcombine.low %v16713_v58, %v16732_v34  ;;  %v4115_v58 = vsel %vm1167_vm3, %v4110_v53, %v4114_v43  ;;  %v4124_v34 = vshrl.u32 %v16776_v46, 16 }
 0x16e   : > { %v1064_v24 = vpop.f32.mrf.mxu1  ;;  %14520 = vmatprep.mubr.msk.bf16.mxu0 %vm624_vm1, %v3761_v37  ;;  %v1344_v41 = vpop.f32.mrf.mxu0  ;;  %14618 = vmatprep.subr.bf16.mxu0 %v16788_v15  ;;  %v3804_v37 = vrot.slane %v3802_v23, 4  ;;  %v3787_v59 = vor.u32 %v3786_v21, %v3783_v0  ;;  %v3817_v43 = vshrl.u32 %v16812_v30, 16  ;;  %v3796_v7 = vor.u32 %v3795_v10, %v3792_v55 }
 0x16f   : > { %v1431_v19 = vadd.f32 %v1344_v41, %v16658_v47  ;;  %v4136_v47 = vshll.u32 %v16802_v60, 16  ;;  %v4126_v57 = vor.u32 %v4124_v34, %v4122_v20  ;;  %v16833_v24 = vld [vmem:[#allocation2 + $0x9c] sm:$0xff]   ;;  %v3808_v20 = vshrl.u32 %v16806_v38, 16  ;;  %v15396_v60 = vld [vmem:[#allocation2 + $0xa4] sm:$0xff]  }
 0x170   : > { %v14305_v22 = vpop.f32.mrf.mxu1  ;;  %v14311_v39 = vpop.f32.mrf.mxu0  ;;  %v3811_v0 = vshll.u32 %v16806_v38, 16  ;;  %v3788_v38 = vsel %vm797_vm2, %v3778_v49, %v3787_v59  ;;  %v3797_v1 = vsel %vm797_vm2, %v3787_v59, %v3796_v7  ;;  %v4156_v55 = vshrl.u32 %v16833_v24, 16 }
 0x171   : > { %v1433_v25 = vadd.f32 %v14311_v39, %v16665_v32  ;;  %v4130_v32 = vrot.slane %v4128_v2, 1  ;;  %v4138_v53 = vrot.slane %v4136_v47, 1  ;;  %v3810_v6 = vrot.slane %v3808_v20, 3  ;;  %v16856_v47 = vld [vmem:[#allocation2 + $0xac] sm:$0xff]  }
 0x172   : > { %v1066_v13 = vpop.f32.mrf.mxu1  ;;  %v1347_v33 = vpop.f32.mrf.mxu0  ;;  %v3826_v10 = vshrl.u32 %v12820_v3, 16  ;;  %v4168_v20 = vshll.u32 %v16856_v47, 16 }
 0x173   : > { %v16820_v12 = vadd.f32 %v1066_v13, %v771_v4  ;;  %v1432_v46 = vadd.f32 %v1347_v33, %v16671_v29  ;;  %v4134_v29 = vor.u32 %v4132_v28, %v4130_v32  ;;  %v4131_v22 = vsel %vm1167_vm3, %v4126_v57, %v4130_v32 }
 0x174   : > { %v14336_v27 = vpop.f32.mrf.mxu1  ;;  %14543 = vmatmul.mubr.msk.bf16.vlgmr.msra.gmra.mxu1 %vm624_vm1, %v4115_v58  ;;  %v14314_v4 = vpop.f32.mrf.mxu0  ;;  %14521 = vmatmul.mubr.msk.bf16.gmra.mxu0 %vm624_vm1, %v3770_v17  ;;  %v4152_v58 = vshll.u32 %v16833_v24, 16  ;;  %v3819_v13 = vrot.slane %v3817_v43, 3  ;;  %v4142_v49 = vor.u32 %v4140_v26, %v4138_v53 }
 0x175   : > { %14593 = vmatpush3.bf16.msra.mxu1 %v16645_v61  ;;  %v1435_v45 = vadd.f32 %v14314_v4, %v16678_v9  ;;  %14546 = vmatprep.mubr.msk.bf16.mxu1 %vm624_vm1, %v4123_v36  ;;  %v3820_v9 = vshll.u32 %v16812_v30, 16  ;;  %v4139_v30 = vsel %vm1167_vm3, %v4134_v29, %v4138_v53  ;;  %v3805_v36 = vor.u32 %v3804_v37, %v3801_v56  ;;  %v16869_v29 = vld [vmem:[#allocation2 + $0x70] sm:$0xf] }
 0x176   : > { %v1729_v16 = vpop.f32.mrf.mxu1  ;;  %14524 = vmatprep.mubr.msk.bf16.mxu0 %vm624_vm1, %v3779_v52  ;;  %v1359_v61 = vpop.f32.mrf.mxu0  ;;  %14644 = vmatprep.subr.bf16.mxu1 %v16823_v18  ;;  %v4154_v56 = vrot.slane %v4152_v58, 1  ;;  %v4160_v37 = vshll.u32 %v15396_v60, 16  ;;  %v12821_v53 = vcombine.low %v16767_v8, %v16767_v8 }
 0x177   : > { %v16835_v5 = vadd.f32 %v1729_v16, %v1431_v19  ;;  %v1434_v21 = vadd.f32 %v1359_v61, %v16689_v48  ;;  %v4148_v48 = vshrl.u32 %v15394_v11, 16  ;;  %v3822_v4 = vrot.slane %v3820_v9, 4  ;;  %v4375_v16 = vld [vmem:[#allocation2 + $0x6c] sm:$0x8]  ;;  %v16877_v9 = vld [vmem:[#allocation2 + $0x78] sm:$0xf] }
 0x178   : > { %v14337_v41 = vpop.f32.mrf.mxu1  ;;  %v14315_v19 = vpop.f32.mrf.mxu0  ;;  %v4164_v61 = vshrl.u32 %v15396_v60, 16  ;;  %v3806_v26 = vsel %vm797_vm2, %v3796_v7, %v3805_v36 }
 0x179   : > { %v16845_v23 = vadd.f32 %v14337_v41, %v1433_v25  ;;  %v1436_v2 = vadd.f32 %v14315_v19, %v16696_v35  ;;  %v3813_v25 = vrot.slane %v3811_v0, 4  ;;  %v4146_v35 = vrot.slane %v4144_v42, 1  ;;  %v16875_v0 = vld [vmem:[#allocation2 + $0x74] sm:$0xf] }
 0x17a   : > { %v1732_v39 = vpop.f32.mrf.mxu1  ;;  %v1362_v28 = vpop.f32.mrf.mxu0  ;;  %v3828_v42 = vrot.slane %v3826_v10, 3  ;;  %v3823_v58 = vor.u32 %v3822_v4, %v3819_v13  ;;  %v4172_v10 = vshrl.u32 %v16856_v47, 16 }
 0x17b   : > { %v16852_v34 = vadd.f32 %v1732_v39, %v1432_v46  ;;  %v3829_v46 = vshll.u32 %v12820_v3, 16  ;;  %v4150_v11 = vor.u32 %v4148_v48, %v4146_v35  ;;  %v3814_v43 = vor.u32 %v3813_v25, %v3810_v6 }
 0x17c   : > { %v14340_v17 = vpop.f32.mrf.mxu1  ;;  %14547 = vmatmul.mubr.msk.bf16.gmra.mxu1 %vm624_vm1, %v4131_v22  ;;  %v14318_v52 = vpop.f32.mrf.mxu0  ;;  %14525 = vmatmul.mubr.msk.bf16.gmra.mxu0 %vm624_vm1, %v3788_v38  ;;  %v4147_v24 = vsel %vm1167_vm3, %v4142_v49, %v4146_v35  ;;  %v4158_v22 = vor.u32 %v4156_v55, %v4154_v56  ;;  %v4162_v38 = vrot.slane %v4160_v37, 1  ;;  %v12861_v39 = vcombine.low %v4375_v16, %v16869_v29  ;;  %v16896_v35 = vld [vmem:[#allocation2 + $0xbc] sm:$0xff]   ;;  %v16908_v16 = vld [vmem:[#allocation2 + $0x88] sm:$0xf] }
 0x17d   : > { %v16858_v33 = vadd.f32 %v14340_v17, %v1435_v45  ;;  %14550 = vmatprep.mubr.msk.bf16.mxu1 %vm624_vm1, %v4139_v30  ;;  %v1438_v27 = vadd.f32 %v14318_v52, %v16715_v31  ;;  %14528 = vmatprep.mubr.msk.bf16.mxu0 %vm624_vm1, %v3797_v1  ;;  %v16867_v45 = vld [vmem:[#allocation2 + $0xb4] sm:$0xff]   ;;  %v3831_v3 = vrot.slane %v3829_v46, 4  ;;  %v4155_v8 = vsel %vm1167_vm3, %v4150_v11, %v4154_v56 }
 0x17e   : > { %v1744_v32 = vpop.f32.mrf.mxu1  ;;  %v1374_v59 = vpop.f32.mrf.mxu0  ;;  %v3815_v48 = vsel %vm797_vm2, %v3805_v36, %v3814_v43  ;;  %v4166_v7 = vor.u32 %v4164_v61, %v4162_v38  ;;  %v4170_v1 = vrot.slane %v4168_v20, 1  ;;  %v4176_v6 = vshll.u32 %v16867_v45, 16  ;;  %v16900_v36 = vld [vmem:[#allocation2 + $0x80] sm:$0xf] }
 0x17f   : > { %v16865_v57 = vadd.f32 %v1744_v32, %v1434_v21  ;;  %v16894_v13 = vor.u32 %v3831_v3, %v3828_v42  ;;  %v3835_v49 = vshrl.u32 %v12821_v53, 16  ;;  %v4163_v55 = vsel %vm1167_vm3, %v4158_v22, %v4162_v38  ;;  %v16905_v32 = vld [vmem:[#allocation2 + $0x84] sm:$0xf] }
 0x180   : > { %v14341_v31 = vpop.f32.mrf.mxu1  ;;  %v14319_v41 = vpop.f32.mrf.mxu0  ;;  %v3838_v46 = vshll.u32 %v12821_v53, 16  ;;  %v3824_v56 = vsel %vm797_vm2, %v3814_v43, %v3823_v58  ;;  %v4469_v37 = vshll.u32 %v12861_v39, 16  ;;  %v4171_v61 = vsel %vm1167_vm3, %v4166_v7, %v4170_v1 }
 0x181   : > { %v16879_v21 = vadd.f32 %v14341_v31, %v1436_v2  ;;  %v12862_v2 = vcombine.low %v16875_v0, %v16877_v9  ;;  %v4178_v20 = vrot.slane %v4176_v6, 1  ;;  %v3833_v41 = vsel %vm797_vm2, %v3823_v58, %v16894_v13 }
 0x182   : > { %v1747_v19 = vpop.f32.mrf.mxu1  ;;  %v1376_v30 = vpop.f32.mrf.mxu0  ;;  %v4180_v43 = vshrl.u32 %v16867_v45, 16  ;;  %v4184_v42 = vshll.u32 %v16896_v35, 16  ;;  %v12864_v22 = vcombine.low %v16905_v32, %v16908_v16  ;;  %v4174_v45 = vor.u32 %v4172_v10, %v4170_v1  ;;  %v16931_v1 = vld [vmem:[#allocation2 + $0x90] sm:$0xf] }
 0x183   : > { %v1437_v60 = vadd.f32 %v1376_v30, %v16730_v50  ;;  %v16898_v50 = vld [vmem:[#allocation2 + $0x7c] sm:$0xf]  ;;  %v4474_v4 = vshrl.u32 %v12862_v2, 16  ;;  %v4477_v59 = vshll.u32 %v12862_v2, 16  ;;  %v4471_v30 = vrot.slane %v4469_v37, 4 }
 0x184   : > { %v14344_v28 = vpop.f32.mrf.mxu1  ;;  %14551 = vmatmul.mubr.msk.bf16.gmra.mxu1 %vm624_vm1, %v4147_v24  ;;  %v14322_v17 = vpop.f32.mrf.mxu0  ;;  %14529 = vmatmul.mubr.msk.bf16.gmra.mxu0 %vm624_vm1, %v3806_v26  ;;  %v12863_v47 = vcombine.low %v16898_v50, %v16900_v36  ;;  %v3837_v26 = vrot.slane %v3835_v49, 3  ;;  %v4182_v6 = vor.u32 %v4180_v43, %v4178_v20 }
 0x185   : > { %v16890_v25 = vadd.f32 %v14344_v28, %v1438_v27  ;;  %14554 = vmatprep.mubr.msk.bf16.mxu1 %vm624_vm1, %v4155_v8  ;;  %14532 = vmatprep.mubr.msk.bf16.mxu0 %vm624_vm1, %v3815_v48  ;;  %v4466_v27 = vshrl.u32 %v12861_v39, 16  ;;  %v4476_v48 = vrot.slane %v4474_v4, 3  ;;  %v4479_v2 = vrot.slane %v4477_v59, 4  ;;  %v15400_v17 = vld [vmem:[#allocation2 + $0xc4] ss:$0 sps:$4 sm:$0x11]  }
 0x186   : > { %v1759_v52 = vpop.f32.mrf.mxu1  ;;  %v1388_v11 = vpop.f32.mrf.mxu0  ;;  %v4483_v7 = vshrl.u32 %v12863_v47, 16  ;;  %v4495_v4 = vshll.u32 %v12864_v22, 16  ;;  %v16935_v59 = vld [vmem:[#allocation2 + $0x94] sm:$0xf]  ;;  %v4192_v43 = vshll.u32 %v15400_v17, 16 }
 0x187   : > { %v1439_v31 = vadd.f32 %v1388_v11, %v16749_v63  ;;  %v3840_v63 = vrot.slane %v3838_v46, 4  ;;  %v4468_v8 = vrot.slane %v4466_v27, 3  ;;  %v4492_v27 = vshrl.u32 %v12864_v22, 16  ;;  %v16929_v11 = vld [vmem:[#allocation2 + $0x8c] sm:$0xf] }
 0x188   : > { %v14345_v24 = vpop.f32.mrf.mxu1  ;;  %v14323_v53 = vpop.f32.mrf.mxu0  ;;  %v4480_v37 = vor.u32 %v4479_v2, %v4476_v48  ;;  %v4497_v48 = vrot.slane %v4495_v4, 4  ;;  %v12887_v4 = vcombine.low %v16869_v29, %v16875_v0 }
 0x189   : > { %v1441_v3 = vadd.f32 %v14323_v53, %v16755_v62  ;;  %v3841_v46 = vor.u32 %v3840_v63, %v3837_v26  ;;  %v16937_v24 = vld [vmem:[#allocation2 + $0x98] sm:$0xf]  ;;  %v4188_v53 = vshrl.u32 %v16896_v35, 16 }
 0x18a   : > { %v1761_v19 = vpop.f32.mrf.mxu1  ;;  %v1391_v39 = vpop.f32.mrf.mxu0  ;;  %v12866_v35 = vcombine.low %v16935_v59, %v16937_v24 }
 0x18b   : > { %v16921_v38 = vadd.f32 %v1761_v19, %v1437_v60  ;;  %v1440_v58 = vadd.f32 %v1391_v39, %v16761_v44  ;;  %v4486_v60 = vshll.u32 %v12863_v47, 16  ;;  %v4186_v44 = vrot.slane %v4184_v42, 1 }
 0x18c   : > { %v14348_v28 = vpop.f32.mrf.mxu1  ;;  %14555 = vmatmul.mubr.msk.bf16.gmra.mxu1 %vm624_vm1, %v4163_v55  ;;  %v14326_v62 = vpop.f32.mrf.mxu0  ;;  %14533 = vmatmul.mubr.msk.bf16.gmra.mxu0 %vm624_vm1, %v3824_v56  ;;  %v4472_v56 = vor.u32 %v4471_v30, %v4468_v8  ;;  %v4179_v47 = vsel %vm1167_vm3, %v4174_v45, %v4178_v20  ;;  %v12865_v19 = vcombine.low %v16929_v11, %v16931_v1  ;;  %v4494_v30 = vrot.slane %v4492_v27, 3 }
 0x18d   : > { %14558 = vmatprep.mubr.msk.bf16.mxu1 %vm624_vm1, %v4171_v61  ;;  %v1443_v49 = vadd.f32 %v14326_v62, %v16769_v51  ;;  %14536 = vmatprep.mubr.msk.bf16.mxu0 %vm624_vm1, %v3833_v41  ;;  %v4485_v41 = vrot.slane %v4483_v7, 3  ;;  %v4488_v42 = vrot.slane %v4486_v60, 4  ;;  %v4187_v22 = vsel %vm1167_vm3, %v4182_v6, %v4186_v44  ;;  %v16960_v62 = vld [vmem:[#allocation2 + $0x9c] sm:$0xf] }
 0x18e   : > { %v1773_v52 = vpop.f32.mrf.mxu1  ;;  %v1403_v10 = vpop.f32.mrf.mxu0  ;;  %v4481_v39 = vsel %vm797_vm2, %v4472_v56, %v4480_v37  ;;  %v4504_v60 = vshll.u32 %v12865_v19, 16 }
 0x18f   : > { %v16933_v55 = vadd.f32 %v1773_v52, %v1439_v31  ;;  %v1442_v51 = vadd.f32 %v1403_v10, %v16778_v54  ;;  %v3842_v54 = vsel %vm797_vm2, %v16894_v13, %v3841_v46  ;;  %v4194_v13 = vrot.slane %v4192_v43, 1 }
 0x190   : > { %v14349_v61 = vpop.f32.mrf.mxu1  ;;  %v14327_v31 = vpop.f32.mrf.mxu0  ;;  %v4489_v7 = vor.u32 %v4488_v42, %v4485_v41  ;;  %v4510_v52 = vshrl.u32 %v12866_v35, 16  ;;  %v4513_v46 = vshll.u32 %v12866_v35, 16  ;;  %v4498_v10 = vor.u32 %v4497_v48, %v4494_v30  ;;  %v16991_v48 = vld [vmem:[#allocation2 + $0xac] sm:$0xf] }
 0x191   : > { %v16942_v26 = vadd.f32 %v14349_v61, %v1441_v3  ;;  %v1444_v63 = vadd.f32 %v14327_v31, %v16782_v14  ;;  %v4190_v14 = vor.u32 %v4188_v53, %v4186_v44  ;;  %v16970_v61 = vld [vmem:[#allocation2 + $0xa4] sm:$0xf] }
 0x192   : > { %v1776_v8 = vpop.f32.mrf.mxu1  ;;  %v1406_v3 = vpop.f32.mrf.mxu0  ;;  %v4490_v31 = vsel %vm797_vm2, %v4480_v37, %v4489_v7  ;;  %v4499_v0 = vsel %vm797_vm2, %v4489_v7, %v4498_v10 }
 0x193   : > { %v16952_v20 = vadd.f32 %v1776_v8, %v1440_v58  ;;  %v4501_v58 = vshrl.u32 %v12865_v19, 16  ;;  %v4195_v41 = vsel %vm1167_vm3, %v4190_v14, %v4194_v13  ;;  %v4506_v19 = vrot.slane %v4504_v60, 4 }
 0x194   : > { %v14352_v2 = vpop.f32.mrf.mxu1  ;;  %14559 = vmatmul.mubr.msk.bf16.gmra.mxu1 %vm624_vm1, %v4179_v47  ;;  %v14330_v45 = vpop.f32.mrf.mxu0  ;;  %14537 = vmatmul.mubr.msk.bf16.gmra.mxu0 %vm624_vm1, %v3842_v54  ;;  %v16972_v47 = vld [vmem:[#allocation2 + $0xa8] sm:$0xf]  ;;  %v4512_v8 = vrot.slane %v4510_v52, 3  ;;  %v4515_v54 = vrot.slane %v4513_v46, 4 }
 0x195   : > { %v16956_v28 = vadd.f32 %v14352_v2, %v1443_v49  ;;  %14562 = vmatprep.mubr.msk.bf16.mxu1 %vm624_vm1, %v4187_v22  ;;  %v1446_v6 = vadd.f32 %v14330_v45, %v16796_v40  ;;  %14568 = vmatprep.mubr.msk.bf16.mxu0 %vm624_vm1, %v4481_v39  ;;  %v16964_v49 = vld [vmem:[#allocation2 + $0xa0] sm:$0xf]  ;;  %v4503_v42 = vrot.slane %v4501_v58, 3  ;;  %v16983_v22 = vld [vmem:[#allocation7 + $0x38] sm:$0xff]   ;;  %v16993_v2 = vld [vmem:[#allocation2 + $0xb0] sm:$0xf] }
 0x196   : > { %v1788_v17 = vpop.f32.mrf.mxu1  ;;  %v1418_v27 = vpop.f32.mrf.mxu0  ;;  %v4516_v45 = vor.u32 %v4515_v54, %v4512_v8  ;;  %v12869_v46 = vcombine.low %v16991_v48, %v16993_v2  ;;  %v17016_v54 = vld [vmem:[#allocation7 + $0x40] sm:$0xff]  }
 0x197   : > { %v16966_v44 = vadd.f32 %v1788_v17, %v1442_v51  ;;  %v12867_v51 = vcombine.low %v16960_v62, %v16964_v49  ;;  %v12888_v17 = vcombine.low %v16877_v9, %v16898_v50  ;;  %v17005_v27 = vld [vmem:[#allocation2 + $0xb8] sm:$0xf] }
 0x198   : > { %v14353_v56 = vpop.f32.mrf.mxu1  ;;  %v14331_v53 = vpop.f32.mrf.mxu0 }
 0x199   : > { %v16974_v40 = vadd.f32 %v14353_v56, %v1444_v63  ;;  %v12868_v63 = vcombine.low %v16970_v61, %v16972_v47  ;;  %v4519_v30 = vshrl.u32 %v12867_v51, 16  ;;  %v4522_v13 = vshll.u32 %v12867_v51, 16 }
 0x19a   : > { %v1791_v43 = vpop.f32.mrf.mxu1  ;;  %v1420_v29 = vpop.f32.mrf.mxu0 }
 0x19b   : > { %v1445_v35 = vadd.f32 %v1420_v29, %v16820_v12  ;;  %v4507_v12 = vor.u32 %v4506_v19, %v4503_v42  ;;  %v4528_v58 = vshrl.u32 %v12868_v63, 16  ;;  %v4521_v53 = vrot.slane %v4519_v30, 3 }
 0x19c   : > { %v14356_v3 = vpop.f32.mrf.mxu1  ;;  %14563 = vmatmul.mubr.msk.bf16.gmra.mxu1 %vm624_vm1, %v4195_v41  ;;  %v14362_v39 = vpop.f32.mrf.mxu0  ;;  %14569 = vmatmul.mubr.msk.bf16.vlgmr.msra.gmra.mxu0 %vm624_vm1, %v4490_v31  ;;  %v4524_v50 = vrot.slane %v4522_v13, 4  ;;  %v17031_v13 = vld [vmem:[#allocation2 + $0xc4] sm:$0xf] }
 0x19d   : > { %v16987_v37 = vadd.f32 %v14356_v3, %v1446_v6  ;;  %14594 = vmatprep.mubr.msk.bf16.mxu1 %vm624_vm1, %v12887_v4  ;;  %14619 = vmatpush3.bf16.msra.mxu0 %v16788_v15  ;;  %v4531_v6 = vshll.u32 %v12868_v63, 16  ;;  %v17003_v15 = vld [vmem:[#allocation2 + $0xb4] sm:$0xf]  ;;  %v12889_v4 = vcombine.low %v16900_v36, %v16905_v32  ;;  %v4508_v9 = vsel %vm797_vm2, %v4498_v10, %v4507_v12  ;;  %v17025_v3 = vld [vmem:[#allocation2 + $0xbc] sm:$0xf] }
 0x19e   : > { %v1803_v14 = vpop.f32.mrf.mxu1  ;;  %14572 = vmatprep.mubr.msk.bf16.mxu0 %vm624_vm1, %v4499_v0  ;;  %v1922_v7 = vpop.f32.mrf.mxu0  ;;  %14670 = vmatprep.subr.bf16.mxu0 %v16983_v22  ;;  %v4530_v42 = vrot.slane %v4528_v58, 3  ;;  %v12870_v8 = vcombine.low %v17003_v15, %v17005_v27  ;;  %v4540_v10 = vshll.u32 %v12869_v46, 16 }
 0x19f   : > { %v2009_v60 = vadd.f32 %v1922_v7, %v16835_v5  ;;  %v4517_v5 = vsel %vm797_vm2, %v4507_v12, %v4516_v45  ;;  %v4533_v19 = vrot.slane %v4531_v6, 4  ;;  %v17033_v7 = vld [vmem:[#allocation2 + $0xc8] sm:$0xf]  ;;  %v12890_v6 = vcombine.low %v16908_v16, %v16929_v11 }
 0x1a0   : > { %v14357_v52 = vpop.f32.mrf.mxu1  ;;  %v14363_v56 = vpop.f32.mrf.mxu0  ;;  %v4549_v12 = vshll.u32 %v12870_v8, 16 }
 0x1a1   : > { %v2011_v41 = vadd.f32 %v14363_v56, %v16845_v23  ;;  %v4537_v23 = vshrl.u32 %v12869_v46, 16  ;;  %v4534_v14 = vor.u32 %v4533_v19, %v4530_v42  ;;  %v4542_v52 = vrot.slane %v4540_v10, 4 }
 0x1a2   : > { %v1805_v31 = vpop.f32.mrf.mxu1  ;;  %v1925_v43 = vpop.f32.mrf.mxu0  ;;  %v12891_v56 = vcombine.low %v16931_v1, %v16935_v59 }
 0x1a3   : > { %v17012_v51 = vadd.f32 %v1805_v31, %v1445_v35  ;;  %v2010_v36 = vadd.f32 %v1925_v43, %v16852_v34  ;;  %v4525_v35 = vor.u32 %v4524_v50, %v4521_v53  ;;  %v17027_v34 = vld [vmem:[#allocation2 + $0xc0] sm:$0xf]  ;;  %v4551_v50 = vrot.slane %v4549_v12, 4  ;;  %v17052_v43 = vld [vmem:[#allocation2 + $0xcc] sm:$0xf] }
 0x1a4   : > { %v14388_v32 = vpop.f32.mrf.mxu1  ;;  %14595 = vmatmul.mubr.msk.bf16.vlgmr.msra.gmra.mxu1 %vm624_vm1, %v12888_v17  ;;  %v14366_v29 = vpop.f32.mrf.mxu0  ;;  %14573 = vmatmul.mubr.msk.bf16.gmra.mxu0 %vm624_vm1, %v4508_v9  ;;  %v4539_v17 = vrot.slane %v4537_v23, 3  ;;  %v12872_v9 = vcombine.low %v17031_v13, %v17033_v7  ;;  %v12873_v10 = vcombine.low %v17052_v43, %v17052_v43 }
 0x1a5   : > { %14645 = vmatpush3.bf16.msra.mxu1 %v16823_v18  ;;  %v2013_v0 = vadd.f32 %v14366_v29, %v16858_v33  ;;  %14598 = vmatprep.mubr.msk.bf16.mxu1 %vm624_vm1, %v12889_v4  ;;  %v4546_v18 = vshrl.u32 %v12870_v8, 16  ;;  %v12871_v4 = vcombine.low %v17025_v3, %v17027_v34 }
 0x1a6   : > { %v2291_v63 = vpop.f32.mrf.mxu1  ;;  %14576 = vmatprep.mubr.msk.bf16.mxu0 %vm624_vm1, %v4517_v5  ;;  %v1937_v30 = vpop.f32.mrf.mxu0  ;;  %14696 = vmatprep.subr.bf16.mxu1 %v17016_v54  ;;  %v4543_v59 = vor.u32 %v4542_v52, %v4539_v17  ;;  %v4564_v32 = vshrl.u32 %v12872_v9, 16  ;;  %v4567_v23 = vshll.u32 %v12872_v9, 16  ;;  %v15426_v9 = vld [vmem:[#allocation2 + $0x70] sm:$0xff]  }
 0x1a7   : > { %v17029_v39 = vadd.f32 %v2291_v63, %v2009_v60  ;;  %v2012_v33 = vadd.f32 %v1937_v30, %v16865_v57  ;;  %v4526_v57 = vsel %vm797_vm2, %v4516_v45, %v4525_v35  ;;  %v4548_v5 = vrot.slane %v4546_v18, 3 }
 0x1a8   : > { %v14389_v58 = vpop.f32.mrf.mxu1  ;;  %v14367_v46 = vpop.f32.mrf.mxu0  ;;  %v4555_v45 = vshrl.u32 %v12871_v4, 16  ;;  %v4558_v19 = vshll.u32 %v12871_v4, 16  ;;  %v12892_v30 = vcombine.low %v16937_v24, %v16960_v62  ;;  %v4544_v18 = vsel %vm797_vm2, %v4534_v14, %v4543_v59 }
 0x1a9   : > { %v17039_v60 = vadd.f32 %v14389_v58, %v2011_v41  ;;  %v2014_v53 = vadd.f32 %v14367_v46, %v16879_v21  ;;  %v4535_v41 = vsel %vm797_vm2, %v4525_v35, %v4534_v14  ;;  %v4552_v63 = vor.u32 %v4551_v50, %v4548_v5  ;;  %v5322_v50 = vld [vmem:[#allocation2 + $0x78] sm:$0x8] }
 0x1aa   : > { %v2294_v31 = vpop.f32.mrf.mxu1  ;;  %v1940_v11 = vpop.f32.mrf.mxu0  ;;  %v12893_v58 = vcombine.low %v16964_v49, %v16970_v61  ;;  %v4560_v17 = vrot.slane %v4558_v19, 4  ;;  %v4566_v46 = vrot.slane %v4564_v32, 3  ;;  %v4576_v4 = vshll.u32 %v12873_v10, 16  ;;  %v17086_v19 = vld [vmem:[#allocation2 + $0x84] sm:$0xf] }
 0x1ab   : > { %v17049_v16 = vadd.f32 %v2294_v31, %v2010_v36  ;;  %v12894_v32 = vcombine.low %v16972_v47, %v16991_v48  ;;  %v5044_v48 = vshrl.u32 %v15426_v9, 16 }
 0x1ac   : > { %v14392_v1 = vpop.f32.mrf.mxu1  ;;  %14599 = vmatmul.mubr.msk.bf16.gmra.mxu1 %vm624_vm1, %v12890_v6  ;;  %v14370_v42 = vpop.f32.mrf.mxu0  ;;  %14577 = vmatmul.mubr.msk.bf16.gmra.mxu0 %vm624_vm1, %v4526_v57  ;;  %v4557_v6 = vrot.slane %v4555_v45, 3  ;;  %v4553_v57 = vsel %vm797_vm2, %v4543_v59, %v4552_v63  ;;  %v4578_v5 = vrot.slane %v4576_v4, 4  ;;  %v17082_v59 = vld [vmem:[#allocation2 + $0x78] sm:$0xff]   ;;  %v17084_v45 = vld [vmem:[#allocation2 + $0x80] sm:$0xf] }
 0x1ad   : > { %v17055_v21 = vadd.f32 %v14392_v1, %v2013_v0  ;;  %14602 = vmatprep.mubr.msk.bf16.mxu1 %vm624_vm1, %v12891_v56  ;;  %v2016_v8 = vadd.f32 %v14370_v42, %v16890_v25  ;;  %14580 = vmatprep.mubr.msk.bf16.mxu0 %vm624_vm1, %v4535_v41  ;;  %v4573_v56 = vshrl.u32 %v12873_v10, 16  ;;  %v17080_v1 = vld [vmem:[#allocation2 + $0x7c] sm:$0xf]  ;;  %v5046_v42 = vshll.u32 %v15426_v9, 16 }
 0x1ae   : > { %v2306_v36 = vpop.f32.mrf.mxu1  ;;  %v1952_v0 = vpop.f32.mrf.mxu0  ;;  %v4561_v49 = vor.u32 %v4560_v17, %v4557_v6 }
 0x1af   : > { %v17063_v29 = vadd.f32 %v2306_v36, %v2012_v33  ;;  %v4569_v33 = vrot.slane %v4567_v23, 4  ;;  %v4575_v41 = vrot.slane %v4573_v56, 3  ;;  %v12895_v0 = vcombine.low %v16993_v2, %v17003_v15 }
 0x1b0   : > { %v14393_v35 = vpop.f32.mrf.mxu1  ;;  %v14371_v25 = vpop.f32.mrf.mxu0  ;;  %v4562_v10 = vsel %vm797_vm2, %v4552_v63, %v4561_v49  ;;  %v5048_v17 = vrot.slane %v5046_v42, 1  ;;  %v5051_v63 = vshll.u32 %v17082_v59, 16 }
 0x1b1   : > { %v17068_v12 = vadd.f32 %v14393_v35, %v2014_v53  ;;  %v4570_v11 = vor.u32 %v4569_v33, %v4566_v46  ;;  %v12938_v35 = vcombine.low %v5322_v50, %v17080_v1  ;;  %v17108_v46 = vld [vmem:[#allocation2 + $0x88] sm:$0xf]  ;;  %v17110_v33 = vld [vmem:[#allocation2 + $0x8c] sm:$0xf]  ;;  %v17121_v50 = vld [vmem:[#allocation2 + $0x90] sm:$0xf] }
 0x1b2   : > { %v2309_v52 = vpop.f32.mrf.mxu1  ;;  %v1954_v31 = vpop.f32.mrf.mxu0 }
 0x1b3   : > { %v2015_v24 = vadd.f32 %v1954_v31, %v16921_v38  ;;  %v4571_v25 = vsel %vm797_vm2, %v4561_v49, %v4570_v11  ;;  %v5413_v56 = vshrl.u32 %v12938_v35, 16  ;;  %v5416_v4 = vshll.u32 %v12938_v35, 16 }
 0x1b4   : > { %v14396_v62 = vpop.f32.mrf.mxu1  ;;  %14603 = vmatmul.mubr.msk.bf16.gmra.mxu1 %vm624_vm1, %v12892_v30  ;;  %v14374_v53 = vpop.f32.mrf.mxu0  ;;  %14581 = vmatmul.mubr.msk.bf16.gmra.mxu0 %vm624_vm1, %v4544_v18 }
 0x1b5   : > { %v17075_v14 = vadd.f32 %v14396_v62, %v2016_v8  ;;  %14606 = vmatprep.mubr.msk.bf16.mxu1 %vm624_vm1, %v12893_v58  ;;  %14584 = vmatprep.mubr.msk.bf16.mxu0 %vm624_vm1, %v4553_v57  ;;  %v4579_v58 = vor.u32 %v4578_v5, %v4575_v41  ;;  %v5053_v41 = vrot.slane %v5051_v63, 1  ;;  %v17119_v5 = vld [vmem:[#allocation2 + $0x88] sm:$0xff]  }
 0x1b6   : > { %v2321_v61 = vpop.f32.mrf.mxu1  ;;  %v1966_v38 = vpop.f32.mrf.mxu0 }
 0x1b7   : > { %v2017_v8 = vadd.f32 %v1966_v38, %v16933_v55  ;;  %v12939_v55 = vcombine.low %v17084_v45, %v17086_v19  ;;  %v4580_v49 = vsel %vm797_vm2, %v4570_v11, %v4579_v58  ;;  %v5049_v61 = vor.u32 %v5048_v17, %v5044_v48 }
 0x1b8   : > { %v14397_v36 = vpop.f32.mrf.mxu1  ;;  %v14375_v23 = vpop.f32.mrf.mxu0 }
 0x1b9   : > { %v2019_v30 = vadd.f32 %v14375_v23, %v16942_v26  ;;  %v17104_v26 = vld [vmem:[#allocation2 + $0x80] sm:$0xff]   ;;  %v5421_v9 = vshrl.u32 %v12939_v55, 16  ;;  %v5415_v23 = vrot.slane %v5413_v56, 3  ;;  %v17147_v56 = vld [vmem:[#allocation2 + $0x98] sm:$0xf] }
 0x1ba   : > { %v2323_v18 = vpop.f32.mrf.mxu1  ;;  %v1969_v47 = vpop.f32.mrf.mxu0 }
 0x1bb   : > { %v17099_v6 = vadd.f32 %v2323_v18, %v2015_v24  ;;  %v2018_v2 = vadd.f32 %v1969_v47, %v16952_v20  ;;  %v12896_v20 = vcombine.low %v17005_v27, %v17025_v3  ;;  %v5424_v24 = vshll.u32 %v12939_v55, 16 }
 0x1bc   : > { %v14400_v15 = vpop.f32.mrf.mxu1  ;;  %14607 = vmatmul.mubr.msk.bf16.gmra.mxu1 %vm624_vm1, %v12894_v32  ;;  %v14378_v52 = vpop.f32.mrf.mxu0  ;;  %14585 = vmatmul.mubr.msk.bf16.gmra.mxu0 %vm624_vm1, %v4562_v10  ;;  %v5055_v27 = vshrl.u32 %v17082_v59, 16  ;;  %v5059_v3 = vshll.u32 %v17104_v26, 16  ;;  %v12897_v32 = vcombine.low %v17027_v34, %v17031_v13  ;;  %v5418_v10 = vrot.slane %v5416_v4, 4 }
 0x1bd   : > { %19683 = vst [vmem:[#allocation14_spill] sm:$0xff] %v17099_v6  ;;  %14610 = vmatprep.mubr.msk.bf16.mxu1 %vm624_vm1, %v12895_v0  ;;  %v2021_v31 = vadd.f32 %v14378_v52, %v16956_v28  ;;  %14588 = vmatprep.mubr.msk.bf16.mxu0 %vm624_vm1, %v4571_v25  ;;  %v17123_v28 = vld [vmem:[#allocation2 + $0x94] sm:$0xf]  ;;  %v5426_v18 = vrot.slane %v5424_v24, 4  ;;  %v5063_v55 = vshrl.u32 %v17104_v26, 16  ;;  %v5067_v47 = vshll.u32 %v17119_v5, 16 }
 0x1be   : > { %v2335_v57 = vpop.f32.mrf.mxu1  ;;  %v1981_v53 = vpop.f32.mrf.mxu0  ;;  %v12941_v59 = vcombine.low %v17121_v50, %v17123_v28  ;;  %v5057_v13 = vor.u32 %v5055_v27, %v5053_v41  ;;  %v15436_v52 = vld [vmem:[#allocation2 + $0x90] sm:$0xff]   ;;  %v17149_v26 = vld [vmem:[#allocation2 + $0x9c] sm:$0xf]  ;;  %v17161_v27 = vld [vmem:[#allocation2 + $0xa4] sm:$0xf] }
 0x1bf   : > { %v17116_v62 = vadd.f32 %v2335_v57, %v2017_v8  ;;  %v2020_v38 = vadd.f32 %v1981_v53, %v16966_v44  ;;  %v12940_v8 = vcombine.low %v17108_v46, %v17110_v33  ;;  %v5423_v44 = vrot.slane %v5421_v9, 3  ;;  %v17275_v6 = vld [vmem:[#allocation2 + $0xd0] sm:$0xf] }
 0x1c0   : > { %v14401_v42 = vpop.f32.mrf.mxu1  ;;  %v14379_v11 = vpop.f32.mrf.mxu0  ;;  %v5442_v9 = vshll.u32 %v12941_v59, 16  ;;  %19701 = vst [vmem:[#allocation32_spill] sm:$0xff] %v17275_v6 }
 0x1c1   : > { %19684 = vst [vmem:[#allocation15_spill] sm:$0xff] %v17116_v62  ;;  %v17130_v36 = vadd.f32 %v14401_v42, %v2019_v30  ;;  %v2022_v0 = vadd.f32 %v14379_v11, %v16974_v40  ;;  %v5054_v30 = vsel %vm1167_vm3, %v5049_v61, %v5053_v41  ;;  %v5061_v40 = vrot.slane %v5059_v3, 1  ;;  %v17157_v41 = vld [vmem:[#allocation2 + $0x98] sm:$0xff]   ;;  %v17159_v42 = vld [vmem:[#allocation2 + $0xa0] sm:$0xf] }
 0x1c2   : > { %v2338_v35 = vpop.f32.mrf.mxu1  ;;  %v1984_v58 = vpop.f32.mrf.mxu0  ;;  %v5430_v48 = vshrl.u32 %v12940_v8, 16  ;;  %v5433_v15 = vshll.u32 %v12940_v8, 16  ;;  %v5069_v61 = vrot.slane %v5067_v47, 1  ;;  %v5071_v11 = vshrl.u32 %v17119_v5, 16  ;;  %v17177_v47 = vld [vmem:[#allocation9 + $0x8] sm:$0xff]  }
 0x1c3   : > { %19685 = vst [vmem:[#allocation16_spill] sm:$0xff] %v17130_v36  ;;  %v17137_v25 = vadd.f32 %v2338_v35, %v2018_v2  ;;  %v5419_v2 = vor.u32 %v5418_v10, %v5415_v23  ;;  %v5062_v8 = vsel %vm1167_vm3, %v5057_v13, %v5061_v40 }
 0x1c4   : > { %v14404_v34 = vpop.f32.mrf.mxu1  ;;  %14611 = vmatmul.mubr.msk.bf16.gmra.mxu1 %vm624_vm1, %v12896_v20  ;;  %v14382_v63 = vpop.f32.mrf.mxu0  ;;  %14589 = vmatmul.mubr.msk.bf16.gmra.mxu0 %vm624_vm1, %v4580_v49  ;;  %v17153_v20 = vor.u32 %v5426_v18, %v5423_v44  ;;  %v5065_v49 = vor.u32 %v5063_v55, %v5061_v40  ;;  %v5432_v10 = vrot.slane %v5430_v48, 3  ;;  %v5435_v35 = vrot.slane %v5433_v15, 4 }
 0x1c5   : > { %19686 = vst [vmem:[#allocation17_spill] sm:$0xff] %v17137_v25  ;;  %v17143_v17 = vadd.f32 %v14404_v34, %v2021_v31  ;;  %14614 = vmatprep.mubr.msk.bf16.mxu1 %vm624_vm1, %v12897_v32  ;;  %v2024_v4 = vadd.f32 %v14382_v63, %v16987_v37  ;;  %14620 = vmatprep.mubr.msk.bf16.mxu0 %vm624_vm1, %v5054_v30  ;;  %v5439_v31 = vshrl.u32 %v12941_v59, 16  ;;  %v5075_v44 = vshll.u32 %v15436_v52, 16  ;;  %v17181_v63 = vld [vmem:[#allocation2 + $0xa0] sm:$0xff]  }
 0x1c6   : > { %v2350_v57 = vpop.f32.mrf.mxu1  ;;  %v1996_v53 = vpop.f32.mrf.mxu0  ;;  %v12898_v37 = vcombine.low %v17033_v7, %v17052_v43  ;;  %v5428_v59 = vsel %vm797_vm2, %v5419_v2, %v17153_v20  ;;  %v5444_v30 = vrot.slane %v5442_v9, 4  ;;  %v12943_v7 = vcombine.low %v17159_v42, %v17161_v27 }
 0x1c7   : > { %19687 = vst [vmem:[#allocation18_spill] sm:$0xff] %v17143_v17  ;;  %v17155_v24 = vadd.f32 %v2350_v57, %v2020_v38  ;;  %v12942_v38 = vcombine.low %v17147_v56, %v17149_v26  ;;  %v5441_v58 = vrot.slane %v5439_v31, 3  ;;  %v5070_v5 = vsel %vm1167_vm3, %v5065_v49, %v5069_v61 }
 0x1c8   : > { %v14405_v3 = vpop.f32.mrf.mxu1  ;;  %v14383_v23 = vpop.f32.mrf.mxu0  ;;  %v5079_v55 = vshrl.u32 %v15436_v52, 16  ;;  %v5073_v52 = vor.u32 %v5071_v11, %v5069_v61  ;;  %v5436_v57 = vor.u32 %v5435_v35, %v5432_v10  ;;  %v5077_v31 = vrot.slane %v5075_v44, 1  ;;  %v17197_v61 = vld [vmem:[#allocation2 + $0xb0] sm:$0xf]  ;;  %v17199_v11 = vld [vmem:[#allocation2 + $0xb4] sm:$0xf] }
 0x1c9   : > { %19688 = vst [vmem:[#allocation19_spill] sm:$0xff] %v17155_v24  ;;  %v17169_v32 = vadd.f32 %v14405_v3, %v2022_v0  ;;  %v5083_v0 = vshll.u32 %v17157_v41, 16  ;;  %v5448_v40 = vshrl.u32 %v12942_v38, 16  ;;  %v5451_v48 = vshll.u32 %v12942_v38, 16  ;;  %v17189_v3 = vld [vmem:[#allocation2 + $0xa8] sm:$0xf] }
 0x1ca   : > { %v2353_v18 = vpop.f32.mrf.mxu1  ;;  %v1998_v43 = vpop.f32.mrf.mxu0  ;;  %v5457_v53 = vshrl.u32 %v12943_v7, 16  ;;  %v5460_v49 = vshll.u32 %v12943_v7, 16  ;;  %v17195_v23 = vld [vmem:[#allocation2 + $0xa8] sm:$0xff]   ;;  %19692 = vst [vmem:[#allocation23_spill] sm:$0xff] %v17197_v61  ;;  %19693 = vst [vmem:[#allocation24_spill] sm:$0xff] %v17199_v11  ;;  %v5087_v10 = vshrl.u32 %v17157_v41, 16  ;;  %v12945_v41 = vcombine.low %v17197_v61, %v17199_v11 }
 0x1cb   : > { %19689 = vst [vmem:[#allocation20_spill] sm:$0xff] %v17169_v32  ;;  %v2023_v34 = vadd.f32 %v1998_v43, %v17012_v51  ;;  %v5445_v51 = vor.u32 %v5444_v30, %v5441_v58  ;;  %v5085_v38 = vrot.slane %v5083_v0, 1  ;;  %v5450_v35 = vrot.slane %v5448_v40, 3 }
 0x1cc   : > { %v14408_v13 = vpop.f32.mrf.mxu1  ;;  %14615 = vmatmul.mubr.msk.bf16.gmra.mxu1 %vm624_vm1, %v12898_v37  ;;  %v14414_v15 = vpop.f32.mrf.mxu0  ;;  %14621 = vmatmul.mubr.msk.bf16.vlgmr.msra.gmra.mxu0 %vm624_vm1, %v5062_v8  ;;  %v5081_v8 = vor.u32 %v5079_v55, %v5077_v31  ;;  %v5453_v44 = vrot.slane %v5451_v48, 4  ;;  %v5091_v18 = vshll.u32 %v17181_v63, 16  ;;  %v5437_v58 = vsel %vm797_vm2, %v17153_v20, %v5436_v57 }
 0x1cd   : > { %v17183_v2 = vadd.f32 %v14408_v13, %v2024_v4  ;;  %14646 = vmatprep.mubr.msk.bf16.mxu1 %vm624_vm1, %v5428_v59  ;;  %14671 = vmatpush3.bf16.msra.mxu0 %v16983_v22  ;;  %v17191_v4 = vld [vmem:[#allocation2 + $0xac] sm:$0xf]  ;;  %v5078_v30 = vsel %vm1167_vm3, %v5073_v52, %v5077_v31  ;;  %v5459_v55 = vrot.slane %v5457_v53, 3  ;;  %v5462_v0 = vrot.slane %v5460_v49, 4  ;;  %v15444_v49 = vld [vmem:[#allocation2 + $0xb0] sm:$0xff]  }
 0x1ce   : > { %v2365_v9 = vpop.f32.mrf.mxu1  ;;  %14624 = vmatprep.mubr.msk.bf16.mxu0 %vm624_vm1, %v5070_v5  ;;  %19691 = vst [vmem:[#allocation22_spill] sm:$0xff] %v17191_v4  ;;  %v17193_v37 = vpop.f32.mrf.mxu0  ;;  %14722 = vmatprep.subr.bf16.mxu0 %v17177_v47  ;;  %v12944_v7 = vcombine.low %v17189_v3, %v17191_v4  ;;  %v5446_v5 = vsel %vm797_vm2, %v5436_v57, %v5445_v51  ;;  %v5095_v20 = vshrl.u32 %v17181_v63, 16  ;;  %v5099_v15 = vshll.u32 %v17195_v23, 16  ;;  %v17221_v52 = vld [vmem:[#allocation9] sm:$0xff]   ;;  %v17228_v63 = vld [vmem:[#allocation2 + $0xb8] sm:$0xf] }
 0x1cf   : > { %19690 = vst [vmem:[#allocation21_spill] sm:$0xff] %v17183_v2  ;;  %v5086_v48 = vsel %vm1167_vm3, %v5081_v8, %v5085_v38  ;;  %v5089_v57 = vor.u32 %v5087_v10, %v5085_v38  ;;  %v5454_v9 = vor.u32 %v5453_v44, %v5450_v35  ;;  %v5093_v53 = vrot.slane %v5091_v18, 1  ;;  %19695 = vst [vmem:[#allocation26_spill] sm:$0xff] %v17228_v63 }
 0x1d0   : > { %v14409_v22 = vpop.f32.mrf.mxu1  ;;  %v17204_v59 = vpop.f32.mrf.mxu0  ;;  %v5466_v8 = vshrl.u32 %v12944_v7, 16  ;;  %v5463_v38 = vor.u32 %v5462_v0, %v5459_v55  ;;  %v5475_v10 = vshrl.u32 %v12945_v41, 16  ;;  %v5478_v35 = vshll.u32 %v12945_v41, 16 }
 0x1d1   : > { %v5469_v22 = vshll.u32 %v12944_v7, 16  ;;  %v5097_v44 = vor.u32 %v5095_v20, %v5093_v53  ;;  %v5101_v18 = vrot.slane %v5099_v15, 1  ;;  %v17242_v7 = vld [vmem:[#allocation2 + $0xc4] sm:$0xf]  ;;  %v5094_v55 = vsel %vm1167_vm3, %v5089_v57, %v5093_v53 }
 0x1d2   : > { %v2367_v43 = vpop.f32.mrf.mxu1  ;;  %v17216_v40 = vpop.f32.mrf.mxu0  ;;  %19698 = vst [vmem:[#allocation29_spill] sm:$0xff] %v17242_v7  ;;  %v5468_v20 = vrot.slane %v5466_v8, 3  ;;  %v5107_v2 = vshll.u32 %v15444_v49, 16  ;;  %v5464_v24 = vsel %vm797_vm2, %v5454_v9, %v5463_v38  ;;  %v5477_v17 = vrot.slane %v5475_v10, 3 }
 0x1d3   : > { %v17214_v13 = vadd.f32 %v2367_v43, %v2023_v34  ;;  %v17230_v43 = vld [vmem:[#allocation2 + $0xbc] sm:$0xf]  ;;  %v5471_v15 = vrot.slane %v5469_v22, 4  ;;  %v5480_v25 = vrot.slane %v5478_v35, 4  ;;  %v5102_v53 = vsel %vm1167_vm3, %v5097_v44, %v5101_v18  ;;  %v17268_v44 = vld [vmem:[#allocation2 + $0xc8] sm:$0xf] }
 0x1d4   : > { %v14440_v31 = vpop.f32.mrf.mxu1  ;;  %14647 = vmatmul.mubr.msk.bf16.vlgmr.msra.gmra.mxu1 %vm624_vm1, %v5437_v58  ;;  %v17225_v34 = vpop.f32.mrf.mxu0  ;;  %14625 = vmatmul.mubr.msk.bf16.gmra.mxu0 %vm624_vm1, %v5078_v30  ;;  %19696 = vst [vmem:[#allocation27_spill] sm:$0xff] %v17230_v43  ;;  %v17238_v58 = vld [vmem:[#allocation2 + $0xb8] sm:$0xff]   ;;  %v17240_v30 = vld [vmem:[#allocation2 + $0xc0] sm:$0xf]  ;;  %v12946_v0 = vcombine.low %v17228_v63, %v17230_v43  ;;  %v5111_v36 = vshrl.u32 %v15444_v49, 16  ;;  %v5109_v35 = vrot.slane %v5107_v2, 1 }
 0x1d5   : > { %19694 = vst [vmem:[#allocation25_spill] sm:$0xff] %v17214_v13  ;;  %14697 = vmatpush3.bf16.msra.mxu1 %v17016_v54  ;;  %14650 = vmatprep.mubr.msk.bf16.mxu1 %vm624_vm1, %v5446_v5  ;;  %19697 = vst [vmem:[#allocation28_spill] sm:$0xff] %v17240_v30  ;;  %v5455_v5 = vsel %vm797_vm2, %v5445_v51, %v5454_v9  ;;  %v12947_v51 = vcombine.low %v17240_v30, %v17242_v7  ;;  %v5115_v62 = vshll.u32 %v17238_v58, 16  ;;  %v17270_v49 = vld [vmem:[#allocation2 + $0xcc] sm:$0xf] }
 0x1d6   : > { %v17232_v13 = vpop.f32.mrf.mxu1  ;;  %14628 = vmatprep.mubr.msk.bf16.mxu0 %vm624_vm1, %v5086_v48  ;;  %v17236_v54 = vpop.f32.mrf.mxu0  ;;  %14748 = vmatprep.subr.bf16.mxu1 %v17221_v52  ;;  %v5103_v48 = vshrl.u32 %v17195_v23, 16  ;;  %v5484_v23 = vshrl.u32 %v12946_v0, 16  ;;  %v5487_v8 = vshll.u32 %v12946_v0, 16  ;;  %v5472_v10 = vor.u32 %v5471_v15, %v5468_v20  ;;  %19699 = vst [vmem:[#allocation30_spill] sm:$0xff] %v17268_v44  ;;  %19700 = vst [vmem:[#allocation31_spill] sm:$0xff] %v17270_v49  ;;  %v15450_v2 = vld [vmem:[#allocation2 + $0xc8] sm:$0xff]  }
 0x1d7   : > { %v5493_v0 = vshrl.u32 %v12947_v51, 16  ;;  %v5496_v30 = vshll.u32 %v12947_v51, 16  ;;  %v12948_v63 = vcombine.low %v17268_v44, %v17270_v49  ;;  %v5131_v44 = vshll.u32 %v15450_v2, 16 }
 0x1d8   : > { %v17245_v31 = vpop.f32.mrf.mxu1  ;;  %v17251_v41 = vpop.f32.mrf.mxu0  ;;  %v5105_v9 = vor.u32 %v5103_v48, %v5101_v18  ;;  %v5113_v18 = vor.u32 %v5111_v36, %v5109_v35  ;;  %v5117_v48 = vrot.slane %v5115_v62, 1  ;;  %v5486_v15 = vrot.slane %v5484_v23, 3 }
 0x1d9   : > { %v5489_v11 = vrot.slane %v5487_v8, 4  ;;  %v5119_v36 = vshrl.u32 %v17238_v58, 16  ;;  %v5495_v61 = vrot.slane %v5493_v0, 3  ;;  %v5498_v23 = vrot.slane %v5496_v30, 4 }
 0x1da   : > { %v17254_v32 = vpop.f32.mrf.mxu1  ;;  %v2694_v57 = vpop.f32.mrf.mxu0  ;;  %v5118_v49 = vsel %vm1167_vm3, %v5113_v18, %v5117_v48  ;;  %v15452_v30 = vld [vmem:[#allocation2 + $0xd0] ss:$0 sps:$4 sm:$0x11]  }
 0x1db   : > { %v15448_v57 = vld [vmem:[#allocation2 + $0xc0] sm:$0xff]   ;;  %v5121_v18 = vor.u32 %v5119_v36, %v5117_v48 }
 0x1dc   : > { %v17261_v43 = vpop.f32.mrf.mxu1  ;;  %14651 = vmatmul.mubr.msk.bf16.gmra.mxu1 %vm624_vm1, %v5455_v5  ;;  %v17264_v22 = vpop.f32.mrf.mxu0  ;;  %14629 = vmatmul.mubr.msk.bf16.gmra.mxu0 %vm624_vm1, %v5094_v55  ;;  %v5481_v5 = vor.u32 %v5480_v25, %v5477_v17  ;;  %v17277_v55 = vld [vmem:[#allocation2 + $0xd4] sm:$0xf]  ;;  %v5473_v25 = vsel %vm797_vm2, %v5463_v38, %v5472_v10  ;;  %v5110_v17 = vsel %vm1167_vm3, %v5105_v9, %v5109_v35  ;;  %v5123_v51 = vshll.u32 %v15448_v57, 16 }
 0x1dd   : > { %14654 = vmatprep.mubr.msk.bf16.mxu1 %vm624_vm1, %v5464_v24  ;;  %14632 = vmatprep.mubr.msk.bf16.mxu0 %vm624_vm1, %v5102_v53  ;;  %19702 = vst [vmem:[#allocation33_spill] sm:$0xff] %v17277_v55  ;;  %v12949_v53 = vcombine.low %v17275_v6, %v17277_v55  ;;  %v5490_v9 = vor.u32 %v5489_v11, %v5486_v15  ;;  %v5502_v35 = vshrl.u32 %v12948_v63, 16  ;;  %v5505_v55 = vshll.u32 %v12948_v63, 16 }
 0x1de   : > { %v17272_v7 = vpop.f32.mrf.mxu1  ;;  %v2706_v24 = vpop.f32.mrf.mxu0  ;;  %v5482_v62 = vsel %vm797_vm2, %v5472_v10, %v5481_v5  ;;  %v5125_v58 = vrot.slane %v5123_v51, 1  ;;  %v5133_v63 = vrot.slane %v5131_v44, 1 }
 0x1df   : > { %v5511_v10 = vshrl.u32 %v12949_v53, 16  ;;  %v5514_v0 = vshll.u32 %v12949_v53, 16  ;;  %v5507_v51 = vrot.slane %v5505_v55, 4  ;;  %v5139_v53 = vshll.u32 %v15452_v30, 16 }
 0x1e0   : > { %v17279_v20 = vpop.f32.mrf.mxu1  ;;  %v14423_v4 = vpop.f32.mrf.mxu0  ;;  %v5126_v36 = vsel %vm1167_vm3, %v5121_v18, %v5125_v58 }
 0x1e1   : > { %v5127_v4 = vshrl.u32 %v15448_v57, 16  ;;  %v5499_v57 = vor.u32 %v5498_v23, %v5495_v61  ;;  %v5516_v48 = vrot.slane %v5514_v0, 4  ;;  %v15456_v23 = vld [vmem:[#allocation2 + $0x7c] sm:$0xff]  }
 0x1e2   : > { %v2887_v24 = vpop.f32.mrf.mxu1  ;;  %v17289_v8 = vpop.f32.mrf.mxu0 }
 0x1e3   : > { %19703 = vst [vmem:[#allocation34_spill] sm:$0xff] %v17289_v8  ;;  %v17298_v8 = vld [vmem:[#allocation2 + $0xd8] sm:$0xf]  ;;  %v5129_v11 = vor.u32 %v5127_v4, %v5125_v58  ;;  %v5500_v44 = vsel %vm797_vm2, %v5490_v9, %v5499_v57 }
 0x1e4   : > { %v17292_v38 = vpop.f32.mrf.mxu1  ;;  %14655 = vmatmul.mubr.msk.bf16.gmra.mxu1 %vm624_vm1, %v5473_v25  ;;  %v14426_v24 = vpop.f32.mrf.mxu0  ;;  %14633 = vmatmul.mubr.msk.bf16.gmra.mxu0 %vm624_vm1, %v5110_v17  ;;  %19705 = vst [vmem:[#allocation36_spill] sm:$0xff] %v17298_v8  ;;  %v5491_v17 = vsel %vm797_vm2, %v5481_v5, %v5490_v9  ;;  %v12950_v61 = vcombine.low %v17298_v8, %v17298_v8 }
 0x1e5   : > { %19704 = vst [vmem:[#allocation35_spill] sm:$0xff] %v17292_v38  ;;  %14658 = vmatprep.mubr.msk.bf16.mxu1 %vm624_vm1, %v5482_v62  ;;  %14636 = vmatprep.mubr.msk.bf16.mxu0 %vm624_vm1, %v5118_v49  ;;  %v5135_v24 = vshrl.u32 %v15450_v2, 16  ;;  %v5504_v62 = vrot.slane %v5502_v35, 3  ;;  %v5134_v5 = vsel %vm1167_vm3, %v5129_v11, %v5133_v63  ;;  %v15457_v11 = vld [vmem:[#allocation2 + $0x84] sm:$0xff]  }
 0x1e6   : > { %v2899_v6 = vpop.f32.mrf.mxu1  ;;  %v17300_v25 = vpop.f32.mrf.mxu0  ;;  %v5520_v0 = vshrl.u32 %v12950_v61, 16  ;;  %v5523_v9 = vshll.u32 %v12950_v61, 16  ;;  %v12964_v61 = vcombine.low %v17080_v1, %v17084_v45 }
 0x1e7   : > { %v5513_v6 = vrot.slane %v5511_v10, 3  ;;  %v5137_v2 = vor.u32 %v5135_v24, %v5133_v63  ;;  %v5508_v35 = vor.u32 %v5507_v51, %v5504_v62  ;;  %v5141_v10 = vrot.slane %v5139_v53, 1 }
 0x1e8   : > { %v14449_v15 = vpop.f32.mrf.mxu1  ;;  %v17303_v38 = vpop.f32.mrf.mxu0  ;;  %v5522_v53 = vrot.slane %v5520_v0, 3 }
 0x1e9   : > { %v5517_v58 = vor.u32 %v5516_v48, %v5513_v6  ;;  %v5993_v15 = vshll.u32 %v15456_v23, 16  ;;  %v5142_v62 = vsel %vm1167_vm3, %v5137_v2, %v5141_v10  ;;  %v5525_v6 = vrot.slane %v5523_v9, 4 }
 0x1ea   : > { %v17307_v49 = vpop.f32.mrf.mxu1  ;;  %v17311_v4 = vpop.f32.mrf.mxu0 }
 0x1eb   : > { %v5518_v51 = vsel %vm797_vm2, %v5508_v35, %v5517_v58 }
 0x1ec   : > { %v14452_v55 = vpop.f32.mrf.mxu1  ;;  %14659 = vmatmul.mubr.msk.bf16.gmra.mxu1 %vm624_vm1, %v5491_v17  ;;  %v17315_v30 = vpop.f32.mrf.mxu0  ;;  %14637 = vmatmul.mubr.msk.bf16.gmra.mxu0 %vm624_vm1, %v5126_v36  ;;  %v5509_v17 = vsel %vm797_vm2, %v5499_v57, %v5508_v35  ;;  %v5991_v36 = vshrl.u32 %v15456_v23, 16  ;;  %v5526_v35 = vor.u32 %v5525_v6, %v5522_v53 }
 0x1ed   : > { %19706 = vst [vmem:[#allocation37_spill] sm:$0xff] %v17315_v30  ;;  %14662 = vmatprep.mubr.msk.bf16.mxu1 %vm624_vm1, %v5500_v44  ;;  %14640 = vmatprep.mubr.msk.bf16.mxu0 %vm624_vm1, %v5134_v5  ;;  %v5995_v44 = vrot.slane %v5993_v15, 1  ;;  %v5998_v5 = vshll.u32 %v15457_v11, 16  ;;  %v15459_v30 = vld [vmem:[#allocation2 + $0x94] sm:$0xff]   ;;  %v17345_v15 = vld [vmem:[#allocation2 + $0x9c] sm:$0xff]  }
 0x1ee   : > { %v17319_v18 = vpop.f32.mrf.mxu1  ;;  %v17322_v55 = vpop.f32.mrf.mxu0  ;;  %v6014_v9 = vshll.u32 %v15459_v30, 16 }
 0x1ef   : > { %19707 = vst [vmem:[#allocation38_spill] sm:$0xff] %v17322_v55  ;;  %v15458_v55 = vld [vmem:[#allocation2 + $0x8c] sm:$0xff]   ;;  %v5996_v1 = vor.u32 %v5995_v44, %v5991_v36  ;;  %v6000_v45 = vrot.slane %v5998_v5, 1 }
 0x1f0   : > { %v17324_v63 = vpop.f32.mrf.mxu1  ;;  %v17327_v24 = vpop.f32.mrf.mxu0  ;;  %v6006_v0 = vshll.u32 %v15458_v55, 16  ;;  %v6010_v53 = vshrl.u32 %v15458_v55, 16 }
 0x1f1   : > { %19708 = vst [vmem:[#allocation39_spill] sm:$0xff] %v17327_v24  ;;  %v17358_v24 = vld [vmem:[#allocation9 + $0x10] sm:$0xff]  }
 0x1f2   : > { %v17331_v48 = vpop.f32.mrf.mxu1  ;;  %v2738_v8 = vpop.f32.mrf.mxu0  ;;  %v6008_v5 = vrot.slane %v6006_v0, 1 }
 0x1f3   : > { %v6002_v8 = vshrl.u32 %v15457_v11, 16  ;;  %v12966_v11 = vcombine.low %v17110_v33, %v17121_v50  ;;  %v17367_v50 = vld [vmem:[#allocation2 + $0xa4] sm:$0xff]  }
 0x1f4   : > { %v17335_v57 = vpop.f32.mrf.mxu1  ;;  %14663 = vmatmul.mubr.msk.bf16.gmra.mxu1 %vm624_vm1, %v5509_v17  ;;  %v17338_v2 = vpop.f32.mrf.mxu0  ;;  %14641 = vmatmul.mubr.msk.bf16.gmra.mxu0 %vm624_vm1, %v5142_v62  ;;  %v12965_v62 = vcombine.low %v17086_v19, %v17108_v46  ;;  %v2763_v19 = vadd.f32 %v17193_v37, %v17029_v39  ;;  %v6012_v33 = vor.u32 %v6010_v53, %v6008_v5  ;;  %v17377_v37 = vld [vmem:[%s19634_s3] ss:$0 sm:$0xff] }
 0x1f5   : > { %19709 = vst [vmem:[#allocation40_spill] sm:$0xff] %v17338_v2  ;;  %14666 = vmatprep.mubr.msk.bf16.mxu1 %vm624_vm1, %v5518_v51  ;;  %14672 = vmatprep.mubr.msk.bf16.mxu0 %vm624_vm1, %v12964_v61  ;;  %v5527_v51 = vsel %vm797_vm2, %v5517_v58, %v5526_v35  ;;  %v6001_v61 = vsel %vm1167_vm3, %v5996_v1, %v6000_v45 }
 0x1f6   : > { %v17342_v10 = vpop.f32.mrf.mxu1  ;;  %v2750_v23 = vpop.f32.mrf.mxu0  ;;  %v6004_v36 = vor.u32 %v6002_v8, %v6000_v45  ;;  %v2956_v55 = vadd.f32 %v17232_v13, %v2763_v19 }
 0x1f7   : > { %19710 = vst [vmem:[#allocation41_spill] sm:$0xff] %v17342_v10  ;;  %v6016_v23 = vrot.slane %v6014_v9, 1  ;;  %v6018_v10 = vshrl.u32 %v15459_v30, 16  ;;  %v2765_v30 = vadd.f32 %v17204_v59, %v17039_v60  ;;  %v2764_v60 = vadd.f32 %v17216_v40, %v17049_v16 }
 0x1f8   : > { %v17347_v17 = vpop.f32.mrf.mxu1  ;;  %v14435_v2 = vpop.f32.mrf.mxu0  ;;  %v6009_v35 = vsel %vm1167_vm3, %v6004_v36, %v6008_v5  ;;  %v2767_v16 = vadd.f32 %v17225_v34, %v17055_v21  ;;  %v17406_v21 = vld [vmem:[#allocation9 + $0x18] sm:$0xff]  }
 0x1f9   : > { %19711 = vst [vmem:[#allocation42_spill] sm:$0xff] %v17347_v17  ;;  %v6022_v17 = vshll.u32 %v17345_v15, 16  ;;  %v6020_v1 = vor.u32 %v6018_v10, %v6016_v23  ;;  %v2958_v59 = vadd.f32 %v17245_v31, %v2765_v30  ;;  %v6017_v9 = vsel %vm1167_vm3, %v6012_v33, %v6016_v23 }
 0x1fa   : > { %v2931_v6 = vpop.f32.mrf.mxu1  ;;  %v17355_v44 = vpop.f32.mrf.mxu0  ;;  %v6026_v10 = vshrl.u32 %v17345_v15, 16  ;;  %v2957_v40 = vadd.f32 %v17254_v32, %v2764_v60  ;;  %v17402_v15 = vld [vmem:[#allocation2 + $0xac] sm:$0xff]   ;;  %v2960_v32 = vadd.f32 %v17261_v43, %v2767_v16 }
 0x1fb   : > { %v6024_v45 = vrot.slane %v6022_v17, 1  ;;  %v6030_v17 = vshll.u32 %v17367_v50, 16  ;;  %v17404_v6 = vld [vmem:[#allocation2 + $0xb4] sm:$0xff]  }
 0x1fc   : > { %v17362_v46 = vpop.f32.mrf.mxu1  ;;  %14667 = vmatmul.mubr.msk.bf16.gmra.mxu1 %vm624_vm1, %v5527_v51  ;;  %v14466_v58 = vpop.f32.mrf.mxu0  ;;  %14673 = vmatmul.mubr.msk.bf16.vlgmr.msra.gmra.mxu0 %vm624_vm1, %v12965_v62  ;;  %v12968_v62 = vcombine.low %v17149_v26, %v17159_v42  ;;  %v12969_v42 = vcombine.low %v17161_v27, %v17189_v3  ;;  %v17463_v27 = vld [vmem:[#allocation3 + $0xc] sm:$0xf] }
 0x1fd   : > { %14698 = vmatprep.mubr.msk.bf16.mxu1 %vm624_vm1, %v6001_v61  ;;  %14676 = vmatprep.mubr.msk.bf16.mxu0 %vm624_vm1, %v12966_v11  ;;  %v6025_v26 = vsel %vm1167_vm3, %v6020_v1, %v6024_v45  ;;  %v6028_v23 = vor.u32 %v6026_v10, %v6024_v45  ;;  %v6032_v19 = vrot.slane %v6030_v17, 1 }
 0x1fe   : > { %v2943_v2 = vpop.f32.mrf.mxu1  ;;  %14723 = vmatpush3.bf16.msra.mxu0 %v17177_v47  ;;  %v3238_v39 = vpop.f32.mrf.mxu0  ;;  %v12967_v47 = vcombine.low %v17123_v28, %v17147_v56  ;;  %v2766_v28 = vadd.f32 %v17236_v54, %v17063_v29  ;;  %v2768_v29 = vadd.f32 %v17251_v41, %v17068_v12  ;;  %v6034_v41 = vshrl.u32 %v17367_v50, 16 }
 0x1ff   : > { %14774 = vmatprep.subr.bf16.mxu0 %v17358_v24  ;;  %v3325_v13 = vadd.f32 %v3238_v39, %v2956_v55  ;;  %v6038_v2 = vshll.u32 %v17402_v15, 16  ;;  %v6046_v39 = vshll.u32 %v17404_v6, 16  ;;  %v6033_v50 = vsel %vm1167_vm3, %v6028_v23, %v6032_v19  ;;  %v17457_v23 = vld [vmem:[#allocation2 + $0xcc] sm:$0xff]  }
 0x200   : > { %v14461_v8 = vpop.f32.mrf.mxu1  ;;  %v14467_v0 = vpop.f32.mrf.mxu0  ;;  %v2959_v54 = vadd.f32 %v17272_v7, %v2766_v28  ;;  %v2961_v12 = vadd.f32 %v17279_v20, %v2768_v29  ;;  %v17449_v29 = vld [vmem:[#allocation3 + $0x8] sm:$0xf] }
 0x201   : > { %v3348_v31 = vadd.f32 %v17377_v37, %v3325_v13  ;;  %v3327_v51 = vadd.f32 %v14467_v0, %v2958_v59  ;;  %v19712_v13 = vld [vmem:[#allocation23_spill] sm:$0xff]  ;;  %v19713_v8 = vld [vmem:[#allocation22_spill] sm:$0xff]  ;;  %v6042_v0 = vshrl.u32 %v17402_v15, 16  ;;  %v6048_v28 = vrot.slane %v6046_v39, 1 }
 0x202   : > { %v17395_v53 = vpop.f32.mrf.mxu1  ;;  %v3241_v56 = vpop.f32.mrf.mxu0  ;;  %v19717_v39 = vld [vmem:[#allocation14_spill] sm:$0xff] }
 0x203   : > { %v3364_v34 = vmax.f32 %v3348_v31, 0.0  ;;  %v3350_v61 = vadd.f32 %v17377_v37, %v3327_v51  ;;  %v3326_v36 = vadd.f32 %v3241_v56, %v2957_v40  ;;  %v6040_v51 = vrot.slane %v6038_v2, 1 }
 0x204   : > { %v14492_v11 = vpop.f32.mrf.mxu1  ;;  %14699 = vmatmul.mubr.msk.bf16.vlgmr.msra.gmra.mxu1 %vm624_vm1, %v6009_v35  ;;  %v14470_v5 = vpop.f32.mrf.mxu0  ;;  %14677 = vmatmul.mubr.msk.bf16.gmra.mxu0 %vm624_vm1, %v12967_v47  ;;  %v12970_v47 = vcombine.low %v19713_v8, %v19712_v13  ;;  %v6050_v56 = vshrl.u32 %v17404_v6, 16  ;;  %v17470_v2 = vcombine.low %v17449_v29, %v17463_v27 }
 0x205   : > { %14702 = vmatprep.mubr.msk.bf16.mxu1 %vm624_vm1, %v6017_v9  ;;  %v13626_v43 = vpack.c.bf16 %v3364_v34, %v3364_v34  ;;  %v3366_v58 = vmax.f32 %v3350_v61, 0.0  ;;  %v3349_v33 = vadd.f32 %v17377_v37, %v3326_v36  ;;  %v3329_v30 = vadd.f32 %v14470_v5, %v2960_v32  ;;  %14680 = vmatprep.mubr.msk.bf16.mxu0 %vm624_vm1, %v12968_v62  ;;  %v15464_v9 = vld [vmem:[#allocation2 + $0xbc] sm:$0xff]   ;;  %v17436_v62 = vld [vmem:[#allocation2 + $0xc4] sm:$0xff]  }
 0x206   : > { %v17417_v55 = vpop.f32.mrf.mxu1  ;;  %14749 = vmatpush3.bf16.msra.mxu1 %v17221_v52  ;;  %v3253_v7 = vpop.f32.mrf.mxu0  ;;  %v2770_v52 = vadd.f32 %v17264_v22, %v17075_v14  ;;  %v6036_v22 = vor.u32 %v6034_v41, %v6032_v19  ;;  %v19714_v32 = vld [vmem:[#allocation35_spill] sm:$0xff]  ;;  %v6054_v6 = vshll.u32 %v15464_v9, 16  ;;  %v6062_v5 = vshll.u32 %v17436_v62, 16 }
 0x207   : > { %14800 = vmatprep.subr.bf16.mxu1 %v17406_v21  ;;  %3388 = vst.msk [vmem:[#allocation3 + $0x10] sm:$0xf] %vm273_vm0, %v13626_v43  ;;  %v13628_v35 = vpack.c.bf16 %v3366_v58, %v3366_v58  ;;  %v3365_v1 = vmax.f32 %v3349_v33, 0.0  ;;  %v3352_v45 = vadd.f32 %v17377_v37, %v3329_v30  ;;  %v3328_v60 = vadd.f32 %v3253_v7, %v2959_v54  ;;  %v19715_v30 = vld [vmem:[#allocation26_spill] sm:$0xff] }
 0x208   : > { %v17428_v59 = vpop.f32.mrf.mxu1  ;;  %v14471_v20 = vpop.f32.mrf.mxu0  ;;  %v2963_v15 = vadd.f32 %v19714_v32, %v2770_v52  ;;  %v6044_v33 = vor.u32 %v6042_v0, %v6040_v51  ;;  %v6058_v41 = vshrl.u32 %v15464_v9, 16  ;;  %v6056_v13 = vrot.slane %v6054_v6, 1  ;;  %v17485_v32 = vld [vmem:[#allocation2 + $0xd4] sm:$0xff]  }
 0x209   : > { %3398 = vst.msk [vmem:[#allocation3 + $0x1c] sm:$0xf] %vm273_vm0, %v13628_v35  ;;  %v13627_v10 = vpack.c.bf16 %v3365_v1, %v3365_v1  ;;  %v3368_v17 = vmax.f32 %v3352_v45, 0.0  ;;  %v3351_v16 = vadd.f32 %v17377_v37, %v3328_v60  ;;  %v3330_v40 = vadd.f32 %v14471_v20, %v2961_v12  ;;  %v19716_v12 = vld [vmem:[#allocation24_spill] sm:$0xff]  ;;  %v19718_v35 = vld [vmem:[#allocation34_spill] sm:$0xff] }
 0x20a   : > { %v17440_v31 = vpop.f32.mrf.mxu1  ;;  %v3256_v14 = vpop.f32.mrf.mxu0  ;;  %v12971_v7 = vcombine.low %v19716_v12, %v19715_v30  ;;  %v2769_v1 = vadd.f32 %v19718_v35, %v19717_v39  ;;  %v6052_v20 = vor.u32 %v6050_v56, %v6048_v28  ;;  %v6064_v8 = vrot.slane %v6062_v5, 1  ;;  %v17503_v30 = vld [vmem:[#allocation3 + $0x4] sm:$0xf] }
 0x20b   : > { %3389 = vst.msk [vmem:[#allocation3 + $0x14] sm:$0xf] %vm273_vm0, %v13627_v10  ;;  %v13630_v34 = vpack.c.bf16 %v3368_v17, %v3368_v17  ;;  %v3367_v61 = vmax.f32 %v3351_v16, 0.0  ;;  %v3353_v36 = vadd.f32 %v17377_v37, %v3330_v40  ;;  %v6070_v0 = vshll.u32 %v17457_v23, 16  ;;  %v19719_v40 = vld [vmem:[#allocation28_spill] sm:$0xff]  ;;  %v19720_v14 = vld [vmem:[#allocation27_spill] sm:$0xff] }
 0x20c   : > { %v17446_v11 = vpop.f32.mrf.mxu1  ;;  %14703 = vmatmul.mubr.msk.bf16.gmra.mxu1 %vm624_vm1, %v6025_v26  ;;  %v14474_v54 = vpop.f32.mrf.mxu0  ;;  %14681 = vmatmul.mubr.msk.bf16.gmra.mxu0 %vm624_vm1, %v12969_v42  ;;  %v6041_v42 = vsel %vm1167_vm3, %v6036_v22, %v6040_v51  ;;  %v2962_v9 = vadd.f32 %v17307_v49, %v2769_v1  ;;  %v6049_v16 = vsel %vm1167_vm3, %v6044_v33, %v6048_v28  ;;  %v6664_v6 = vshrl.u32 %v17470_v2, 16  ;;  %v19725_v1 = vld [vmem:[#allocation17_spill] sm:$0xff] }
 0x20d   : > { %14706 = vmatprep.mubr.msk.bf16.mxu1 %vm624_vm1, %v6033_v50  ;;  %3408 = vst.msk [vmem:[#allocation3 + $0x28] sm:$0xf] %vm273_vm0, %v13630_v34  ;;  %v13629_v19 = vpack.c.bf16 %v3367_v61, %v3367_v61  ;;  %v3369_v43 = vmax.f32 %v3353_v36, 0.0  ;;  %v3332_v26 = vadd.f32 %v14474_v54, %v2963_v15  ;;  %14684 = vmatprep.mubr.msk.bf16.mxu0 %vm624_vm1, %v12970_v47  ;;  %v6066_v47 = vshrl.u32 %v17436_v62, 16  ;;  %v19721_v15 = vld [vmem:[#allocation15_spill] sm:$0xff] }
 0x20e   : > { %v17460_v58 = vpop.f32.mrf.mxu1  ;;  %v3268_v3 = vpop.f32.mrf.mxu0  ;;  %v12972_v22 = vcombine.low %v19720_v14, %v19719_v40  ;;  %v6060_v56 = vor.u32 %v6058_v41, %v6056_v13  ;;  %v2771_v62 = vadd.f32 %v17300_v25, %v19721_v15  ;;  %v6072_v54 = vrot.slane %v6070_v0, 1  ;;  %v19724_v41 = vld [vmem:[#allocation29_spill] sm:$0xff]  ;;  %v19731_v15 = vld [vmem:[#allocation38_spill] sm:$0xff] }
 0x20f   : > { %3399 = vst.msk [vmem:[#allocation3 + $0x20] sm:$0xf] %vm273_vm0, %v13629_v19  ;;  %v13631_v45 = vpack.c.bf16 %v3369_v43, %v3369_v43  ;;  %v3355_v60 = vadd.f32 %v17377_v37, %v3332_v26  ;;  %v6068_v28 = vor.u32 %v6066_v47, %v6064_v8  ;;  %v6667_v5 = vshll.u32 %v17470_v2, 16  ;;  %v19722_v19 = vld [vmem:[#allocation16_spill] sm:$0xff]  ;;  %v19726_v47 = vld [vmem:[#allocation18_spill] sm:$0xff]  ;;  %v19727_v0 = vld [vmem:[#allocation37_spill] sm:$0xff] }
 0x210   : > { %v17476_v52 = vpop.f32.mrf.mxu1  ;;  %v14475_v50 = vpop.f32.mrf.mxu0  ;;  %v2773_v25 = vadd.f32 %v17303_v38, %v19722_v19  ;;  %v2964_v43 = vadd.f32 %v17319_v18, %v2771_v62  ;;  %v6057_v3 = vsel %vm1167_vm3, %v6052_v20, %v6056_v13  ;;  %v6065_v38 = vsel %vm1167_vm3, %v6060_v56, %v6064_v8  ;;  %v19730_v56 = vld [vmem:[#allocation19_spill] sm:$0xff] }
 0x211   : > { %3409 = vst.msk [vmem:[#allocation3 + $0x2c] sm:$0xf] %vm273_vm0, %v13631_v45  ;;  %v3371_v10 = vmax.f32 %v3355_v60, 0.0  ;;  %v6074_v18 = vshrl.u32 %v17457_v23, 16  ;;  %v6078_v35 = vshll.u32 %v17485_v32, 16  ;;  %v2772_v45 = vadd.f32 %v17311_v4, %v19725_v1 }
 0x212   : > { %v3643_v17 = vpop.f32.mrf.mxu1  ;;  %v3270_v51 = vpop.f32.mrf.mxu0  ;;  %v2966_v60 = vadd.f32 %v17324_v63, %v2773_v25  ;;  %v17518_v8 = vsel %vm1167_vm3, %v6068_v28, %v6072_v54  ;;  %v2774_v62 = vadd.f32 %v19731_v15, %v19730_v56  ;;  %v19739_v56 = vld [vmem:[#allocation40_spill] sm:$0xff] }
 0x213   : > { %v13633_v34 = vpack.c.bf16 %v3371_v10, %v3371_v10  ;;  %v3331_v61 = vadd.f32 %v3270_v51, %v2962_v9  ;;  %v2775_v9 = vadd.f32 %v19727_v0, %v19726_v47  ;;  %v19728_v17 = vld [vmem:[#allocation32_spill] sm:$0xff]  ;;  %v2965_v14 = vadd.f32 %v17331_v48, %v2772_v45  ;;  %v19736_v45 = vld [vmem:[#allocation41_spill] sm:$0xff] }
 0x214   : > { %v17489_v36 = vpop.f32.mrf.mxu1  ;;  %14707 = vmatmul.mubr.msk.bf16.gmra.mxu1 %vm624_vm1, %v6041_v42  ;;  %v14478_v49 = vpop.f32.mrf.mxu0  ;;  %14685 = vmatmul.mubr.msk.bf16.gmra.mxu0 %vm624_vm1, %v12971_v7  ;;  %v6388_v42 = vld [vmem:[#allocation3] sm:$0x8]  ;;  %v19723_v7 = vld [vmem:[#allocation30_spill] sm:$0xff]  ;;  %v6076_v25 = vor.u32 %v6074_v18, %v6072_v54  ;;  %v6080_v28 = vrot.slane %v6078_v35, 1 }
 0x215   : > { %14710 = vmatprep.mubr.msk.bf16.mxu1 %vm624_vm1, %v6049_v16  ;;  %3419 = vst.msk [vmem:[#allocation3 + $0x38] sm:$0xf] %vm273_vm0, %v13633_v34  ;;  %v3354_v26 = vadd.f32 %v17377_v37, %v3331_v61  ;;  %14688 = vmatprep.mubr.msk.bf16.mxu0 %vm624_vm1, %v12972_v22  ;;  %v12973_v39 = vcombine.low %v19724_v41, %v19723_v7  ;;  %v19729_v16 = vld [vmem:[#allocation31_spill] sm:$0xff]  ;;  %v19732_v61 = vld [vmem:[#allocation36_spill] sm:$0xff]  ;;  %v19733_v49 = vld [vmem:[#allocation33_spill] sm:$0xff] }
 0x216   : > { %v3655_v33 = vpop.f32.mrf.mxu1  ;;  %v3282_v12 = vpop.f32.mrf.mxu0  ;;  %v12974_v40 = vcombine.low %v19729_v16, %v19728_v17  ;;  %v13057_v23 = vcombine.low %v6388_v42, %v17503_v30  ;;  %v12975_v19 = vcombine.low %v19733_v49, %v19732_v61  ;;  %v19734_v7 = vld [vmem:[#allocation20_spill] sm:$0xff]  ;;  %v19735_v41 = vld [vmem:[#allocation39_spill] sm:$0xff] }
 0x217   : > { %v3370_v50 = vmax.f32 %v3354_v26, 0.0  ;;  %v3333_v20 = vadd.f32 %v3282_v12, %v2964_v43  ;;  %v15470_v43 = vld [vmem:[#allocation2 + $0xdc] ss:$0 sps:$4 sm:$0x11]   ;;  %v2968_v26 = vadd.f32 %v17335_v57, %v2775_v9  ;;  %v2776_v1 = vadd.f32 %v19735_v41, %v19734_v7 }
 0x218   : > { %v14501_v13 = vpop.f32.mrf.mxu1  ;;  %v14479_v10 = vpop.f32.mrf.mxu0  ;;  %v6656_v57 = vshrl.u32 %v13057_v23, 16  ;;  %v6659_v54 = vshll.u32 %v13057_v23, 16  ;;  %v6086_v17 = vshll.u32 %v15470_v43, 16  ;;  %v17559_v61 = vld [vmem:[#allocation3 + $0x1c] sm:$0xf] }
 0x219   : > { %v13632_v4 = vpack.c.bf16 %v3370_v50, %v3370_v50  ;;  %v3356_v63 = vadd.f32 %v17377_v37, %v3333_v20  ;;  %v3335_v22 = vadd.f32 %v14479_v10, %v2966_v60  ;;  %v2967_v60 = vadd.f32 %v19736_v45, %v2774_v62 }
 0x21a   : > { %v17523_v51 = vpop.f32.mrf.mxu1  ;;  %v3285_v34 = vpop.f32.mrf.mxu0  ;;  %v6081_v10 = vsel %vm1167_vm3, %v6076_v25, %v6080_v28  ;;  %v6658_v49 = vrot.slane %v6656_v57, 3  ;;  %v6661_v25 = vrot.slane %v6659_v54, 4  ;;  %v6088_v2 = vrot.slane %v6086_v17, 1 }
 0x21b   : > { %3418 = vst.msk [vmem:[#allocation3 + $0x34] sm:$0xf] %vm273_vm0, %v13632_v4  ;;  %v3372_v48 = vmax.f32 %v3356_v63, 0.0  ;;  %v3358_v33 = vadd.f32 %v17377_v37, %v3335_v22  ;;  %v3334_v42 = vadd.f32 %v3285_v34, %v2965_v14  ;;  %v17549_v63 = vld [vmem:[#allocation3 + $0x14] sm:$0xf]  ;;  %v19738_v22 = vld [vmem:[#allocation21_spill] sm:$0xff] }
 0x21c   : > { %v14504_v12 = vpop.f32.mrf.mxu1  ;;  %14711 = vmatmul.mubr.msk.bf16.gmra.mxu1 %vm624_vm1, %v6057_v3  ;;  %v14482_v50 = vpop.f32.mrf.mxu0  ;;  %14689 = vmatmul.mubr.msk.bf16.gmra.mxu0 %vm624_vm1, %v12973_v39  ;;  %v19737_v3 = vld [vmem:[#allocation42_spill] sm:$0xff]  ;;  %v6082_v39 = vshrl.u32 %v17485_v32, 16  ;;  %v2778_v15 = vadd.f32 %v19739_v56, %v19738_v22  ;;  %v13032_v32 = vcombine.low %v17503_v30, %v17449_v29  ;;  %v6666_v29 = vrot.slane %v6664_v6, 3  ;;  %v17597_v56 = vld [vmem:[#allocation3 + $0x24] sm:$0xf] }
 0x21d   : > { %14714 = vmatprep.mubr.msk.bf16.mxu1 %vm624_vm1, %v6065_v38  ;;  %v13634_v18 = vpack.c.bf16 %v3372_v48, %v3372_v48  ;;  %v3374_v35 = vmax.f32 %v3358_v33, 0.0  ;;  %v3357_v20 = vadd.f32 %v17377_v37, %v3334_v42  ;;  %v3337_v13 = vadd.f32 %v14482_v50, %v2968_v26  ;;  %14692 = vmatprep.mubr.msk.bf16.mxu0 %vm624_vm1, %v12974_v40  ;;  %v17551_v40 = vld [vmem:[#allocation3 + $0x18] sm:$0xf]  ;;  %v17555_v34 = vld [vmem:[#allocation3 + $0x10] sm:$0xf] }
 0x21e   : > { %v17539_v47 = vpop.f32.mrf.mxu1  ;;  %v2969_v0 = vadd.f32 %v19737_v3, %v2776_v1  ;;  %v3297_v9 = vpop.f32.mrf.mxu0  ;;  %v13059_v7 = vcombine.low %v17555_v34, %v17549_v63  ;;  %v6669_v30 = vrot.slane %v6667_v5, 4  ;;  %v2971_v41 = vadd.f32 %v17362_v46, %v2778_v15  ;;  %v19740_v3 = vld [vmem:[#allocation25_spill] sm:$0xff] }
 0x21f   : > { %3428 = vst.msk [vmem:[#allocation3 + $0x40] sm:$0xf] %vm273_vm0, %v13634_v18  ;;  %v13636_v38 = vpack.c.bf16 %v3374_v35, %v3374_v35  ;;  %v3373_v16 = vmax.f32 %v3357_v20, 0.0  ;;  %v3360_v23 = vadd.f32 %v17377_v37, %v3337_v13  ;;  %v3336_v14 = vadd.f32 %v3297_v9, %v2967_v60  ;;  %v17586_v13 = vld [vmem:[#allocation3 + $0x20] sm:$0xf] }
 0x220   : > { %v17547_v4 = vpop.f32.mrf.mxu1  ;;  %v14483_v62 = vpop.f32.mrf.mxu0  ;;  %v6084_v6 = vor.u32 %v6082_v39, %v6080_v28  ;;  %v13060_v46 = vcombine.low %v17551_v40, %v17559_v61  ;;  %v6676_v28 = vshll.u32 %v13059_v7, 16  ;;  %v6670_v17 = vor.u32 %v6669_v30, %v6666_v29 }
 0x221   : > { %3438 = vst.msk [vmem:[#allocation3 + $0x4c] sm:$0xf] %vm273_vm0, %v13636_v38  ;;  %v13635_v43 = vpack.c.bf16 %v3373_v16, %v3373_v16  ;;  %v3376_v26 = vmax.f32 %v3360_v23, 0.0  ;;  %v3359_v48 = vadd.f32 %v17377_v37, %v3336_v14  ;;  %v3338_v33 = vadd.f32 %v14483_v62, %v2969_v0  ;;  %v17594_v38 = vld [vmem:[#allocation3 + $0x2c] sm:$0xf] }
 0x222   : > { %v17563_v42 = vpop.f32.mrf.mxu1  ;;  %v3300_v12 = vpop.f32.mrf.mxu0  ;;  %v2777_v0 = vadd.f32 %v17355_v44, %v19740_v3  ;;  %v6089_v23 = vsel %vm1167_vm3, %v6084_v6, %v6088_v2  ;;  %v6682_v14 = vshrl.u32 %v13060_v46, 16  ;;  %v6685_v22 = vshll.u32 %v13060_v46, 16 }
 0x223   : > { %3429 = vst.msk [vmem:[#allocation3 + $0x44] sm:$0xf] %vm273_vm0, %v13635_v43  ;;  %v13638_v1 = vpack.c.bf16 %v3376_v26, %v3376_v26  ;;  %v3375_v45 = vmax.f32 %v3359_v48, 0.0  ;;  %v3361_v60 = vadd.f32 %v17377_v37, %v3338_v33  ;;  %v13033_v26 = vcombine.low %v17463_v27, %v17555_v34  ;;  %v17610_v12 = vld [vmem:[#allocation9 + $0x20] sm:$0xff]  }
 0x224   : > { %v17574_v50 = vpop.f32.mrf.mxu1  ;;  %14715 = vmatmul.mubr.msk.bf16.gmra.mxu1 %vm624_vm1, %v17518_v8  ;;  %v14486_v57 = vpop.f32.mrf.mxu0  ;;  %14693 = vmatmul.mubr.msk.bf16.gmra.mxu0 %vm624_vm1, %v12975_v19  ;;  %v6662_v8 = vor.u32 %v6661_v25, %v6658_v49  ;;  %v6673_v19 = vshrl.u32 %v13059_v7, 16  ;;  %v2970_v15 = vadd.f32 %v17395_v53, %v2777_v0  ;;  %v17602_v49 = vld [vmem:[#allocation3 + $0x28] sm:$0xf]  ;;  %v13061_v25 = vcombine.low %v17586_v13, %v17597_v56 }
 0x225   : > { %14718 = vmatprep.mubr.msk.bf16.mxu1 %vm624_vm1, %v6081_v10  ;;  %3448 = vst.msk [vmem:[#allocation3 + $0x58] sm:$0xf] %vm273_vm0, %v13638_v1  ;;  %v13637_v5 = vpack.c.bf16 %v3375_v45, %v3375_v45  ;;  %v3377_v54 = vmax.f32 %v3361_v60, 0.0  ;;  %v3340_v18 = vadd.f32 %v14486_v57, %v2971_v41  ;;  %14724 = vmatprep.mubr.msk.bf16.mxu0 %vm624_vm1, %v13032_v32  ;;  %v6678_v33 = vrot.slane %v6676_v28, 4  ;;  %v17629_v28 = vld [vmem:[#allocation3 + $0x3c] sm:$0xf] }
 0x226   : > { %v17583_v35 = vpop.f32.mrf.mxu1  ;;  %v3312_v20 = vpop.f32.mrf.mxu0  ;;  %v6671_v32 = vsel %vm797_vm2, %v6662_v8, %v6670_v17  ;;  %v6675_v48 = vrot.slane %v6673_v19, 3  ;;  %v13062_v53 = vcombine.low %v17602_v49, %v17594_v38  ;;  %v13034_v41 = vcombine.low %v17549_v63, %v17551_v40  ;;  %v17625_v8 = vld [vmem:[#allocation3 + $0x34] sm:$0xf]  ;;  %v17627_v19 = vld [vmem:[#allocation3 + $0x30] sm:$0xf] }
 0x227   : > { %3439 = vst.msk [vmem:[#allocation3 + $0x50] sm:$0xf] %vm273_vm0, %v13637_v5  ;;  %v13639_v9 = vpack.c.bf16 %v3377_v54, %v3377_v54  ;;  %v3363_v10 = vadd.f32 %v17377_v37, %v3340_v18  ;;  %v6684_v27 = vrot.slane %v6682_v14, 3  ;;  %v6687_v34 = vrot.slane %v6685_v22, 4  ;;  %v6402_v22 = vld [vmem:[#allocation3 + $0x38] sm:$0xf] }
 0x228   : > { %v17592_v39 = vpop.f32.mrf.mxu1  ;;  %v14487_v16 = vpop.f32.mrf.mxu0  ;;  %v6691_v57 = vshrl.u32 %v13061_v25, 16  ;;  %v6694_v6 = vshll.u32 %v13061_v25, 16  ;;  %v6679_v2 = vor.u32 %v6678_v33, %v6675_v48  ;;  %v6700_v40 = vshrl.u32 %v13062_v53, 16 }
 0x229   : > { %3449 = vst.msk [vmem:[#allocation3 + $0x5c] sm:$0xf] %vm273_vm0, %v13639_v9  ;;  %v3379_v44 = vmax.f32 %v3363_v10, 0.0  ;;  %v6703_v18 = vshll.u32 %v13062_v53, 16  ;;  %v6688_v20 = vor.u32 %v6687_v34, %v6684_v27  ;;  %v13036_v14 = vcombine.low %v17597_v56, %v17602_v49  ;;  %v17665_v34 = vld [vmem:[#allocation3 + $0x4] sm:$0xff]  }
 0x22a   : > { %v3687_v62 = vpop.f32.mrf.mxu1  ;;  %v3314_v43 = vpop.f32.mrf.mxu0  ;;  %v6693_v9 = vrot.slane %v6691_v57, 3  ;;  %v6696_v10 = vrot.slane %v6694_v6, 4 }
 0x22b   : > { %v13641_v7 = vpack.c.bf16 %v3379_v44, %v3379_v44  ;;  %v3339_v29 = vadd.f32 %v3314_v43, %v2970_v15  ;;  %v13063_v15 = vcombine.low %v17627_v19, %v17625_v8  ;;  %v17641_v44 = vld [vmem:[#allocation9 + $0x28] sm:$0xff]  }
 0x22c   : > { %v17612_v30 = vpop.f32.mrf.mxu1  ;;  %14719 = vmatmul.mubr.msk.bf16.gmra.mxu1 %vm624_vm1, %v6089_v23  ;;  %v14518_v1 = vpop.f32.mrf.mxu0  ;;  %14725 = vmatmul.mubr.msk.bf16.vlgmr.msra.gmra.mxu0 %vm624_vm1, %v13033_v26  ;;  %v6680_v23 = vsel %vm797_vm2, %v6670_v17, %v6679_v2  ;;  %v6705_v17 = vrot.slane %v6703_v18, 4  ;;  %v6697_v25 = vor.u32 %v6696_v10, %v6693_v9 }
 0x22d   : > { %14750 = vmatprep.mubr.msk.bf16.mxu1 %vm624_vm1, %v6671_v32  ;;  %3459 = vst.msk [vmem:[#allocation3 + $0x68] sm:$0xf] %vm273_vm0, %v13641_v7  ;;  %v3362_v45 = vadd.f32 %v17377_v37, %v3339_v29  ;;  %14728 = vmatprep.mubr.msk.bf16.mxu0 %vm624_vm1, %v13034_v41  ;;  %v6709_v48 = vshrl.u32 %v13063_v15, 16  ;;  %v6712_v33 = vshll.u32 %v13063_v15, 16  ;;  %v13037_v41 = vcombine.low %v17594_v38, %v17627_v19 }
 0x22e   : > { %v3699_v60 = vpop.f32.mrf.mxu1  ;;  %14775 = vmatpush3.bf16.msra.mxu0 %v17358_v24  ;;  %v3919_v63 = vpop.f32.mrf.mxu0  ;;  %v6698_v57 = vsel %vm797_vm2, %v6688_v20, %v6697_v25 }
 0x22f   : > { %14826 = vmatprep.subr.bf16.mxu0 %v17610_v12  ;;  %v3378_v46 = vmax.f32 %v3362_v45, 0.0  ;;  %v3920_v5 = vadd.f32 %v3919_v63, %v17417_v55  ;;  %v13035_v55 = vcombine.low %v17559_v61, %v17586_v13  ;;  %v6689_v61 = vsel %vm797_vm2, %v6679_v2, %v6688_v20 }
 0x230   : > { %v14513_v54 = vpop.f32.mrf.mxu1  ;;  %v14519_v37 = vpop.f32.mrf.mxu0  ;;  %v6702_v13 = vrot.slane %v6700_v40, 3  ;;  %v6714_v38 = vrot.slane %v6712_v33, 4 }
 0x231   : > { %v13640_v3 = vpack.c.bf16 %v3378_v46, %v3378_v46  ;;  %v3930_v24 = vadd.f32 %v14519_v37, %v17428_v59  ;;  %v6711_v46 = vrot.slane %v6709_v48, 3  ;;  %v13038_v37 = vcombine.low %v17625_v8, %v6402_v22 }
 0x232   : > { %v17632_v0 = vpop.f32.mrf.mxu1  ;;  %v3922_v16 = vpop.f32.mrf.mxu0  ;;  %v6706_v29 = vor.u32 %v6705_v17, %v6702_v13  ;;  %v17694_v17 = vld [vmem:[#allocation3 + $0x5c] sm:$0xf] }
 0x233   : > { %3458 = vst.msk [vmem:[#allocation3 + $0x64] sm:$0xf] %vm273_vm0, %v13640_v3  ;;  %v3923_v59 = vadd.f32 %v3922_v16, %v17440_v31  ;;  %v13064_v31 = vcombine.low %v6402_v22, %v17629_v28  ;;  %v7027_v3 = vshll.u32 %v17665_v34, 16 }
 0x234   : > { %v14544_v62 = vpop.f32.mrf.mxu1  ;;  %14751 = vmatmul.mubr.msk.bf16.vlgmr.msra.gmra.mxu1 %vm624_vm1, %v6680_v23  ;;  %v14522_v32 = vpop.f32.mrf.mxu0  ;;  %14729 = vmatmul.mubr.msk.bf16.gmra.mxu0 %vm624_vm1, %v13035_v55 }
 0x235   : > { %14754 = vmatprep.mubr.msk.bf16.mxu1 %vm624_vm1, %v6689_v61  ;;  %v3942_v56 = vadd.f32 %v14522_v32, %v17446_v11  ;;  %14732 = vmatprep.mubr.msk.bf16.mxu0 %vm624_vm1, %v13036_v14  ;;  %v17657_v11 = vld [vmem:[#allocation3 + $0x44] sm:$0xf]  ;;  %v6718_v6 = vshrl.u32 %v13064_v31, 16  ;;  %v6721_v2 = vshll.u32 %v13064_v31, 16  ;;  %v6715_v14 = vor.u32 %v6714_v38, %v6711_v46  ;;  %v17688_v62 = vld [vmem:[#allocation3 + $0x50] sm:$0xf] }
 0x236   : > { %v4272_v49 = vpop.f32.mrf.mxu1  ;;  %14801 = vmatpush3.bf16.msra.mxu1 %v17406_v21  ;;  %v3934_v26 = vpop.f32.mrf.mxu0  ;;  %v17663_v21 = vld [vmem:[#allocation3 + $0x48] sm:$0xf]  ;;  %v17690_v61 = vld [vmem:[#allocation3 + $0x54] sm:$0xf] }
 0x237   : > { %v17653_v43 = vadd.f32 %v4272_v49, %v3920_v5  ;;  %14852 = vmatprep.subr.bf16.mxu1 %v17641_v44  ;;  %v3935_v53 = vadd.f32 %v3934_v26, %v17460_v58  ;;  %v6404_v58 = vld [vmem:[#allocation3 + $0x40] sm:$0xf]  ;;  %v17671_v5 = vld [vmem:[#allocation3 + $0x4c] sm:$0xf]  ;;  %v6720_v10 = vrot.slane %v6718_v6, 3  ;;  %v6723_v55 = vrot.slane %v6721_v2, 4 }
 0x238   : > { %v14545_v7 = vpop.f32.mrf.mxu1  ;;  %v14523_v27 = vpop.f32.mrf.mxu0  ;;  %v13065_v54 = vcombine.low %v6404_v58, %v17657_v11  ;;  %v13066_v16 = vcombine.low %v17663_v21, %v17671_v5  ;;  %v13039_v32 = vcombine.low %v17629_v28, %v6404_v58  ;;  %v17697_v26 = vld [vmem:[#allocation3 + $0x60] sm:$0xf]  ;;  %v6716_v33 = vsel %vm797_vm2, %v6706_v29, %v6715_v14  ;;  %v7303_v2 = vld [vmem:[#allocation3 + $0xc] sm:$0x8]  ;;  %v17718_v46 = vld [vmem:[#allocation3 + $0x14] sm:$0xf] }
 0x239   : > { %v17661_v1 = vadd.f32 %v14545_v7, %v3930_v24  ;;  %v3945_v45 = vadd.f32 %v14523_v27, %v17476_v52  ;;  %v6707_v52 = vsel %vm797_vm2, %v6697_v25, %v6706_v29  ;;  %v6724_v49 = vor.u32 %v6723_v55, %v6720_v10 }
 0x23a   : > { %v4275_v60 = vpop.f32.mrf.mxu1  ;;  %v3937_v40 = vpop.f32.mrf.mxu0  ;;  %v6727_v22 = vshrl.u32 %v13065_v54, 16  ;;  %v6730_v15 = vshll.u32 %v13065_v54, 16  ;;  %v6736_v25 = vshrl.u32 %v13066_v16, 16  ;;  %v6739_v31 = vshll.u32 %v13066_v16, 16  ;;  %v17723_v16 = vld [vmem:[#allocation3 + $0x18] sm:$0xf] }
 0x23b   : > { %v17669_v63 = vadd.f32 %v4275_v60, %v3923_v59  ;;  %v13067_v27 = vcombine.low %v17688_v62, %v17690_v61  ;;  %v6725_v28 = vsel %vm797_vm2, %v6715_v14, %v6724_v49  ;;  %v17716_v40 = vld [vmem:[#allocation3 + $0x10] sm:$0xf]  ;;  %v7025_v55 = vshrl.u32 %v17665_v34, 16 }
 0x23c   : > { %v14548_v18 = vpop.f32.mrf.mxu1  ;;  %14755 = vmatmul.mubr.msk.bf16.gmra.mxu1 %vm624_vm1, %v6698_v57  ;;  %v14526_v19 = vpop.f32.mrf.mxu0  ;;  %14733 = vmatmul.mubr.msk.bf16.gmra.mxu0 %vm624_vm1, %v13037_v41  ;;  %v6732_v7 = vrot.slane %v6730_v15, 4  ;;  %v6410_v41 = vld [vmem:[#allocation3 + $0x58] sm:$0xf]  ;;  %v13040_v57 = vcombine.low %v17657_v11, %v17663_v21  ;;  %v6738_v11 = vrot.slane %v6736_v25, 3  ;;  %v6741_v21 = vrot.slane %v6739_v31, 4  ;;  %v17725_v14 = vld [vmem:[#allocation3 + $0xc] sm:$0xff]  }
 0x23d   : > { %v17677_v20 = vadd.f32 %v14548_v18, %v3942_v56  ;;  %14758 = vmatprep.mubr.msk.bf16.mxu1 %vm624_vm1, %v6707_v52  ;;  %v3957_v24 = vadd.f32 %v14526_v19, %v17489_v36  ;;  %14736 = vmatprep.mubr.msk.bf16.mxu0 %vm624_vm1, %v13038_v37  ;;  %v13068_v58 = vcombine.low %v6410_v41, %v17694_v17  ;;  %v6745_v52 = vshrl.u32 %v13067_v27, 16 }
 0x23e   : > { %v4287_v9 = vpop.f32.mrf.mxu1  ;;  %v3949_v23 = vpop.f32.mrf.mxu0  ;;  %v6748_v37 = vshll.u32 %v13067_v27, 16  ;;  %v13042_v25 = vcombine.low %v17690_v61, %v6410_v41  ;;  %v7032_v61 = vshll.u32 %v17725_v14, 16  ;;  %v17747_v41 = vld [vmem:[#allocation3 + $0x14] sm:$0xff]  }
 0x23f   : > { %v17686_v8 = vadd.f32 %v4287_v9, %v3935_v53  ;;  %v6729_v53 = vrot.slane %v6727_v22, 3  ;;  %v6754_v9 = vshrl.u32 %v13068_v58, 16  ;;  %v6757_v10 = vshll.u32 %v13068_v58, 16 }
 0x240   : > { %v14549_v59 = vpop.f32.mrf.mxu1  ;;  %v14527_v13 = vpop.f32.mrf.mxu0  ;;  %v7029_v22 = vrot.slane %v7027_v3, 1 }
 0x241   : > { %v17692_v36 = vadd.f32 %v14549_v59, %v3945_v45  ;;  %v6733_v18 = vor.u32 %v6732_v7, %v6729_v53  ;;  %v17729_v59 = vcombine.low %v7303_v2, %v17716_v40  ;;  %v13110_v13 = vcombine.low %v17718_v46, %v17723_v16 }
 0x242   : > { %v4290_v56 = vpop.f32.mrf.mxu1  ;;  %v3951_v48 = vpop.f32.mrf.mxu0  ;;  %v6750_v53 = vrot.slane %v6748_v37, 4 }
 0x243   : > { %v3952_v45 = vadd.f32 %v3951_v48, %v17523_v51  ;;  %v17714_v51 = vcombine.low %v17697_v26, %v17697_v26  ;;  %v6742_v56 = vor.u32 %v6741_v21, %v6738_v11  ;;  %v6734_v48 = vsel %vm797_vm2, %v6724_v49, %v6733_v18 }
 0x244   : > { %v14552_v60 = vpop.f32.mrf.mxu1  ;;  %14759 = vmatmul.mubr.msk.bf16.gmra.mxu1 %vm624_vm1, %v6716_v33  ;;  %v14530_v29 = vpop.f32.mrf.mxu0  ;;  %14737 = vmatmul.mubr.msk.bf16.gmra.mxu0 %vm624_vm1, %v13039_v32  ;;  %v6747_v33 = vrot.slane %v6745_v52, 3  ;;  %v7402_v58 = vshrl.u32 %v13110_v13, 16  ;;  %v7030_v21 = vor.u32 %v7029_v22, %v7025_v55  ;;  %v7034_v55 = vrot.slane %v7032_v61, 1 }
 0x245   : > { %v17708_v6 = vadd.f32 %v14552_v60, %v3957_v24  ;;  %14762 = vmatprep.mubr.msk.bf16.mxu1 %vm624_vm1, %v6725_v28  ;;  %14740 = vmatprep.mubr.msk.bf16.mxu0 %vm624_vm1, %v13040_v57  ;;  %v6763_v15 = vshrl.u32 %v17714_v51, 16  ;;  %v6766_v49 = vshll.u32 %v17714_v51, 16  ;;  %v7394_v57 = vshrl.u32 %v17729_v59, 16  ;;  %v17758_v51 = vld [vmem:[#allocation3 + $0x1c] sm:$0xf] }
 0x246   : > { %v4302_v38 = vpop.f32.mrf.mxu1  ;;  %v3963_v54 = vpop.f32.mrf.mxu0  ;;  %v7405_v29 = vshll.u32 %v13110_v13, 16  ;;  %v6751_v11 = vor.u32 %v6750_v53, %v6747_v33  ;;  %v7040_v22 = vshll.u32 %v17747_v41, 16 }
 0x247   : > { %v3964_v19 = vadd.f32 %v3963_v54, %v17539_v47  ;;  %v13041_v47 = vcombine.low %v17671_v5, %v17688_v62  ;;  %v6743_v5 = vsel %vm797_vm2, %v6733_v18, %v6742_v56  ;;  %v6756_v62 = vrot.slane %v6754_v9, 3  ;;  %v17760_v18 = vld [vmem:[#allocation3 + $0x1c] sm:$0xff]  }
 0x248   : > { %v14553_v24 = vpop.f32.mrf.mxu1  ;;  %v14531_v23 = vpop.f32.mrf.mxu0  ;;  %v17756_v54 = vrot.slane %v6763_v15, 3  ;;  %v17771_v15 = vld [vmem:[#allocation3 + $0x24] sm:$0xf]  ;;  %v6752_v33 = vsel %vm797_vm2, %v6742_v56, %v6751_v11  ;;  %v7048_v53 = vshll.u32 %v17760_v18, 16 }
 0x249   : > { %v3974_v32 = vadd.f32 %v14531_v23, %v17547_v4  ;;  %v6759_v4 = vrot.slane %v6757_v10, 4  ;;  %v6768_v23 = vrot.slane %v6766_v49, 4 }
 0x24a   : > { %v4304_v34 = vpop.f32.mrf.mxu1  ;;  %v3966_v3 = vpop.f32.mrf.mxu0 }
 0x24b   : > { %v17737_v31 = vadd.f32 %v4304_v34, %v3952_v45  ;;  %v3967_v7 = vadd.f32 %v3966_v3, %v17563_v42  ;;  %v17749_v45 = vld [vmem:[#allocation3 + $0x20] sm:$0xf]  ;;  %v17763_v37 = vor.u32 %v6759_v4, %v6756_v62  ;;  %v7404_v34 = vrot.slane %v7402_v58, 3  ;;  %v17774_v3 = vld [vmem:[#allocation3 + $0x28] sm:$0xf] }
 0x24c   : > { %v14556_v27 = vpop.f32.mrf.mxu1  ;;  %14763 = vmatmul.mubr.msk.bf16.gmra.mxu1 %vm624_vm1, %v6734_v48  ;;  %v14534_v60 = vpop.f32.mrf.mxu0  ;;  %14741 = vmatmul.mubr.msk.bf16.gmra.mxu0 %vm624_vm1, %v13041_v47  ;;  %v13111_v24 = vcombine.low %v17758_v51, %v17749_v45  ;;  %v7396_v47 = vrot.slane %v7394_v57, 3  ;;  %v13112_v56 = vcombine.low %v17771_v15, %v17774_v3  ;;  %v17796_v57 = vld [vmem:[#allocation3 + $0x30] sm:$0xf] }
 0x24d   : > { %14766 = vmatprep.mubr.msk.bf16.mxu1 %vm624_vm1, %v6743_v5  ;;  %v3986_v42 = vadd.f32 %v14534_v60, %v17574_v50  ;;  %14744 = vmatprep.mubr.msk.bf16.mxu0 %vm624_vm1, %v13042_v25  ;;  %v7407_v25 = vrot.slane %v7405_v29, 4 }
 0x24e   : > { %v4316_v28 = vpop.f32.mrf.mxu1  ;;  %v3978_v38 = vpop.f32.mrf.mxu0  ;;  %v7411_v62 = vshrl.u32 %v13111_v24, 16  ;;  %v7414_v4 = vshll.u32 %v13111_v24, 16  ;;  %v17803_v24 = vld [vmem:[#allocation3 + $0x2c] sm:$0xf] }
 0x24f   : > { %v17754_v2 = vadd.f32 %v4316_v28, %v3964_v19  ;;  %v3979_v50 = vadd.f32 %v3978_v38, %v17583_v35  ;;  %v7397_v19 = vshll.u32 %v17729_v59, 16  ;;  %v13043_v59 = vcombine.low %v17694_v17, %v17697_v26 }
 0x250   : > { %v14557_v52 = vpop.f32.mrf.mxu1  ;;  %v14535_v10 = vpop.f32.mrf.mxu0  ;;  %v7035_v17 = vsel %vm1167_vm3, %v7030_v21, %v7034_v55  ;;  %v7042_v26 = vrot.slane %v7040_v22, 1  ;;  %v7036_v28 = vshrl.u32 %v17725_v14, 16  ;;  %v7408_v38 = vor.u32 %v7407_v25, %v7404_v34  ;;  %v17809_v34 = vld [vmem:[#allocation3 + $0x34] sm:$0xf] }
 0x251   : > { %v17768_v9 = vadd.f32 %v14557_v52, %v3974_v32  ;;  %v3989_v13 = vadd.f32 %v14535_v10, %v17592_v39  ;;  %v6761_v39 = vsel %vm797_vm2, %v6751_v11, %v17763_v37  ;;  %v7399_v5 = vrot.slane %v7397_v19, 4  ;;  %v17801_v52 = vld [vmem:[#allocation3 + $0x24] sm:$0xff]  }
 0x252   : > { %v4319_v35 = vpop.f32.mrf.mxu1  ;;  %v3981_v48 = vpop.f32.mrf.mxu0  ;;  %v7044_v11 = vshrl.u32 %v17747_v41, 16  ;;  %v7050_v21 = vrot.slane %v7048_v53, 1  ;;  %v7413_v10 = vrot.slane %v7411_v62, 3  ;;  %v7416_v22 = vrot.slane %v7414_v4, 4  ;;  %v17822_v62 = vld [vmem:[#allocation9 + $0x30] sm:$0xff]  }
 0x253   : > { %v17778_v32 = vadd.f32 %v4319_v35, %v3967_v7  ;;  %v7400_v14 = vor.u32 %v7399_v5, %v7396_v47  ;;  %v17807_v48 = vld [vmem:[#allocation3 + $0x2c] sm:$0xff]   ;;  %v17820_v5 = vld [vmem:[#allocation3 + $0x38] sm:$0xf] }
 0x254   : > { %v14560_v27 = vpop.f32.mrf.mxu1  ;;  %14767 = vmatmul.mubr.msk.bf16.gmra.mxu1 %vm624_vm1, %v6752_v33  ;;  %v14538_v61 = vpop.f32.mrf.mxu0  ;;  %14745 = vmatmul.mubr.msk.bf16.gmra.mxu0 %vm624_vm1, %v13043_v59  ;;  %v7423_v59 = vshll.u32 %v13112_v56, 16  ;;  %v7052_v33 = vshrl.u32 %v17760_v18, 16 }
 0x255   : > { %v17785_v60 = vadd.f32 %v14560_v27, %v3986_v42  ;;  %14770 = vmatprep.mubr.msk.bf16.mxu1 %vm624_vm1, %v6761_v39  ;;  %v4001_v7 = vadd.f32 %v14538_v61, %v17612_v30  ;;  %14776 = vmatprep.mubr.msk.bf16.mxu0 %vm624_vm1, %v7035_v17  ;;  %v6769_v42 = vor.u32 %v6768_v23, %v17756_v54  ;;  %v7056_v39 = vshll.u32 %v17801_v52, 16 }
 0x256   : > { %v4331_v49 = vpop.f32.mrf.mxu1  ;;  %v3993_v29 = vpop.f32.mrf.mxu0  ;;  %v7038_v30 = vor.u32 %v7036_v28, %v7034_v55  ;;  %v7046_v23 = vor.u32 %v7044_v11, %v7042_v26  ;;  %v13113_v55 = vcombine.low %v17803_v24, %v17796_v57  ;;  %v7409_v53 = vsel %vm797_vm2, %v7400_v14, %v7408_v38 }
 0x257   : > { %v17798_v58 = vadd.f32 %v4331_v49, %v3979_v50  ;;  %v7420_v50 = vshrl.u32 %v13112_v56, 16  ;;  %v7054_v61 = vor.u32 %v7052_v33, %v7050_v21  ;;  %v7417_v17 = vor.u32 %v7416_v22, %v7413_v10  ;;  %v17844_v33 = vld [vmem:[#allocation3 + $0x3c] sm:$0xff]  }
 0x258   : > { %v14561_v19 = vpop.f32.mrf.mxu1  ;;  %v14539_v54 = vpop.f32.mrf.mxu0  ;;  %v7043_v25 = vsel %vm1167_vm3, %v7038_v30, %v7042_v26  ;;  %v7051_v27 = vsel %vm1167_vm3, %v7046_v23, %v7050_v21  ;;  %v7425_v28 = vrot.slane %v7423_v59, 4  ;;  %v7429_v29 = vshrl.u32 %v13113_v55, 16  ;;  %v17834_v21 = vld [vmem:[#allocation3 + $0x34] sm:$0xff]   ;;  %v17840_v23 = vld [vmem:[#allocation3 + $0x40] sm:$0xf] }
 0x259   : > { %v17805_v35 = vadd.f32 %v14561_v19, %v3989_v13  ;;  %v6770_v13 = vsel %vm797_vm2, %v17763_v37, %v6769_v42  ;;  %v13114_v37 = vcombine.low %v17809_v34, %v17820_v5  ;;  %v7422_v49 = vrot.slane %v7420_v50, 3 }
 0x25a   : > { %v4334_v41 = vpop.f32.mrf.mxu1  ;;  %v3995_v47 = vpop.f32.mrf.mxu0  ;;  %v7064_v42 = vshll.u32 %v17807_v48, 16  ;;  %v7432_v11 = vshll.u32 %v13113_v55, 16  ;;  %v7058_v30 = vrot.slane %v7056_v39, 1  ;;  %v7060_v10 = vshrl.u32 %v17801_v52, 16  ;;  %v17846_v55 = vld [vmem:[#allocation3 + $0x44] sm:$0xf] }
 0x25b   : > { %v3996_v4 = vadd.f32 %v3995_v47, %v17632_v0  ;;  %v7438_v22 = vshrl.u32 %v13114_v37, 16  ;;  %v7441_v54 = vshll.u32 %v13114_v37, 16  ;;  %v7418_v59 = vsel %vm797_vm2, %v7408_v38, %v7417_v17 }
 0x25c   : > { %v14564_v18 = vpop.f32.mrf.mxu1  ;;  %14771 = vmatmul.mubr.msk.bf16.gmra.mxu1 %vm624_vm1, %v6770_v13  ;;  %v14570_v56 = vpop.f32.mrf.mxu0  ;;  %14777 = vmatmul.mubr.msk.bf16.vlgmr.msra.gmra.mxu0 %vm624_vm1, %v7043_v25  ;;  %v7059_v41 = vsel %vm1167_vm3, %v7054_v61, %v7058_v30  ;;  %v7426_v25 = vor.u32 %v7425_v28, %v7422_v49  ;;  %v7431_v13 = vrot.slane %v7429_v29, 3  ;;  %v7434_v52 = vrot.slane %v7432_v11, 4  ;;  %v17859_v49 = vld [vmem:[#allocation9 + $0x38] sm:$0xff]  }
 0x25d   : > { %v17828_v26 = vadd.f32 %v14564_v18, %v4001_v7  ;;  %14802 = vmatprep.mubr.msk.bf16.mxu1 %vm624_vm1, %v7409_v53  ;;  %14780 = vmatprep.mubr.msk.bf16.mxu0 %vm624_vm1, %v7051_v27  ;;  %v7072_v53 = vshll.u32 %v17834_v21, 16  ;;  %v17850_v27 = vld [vmem:[#allocation3 + $0x3c] sm:$0xf]  ;;  %v7062_v61 = vor.u32 %v7060_v10, %v7058_v30  ;;  %v17857_v56 = vld [vmem:[#allocation3 + $0x48] sm:$0xf]  ;;  %v7080_v11 = vshll.u32 %v17844_v33, 16 }
 0x25e   : > { %v4346_v0 = vpop.f32.mrf.mxu1  ;;  %14827 = vmatpush3.bf16.msra.mxu0 %v17610_v12  ;;  %v4657_v7 = vpop.f32.mrf.mxu0  ;;  %v7066_v12 = vrot.slane %v7064_v42, 1  ;;  %v7427_v18 = vsel %vm797_vm2, %v7417_v17, %v7426_v25  ;;  %v13115_v37 = vcombine.low %v17850_v27, %v17840_v23  ;;  %v7440_v42 = vrot.slane %v7438_v22, 3 }
 0x25f   : > { %14878 = vmatprep.subr.bf16.mxu0 %v17822_v62  ;;  %v4744_v19 = vadd.f32 %v4657_v7, %v17653_v43  ;;  %v7443_v0 = vrot.slane %v7441_v54, 4  ;;  %v17869_v7 = vld [vmem:[#allocation3 + $0x44] sm:$0xff]   ;;  %v7435_v10 = vor.u32 %v7434_v52, %v7431_v13  ;;  %v7074_v22 = vrot.slane %v7072_v53, 1  ;;  %v17882_v13 = vld [vmem:[#allocation3 + $0x50] sm:$0xf] }
 0x260   : > { %v14565_v14 = vpop.f32.mrf.mxu1  ;;  %v14571_v50 = vpop.f32.mrf.mxu0  ;;  %v7067_v17 = vsel %vm1167_vm3, %v7062_v61, %v7066_v12  ;;  %v7088_v53 = vshll.u32 %v17869_v7, 16 }
 0x261   : > { %v4746_v43 = vadd.f32 %v14571_v50, %v17661_v1  ;;  %v7068_v14 = vshrl.u32 %v17807_v48, 16 }
 0x262   : > { %v4348_v47 = vpop.f32.mrf.mxu1  ;;  %v4660_v38 = vpop.f32.mrf.mxu0 }
 0x263   : > { %v17852_v39 = vadd.f32 %v4348_v47, %v3996_v4  ;;  %v4745_v1 = vadd.f32 %v4660_v38, %v17669_v63  ;;  %v13116_v4 = vcombine.low %v17846_v55, %v17857_v56  ;;  %v7450_v47 = vshll.u32 %v13115_v37, 16 }
 0x264   : > { %v14596_v28 = vpop.f32.mrf.mxu1  ;;  %14803 = vmatmul.mubr.msk.bf16.vlgmr.msra.gmra.mxu1 %vm624_vm1, %v7418_v59  ;;  %v14574_v29 = vpop.f32.mrf.mxu0  ;;  %14781 = vmatmul.mubr.msk.bf16.gmra.mxu0 %vm624_vm1, %v7059_v41  ;;  %v7076_v59 = vshrl.u32 %v17834_v21, 16  ;;  %v7447_v41 = vshrl.u32 %v13115_v37, 16  ;;  %v17887_v21 = vld [vmem:[#allocation3 + $0x4c] sm:$0xff]   ;;  %v7070_v37 = vor.u32 %v7068_v14, %v7066_v12 }
 0x265   : > { %14806 = vmatprep.mubr.msk.bf16.mxu1 %vm624_vm1, %v7427_v18  ;;  %v4748_v63 = vadd.f32 %v14574_v29, %v17677_v20  ;;  %14784 = vmatprep.mubr.msk.bf16.mxu0 %vm624_vm1, %v7067_v17  ;;  %v17880_v18 = vor.u32 %v7443_v0, %v7440_v42  ;;  %v7456_v48 = vshrl.u32 %v13116_v4, 16  ;;  %v7459_v61 = vshll.u32 %v13116_v4, 16  ;;  %v17891_v0 = vld [vmem:[#allocation3 + $0x4c] sm:$0xf] }
 0x266   : > { %v4850_v30 = vpop.f32.mrf.mxu1  ;;  %14853 = vmatpush3.bf16.msra.mxu1 %v17641_v44  ;;  %v4672_v50 = vpop.f32.mrf.mxu0  ;;  %v7078_v42 = vor.u32 %v7076_v59, %v7074_v22 }
 0x267   : > { %v17875_v54 = vadd.f32 %v4850_v30, %v4744_v19  ;;  %14904 = vmatprep.subr.bf16.mxu1 %v17859_v49  ;;  %v4747_v20 = vadd.f32 %v4672_v50, %v17686_v8  ;;  %v7082_v19 = vrot.slane %v7080_v11, 1  ;;  %v7436_v8 = vsel %vm797_vm2, %v7426_v25, %v7435_v10  ;;  %v17897_v50 = vld [vmem:[#allocation3 + $0x54] sm:$0xf] }
 0x268   : > { %v14597_v38 = vpop.f32.mrf.mxu1  ;;  %v14575_v44 = vpop.f32.mrf.mxu0  ;;  %v7452_v30 = vrot.slane %v7450_v47, 4  ;;  %v13117_v11 = vcombine.low %v17891_v0, %v17882_v13  ;;  %v7445_v25 = vsel %vm797_vm2, %v7435_v10, %v17880_v18  ;;  %v7461_v14 = vrot.slane %v7459_v61, 4  ;;  %v17915_v10 = vld [vmem:[#allocation3 + $0x54] sm:$0xff]  }
 0x269   : > { %19741 = vst [vmem:[#allocation23_spill] sm:$0xff] %v17875_v54  ;;  %v17884_v52 = vadd.f32 %v14597_v38, %v4746_v43  ;;  %v4749_v28 = vadd.f32 %v14575_v44, %v17692_v36  ;;  %v7449_v43 = vrot.slane %v7447_v41, 3  ;;  %v17899_v38 = vld [vmem:[#allocation3 + $0x58] sm:$0xf]  ;;  %v7075_v36 = vsel %vm1167_vm3, %v7070_v37, %v7074_v22 }
 0x26a   : > { %v4853_v29 = vpop.f32.mrf.mxu1  ;;  %v4675_v17 = vpop.f32.mrf.mxu0  ;;  %v7083_v47 = vsel %vm1167_vm3, %v7078_v42, %v7082_v19  ;;  %v7090_v44 = vrot.slane %v7088_v53, 1  ;;  %v7084_v37 = vshrl.u32 %v17844_v33, 16  ;;  %v17923_v33 = vld [vmem:[#allocation3 + $0x60] sm:$0xf] }
 0x26b   : > { %19742 = vst [vmem:[#allocation22_spill] sm:$0xff] %v17884_v52  ;;  %v17893_v4 = vadd.f32 %v4853_v29, %v4745_v1  ;;  %v7458_v1 = vrot.slane %v7456_v48, 3  ;;  %v7096_v29 = vshll.u32 %v17887_v21, 16  ;;  %v13118_v48 = vcombine.low %v17897_v50, %v17899_v38  ;;  %v17927_v52 = vld [vmem:[#allocation3 + $0x5c] sm:$0xff]  }
 0x26c   : > { %v14600_v12 = vpop.f32.mrf.mxu1  ;;  %14807 = vmatmul.mubr.msk.bf16.gmra.mxu1 %vm624_vm1, %v7436_v8  ;;  %v14578_v41 = vpop.f32.mrf.mxu0  ;;  %14785 = vmatmul.mubr.msk.bf16.gmra.mxu0 %vm624_vm1, %v7075_v36  ;;  %v7453_v53 = vor.u32 %v7452_v30, %v7449_v43  ;;  %v7465_v17 = vshrl.u32 %v13117_v11, 16  ;;  %v7100_v43 = vshrl.u32 %v17887_v21, 16  ;;  %v7104_v30 = vshll.u32 %v17915_v10, 16 }
 0x26d   : > { %19743 = vst [vmem:[#allocation35_spill] sm:$0xff] %v17893_v4  ;;  %v17905_v59 = vadd.f32 %v14600_v12, %v4748_v63  ;;  %14810 = vmatprep.mubr.msk.bf16.mxu1 %vm624_vm1, %v7445_v25  ;;  %v4751_v8 = vadd.f32 %v14578_v41, %v17708_v6  ;;  %14788 = vmatprep.mubr.msk.bf16.mxu0 %vm624_vm1, %v7083_v47  ;;  %v7092_v63 = vshrl.u32 %v17869_v7, 16  ;;  %v7468_v12 = vshll.u32 %v13117_v11, 16  ;;  %v17921_v25 = vld [vmem:[#allocation3 + $0x5c] sm:$0xf] }
 0x26e   : > { %v4865_v22 = vpop.f32.mrf.mxu1  ;;  %v4687_v42 = vpop.f32.mrf.mxu0  ;;  %v7462_v6 = vor.u32 %v7461_v14, %v7458_v1  ;;  %v7086_v41 = vor.u32 %v7084_v37, %v7082_v19  ;;  %v7098_v4 = vrot.slane %v7096_v29, 1  ;;  %v7474_v11 = vshrl.u32 %v13118_v48, 16 }
 0x26f   : > { %19744 = vst [vmem:[#allocation26_spill] sm:$0xff] %v17905_v59  ;;  %v17919_v61 = vadd.f32 %v4865_v22, %v4747_v20  ;;  %v7094_v59 = vor.u32 %v7092_v63, %v7090_v44  ;;  %v17929_v20 = vld [vmem:[#allocation3 + $0x64] sm:$0xf]  ;;  %v7477_v1 = vshll.u32 %v13118_v48, 16  ;;  %v7454_v19 = vsel %vm797_vm2, %v17880_v18, %v7453_v53  ;;  %v17937_v63 = vld [vmem:[#allocation3 + $0x68] sm:$0xf] }
 0x270   : > { %v14601_v36 = vpop.f32.mrf.mxu1  ;;  %v14579_v7 = vpop.f32.mrf.mxu0  ;;  %v7470_v37 = vrot.slane %v7468_v12, 4  ;;  %v13119_v29 = vcombine.low %v17921_v25, %v17923_v33  ;;  %19747 = vst [vmem:[#allocation34_spill] sm:$0xff] %v17937_v63  ;;  %v7091_v21 = vsel %vm1167_vm3, %v7086_v41, %v7090_v44  ;;  %v7463_v48 = vsel %vm797_vm2, %v7453_v53, %v7462_v6 }
 0x271   : > { %19745 = vst [vmem:[#allocation24_spill] sm:$0xff] %v17919_v61  ;;  %v17925_v47 = vadd.f32 %v14601_v36, %v4749_v28  ;;  %v7467_v28 = vrot.slane %v7465_v17, 3  ;;  %v13120_v7 = vcombine.low %v17929_v20, %v17937_v63  ;;  %v7099_v12 = vsel %vm1167_vm3, %v7094_v59, %v7098_v4 }
 0x272   : > { %v4868_v22 = vpop.f32.mrf.mxu1  ;;  %v4689_v14 = vpop.f32.mrf.mxu0  ;;  %v7106_v44 = vrot.slane %v7104_v30, 1  ;;  %v7476_v53 = vrot.slane %v7474_v11, 3  ;;  %v7479_v41 = vrot.slane %v7477_v1, 4 }
 0x273   : > { %19746 = vst [vmem:[#allocation14_spill] sm:$0xff] %v17925_v47  ;;  %v4750_v42 = vadd.f32 %v4689_v14, %v17737_v31  ;;  %v7102_v31 = vor.u32 %v7100_v43, %v7098_v4  ;;  %v7112_v22 = vshll.u32 %v17927_v52, 16  ;;  %v7492_v59 = vshrl.u32 %v13120_v7, 16  ;;  %v17954_v43 = vld [vmem:[#allocation3 + $0x6c] sm:$0xf] }
 0x274   : > { %v14604_v36 = vpop.f32.mrf.mxu1  ;;  %14811 = vmatmul.mubr.msk.bf16.gmra.mxu1 %vm624_vm1, %v7454_v19  ;;  %v14582_v17 = vpop.f32.mrf.mxu0  ;;  %14789 = vmatmul.mubr.msk.bf16.gmra.mxu0 %vm624_vm1, %v7091_v21  ;;  %v15523_v19 = vld [vmem:[#allocation3 + $0x64] ss:$0 sps:$4 sm:$0x11]   ;;  %v7495_v4 = vshll.u32 %v13120_v7, 16  ;;  %v13121_v11 = vcombine.low %v17954_v43, %v17954_v43 }
 0x275   : > { %v17945_v18 = vadd.f32 %v14604_v36, %v4751_v8  ;;  %14814 = vmatprep.mubr.msk.bf16.mxu1 %vm624_vm1, %v7463_v48  ;;  %14792 = vmatprep.mubr.msk.bf16.mxu0 %vm624_vm1, %v7099_v12  ;;  %v7471_v8 = vor.u32 %v7470_v37, %v7467_v28  ;;  %v7483_v36 = vshrl.u32 %v13119_v29, 16  ;;  %v7486_v17 = vshll.u32 %v13119_v29, 16 }
 0x276   : > { %v4880_v14 = vpop.f32.mrf.mxu1  ;;  %v4701_v47 = vpop.f32.mrf.mxu0  ;;  %v7108_v48 = vshrl.u32 %v17915_v10, 16  ;;  %v7107_v12 = vsel %vm1167_vm3, %v7102_v31, %v7106_v44  ;;  %v7114_v30 = vrot.slane %v7112_v22, 1  ;;  %v7480_v37 = vor.u32 %v7479_v41, %v7476_v53 }
 0x277   : > { %19748 = vst [vmem:[#allocation28_spill] sm:$0xff] %v17945_v18  ;;  %v4752_v21 = vadd.f32 %v4701_v47, %v17754_v2  ;;  %v7120_v2 = vshll.u32 %v15523_v19, 16  ;;  %v7472_v7 = vsel %vm797_vm2, %v7462_v6, %v7471_v8  ;;  %v7488_v61 = vrot.slane %v7486_v17, 4 }
 0x278   : > { %v14605_v18 = vpop.f32.mrf.mxu1  ;;  %v14583_v14 = vpop.f32.mrf.mxu0  ;;  %v7110_v29 = vor.u32 %v7108_v48, %v7106_v44  ;;  %v7481_v22 = vsel %vm797_vm2, %v7471_v8, %v7480_v37  ;;  %v7494_v63 = vrot.slane %v7492_v59, 3  ;;  %v7116_v19 = vshrl.u32 %v17927_v52, 16 }
 0x279   : > { %v4754_v1 = vadd.f32 %v14583_v14, %v17768_v9  ;;  %v7485_v18 = vrot.slane %v7483_v36, 3  ;;  %v7497_v9 = vrot.slane %v7495_v4, 4  ;;  %v15528_v14 = vld [vmem:[#allocation3 + $0x10] sm:$0xff]   ;;  %v7504_v17 = vshll.u32 %v13121_v11, 16 }
 0x27a   : > { %v4882_v28 = vpop.f32.mrf.mxu1  ;;  %v4704_v10 = vpop.f32.mrf.mxu0  ;;  %v7122_v4 = vrot.slane %v7120_v2, 1  ;;  %v15531_v2 = vld [vmem:[#allocation3 + $0x20] sm:$0xff]  }
 0x27b   : > { %v17960_v47 = vadd.f32 %v4882_v28, %v4750_v42  ;;  %v4753_v54 = vadd.f32 %v4704_v10, %v17778_v32  ;;  %v7115_v42 = vsel %vm1167_vm3, %v7110_v29, %v7114_v30  ;;  %v7501_v32 = vshrl.u32 %v13121_v11, 16 }
 0x27c   : > { %v14608_v31 = vpop.f32.mrf.mxu1  ;;  %14815 = vmatmul.mubr.msk.bf16.gmra.mxu1 %vm624_vm1, %v7472_v7  ;;  %v14586_v53 = vpop.f32.mrf.mxu0  ;;  %14793 = vmatmul.mubr.msk.bf16.gmra.mxu0 %vm624_vm1, %v7107_v12  ;;  %v7489_v36 = vor.u32 %v7488_v61, %v7485_v18  ;;  %v7498_v12 = vor.u32 %v7497_v9, %v7494_v63  ;;  %v7974_v28 = vshll.u32 %v15528_v14, 16  ;;  %v7118_v10 = vor.u32 %v7116_v19, %v7114_v30 }
 0x27d   : > { %14818 = vmatprep.mubr.msk.bf16.mxu1 %vm624_vm1, %v7481_v22  ;;  %v4756_v6 = vadd.f32 %v14586_v53, %v17785_v60  ;;  %14796 = vmatprep.mubr.msk.bf16.mxu0 %vm624_vm1, %v7115_v42  ;;  %v7503_v11 = vrot.slane %v7501_v32, 3  ;;  %v7506_v18 = vrot.slane %v7504_v17, 4  ;;  %v13135_v30 = vcombine.low %v17716_v40, %v17718_v46 }
 0x27e   : > { %v4894_v44 = vpop.f32.mrf.mxu1  ;;  %v4716_v8 = vpop.f32.mrf.mxu0  ;;  %v7490_v61 = vsel %vm797_vm2, %v7480_v37, %v7489_v36  ;;  %v7123_v63 = vsel %vm1167_vm3, %v7118_v10, %v7122_v4  ;;  %v7972_v42 = vshrl.u32 %v15528_v14, 16  ;;  %v18001_v10 = vld [vmem:[#allocation9 + $0x40] sm:$0xff]  }
 0x27f   : > { %v17971_v41 = vadd.f32 %v4894_v44, %v4752_v21  ;;  %v4755_v48 = vadd.f32 %v4716_v8, %v17798_v58  ;;  %v15529_v21 = vld [vmem:[#allocation3 + $0x18] sm:$0xff]   ;;  %v7507_v40 = vor.u32 %v7506_v18, %v7503_v11  ;;  %v15535_v18 = vld [vmem:[#allocation3 + $0x30] sm:$0xff]  }
 0x280   : > { %v14609_v59 = vpop.f32.mrf.mxu1  ;;  %v14587_v60 = vpop.f32.mrf.mxu0  ;;  %v7979_v44 = vshll.u32 %v15529_v21, 16 }
 0x281   : > { %v17975_v29 = vadd.f32 %v14609_v59, %v4754_v1  ;;  %v4757_v7 = vadd.f32 %v14587_v60, %v17805_v35  ;;  %v7499_v1 = vsel %vm797_vm2, %v7489_v36, %v7498_v12  ;;  %v7976_v35 = vrot.slane %v7974_v28, 1  ;;  %v15533_v36 = vld [vmem:[#allocation3 + $0x28] sm:$0xff]  }
 0x282   : > { %v4897_v31 = vpop.f32.mrf.mxu1  ;;  %v4719_v52 = vpop.f32.mrf.mxu0  ;;  %v7981_v28 = vrot.slane %v7979_v44, 1  ;;  %v7508_v14 = vsel %vm797_vm2, %v7498_v12, %v7507_v40  ;;  %v7995_v11 = vshll.u32 %v15533_v36, 16 }
 0x283   : > { %v17978_v22 = vadd.f32 %v4897_v31, %v4753_v54  ;;  %v7977_v8 = vor.u32 %v7976_v35, %v7972_v42 }
 0x284   : > { %v14612_v58 = vpop.f32.mrf.mxu1  ;;  %14819 = vmatmul.mubr.msk.bf16.gmra.mxu1 %vm624_vm1, %v7490_v61  ;;  %v14590_v54 = vpop.f32.mrf.mxu0  ;;  %14797 = vmatmul.mubr.msk.bf16.gmra.mxu0 %vm624_vm1, %v7123_v63 }
 0x285   : > { %v17986_v9 = vadd.f32 %v14612_v58, %v4756_v6  ;;  %14822 = vmatprep.mubr.msk.bf16.mxu1 %vm624_vm1, %v7499_v1  ;;  %v4759_v37 = vadd.f32 %v14590_v54, %v17828_v26  ;;  %14828 = vmatprep.mubr.msk.bf16.mxu0 %vm624_vm1, %v13135_v30  ;;  %v7987_v6 = vshll.u32 %v15531_v2, 16  ;;  %v13136_v26 = vcombine.low %v17723_v16, %v17758_v51 }
 0x286   : > { %v4909_v53 = vpop.f32.mrf.mxu1  ;;  %v4731_v19 = vpop.f32.mrf.mxu0  ;;  %v7991_v51 = vshrl.u32 %v15531_v2, 16  ;;  %v7997_v1 = vrot.slane %v7995_v11, 1  ;;  %v8003_v30 = vshll.u32 %v15535_v18, 16  ;;  %v18024_v2 = vld [vmem:[#allocation9 + $0x8] sm:$0xff]  }
 0x287   : > { %v17992_v32 = vadd.f32 %v4909_v53, %v4755_v48  ;;  %v13137_v48 = vcombine.low %v17749_v45, %v17771_v15  ;;  %v7989_v61 = vrot.slane %v7987_v6, 1  ;;  %v7983_v15 = vshrl.u32 %v15529_v21, 16  ;;  %v15537_v53 = vld [vmem:[#allocation3 + $0x38] sm:$0xff]   ;;  %19753 = vst [vmem:[#allocation29_spill] sm:$0xff] %v18024_v2  ;;  %v15539_v6 = vld [vmem:[#allocation3 + $0x40] sm:$0xff]  }
 0x288   : > { %v14613_v46 = vpop.f32.mrf.mxu1  ;;  %v14591_v59 = vpop.f32.mrf.mxu0  ;;  %v13138_v21 = vcombine.low %v17774_v3, %v17803_v24  ;;  %v8007_v3 = vshrl.u32 %v15535_v18, 16  ;;  %v8011_v24 = vshll.u32 %v15537_v53, 16 }
 0x289   : > { %19749 = vst [vmem:[#allocation27_spill] sm:$0xff] %v17992_v32  ;;  %v17994_v17 = vadd.f32 %v14613_v46, %v4757_v7  ;;  %v7982_v7 = vsel %vm1167_vm3, %v7977_v8, %v7981_v28  ;;  %v7993_v63 = vor.u32 %v7991_v51, %v7989_v61  ;;  %v7985_v35 = vor.u32 %v7983_v15, %v7981_v28  ;;  %v15543_v51 = vld [vmem:[#allocation3 + $0x50] sm:$0xff]  }
 0x28a   : > { %v4912_v4 = vpop.f32.mrf.mxu1  ;;  %v4733_v60 = vpop.f32.mrf.mxu0  ;;  %v13139_v46 = vcombine.low %v17796_v57, %v17809_v34  ;;  %v8005_v8 = vrot.slane %v8003_v30, 1  ;;  %v7999_v28 = vshrl.u32 %v15533_v36, 16 }
 0x28b   : > { %19750 = vst [vmem:[#allocation15_spill] sm:$0xff] %v17994_v17  ;;  %v4758_v31 = vadd.f32 %v4733_v60, %v17852_v39  ;;  %v7998_v40 = vsel %vm1167_vm3, %v7993_v63, %v7997_v1  ;;  %v8019_v60 = vshll.u32 %v15539_v6, 16  ;;  %v8015_v63 = vshrl.u32 %v15537_v53, 16  ;;  %v18155_v17 = vld [vmem:[#allocation3 + $0x40] sm:$0xf] }
 0x28c   : > { %v14616_v52 = vpop.f32.mrf.mxu1  ;;  %14823 = vmatmul.mubr.msk.bf16.gmra.mxu1 %vm624_vm1, %v7508_v14  ;;  %v14622_v16 = vpop.f32.mrf.mxu0  ;;  %14829 = vmatmul.mubr.msk.bf16.vlgmr.msra.gmra.mxu0 %vm624_vm1, %v13136_v26  ;;  %v8009_v34 = vor.u32 %v8007_v3, %v8005_v8  ;;  %v8001_v14 = vor.u32 %v7999_v28, %v7997_v1  ;;  %v13142_v53 = vcombine.low %v17857_v56, %v17891_v0  ;;  %v18074_v3 = vld [vmem:[#allocation3 + $0x24] sm:$0xf] }
 0x28d   : > { %v18006_v58 = vadd.f32 %v14616_v52, %v4759_v37  ;;  %14854 = vmatprep.mubr.msk.bf16.mxu1 %vm624_vm1, %v7982_v7  ;;  %14832 = vmatprep.mubr.msk.bf16.mxu0 %vm624_vm1, %v13137_v48  ;;  %v8013_v52 = vrot.slane %v8011_v24, 1  ;;  %v15541_v7 = vld [vmem:[#allocation3 + $0x48] sm:$0xff]   ;;  %v13141_v16 = vcombine.low %v17840_v23, %v17846_v55  ;;  %v8035_v23 = vshll.u32 %v15543_v51, 16  ;;  %v18065_v55 = vld [vmem:[#allocation3 + $0x58] sm:$0xff]   ;;  %19763 = vst [vmem:[#allocation33_spill] sm:$0xff] %v18155_v17 }
 0x28e   : > { %v4924_v45 = vpop.f32.mrf.mxu1  ;;  %14879 = vmatpush3.bf16.msra.mxu0 %v17822_v62  ;;  %v18012_v39 = vpop.f32.mrf.mxu0  ;;  %v7990_v62 = vsel %vm1167_vm3, %v7985_v35, %v7989_v61  ;;  %v8006_v11 = vsel %vm1167_vm3, %v8001_v14, %v8005_v8  ;;  %v8043_v14 = vshll.u32 %v18065_v55, 16 }
 0x28f   : > { %19751 = vst [vmem:[#allocation16_spill] sm:$0xff] %v18006_v58  ;;  %14930 = vmatprep.subr.bf16.mxu0 %v18001_v10  ;;  %v8014_v18 = vsel %vm1167_vm3, %v8009_v34, %v8013_v52  ;;  %v8021_v45 = vrot.slane %v8019_v60, 1  ;;  %v13143_v34 = vcombine.low %v17882_v13, %v17897_v50  ;;  %v8037_v60 = vrot.slane %v8035_v23, 1 }
 0x290   : > { %v14617_v12 = vpop.f32.mrf.mxu1  ;;  %v18015_v54 = vpop.f32.mrf.mxu0 }
 0x292   : > { %v4926_v37 = vpop.f32.mrf.mxu1  ;;  %v18019_v44 = vpop.f32.mrf.mxu0 }
 0x293   : > { %v18017_v42 = vadd.f32 %v4926_v37, %v4758_v31  ;;  %v8017_v37 = vor.u32 %v8015_v63, %v8013_v52  ;;  %v15548_v52 = vld [vmem:[#allocation3 + $0x60] sm:$0xff]  }
 0x294   : > { %v14648_v19 = vpop.f32.mrf.mxu1  ;;  %14855 = vmatmul.mubr.msk.bf16.vlgmr.msra.gmra.mxu1 %vm624_vm1, %v7990_v62  ;;  %v18030_v59 = vpop.f32.mrf.mxu0  ;;  %14833 = vmatmul.mubr.msk.bf16.gmra.mxu0 %vm624_vm1, %v13138_v21 }
 0x295   : > { %19752 = vst [vmem:[#allocation30_spill] sm:$0xff] %v18017_v42  ;;  %14858 = vmatprep.mubr.msk.bf16.mxu1 %vm624_vm1, %v7998_v40  ;;  %14836 = vmatprep.mubr.msk.bf16.mxu0 %vm624_vm1, %v13139_v46  ;;  %v18067_v40 = vld [vmem:[#allocation3 + $0x20] sm:$0xf]  ;;  %v8022_v8 = vsel %vm1167_vm3, %v8017_v37, %v8021_v45 }
 0x296   : > { %v18034_v4 = vpop.f32.mrf.mxu1  ;;  %14905 = vmatpush3.bf16.msra.mxu1 %v17859_v49  ;;  %v18038_v26 = vpop.f32.mrf.mxu0  ;;  %v13140_v49 = vcombine.low %v17820_v5, %v17850_v27  ;;  %v8023_v5 = vshrl.u32 %v15539_v6, 16  ;;  %v8027_v27 = vshll.u32 %v15541_v7, 16  ;;  %v8250_v6 = vld [vmem:[#allocation3 + $0x18] sm:$0x8]  ;;  %v13187_v56 = vcombine.low %v18067_v40, %v18074_v3 }
 0x297   : > { %14956 = vmatprep.subr.bf16.mxu1 %v18024_v2  ;;  %v18137_v2 = vld [vmem:[#allocation3 + $0x3c] sm:$0xf] }
 0x298   : > { %v18041_v57 = vpop.f32.mrf.mxu1  ;;  %v18043_v48 = vpop.f32.mrf.mxu0  ;;  %v8025_v35 = vor.u32 %v8023_v5, %v8021_v45  ;;  %v8029_v19 = vrot.slane %v8027_v27, 1  ;;  %v8045_v5 = vrot.slane %v8043_v14, 1  ;;  %v8051_v27 = vshll.u32 %v15548_v52, 16  ;;  %19758 = vst [vmem:[#allocation31_spill] sm:$0xff] %v18137_v2 }
 0x299   : > { %v8349_v23 = vshrl.u32 %v13187_v56, 16  ;;  %v8352_v37 = vshll.u32 %v13187_v56, 16 }
 0x29a   : > { %v18045_v31 = vpop.f32.mrf.mxu1  ;;  %v5237_v61 = vpop.f32.mrf.mxu0  ;;  %v8030_v28 = vsel %vm1167_vm3, %v8025_v35, %v8029_v19  ;;  %v18095_v35 = vld [vmem:[#allocation3 + $0x2c] sm:$0xf]  ;;  %v8053_v56 = vrot.slane %v8051_v27, 1 }
 0x29b   : > { %v18083_v61 = vld [vmem:[#allocation3 + $0x1c] sm:$0xf] }
 0x29c   : > { %v18050_v36 = vpop.f32.mrf.mxu1  ;;  %14859 = vmatmul.mubr.msk.bf16.gmra.mxu1 %vm624_vm1, %v8006_v11  ;;  %v18056_v15 = vpop.f32.mrf.mxu0  ;;  %14837 = vmatmul.mubr.msk.bf16.gmra.mxu0 %vm624_vm1, %v13140_v49  ;;  %v8039_v49 = vshrl.u32 %v15543_v51, 16  ;;  %v13186_v50 = vcombine.low %v8250_v6, %v18083_v61 }
 0x29d   : > { %14862 = vmatprep.mubr.msk.bf16.mxu1 %vm624_vm1, %v8014_v18  ;;  %14840 = vmatprep.mubr.msk.bf16.mxu0 %vm624_vm1, %v13141_v16  ;;  %v8031_v18 = vshrl.u32 %v15541_v7, 16  ;;  %v18101_v7 = vld [vmem:[#allocation3 + $0x34] sm:$0xf] }
 0x29e   : > { %v18060_v12 = vpop.f32.mrf.mxu1  ;;  %v5249_v1 = vpop.f32.mrf.mxu0  ;;  %v8041_v45 = vor.u32 %v8039_v49, %v8037_v60  ;;  %19754 = vst [vmem:[#allocation17_spill] sm:$0xff] %v18101_v7  ;;  %v8341_v6 = vshrl.u32 %v13186_v50, 16 }
 0x29f   : > { %v8033_v63 = vor.u32 %v8031_v18, %v8029_v19  ;;  %v18108_v19 = vld [vmem:[#allocation3 + $0x28] sm:$0xf] }
 0x2a0   : > { %v18063_v30 = vpop.f32.mrf.mxu1  ;;  %v14631_v62 = vpop.f32.mrf.mxu0  ;;  %v8046_v14 = vsel %vm1167_vm3, %v8041_v45, %v8045_v5  ;;  %v8343_v27 = vrot.slane %v8341_v6, 3  ;;  %v18143_v6 = vld [vmem:[#allocation3 + $0x44] sm:$0xf] }
 0x2a1   : > { %19760 = vst [vmem:[#allocation38_spill] sm:$0xff] %v18143_v6 }
 0x2a2   : > { %v5622_v21 = vpop.f32.mrf.mxu1  ;;  %v18069_v46 = vpop.f32.mrf.mxu0 }
 0x2a3   : > { %v18099_v21 = vld [vmem:[#allocation3 + $0x68] sm:$0xff]  }
 0x2a4   : > { %v18076_v24 = vpop.f32.mrf.mxu1  ;;  %14863 = vmatmul.mubr.msk.bf16.gmra.mxu1 %vm624_vm1, %v8022_v8  ;;  %v14634_v11 = vpop.f32.mrf.mxu0  ;;  %14841 = vmatmul.mubr.msk.bf16.gmra.mxu0 %vm624_vm1, %v13142_v53  ;;  %v8038_v8 = vsel %vm1167_vm3, %v8033_v63, %v8037_v60  ;;  %v13144_v53 = vcombine.low %v17899_v38, %v17921_v25  ;;  %v18116_v60 = vld [vmem:[#allocation3 + $0x30] sm:$0xf]  ;;  %v8351_v38 = vrot.slane %v8349_v23, 3  ;;  %v8354_v25 = vrot.slane %v8352_v37, 4 }
 0x2a5   : > { %14866 = vmatprep.mubr.msk.bf16.mxu1 %vm624_vm1, %v8030_v28  ;;  %14844 = vmatprep.mubr.msk.bf16.mxu0 %vm624_vm1, %v13143_v34  ;;  %v8344_v28 = vshll.u32 %v13186_v50, 16  ;;  %v13145_v11 = vcombine.low %v17923_v33, %v17929_v20  ;;  %v13189_v18 = vcombine.low %v18116_v60, %v18101_v7  ;;  %v8055_v33 = vshrl.u32 %v15548_v52, 16  ;;  %v18135_v52 = vld [vmem:[#allocation3 + $0x38] sm:$0xf] }
 0x2a6   : > { %v5634_v0 = vpop.f32.mrf.mxu1  ;;  %v18090_v13 = vpop.f32.mrf.mxu0  ;;  %v8059_v20 = vshll.u32 %v18099_v21, 16  ;;  %v8355_v42 = vor.u32 %v8354_v25, %v8351_v38  ;;  %19757 = vst [vmem:[#allocation32_spill] sm:$0xff] %v18135_v52 }
 0x2a7   : > { %v13188_v0 = vcombine.low %v18108_v19, %v18095_v35  ;;  %v8346_v63 = vrot.slane %v8344_v28, 4  ;;  %v8057_v23 = vor.u32 %v8055_v33, %v8053_v56  ;;  %v8367_v7 = vshrl.u32 %v13189_v18, 16 }
 0x2a8   : > { %v14657_v16 = vpop.f32.mrf.mxu1  ;;  %v18093_v1 = vpop.f32.mrf.mxu0  ;;  %v18141_v58 = vrot.slane %v8059_v20, 1  ;;  %v13190_v20 = vcombine.low %v18135_v52, %v18137_v2  ;;  %v18177_v52 = vld [vmem:[#allocation3 + $0x54] sm:$0xf] }
 0x2a9   : > { %v8047_v16 = vshrl.u32 %v18065_v55, 16  ;;  %v8358_v37 = vshrl.u32 %v13188_v0, 16  ;;  %19770 = vst [vmem:[#allocation25_spill] sm:$0xff] %v18177_v52 }
 0x2aa   : > { %v18097_v62 = vpop.f32.mrf.mxu1  ;;  %v18103_v51 = vpop.f32.mrf.mxu0  ;;  %v8062_v25 = vsel %vm1167_vm3, %v8057_v23, %v18141_v58  ;;  %v18164_v23 = vld [vmem:[#allocation3 + $0x48] sm:$0xf] }
 0x2ab   : > { %19765 = vst [vmem:[#allocation39_spill] sm:$0xff] %v18164_v23 }
 0x2ac   : > { %v14660_v34 = vpop.f32.mrf.mxu1  ;;  %14867 = vmatmul.mubr.msk.bf16.gmra.mxu1 %vm624_vm1, %v8038_v8  ;;  %v18118_v49 = vpop.f32.mrf.mxu0  ;;  %14845 = vmatmul.mubr.msk.bf16.gmra.mxu0 %vm624_vm1, %v13144_v53  ;;  %v8361_v53 = vshll.u32 %v13188_v0, 16 }
 0x2ad   : > { %14870 = vmatprep.mubr.msk.bf16.mxu1 %vm624_vm1, %v8046_v14  ;;  %14848 = vmatprep.mubr.msk.bf16.mxu0 %vm624_vm1, %v13145_v11  ;;  %v8049_v34 = vor.u32 %v8047_v16, %v8045_v5  ;;  %v8370_v11 = vshll.u32 %v13189_v18, 16  ;;  %v19761_v5 = vld [vmem:[#allocation34_spill] sm:$0xff]  ;;  %v8347_v16 = vor.u32 %v8346_v63, %v8343_v27  ;;  %v8360_v18 = vrot.slane %v8358_v37, 3  ;;  %v18166_v37 = vld [vmem:[#allocation3 + $0x4c] sm:$0xf] }
 0x2ae   : > { %v18124_v50 = vpop.f32.mrf.mxu1  ;;  %v18129_v45 = vpop.f32.mrf.mxu0  ;;  %v13146_v0 = vcombine.low %v19761_v5, %v17954_v43  ;;  %v13191_v63 = vcombine.low %v18155_v17, %v18143_v6  ;;  %19766 = vst [vmem:[#allocation41_spill] sm:$0xff] %v18166_v37  ;;  %v8379_v6 = vshll.u32 %v13190_v20, 16 }
 0x2af   : > { %19755 = vst [vmem:[#allocation18_spill] sm:$0xff] %v18129_v45  ;;  %v8054_v33 = vsel %vm1167_vm3, %v8049_v34, %v8053_v56  ;;  %v8356_v43 = vsel %vm797_vm2, %v8347_v16, %v8355_v42  ;;  %v8369_v56 = vrot.slane %v8367_v7, 3  ;;  %v8372_v27 = vrot.slane %v8370_v11, 4 }
 0x2b0   : > { %v18131_v8 = vpop.f32.mrf.mxu1  ;;  %v18133_v14 = vpop.f32.mrf.mxu0  ;;  %v8376_v16 = vshrl.u32 %v13190_v20, 16  ;;  %v13192_v7 = vcombine.low %v18164_v23, %v18166_v37  ;;  %v8385_v2 = vshrl.u32 %v13191_v63, 16  ;;  %v8388_v17 = vshll.u32 %v13191_v63, 16  ;;  %v18190_v63 = vld [vmem:[#allocation3 + $0x58] sm:$0xf] }
 0x2b1   : > { %19756 = vst [vmem:[#allocation37_spill] sm:$0xff] %v18133_v14  ;;  %v8363_v14 = vrot.slane %v8361_v53, 4  ;;  %19775 = vst [vmem:[#allocation46_spill] sm:$0xff] %v18190_v63 }
 0x2b2   : > { %v18139_v55 = vpop.f32.mrf.mxu1  ;;  %v5281_v28 = vpop.f32.mrf.mxu0  ;;  %v8394_v20 = vshrl.u32 %v13192_v7, 16  ;;  %v8390_v23 = vrot.slane %v8388_v17, 4 }
 0x2b3   : > { %19759 = vst [vmem:[#allocation19_spill] sm:$0xff] %v18139_v55  ;;  %v19779_v55 = vld [vmem:[#allocation22_spill] sm:$0xff] }
 0x2b4   : > { %v18148_v38 = vpop.f32.mrf.mxu1  ;;  %14871 = vmatmul.mubr.msk.bf16.gmra.mxu1 %vm624_vm1, %v8054_v33  ;;  %v18157_v28 = vpop.f32.mrf.mxu0  ;;  %14849 = vmatmul.mubr.msk.bf16.gmra.mxu0 %vm624_vm1, %v13146_v0  ;;  %v18171_v33 = vld [vmem:[#allocation3 + $0x50] sm:$0xf]  ;;  %v8364_v0 = vor.u32 %v8363_v14, %v8360_v18  ;;  %v18185_v14 = vld [vmem:[#allocation9] sm:$0xff]  }
 0x2b5   : > { %19762 = vst [vmem:[#allocation36_spill] sm:$0xff] %v18148_v38  ;;  %19764 = vst [vmem:[#allocation20_spill] sm:$0xff] %v18157_v28  ;;  %14874 = vmatprep.mubr.msk.bf16.mxu1 %vm624_vm1, %v8062_v25  ;;  %14880 = vmatprep.mubr.msk.bf16.mxu0 %vm624_vm1, %v8356_v43  ;;  %v8373_v25 = vor.u32 %v8372_v27, %v8369_v56  ;;  %v13193_v43 = vcombine.low %v18171_v33, %v18177_v52  ;;  %v8378_v56 = vrot.slane %v8376_v16, 3 }
 0x2b6   : > { %v18168_v53 = vpop.f32.mrf.mxu1  ;;  %v5293_v34 = vpop.f32.mrf.mxu0  ;;  %19768 = vst [vmem:[#allocation21_spill] sm:$0xff] %v18171_v33  ;;  %19773 = vst [vmem:[#allocation44_spill] sm:$0xff] %v18185_v14  ;;  %v8397_v27 = vshll.u32 %v13192_v7, 16  ;;  %v8381_v52 = vrot.slane %v8379_v6, 4  ;;  %v8387_v33 = vrot.slane %v8385_v2, 3  ;;  %v8396_v2 = vrot.slane %v8394_v20, 3 }
 0x2b7   : > { %19767 = vst [vmem:[#allocation42_spill] sm:$0xff] %v18168_v53  ;;  %v18183_v53 = vld [vmem:[#allocation3 + $0x5c] sm:$0xf]  ;;  %v18200_v7 = vld [vmem:[#allocation3 + $0x60] sm:$0xf] }
 0x2b8   : > { %v18173_v5 = vpop.f32.mrf.mxu1  ;;  %v14643_v11 = vpop.f32.mrf.mxu0  ;;  %19772 = vst [vmem:[#allocation43_spill] sm:$0xff] %v18183_v53  ;;  %v13194_v16 = vcombine.low %v18190_v63, %v18183_v53  ;;  %19777 = vst [vmem:[#allocation48_spill] sm:$0xff] %v18200_v7  ;;  %v8399_v17 = vrot.slane %v8397_v27, 4  ;;  %v8391_v38 = vor.u32 %v8390_v23, %v8387_v33 }
 0x2b9   : > { %19769 = vst [vmem:[#allocation40_spill] sm:$0xff] %v18173_v5  ;;  %v8365_v11 = vsel %vm797_vm2, %v8355_v42, %v8364_v0  ;;  %v8406_v42 = vshll.u32 %v13193_v43, 16 }
 0x2ba   : > { %v5666_v28 = vpop.f32.mrf.mxu1  ;;  %v18181_v34 = vpop.f32.mrf.mxu0  ;;  %v8412_v45 = vshrl.u32 %v13194_v16, 16  ;;  %v8415_v32 = vshll.u32 %v13194_v16, 16 }
 0x2bb   : > { %19771 = vst [vmem:[#allocation34_spill] sm:$0xff] %v18181_v34  ;;  %v8374_v28 = vsel %vm797_vm2, %v8364_v0, %v8373_v25  ;;  %v18194_v34 = vld [vmem:[#allocation3 + $0x64] sm:$0xf]  ;;  %v19778_v0 = vld [vmem:[#allocation23_spill] sm:$0xff]  ;;  %v8408_v63 = vrot.slane %v8406_v42, 4  ;;  %v19781_v42 = vld [vmem:[#allocation26_spill] sm:$0xff] }
 0x2bc   : > { %v18187_v18 = vpop.f32.mrf.mxu1  ;;  %v14674_v37 = vpop.f32.mrf.mxu0  ;;  %14881 = vmatmul.mubr.msk.bf16.vlgmr.msra.gmra.mxu0 %vm624_vm1, %v8365_v11  ;;  %19776 = vst [vmem:[#allocation47_spill] sm:$0xff] %v18194_v34  ;;  %v5306_v11 = vadd.f32 %v18012_v39, %v19778_v0  ;;  %v19780_v0 = vld [vmem:[#allocation35_spill] sm:$0xff]  ;;  %v5310_v16 = vadd.f32 %v18030_v59, %v19781_v42 }
 0x2bd   : > { %19774 = vst [vmem:[#allocation45_spill] sm:$0xff] %v18187_v18  ;;  %14884 = vmatprep.mubr.msk.bf16.mxu0 %vm624_vm1, %v8374_v28  ;;  %v8403_v18 = vshrl.u32 %v13193_v43, 16  ;;  %14931 = vmatpush3.bf16.msra.mxu0 %v18001_v10  ;;  %v8382_v28 = vor.u32 %v8381_v52, %v8378_v56  ;;  %v5307_v52 = vadd.f32 %v18019_v44, %v19780_v0 }
 0x2be   : > { %v5678_v5 = vpop.f32.mrf.mxu1  ;;  %v5797_v37 = vpop.f32.mrf.mxu0  ;;  %14982 = vmatprep.subr.bf16.mxu0 %v18185_v14  ;;  %v5691_v20 = vadd.f32 %v18034_v4, %v5306_v11  ;;  %v18220_v4 = vld [vmem:[#allocation3 + $0x6c] sm:$0xf] }
 0x2bf   : > { %v13195_v5 = vcombine.low %v18200_v7, %v18194_v34  ;;  %v8405_v10 = vrot.slane %v8403_v18, 3  ;;  %v8383_v34 = vsel %vm797_vm2, %v8373_v25, %v8382_v28  ;;  %v8400_v7 = vor.u32 %v8399_v17, %v8396_v2  ;;  %v18225_v25 = vld [vmem:[%s19634_s3] ss:$0 sm:$0xff] }
 0x2c0   : > { %v14669_v6 = vpop.f32.mrf.mxu1  ;;  %v14675_v43 = vpop.f32.mrf.mxu0  ;;  %v5884_v33 = vadd.f32 %v5797_v37, %v5691_v20  ;;  %v8392_v56 = vsel %vm797_vm2, %v8382_v28, %v8391_v38  ;;  %v5692_v37 = vadd.f32 %v18045_v31, %v5307_v52  ;;  %v19782_v28 = vld [vmem:[#allocation24_spill] sm:$0xff]  ;;  %v18240_v31 = vld [vmem:[#allocation3 + $0x78] sm:$0xf] }
 0x2c1   : > { %v5308_v6 = vadd.f32 %v18015_v54, %v19779_v55  ;;  %v8421_v39 = vshrl.u32 %v13195_v5, 16  ;;  %v18218_v54 = vld [vmem:[#allocation3 + $0x68] sm:$0xf]  ;;  %v8401_v44 = vsel %vm797_vm2, %v8391_v38, %v8400_v7 }
 0x2c2   : > { %v18207_v53 = vpop.f32.mrf.mxu1  ;;  %v5800_v27 = vpop.f32.mrf.mxu0  ;;  %v13196_v38 = vcombine.low %v18218_v54, %v18220_v4 }
 0x2c3   : > { %v5693_v23 = vadd.f32 %v18041_v57, %v5308_v6  ;;  %v18229_v57 = vor.u32 %v8408_v63, %v8405_v10  ;;  %v5309_v6 = vadd.f32 %v18038_v26, %v19782_v28  ;;  %v8423_v0 = vrot.slane %v8421_v39, 3 }
 0x2c4   : > { %v14700_v14 = vpop.f32.mrf.mxu1  ;;  %v14678_v18 = vpop.f32.mrf.mxu0  ;;  %14885 = vmatmul.mubr.msk.bf16.gmra.mxu0 %vm624_vm1, %v8383_v34  ;;  %v8417_v34 = vrot.slane %v8415_v32, 4  ;;  %v5885_v32 = vadd.f32 %v5800_v27, %v5692_v37 }
 0x2c5   : > { %14888 = vmatprep.mubr.msk.bf16.mxu0 %vm624_vm1, %v8392_v56  ;;  %v8414_v14 = vrot.slane %v8412_v45, 3  ;;  %v5886_v2 = vadd.f32 %v14675_v43, %v5693_v23  ;;  %v8424_v56 = vshll.u32 %v13195_v5, 16  ;;  %v5695_v45 = vadd.f32 %v18050_v36, %v5310_v16  ;;  %v19783_v43 = vld [vmem:[#allocation14_spill] sm:$0xff] }
 0x2c6   : > { %v6166_v55 = vpop.f32.mrf.mxu1  ;;  %v5812_v11 = vpop.f32.mrf.mxu0  ;;  %v5311_v52 = vadd.f32 %v18043_v48, %v19783_v43  ;;  %v5694_v26 = vadd.f32 %v18060_v12, %v5309_v6  ;;  %v8410_v5 = vsel %vm797_vm2, %v8400_v7, %v18229_v57  ;;  %v18251_v48 = vcombine.low %v18240_v31, %v18240_v31 }
 0x2c7   : > { %v6253_v17 = vadd.f32 %v6166_v55, %v5884_v33  ;;  %v8418_v39 = vor.u32 %v8417_v34, %v8414_v14  ;;  %v5888_v33 = vadd.f32 %v14678_v18, %v5695_v45  ;;  %v19784_v34 = vld [vmem:[#allocation28_spill] sm:$0xff] }
 0x2c8   : > { %v14701_v20 = vpop.f32.mrf.mxu1  ;;  %v14679_v10 = vpop.f32.mrf.mxu0  ;;  %v5696_v16 = vadd.f32 %v18063_v30, %v5311_v52  ;;  %v5887_v37 = vadd.f32 %v5812_v11, %v5694_v26  ;;  %v5313_v6 = vadd.f32 %v18056_v15, %v19784_v34  ;;  %v8430_v11 = vshrl.u32 %v13196_v38, 16 }
 0x2c9   : > { %v6276_v63 = vadd.f32 %v18225_v25, %v6253_v17  ;;  %v6255_v59 = vadd.f32 %v14701_v20, %v5886_v2  ;;  %v8426_v17 = vrot.slane %v8424_v56, 4  ;;  %v8433_v56 = vshll.u32 %v13196_v38, 16 }
 0x2ca   : > { %v6169_v23 = vpop.f32.mrf.mxu1  ;;  %v5815_v42 = vpop.f32.mrf.mxu0  ;;  %v5889_v20 = vadd.f32 %v14679_v10, %v5696_v16  ;;  %v5698_v52 = vadd.f32 %v18076_v24, %v5313_v6  ;;  %v18264_v10 = vld [vmem:[#allocation3 + $0x1c] sm:$0xff]   ;;  %v8419_v24 = vsel %vm797_vm2, %v18229_v57, %v8418_v39  ;;  %v5312_v6 = vadd.f32 %v18069_v46, %v17960_v47 }
 0x2cb   : > { %v6292_v55 = vmax.f32 %v6276_v63, 0.0  ;;  %v6278_v36 = vadd.f32 %v18225_v25, %v6255_v59  ;;  %v6254_v27 = vadd.f32 %v6169_v23, %v5885_v32  ;;  %v18262_v15 = vor.u32 %v8426_v17, %v8423_v0  ;;  %v18266_v23 = vld [vmem:[#allocation3 + $0x24] sm:$0xff]  }
 0x2cc   : > { %v14704_v2 = vpop.f32.mrf.mxu1  ;;  %v14682_v18 = vpop.f32.mrf.mxu0  ;;  %14889 = vmatmul.mubr.msk.bf16.gmra.mxu0 %vm624_vm1, %v8401_v44  ;;  %v8063_v44 = vshrl.u32 %v18099_v21, 16  ;;  %v8432_v21 = vrot.slane %v8430_v11, 3  ;;  %v8435_v42 = vrot.slane %v8433_v56, 4  ;;  %v8448_v0 = vshrl.u32 %v18251_v48, 16  ;;  %v18284_v56 = vld [vmem:[#allocation3 + $0x2c] sm:$0xff]  }
 0x2cd   : > { %v13642_v12 = vpack.c.bf16 %v6292_v55, %v6292_v55  ;;  %v6294_v28 = vmax.f32 %v6278_v36, 0.0  ;;  %v6277_v7 = vadd.f32 %v18225_v25, %v6254_v27  ;;  %v6257_v14 = vadd.f32 %v14704_v2, %v5888_v33  ;;  %14892 = vmatprep.mubr.msk.bf16.mxu0 %vm624_vm1, %v8410_v5 }
 0x2ce   : > { %v6181_v30 = vpop.f32.mrf.mxu1  ;;  %v5827_v43 = vpop.f32.mrf.mxu0  ;;  %v8921_v57 = vshll.u32 %v18264_v10, 16  ;;  %v8926_v34 = vshll.u32 %v18266_v23, 16  ;;  %v13212_v47 = vcombine.low %v18083_v61, %v18067_v40  ;;  %v8919_v46 = vshrl.u32 %v18264_v10, 16 }
 0x2cf   : > { %6316 = vst.msk [vmem:[#allocation3 + $0x70] sm:$0xf] %vm273_vm0, %v13642_v12  ;;  %v13644_v45 = vpack.c.bf16 %v6294_v28, %v6294_v28  ;;  %v6293_v32 = vmax.f32 %v6277_v7, 0.0  ;;  %v6280_v63 = vadd.f32 %v18225_v25, %v6257_v14  ;;  %v6256_v59 = vadd.f32 %v6181_v30, %v5887_v37 }
 0x2d0   : > { %v14705_v26 = vpop.f32.mrf.mxu1  ;;  %v14683_v36 = vpop.f32.mrf.mxu0  ;;  %v5891_v37 = vadd.f32 %v14682_v18, %v5698_v52  ;;  %v8428_v7 = vsel %vm797_vm2, %v8418_v39, %v18262_v15  ;;  %v8451_v14 = vshll.u32 %v18251_v48, 16  ;;  %v8065_v39 = vor.u32 %v8063_v44, %v18141_v58 }
 0x2d1   : > { %6326 = vst.msk [vmem:[#allocation3 + $0x7c] sm:$0xf] %vm273_vm0, %v13644_v45  ;;  %v13643_v38 = vpack.c.bf16 %v6293_v32, %v6293_v32  ;;  %v6296_v5 = vmax.f32 %v6280_v63, 0.0  ;;  %v6279_v33 = vadd.f32 %v18225_v25, %v6256_v59  ;;  %v6258_v55 = vadd.f32 %v14705_v26, %v5889_v20 }
 0x2d2   : > { %v6184_v27 = vpop.f32.mrf.mxu1  ;;  %v5829_v12 = vpop.f32.mrf.mxu0  ;;  %v13213_v48 = vcombine.low %v18074_v3, %v18108_v19  ;;  %v5697_v63 = vadd.f32 %v18097_v62, %v5312_v6  ;;  %v18296_v52 = vrot.slane %v8448_v0, 3  ;;  %v18298_v26 = vor.u32 %v8435_v42, %v8432_v21 }
 0x2d3   : > { %6317 = vst.msk [vmem:[#allocation3 + $0x74] sm:$0xf] %vm273_vm0, %v13643_v38  ;;  %v13646_v16 = vpack.c.bf16 %v6296_v5, %v6296_v5  ;;  %v6295_v2 = vmax.f32 %v6279_v33, 0.0  ;;  %v6281_v17 = vadd.f32 %v18225_v25, %v6258_v55  ;;  %v18300_v5 = vrot.slane %v8451_v14, 4 }
 0x2d4   : > { %v14708_v28 = vpop.f32.mrf.mxu1  ;;  %v14686_v11 = vpop.f32.mrf.mxu0  ;;  %14893 = vmatmul.mubr.msk.bf16.gmra.mxu0 %vm624_vm1, %v8419_v24  ;;  %v8923_v33 = vrot.slane %v8921_v57, 1  ;;  %v5314_v40 = vadd.f32 %v18090_v13, %v17971_v41  ;;  %v5890_v61 = vadd.f32 %v5829_v12, %v5697_v63  ;;  %v18307_v36 = vrot.slane %v8926_v34, 1  ;;  %v19785_v34 = vld [vmem:[#allocation19_spill] sm:$0xff] }
 0x2d5   : > { %6336 = vst.msk [vmem:[#allocation3 + $0x88] sm:$0xf] %vm273_vm0, %v13646_v16  ;;  %v13645_v18 = vpack.c.bf16 %v6295_v2, %v6295_v2  ;;  %v6297_v20 = vmax.f32 %v6281_v17, 0.0  ;;  %v6260_v30 = vadd.f32 %v14708_v28, %v5891_v37  ;;  %14896 = vmatprep.mubr.msk.bf16.mxu0 %vm624_vm1, %v8428_v7  ;;  %v5316_v27 = vadd.f32 %v18093_v1, %v17975_v29 }
 0x2d6   : > { %v6196_v45 = vpop.f32.mrf.mxu1  ;;  %v15564_v32 = vld [vmem:[#allocation3 + $0x70] ss:$0 sps:$4 sm:$0x11]   ;;  %v5841_v58 = vpop.f32.mrf.mxu0  ;;  %v13214_v0 = vcombine.low %v18095_v35, %v18116_v60  ;;  %v8934_v41 = vshll.u32 %v18284_v56, 16  ;;  %v5699_v13 = vadd.f32 %v18124_v50, %v5314_v40  ;;  %v5315_v29 = vadd.f32 %v18103_v51, %v17978_v22 }
 0x2d7   : > { %6327 = vst.msk [vmem:[#allocation3 + $0x80] sm:$0xf] %vm273_vm0, %v13645_v18  ;;  %v13647_v59 = vpack.c.bf16 %v6297_v20, %v6297_v20  ;;  %v6283_v43 = vadd.f32 %v18225_v25, %v6260_v30  ;;  %v8067_v38 = vshll.u32 %v15564_v32, 16  ;;  %v18305_v55 = vld [vmem:[#allocation3 + $0x70] sm:$0xf]  ;;  %v5701_v1 = vadd.f32 %v18131_v8, %v5316_v27  ;;  %v18336_v30 = vld [vmem:[#allocation3 + $0x34] sm:$0xff]  }
 0x2d8   : > { %v14709_v44 = vpop.f32.mrf.mxu1  ;;  %v14687_v10 = vpop.f32.mrf.mxu0  ;;  %v8437_v28 = vsel %vm797_vm2, %v18262_v15, %v18298_v26  ;;  %v5892_v50 = vadd.f32 %v5841_v58, %v5699_v13  ;;  %v5318_v8 = vadd.f32 %v18118_v49, %v17986_v9  ;;  %v5700_v6 = vadd.f32 %v19785_v34, %v5315_v29  ;;  %v19788_v9 = vld [vmem:[#allocation36_spill] sm:$0xff]  ;;  %v19790_v27 = vld [vmem:[#allocation37_spill] sm:$0xff] }
 0x2d9   : > { %6337 = vst.msk [vmem:[#allocation3 + $0x8c] sm:$0xf] %vm273_vm0, %v13647_v59  ;;  %v6299_v62 = vmax.f32 %v6283_v43, 0.0  ;;  %v8069_v21 = vrot.slane %v8067_v38, 1  ;;  %v5894_v15 = vadd.f32 %v14687_v10, %v5701_v1  ;;  %v8454_v20 = vor.u32 %v18300_v5, %v18296_v52  ;;  %v19786_v59 = vld [vmem:[#allocation27_spill] sm:$0xff]  ;;  %v19787_v43 = vld [vmem:[#allocation18_spill] sm:$0xff] }
 0x2da   : > { %v6198_v24 = vpop.f32.mrf.mxu1  ;;  %v18311_v42 = vld [vmem:[#allocation3 + $0x74] sm:$0xf]  ;;  %v5844_v2 = vpop.f32.mrf.mxu0  ;;  %v5317_v58 = vadd.f32 %v19787_v43, %v19786_v59  ;;  %v5703_v49 = vadd.f32 %v19788_v9, %v5318_v8  ;;  %v8924_v40 = vor.u32 %v8923_v33, %v8919_v46  ;;  %v19789_v10 = vld [vmem:[#allocation15_spill] sm:$0xff] }
 0x2db   : > { %v13649_v16 = vpack.c.bf16 %v6299_v62, %v6299_v62  ;;  %v6259_v37 = vadd.f32 %v6198_v24, %v5890_v61  ;;  %v13197_v17 = vcombine.low %v18305_v55, %v18311_v42  ;;  %v8070_v7 = vsel %vm1167_vm3, %v8065_v39, %v8069_v21  ;;  %v19791_v21 = vld [vmem:[#allocation42_spill] sm:$0xff]  ;;  %v18370_v59 = vld [vmem:[#allocation3 + $0x3c] sm:$0xff]  }
 0x2dc   : > { %v14712_v12 = vpop.f32.mrf.mxu1  ;;  %v14690_v57 = vpop.f32.mrf.mxu0  ;;  %14897 = vmatmul.mubr.msk.bf16.gmra.mxu0 %vm624_vm1, %v8437_v28  ;;  %14875 = vmatmul.mubr.msk.bf16.gmra.mxu1 %vm624_vm1, %v8070_v7  ;;  %v5893_v44 = vadd.f32 %v5844_v2, %v5700_v6  ;;  %v5319_v24 = vadd.f32 %v19790_v27, %v19789_v10  ;;  %v5702_v13 = vadd.f32 %v19791_v21, %v5317_v58  ;;  %v19792_v28 = vld [vmem:[#allocation40_spill] sm:$0xff] }
 0x2dd   : > { %6347 = vst.msk [vmem:[#allocation3 + $0x98] sm:$0xf] %vm273_vm0, %v13649_v16  ;;  %v6282_v14 = vadd.f32 %v18225_v25, %v6259_v37  ;;  %v8439_v22 = vshrl.u32 %v13197_v17, 16  ;;  %v8442_v51 = vshll.u32 %v13197_v17, 16  ;;  %14906 = vmatprep.mubr.msk.bf16.mxu1 %vm624_vm1, %v13212_v47  ;;  %v5896_v16 = vadd.f32 %v14690_v57, %v5703_v49  ;;  %v18350_v12 = vld [vmem:[#allocation9 + $0x10] sm:$0xff]  }
 0x2de   : > { %v6210_v18 = vpop.f32.mrf.mxu1  ;;  %v5856_v45 = vpop.f32.mrf.mxu0  ;;  %v8942_v17 = vshll.u32 %v18336_v30, 16  ;;  %v5704_v7 = vadd.f32 %v19792_v28, %v5319_v24  ;;  %v8950_v24 = vshll.u32 %v18370_v59, 16  ;;  %v18396_v28 = vld [vmem:[#allocation9 + $0x18] sm:$0xff]  }
 0x2df   : > { %v6298_v11 = vmax.f32 %v6282_v14, 0.0  ;;  %v6261_v39 = vadd.f32 %v6210_v18, %v5892_v50  ;;  %v8441_v32 = vrot.slane %v8439_v22, 3  ;;  %v8444_v63 = vrot.slane %v8442_v51, 4  ;;  %v19794_v18 = vld [vmem:[#allocation20_spill] sm:$0xff] }
 0x2e0   : > { %v14713_v38 = vpop.f32.mrf.mxu1  ;;  %v14691_v52 = vpop.f32.mrf.mxu0  ;;  %v5895_v50 = vadd.f32 %v5856_v45, %v5702_v13  ;;  %v8929_v22 = vsel %vm1167_vm3, %v8924_v40, %v18307_v36  ;;  %v8930_v45 = vshrl.u32 %v18266_v23, 16  ;;  %v18378_v23 = vld [vmem:[#allocation3 + $0x44] sm:$0xff]  }
 0x2e1   : > { %v13648_v61 = vpack.c.bf16 %v6298_v11, %v6298_v11  ;;  %v6284_v47 = vadd.f32 %v18225_v25, %v6261_v39  ;;  %v6263_v62 = vadd.f32 %v14713_v38, %v5894_v15  ;;  %v8445_v5 = vor.u32 %v8444_v63, %v8441_v32  ;;  %v19795_v32 = vld [vmem:[#allocation29_spill] sm:$0xff] }
 0x2e2   : > { %v6213_v37 = vpop.f32.mrf.mxu1  ;;  %v5859_v29 = vpop.f32.mrf.mxu0  ;;  %v8936_v63 = vrot.slane %v8934_v41, 1  ;;  %v19796_v41 = vld [vmem:[#allocation45_spill] sm:$0xff]  ;;  %v8944_v38 = vrot.slane %v8942_v17, 1  ;;  %v8932_v60 = vor.u32 %v8930_v45, %v18307_v36  ;;  %v8946_v45 = vshrl.u32 %v18336_v30, 16 }
 0x2e3   : > { %6346 = vst.msk [vmem:[#allocation3 + $0x94] sm:$0xf] %vm273_vm0, %v13648_v61  ;;  %v6300_v2 = vmax.f32 %v6284_v47, 0.0  ;;  %v6286_v46 = vadd.f32 %v18225_v25, %v6263_v62  ;;  %v6262_v33 = vadd.f32 %v6213_v37, %v5893_v44  ;;  %v8446_v1 = vsel %vm797_vm2, %v18298_v26, %v8445_v5  ;;  %v19793_v26 = vld [vmem:[#allocation16_spill] sm:$0xff] }
 0x2e4   : > { %v14716_v14 = vpop.f32.mrf.mxu1  ;;  %14900 = vmatprep.mubr.msk.bf16.mxu0 %vm624_vm1, %v8446_v1  ;;  %v8455_v57 = vsel %vm797_vm2, %v8445_v5, %v8454_v20  ;;  %v14694_v15 = vpop.f32.mrf.mxu0  ;;  %14907 = vmatmul.mubr.msk.bf16.vlgmr.msra.gmra.mxu1 %vm624_vm1, %v13213_v48  ;;  %v5321_v11 = vadd.f32 %v19794_v18, %v19793_v26  ;;  %v5897_v20 = vadd.f32 %v14691_v52, %v5704_v7  ;;  %v8938_v44 = vshrl.u32 %v18284_v56, 16  ;;  %v19797_v52 = vld [vmem:[#allocation32_spill] sm:$0xff]  ;;  %v19798_v5 = vld [vmem:[#allocation17_spill] sm:$0xff]  ;;  %v19801_v7 = vld [vmem:[#allocation30_spill] sm:$0xff] }
 0x2e5   : > { %v13650_v51 = vpack.c.bf16 %v6300_v2, %v6300_v2  ;;  %v6302_v8 = vmax.f32 %v6286_v46, 0.0  ;;  %v6285_v34 = vadd.f32 %v18225_v25, %v6262_v33  ;;  %v6265_v6 = vadd.f32 %v14716_v14, %v5896_v16  ;;  %14901 = vmatmul.mubr.msk.bf16.gmra.mxu0 %vm624_vm1, %v8455_v57  ;;  %14957 = vmatpush3.bf16.msra.mxu1 %v19795_v32  ;;  %v19799_v46 = vld [vmem:[#allocation33_spill] sm:$0xff]  ;;  %v19800_v33 = vld [vmem:[#allocation31_spill] sm:$0xff] }
 0x2e6   : > { %v6225_v39 = vpop.f32.mrf.mxu1  ;;  %14932 = vmatprep.mubr.msk.bf16.mxu0 %vm624_vm1, %v8929_v22  ;;  %v5871_v58 = vpop.f32.mrf.mxu0  ;;  %14910 = vmatprep.mubr.msk.bf16.mxu1 %vm624_vm1, %v13214_v0  ;;  %v5706_v9 = vadd.f32 %v19796_v41, %v5321_v11  ;;  %v13215_v10 = vcombine.low %v19798_v5, %v19797_v52  ;;  %v8940_v27 = vor.u32 %v8938_v44, %v8936_v63  ;;  %v8958_v1 = vshll.u32 %v18378_v23, 16 }
 0x2e7   : > { %6356 = vst.msk [vmem:[#allocation3 + $0xa0] sm:$0xf] %vm273_vm0, %v13650_v51  ;;  %v13652_v3 = vpack.c.bf16 %v6302_v8, %v6302_v8  ;;  %v6301_v19 = vmax.f32 %v6285_v34, 0.0  ;;  %v6288_v48 = vadd.f32 %v18225_v25, %v6265_v6  ;;  %v6264_v43 = vadd.f32 %v6225_v39, %v5895_v50  ;;  %15008 = vmatprep.subr.bf16.mxu1 %v18350_v12  ;;  %v19802_v50 = vld [vmem:[#allocation34_spill] sm:$0xff]  ;;  %v19803_v39 = vld [vmem:[#allocation44_spill] sm:$0xff] }
 0x2e8   : > { %v14717_v49 = vpop.f32.mrf.mxu1  ;;  %v14695_v35 = vpop.f32.mrf.mxu0  ;;  %v5899_v21 = vadd.f32 %v14694_v15, %v5706_v9  ;;  %v8937_v2 = vsel %vm1167_vm3, %v8932_v60, %v8936_v63  ;;  %v8945_v36 = vsel %vm1167_vm3, %v8940_v27, %v8944_v38  ;;  %v13216_v29 = vcombine.low %v19800_v33, %v19799_v46  ;;  %v15575_v34 = vld [vmem:[#allocation3 + $0x4c] sm:$0xff]  }
 0x2e9   : > { %6366 = vst.msk [vmem:[#allocation3 + $0xac] sm:$0xf] %vm273_vm0, %v13652_v3  ;;  %v13651_v40 = vpack.c.bf16 %v6301_v19, %v6301_v19  ;;  %v6304_v61 = vmax.f32 %v6288_v48, 0.0  ;;  %v6287_v47 = vadd.f32 %v18225_v25, %v6264_v43  ;;  %v6266_v62 = vadd.f32 %v14717_v49, %v5897_v20  ;;  %v19806_v60 = vld [vmem:[#allocation21_spill] sm:$0xff] }
 0x2ea   : > { %v6228_v0 = vpop.f32.mrf.mxu1  ;;  %v5873_v37 = vpop.f32.mrf.mxu0  ;;  %v5320_v14 = vadd.f32 %v19802_v50, %v19801_v7  ;;  %v8952_v20 = vrot.slane %v8950_v24, 1  ;;  %v8954_v63 = vshrl.u32 %v18370_v59, 16  ;;  %v8960_v48 = vrot.slane %v8958_v1, 1  ;;  %v18433_v1 = vld [vmem:[#allocation3 + $0x64] sm:$0xff]  }
 0x2eb   : > { %6357 = vst.msk [vmem:[#allocation3 + $0xa4] sm:$0xf] %vm273_vm0, %v13651_v40  ;;  %v13654_v56 = vpack.c.bf16 %v6304_v61, %v6304_v61  ;;  %v6303_v13 = vmax.f32 %v6287_v47, 0.0  ;;  %v6289_v16 = vadd.f32 %v18225_v25, %v6266_v62  ;;  %v8966_v43 = vshll.u32 %v15575_v34, 16  ;;  %v19804_v40 = vld [vmem:[#allocation39_spill] sm:$0xff]  ;;  %v19805_v61 = vld [vmem:[#allocation38_spill] sm:$0xff] }
 0x2ec   : > { %v14720_v17 = vpop.f32.mrf.mxu1  ;;  %v14726_v8 = vpop.f32.mrf.mxu0  ;;  %14911 = vmatmul.mubr.msk.bf16.gmra.mxu1 %vm624_vm1, %v13215_v10  ;;  %v5705_v15 = vadd.f32 %v18207_v53, %v5320_v14  ;;  %v8948_v58 = vor.u32 %v8946_v45, %v8944_v38  ;;  %v13217_v30 = vcombine.low %v19805_v61, %v19804_v40  ;;  %v8956_v47 = vor.u32 %v8954_v63, %v8952_v20  ;;  %v18415_v62 = vld [vmem:[#allocation3 + $0x54] sm:$0xff]   ;;  %v19807_v0 = vld [vmem:[#allocation41_spill] sm:$0xff] }
 0x2ed   : > { %6376 = vst.msk [vmem:[#allocation3 + $0xb8] sm:$0xf] %vm273_vm0, %v13654_v56  ;;  %v13653_v57 = vpack.c.bf16 %v6303_v13, %v6303_v13  ;;  %v6305_v22 = vmax.f32 %v6289_v16, 0.0  ;;  %v6268_v51 = vadd.f32 %v14720_v17, %v5899_v21  ;;  %14933 = vmatmul.mubr.msk.bf16.vlgmr.msra.gmra.mxu0 %vm624_vm1, %v8937_v2  ;;  %14914 = vmatprep.mubr.msk.bf16.mxu1 %vm624_vm1, %v13216_v29  ;;  %v8968_v27 = vrot.slane %v8966_v43, 1  ;;  %v9371_v43 = vld [vmem:[#allocation3 + $0x60] sm:$0x8] }
 0x2ee   : > { %v6240_v6 = vpop.f32.mrf.mxu1  ;;  %14936 = vmatprep.mubr.msk.bf16.mxu0 %vm624_vm1, %v8945_v36  ;;  %v6553_v11 = vpop.f32.mrf.mxu0  ;;  %14983 = vmatpush3.bf16.msra.mxu0 %v19803_v39  ;;  %v5898_v3 = vadd.f32 %v5873_v37, %v5705_v15  ;;  %v8953_v35 = vsel %vm1167_vm3, %v8948_v58, %v8952_v20  ;;  %v13218_v52 = vcombine.low %v19807_v0, %v19806_v60  ;;  %v8970_v16 = vshrl.u32 %v15575_v34, 16  ;;  %v15577_v37 = vld [vmem:[#allocation3 + $0x5c] sm:$0xff]  }
 0x2ef   : > { %6367 = vst.msk [vmem:[#allocation3 + $0xb0] sm:$0xf] %vm273_vm0, %v13653_v57  ;;  %v13655_v26 = vpack.c.bf16 %v6305_v22, %v6305_v22  ;;  %v6291_v18 = vadd.f32 %v18225_v25, %v6268_v51  ;;  %15034 = vmatprep.subr.bf16.mxu0 %v18396_v28  ;;  %v8961_v10 = vsel %vm1167_vm3, %v8956_v47, %v8960_v48  ;;  %v8962_v17 = vshrl.u32 %v18378_v23, 16  ;;  %v19808_v22 = vld [vmem:[#allocation46_spill] sm:$0xff]  ;;  %v19809_v51 = vld [vmem:[#allocation25_spill] sm:$0xff] }
 0x2f0   : > { %v14721_v32 = vpop.f32.mrf.mxu1  ;;  %v14727_v19 = vpop.f32.mrf.mxu0  ;;  %v8972_v29 = vor.u32 %v8970_v16, %v8968_v27  ;;  %v13219_v8 = vcombine.low %v19809_v51, %v19808_v22  ;;  %v8982_v23 = vshll.u32 %v15577_v37, 16  ;;  %v8978_v58 = vshrl.u32 %v18415_v62, 16  ;;  %v18460_v47 = vld [vmem:[#allocation3 + $0x74] sm:$0xff]  }
 0x2f1   : > { %6377 = vst.msk [vmem:[#allocation3 + $0xbc] sm:$0xf] %vm273_vm0, %v13655_v26  ;;  %v6307_v53 = vmax.f32 %v6291_v18, 0.0  ;;  %v8964_v7 = vor.u32 %v8962_v17, %v8960_v48  ;;  %v19810_v26 = vld [vmem:[#allocation48_spill] sm:$0xff]  ;;  %v19811_v18 = vld [vmem:[#allocation43_spill] sm:$0xff]  ;;  %v8990_v32 = vshll.u32 %v18433_v1, 16 }
 0x2f2   : > { %v6242_v41 = vpop.f32.mrf.mxu1  ;;  %v6556_v44 = vpop.f32.mrf.mxu0  ;;  %v15579_v48 = vld [vmem:[#allocation3 + $0x6c] sm:$0xff]   ;;  %v8986_v61 = vshrl.u32 %v15577_v37, 16  ;;  %v9006_v37 = vshll.u32 %v18460_v47, 16 }
 0x2f3   : > { %v13657_v9 = vpack.c.bf16 %v6307_v53, %v6307_v53  ;;  %v6267_v49 = vadd.f32 %v6242_v41, %v5898_v3  ;;  %v8969_v15 = vsel %vm1167_vm3, %v8964_v7, %v8968_v27  ;;  %v9002_v51 = vshrl.u32 %v15579_v48, 16 }
 0x2f4   : > { %v14752_v59 = vpop.f32.mrf.mxu1  ;;  %v14730_v5 = vpop.f32.mrf.mxu0  ;;  %14915 = vmatmul.mubr.msk.bf16.gmra.mxu1 %vm624_vm1, %v13217_v30  ;;  %v8992_v30 = vrot.slane %v8990_v32, 1  ;;  %v18491_v32 = vld [vmem:[#allocation3 + $0x7c] sm:$0xf] }
 0x2f5   : > { %6387 = vst.msk [vmem:[#allocation3 + $0xc8] sm:$0xf] %vm273_vm0, %v13657_v9  ;;  %v6290_v38 = vadd.f32 %v18225_v25, %v6267_v49  ;;  %14937 = vmatmul.mubr.msk.bf16.gmra.mxu0 %vm624_vm1, %v8953_v35  ;;  %14918 = vmatprep.mubr.msk.bf16.mxu1 %vm624_vm1, %v13218_v52  ;;  %v8974_v25 = vshll.u32 %v18415_v62, 16  ;;  %v18454_v9 = vld [vmem:[#allocation3 + $0x64] sm:$0xf]  ;;  %v19812_v52 = vld [vmem:[#allocation47_spill] sm:$0xff] }
 0x2f6   : > { %v6847_v24 = vpop.f32.mrf.mxu1  ;;  %14940 = vmatprep.mubr.msk.bf16.mxu0 %vm624_vm1, %v8961_v10  ;;  %v6568_v13 = vpop.f32.mrf.mxu0  ;;  %v18456_v49 = vld [vmem:[#allocation3 + $0x68] sm:$0xf]  ;;  %v18462_v59 = vld [vmem:[#allocation3 + $0x6c] sm:$0xf]  ;;  %v13221_v62 = vcombine.low %v19812_v52, %v18218_v54 }
 0x2f7   : > { %v6306_v56 = vmax.f32 %v6290_v38, 0.0  ;;  %v18427_v21 = vadd.f32 %v6847_v24, %v6553_v11  ;;  %v8976_v34 = vrot.slane %v8974_v25, 1  ;;  %v13220_v11 = vcombine.low %v19811_v18, %v19810_v26 }
 0x2f8   : > { %v14753_v2 = vpop.f32.mrf.mxu1  ;;  %v14731_v33 = vpop.f32.mrf.mxu0  ;;  %v13222_v24 = vcombine.low %v18220_v4, %v18305_v55 }
 0x2f9   : > { %v13656_v36 = vpack.c.bf16 %v6306_v56, %v6306_v56  ;;  %v18431_v46 = vadd.f32 %v14753_v2, %v14727_v19  ;;  %v8977_v45 = vsel %vm1167_vm3, %v8972_v29, %v8976_v34  ;;  %v8984_v19 = vrot.slane %v8982_v23, 1  ;;  %v18480_v2 = vld [vmem:[#allocation3 + $0x74] sm:$0xf]  ;;  %v18483_v29 = vld [vmem:[#allocation3 + $0x70] sm:$0xf] }
 0x2fa   : > { %v6850_v50 = vpop.f32.mrf.mxu1  ;;  %v6571_v57 = vpop.f32.mrf.mxu0  ;;  %v8980_v35 = vor.u32 %v8978_v58, %v8976_v34  ;;  %v13333_v56 = vcombine.low %v9371_v43, %v18454_v9  ;;  %v15586_v34 = vld [vmem:[#allocation3 + $0x7c] ss:$0 sps:$4 sm:$0x11]   ;;  %v13335_v26 = vcombine.low %v18483_v29, %v18480_v2 }
 0x2fb   : > { %6386 = vst.msk [vmem:[#allocation3 + $0xc4] sm:$0xf] %vm273_vm0, %v13656_v36  ;;  %v18436_v14 = vadd.f32 %v6850_v50, %v6556_v44  ;;  %v8988_v38 = vor.u32 %v8986_v61, %v8984_v19  ;;  %v8994_v36 = vshrl.u32 %v18433_v1, 16  ;;  %v13223_v1 = vcombine.low %v18311_v42, %v18240_v31 }
 0x2fc   : > { %v14756_v6 = vpop.f32.mrf.mxu1  ;;  %v14734_v39 = vpop.f32.mrf.mxu0  ;;  %14919 = vmatmul.mubr.msk.bf16.gmra.mxu1 %vm624_vm1, %v13219_v8  ;;  %v8985_v27 = vsel %vm1167_vm3, %v8980_v35, %v8984_v19  ;;  %v9639_v7 = vshrl.u32 %v13333_v56, 16  ;;  %v9642_v50 = vshll.u32 %v13333_v56, 16  ;;  %v9008_v8 = vrot.slane %v9006_v37, 1  ;;  %v18511_v56 = vld [vmem:[#allocation9 + $0x20] sm:$0xff]  }
 0x2fd   : > { %v18443_v20 = vadd.f32 %v14756_v6, %v14730_v5  ;;  %14941 = vmatmul.mubr.msk.bf16.gmra.mxu0 %vm624_vm1, %v8969_v15  ;;  %14922 = vmatprep.mubr.msk.bf16.mxu1 %vm624_vm1, %v13220_v11  ;;  %v8998_v5 = vshll.u32 %v15579_v48, 16  ;;  %v8993_v54 = vsel %vm1167_vm3, %v8988_v38, %v8992_v30  ;;  %v8996_v6 = vor.u32 %v8994_v36, %v8992_v30 }
 0x2fe   : > { %v6862_v63 = vpop.f32.mrf.mxu1  ;;  %14944 = vmatprep.mubr.msk.bf16.mxu0 %vm624_vm1, %v8977_v45  ;;  %v6583_v53 = vpop.f32.mrf.mxu0  ;;  %v9377_v45 = vld [vmem:[#allocation3 + $0x78] sm:$0xf]  ;;  %v13308_v19 = vcombine.low %v18454_v9, %v18456_v49  ;;  %v9641_v48 = vrot.slane %v9639_v7, 3  ;;  %v9644_v43 = vrot.slane %v9642_v50, 4  ;;  %v9014_v31 = vshll.u32 %v15586_v34, 16 }
 0x2ff   : > { %v18451_v3 = vadd.f32 %v6862_v63, %v6568_v13  ;;  %v13334_v13 = vcombine.low %v18456_v49, %v18462_v59  ;;  %v9000_v55 = vrot.slane %v8998_v5, 1  ;;  %v9010_v30 = vshrl.u32 %v18460_v47, 16  ;;  %v18505_v5 = vld [vmem:[#allocation3 + $0x80] sm:$0xf] }
 0x300   : > { %v14757_v41 = vpop.f32.mrf.mxu1  ;;  %v14735_v40 = vpop.f32.mrf.mxu0  ;;  %v13336_v9 = vcombine.low %v9377_v45, %v18491_v32  ;;  %v9656_v49 = vshrl.u32 %v13335_v26, 16  ;;  %v9645_v38 = vor.u32 %v9644_v43, %v9641_v48  ;;  %v13310_v34 = vcombine.low %v18480_v2, %v9377_v45 }
 0x301   : > { %v18458_v44 = vadd.f32 %v14757_v41, %v14731_v33  ;;  %v9647_v57 = vshrl.u32 %v13334_v13, 16  ;;  %v9650_v23 = vshll.u32 %v13334_v13, 16  ;;  %v9001_v53 = vsel %vm1167_vm3, %v8996_v6, %v9000_v55 }
 0x302   : > { %v6865_v60 = vpop.f32.mrf.mxu1  ;;  %v6585_v0 = vpop.f32.mrf.mxu0  ;;  %v9012_v52 = vor.u32 %v9010_v30, %v9008_v8  ;;  %v13309_v13 = vcombine.low %v18462_v59, %v18483_v29  ;;  %v9658_v37 = vrot.slane %v9656_v49, 3  ;;  %v9668_v50 = vshll.u32 %v13336_v9, 16 }
 0x303   : > { %v9649_v42 = vrot.slane %v9647_v57, 3  ;;  %v9652_v40 = vrot.slane %v9650_v23, 4 }
 0x304   : > { %v14760_v10 = vpop.f32.mrf.mxu1  ;;  %v14738_v25 = vpop.f32.mrf.mxu0  ;;  %14923 = vmatmul.mubr.msk.bf16.gmra.mxu1 %vm624_vm1, %v13221_v62 }
 0x305   : > { %v18472_v16 = vadd.f32 %v14760_v10, %v14734_v39  ;;  %14945 = vmatmul.mubr.msk.bf16.gmra.mxu0 %vm624_vm1, %v8985_v27  ;;  %14926 = vmatprep.mubr.msk.bf16.mxu1 %vm624_vm1, %v13222_v24  ;;  %v9004_v39 = vor.u32 %v9002_v51, %v9000_v55  ;;  %v18507_v10 = vld [vmem:[#allocation3 + $0x84] sm:$0xf]  ;;  %v9016_v24 = vrot.slane %v9014_v31, 1  ;;  %v18515_v55 = vld [vmem:[#allocation3 + $0x8c] sm:$0xf] }
 0x306   : > { %v6877_v17 = vpop.f32.mrf.mxu1  ;;  %14948 = vmatprep.mubr.msk.bf16.mxu0 %vm624_vm1, %v8993_v54  ;;  %v6597_v4 = vpop.f32.mrf.mxu0  ;;  %v9653_v54 = vor.u32 %v9652_v40, %v9649_v42  ;;  %v13337_v57 = vcombine.low %v18505_v5, %v18507_v10  ;;  %v9383_v40 = vld [vmem:[#allocation3 + $0x90] sm:$0xf] }
 0x307   : > { %v9009_v41 = vsel %vm1167_vm3, %v9004_v39, %v9008_v8  ;;  %v9665_v17 = vshrl.u32 %v13336_v9, 16  ;;  %v9017_v51 = vsel %vm1167_vm3, %v9012_v52, %v9016_v24  ;;  %v18541_v52 = vld [vmem:[#allocation3 + $0x9c] sm:$0xf] }
 0x308   : > { %v14761_v33 = vpop.f32.mrf.mxu1  ;;  %v14739_v22 = vpop.f32.mrf.mxu0  ;;  %v9654_v59 = vsel %vm797_vm2, %v9645_v38, %v9653_v54  ;;  %v9674_v39 = vshrl.u32 %v13337_v57, 16  ;;  %v18543_v38 = vld [vmem:[#allocation9 + $0x28] sm:$0xff]  }
 0x30a   : > { %v6879_v15 = vpop.f32.mrf.mxu1  ;;  %v6600_v11 = vpop.f32.mrf.mxu0 }
 0x30b   : > { %v18487_v18 = vadd.f32 %v6879_v15, %v6585_v0  ;;  %v9659_v0 = vshll.u32 %v13335_v26, 16  ;;  %v9667_v15 = vrot.slane %v9665_v17, 3 }
 0x30c   : > { %v14764_v63 = vpop.f32.mrf.mxu1  ;;  %v14742_v58 = vpop.f32.mrf.mxu0  ;;  %14927 = vmatmul.mubr.msk.bf16.gmra.mxu1 %vm624_vm1, %v13223_v1  ;;  %v9670_v1 = vrot.slane %v9668_v50, 4 }
 0x30d   : > { %14949 = vmatmul.mubr.msk.bf16.gmra.mxu0 %vm624_vm1, %v9001_v53  ;;  %14958 = vmatprep.mubr.msk.bf16.mxu1 %vm624_vm1, %v13308_v19  ;;  %v9661_v7 = vrot.slane %v9659_v0, 4  ;;  %v9677_v63 = vshll.u32 %v13337_v57, 16  ;;  %v9385_v0 = vld [vmem:[#allocation3 + $0x98] sm:$0xf] }
 0x30e   : > { %v6891_v61 = vpop.f32.mrf.mxu1  ;;  %14952 = vmatprep.mubr.msk.bf16.mxu0 %vm624_vm1, %v9009_v41  ;;  %v6612_v60 = vpop.f32.mrf.mxu0  ;;  %v13311_v41 = vcombine.low %v18491_v32, %v18505_v5  ;;  %v9671_v42 = vor.u32 %v9670_v1, %v9667_v15  ;;  %v9387_v15 = vld [vmem:[#allocation3 + $0xa0] sm:$0xf] }
 0x30f   : > { %v18503_v35 = vadd.f32 %v6891_v61, %v6597_v4  ;;  %v9381_v4 = vld [vmem:[#allocation3 + $0x88] sm:$0xf]  ;;  %v9662_v53 = vor.u32 %v9661_v7, %v9658_v37  ;;  %v9676_v61 = vrot.slane %v9674_v39, 3  ;;  %v9679_v30 = vrot.slane %v9677_v63, 4  ;;  %v18565_v39 = vld [vmem:[#allocation3 + $0xac] sm:$0xf] }
 0x310   : > { %v14765_v62 = vpop.f32.mrf.mxu1  ;;  %v14743_v47 = vpop.f32.mrf.mxu0  ;;  %v13338_v23 = vcombine.low %v9381_v4, %v18515_v55  ;;  %v13340_v37 = vcombine.low %v9385_v0, %v18541_v52 }
 0x311   : > { %v18509_v27 = vadd.f32 %v14765_v62, %v14739_v22  ;;  %v9663_v49 = vsel %vm797_vm2, %v9653_v54, %v9662_v53  ;;  %v9672_v32 = vsel %vm797_vm2, %v9662_v53, %v9671_v42  ;;  %v9680_v54 = vor.u32 %v9679_v30, %v9676_v61 }
 0x312   : > { %v6894_v25 = vpop.f32.mrf.mxu1  ;;  %v6615_v33 = vpop.f32.mrf.mxu0  ;;  %v9683_v48 = vshrl.u32 %v13338_v23, 16  ;;  %v9686_v43 = vshll.u32 %v13338_v23, 16  ;;  %v18560_v23 = vld [vmem:[#allocation3 + $0xa8] sm:$0xf]  ;;  %v9704_v1 = vshll.u32 %v13340_v37, 16 }
 0x313   : > { %v18517_v36 = vadd.f32 %v6894_v25, %v6600_v11 }
 0x314   : > { %v14768_v22 = vpop.f32.mrf.mxu1  ;;  %v14746_v8 = vpop.f32.mrf.mxu0  ;;  %14959 = vmatmul.mubr.msk.bf16.vlgmr.msra.gmra.mxu1 %vm624_vm1, %v13309_v13  ;;  %v9685_v5 = vrot.slane %v9683_v48, 3  ;;  %v9688_v13 = vrot.slane %v9686_v43, 4 }
 0x315   : > { %v18523_v29 = vadd.f32 %v14768_v22, %v14742_v58  ;;  %14953 = vmatmul.mubr.msk.bf16.gmra.mxu0 %vm624_vm1, %v9017_v51  ;;  %15009 = vmatpush3.bf16.msra.mxu1 %v18350_v12  ;;  %v9384_v58 = vld [vmem:[#allocation3 + $0x94] sm:$0xf]  ;;  %v18556_v22 = vld [vmem:[#allocation3 + $0xa4] sm:$0xf]  ;;  %v13313_v51 = vcombine.low %v18515_v55, %v9383_v40 }
 0x316   : > { %v6906_v6 = vpop.f32.mrf.mxu1  ;;  %14984 = vmatprep.mubr.msk.bf16.mxu0 %vm624_vm1, %v9654_v59  ;;  %v6627_v11 = vpop.f32.mrf.mxu0  ;;  %14962 = vmatprep.mubr.msk.bf16.mxu1 %vm624_vm1, %v13310_v34  ;;  %v13339_v62 = vcombine.low %v9383_v40, %v9384_v58  ;;  %v9689_v57 = vor.u32 %v9688_v13, %v9685_v5  ;;  %v13314_v34 = vcombine.low %v9384_v58, %v9385_v0 }
 0x317   : > { %v18531_v26 = vadd.f32 %v6906_v6, %v6612_v60  ;;  %15060 = vmatprep.subr.bf16.mxu1 %v18511_v56  ;;  %v13312_v60 = vcombine.low %v18507_v10, %v9381_v4  ;;  %v9681_v6 = vsel %vm797_vm2, %v9671_v42, %v9680_v54  ;;  %v9701_v11 = vshrl.u32 %v13340_v37, 16 }
 0x318   : > { %v14769_v2 = vpop.f32.mrf.mxu1  ;;  %v14747_v19 = vpop.f32.mrf.mxu0  ;;  %v9692_v33 = vshrl.u32 %v13339_v62, 16  ;;  %v9695_v7 = vshll.u32 %v13339_v62, 16  ;;  %v9690_v48 = vsel %vm797_vm2, %v9680_v54, %v9689_v57  ;;  %v9706_v42 = vrot.slane %v9704_v1, 4  ;;  %v18584_v62 = vld [vmem:[#allocation3 + $0x64] sm:$0xff]   ;;  %v18613_v1 = vld [vmem:[#allocation3 + $0x6c] sm:$0xff]  }
 0x319   : > { %v18535_v45 = vadd.f32 %v14769_v2, %v14743_v47 }
 0x31a   : > { %v6909_v12 = vpop.f32.mrf.mxu1  ;;  %v6629_v31 = vpop.f32.mrf.mxu0  ;;  %v9694_v55 = vrot.slane %v9692_v33, 3  ;;  %v9697_v2 = vrot.slane %v9695_v7, 4 }
 0x31c   : > { %v14772_v9 = vpop.f32.mrf.mxu1  ;;  %v14778_v24 = vpop.f32.mrf.mxu0  ;;  %14963 = vmatmul.mubr.msk.bf16.gmra.mxu1 %vm624_vm1, %v13311_v41  ;;  %v9698_v30 = vor.u32 %v9697_v2, %v9694_v55 }
 0x31d   : > { %v18545_v47 = vadd.f32 %v14772_v9, %v14746_v8  ;;  %14985 = vmatmul.mubr.msk.bf16.vlgmr.msra.gmra.mxu0 %vm624_vm1, %v9663_v49  ;;  %14966 = vmatprep.mubr.msk.bf16.mxu1 %vm624_vm1, %v13312_v60  ;;  %v18580_v9 = vld [vmem:[#allocation3 + $0xb0] sm:$0xf]  ;;  %v13315_v24 = vcombine.low %v18541_v52, %v9387_v15 }
 0x31e   : > { %v6921_v25 = vpop.f32.mrf.mxu1  ;;  %14988 = vmatprep.mubr.msk.bf16.mxu0 %vm624_vm1, %v9672_v32  ;;  %v7200_v10 = vpop.f32.mrf.mxu0  ;;  %15035 = vmatpush3.bf16.msra.mxu0 %v18396_v28  ;;  %v9699_v52 = vsel %vm797_vm2, %v9689_v57, %v9698_v30 }
 0x31f   : > { %v7287_v17 = vadd.f32 %v7200_v10, %v18427_v21  ;;  %15086 = vmatprep.subr.bf16.mxu0 %v18543_v38  ;;  %v18588_v25 = vld [vmem:[#allocation3 + $0xb4] sm:$0xf] }
 0x320   : > { %v14773_v4 = vpop.f32.mrf.mxu1  ;;  %v14779_v50 = vpop.f32.mrf.mxu0  ;;  %v13343_v33 = vcombine.low %v18580_v9, %v18588_v25 }
 0x321   : > { %v7289_v59 = vadd.f32 %v14779_v50, %v18431_v46  ;;  %v13341_v46 = vcombine.low %v9387_v15, %v18556_v22  ;;  %v18594_v4 = vld [vmem:[#allocation3 + $0xc0] sm:$0xf]  ;;  %v10010_v15 = vshll.u32 %v18584_v62, 16 }
 0x322   : > { %v6923_v8 = vpop.f32.mrf.mxu1  ;;  %v7203_v21 = vpop.f32.mrf.mxu0  ;;  %v9728_v2 = vshrl.u32 %v13343_v33, 16 }
 0x323   : > { %v18562_v28 = vadd.f32 %v6923_v8, %v6629_v31  ;;  %v7288_v63 = vadd.f32 %v7203_v21, %v18436_v14  ;;  %v13342_v14 = vcombine.low %v18560_v23, %v18565_v39  ;;  %v9703_v31 = vrot.slane %v9701_v11, 3 }
 0x324   : > { %v14804_v53 = vpop.f32.mrf.mxu1  ;;  %v14782_v19 = vpop.f32.mrf.mxu0  ;;  %14967 = vmatmul.mubr.msk.bf16.gmra.mxu1 %vm624_vm1, %v13313_v51  ;;  %v9713_v49 = vshll.u32 %v13341_v46, 16 }
 0x325   : > { %14989 = vmatmul.mubr.msk.bf16.gmra.mxu0 %vm624_vm1, %v9681_v6  ;;  %v7291_v43 = vadd.f32 %v14782_v19, %v18443_v20  ;;  %14970 = vmatprep.mubr.msk.bf16.mxu1 %vm624_vm1, %v13314_v34  ;;  %v9710_v20 = vshrl.u32 %v13341_v46, 16  ;;  %v9719_v13 = vshrl.u32 %v13342_v14, 16  ;;  %v9707_v37 = vor.u32 %v9706_v42, %v9703_v31 }
 0x326   : > { %v7585_v58 = vpop.f32.mrf.mxu1  ;;  %14992 = vmatprep.mubr.msk.bf16.mxu0 %vm624_vm1, %v9690_v48  ;;  %v7215_v41 = vpop.f32.mrf.mxu0  ;;  %v9715_v51 = vrot.slane %v9713_v49, 4  ;;  %v9731_v46 = vshll.u32 %v13343_v33, 16  ;;  %v10012_v42 = vrot.slane %v10010_v15, 1 }
 0x327   : > { %v18577_v12 = vadd.f32 %v7585_v58, %v7287_v17  ;;  %v7290_v40 = vadd.f32 %v7215_v41, %v18451_v3  ;;  %v18590_v3 = vld [vmem:[#allocation3 + $0xbc] sm:$0xf]  ;;  %v9722_v17 = vshll.u32 %v13342_v14, 16  ;;  %v9712_v50 = vrot.slane %v9710_v20, 3 }
 0x328   : > { %v14805_v61 = vpop.f32.mrf.mxu1  ;;  %v14783_v0 = vpop.f32.mrf.mxu0  ;;  %v9708_v21 = vsel %vm797_vm2, %v9698_v30, %v9707_v37  ;;  %v10015_v20 = vshll.u32 %v18613_v1, 16 }
 0x329   : > { %v18582_v60 = vadd.f32 %v14805_v61, %v7289_v59  ;;  %v7292_v32 = vadd.f32 %v14783_v0, %v18458_v44  ;;  %v13316_v44 = vcombine.low %v18556_v22, %v18560_v23  ;;  %v9393_v59 = vld [vmem:[#allocation3 + $0xb8] sm:$0xf]  ;;  %v9721_v22 = vrot.slane %v9719_v13, 3  ;;  %v18621_v61 = vld [vmem:[#allocation3 + $0x74] sm:$0xf] }
 0x32a   : > { %v7588_v5 = vpop.f32.mrf.mxu1  ;;  %v7218_v54 = vpop.f32.mrf.mxu0  ;;  %v13344_v6 = vcombine.low %v9393_v59, %v18590_v3  ;;  %v13345_v23 = vcombine.low %v18594_v4, %v18594_v4  ;;  %v9724_v55 = vrot.slane %v9722_v17, 4  ;;  %v9716_v48 = vor.u32 %v9715_v51, %v9712_v50 }
 0x32b   : > { %v18592_v10 = vadd.f32 %v7588_v5, %v7288_v63  ;;  %v9730_v13 = vrot.slane %v9728_v2, 3  ;;  %v9733_v54 = vrot.slane %v9731_v46, 4 }
 0x32c   : > { %v14808_v7 = vpop.f32.mrf.mxu1  ;;  %v14786_v34 = vpop.f32.mrf.mxu0  ;;  %14971 = vmatmul.mubr.msk.bf16.gmra.mxu1 %vm624_vm1, %v13315_v24  ;;  %v9737_v41 = vshrl.u32 %v13344_v6, 16  ;;  %v9740_v31 = vshll.u32 %v13344_v6, 16  ;;  %v9746_v49 = vshrl.u32 %v13345_v23, 16  ;;  %v9749_v0 = vshll.u32 %v13345_v23, 16 }
 0x32d   : > { %v18601_v8 = vadd.f32 %v14808_v7, %v7291_v43  ;;  %14993 = vmatmul.mubr.msk.bf16.gmra.mxu0 %vm624_vm1, %v9699_v52  ;;  %v7294_v57 = vadd.f32 %v14786_v34, %v18472_v16  ;;  %14974 = vmatprep.mubr.msk.bf16.mxu1 %vm624_vm1, %v13316_v44  ;;  %v10286_v16 = vld [vmem:[#allocation3 + $0x6c] sm:$0x8]  ;;  %v18617_v43 = vld [vmem:[#allocation3 + $0x70] sm:$0xf]  ;;  %v9725_v5 = vor.u32 %v9724_v55, %v9721_v22  ;;  %v18647_v55 = vld [vmem:[#allocation3 + $0x7c] sm:$0xf] }
 0x32e   : > { %v7600_v11 = vpop.f32.mrf.mxu1  ;;  %14996 = vmatprep.mubr.msk.bf16.mxu0 %vm624_vm1, %v9708_v21  ;;  %v7230_v53 = vpop.f32.mrf.mxu0  ;;  %v13385_v17 = vcombine.low %v10286_v16, %v18617_v43  ;;  %v9717_v52 = vsel %vm797_vm2, %v9707_v37, %v9716_v48  ;;  %v9739_v34 = vrot.slane %v9737_v41, 3  ;;  %v9742_v21 = vrot.slane %v9740_v31, 4 }
 0x32f   : > { %v18615_v63 = vadd.f32 %v7600_v11, %v7290_v40  ;;  %v13317_v40 = vcombine.low %v18565_v39, %v18580_v9  ;;  %v13318_v39 = vcombine.low %v18588_v25, %v9393_v59  ;;  %v9726_v51 = vsel %vm797_vm2, %v9716_v48, %v9725_v5  ;;  %v18641_v59 = vld [vmem:[#allocation3 + $0x80] sm:$0xf]  ;;  %v18644_v11 = vld [vmem:[#allocation3 + $0x74] sm:$0xff]  }
 0x330   : > { %v14809_v19 = vpop.f32.mrf.mxu1  ;;  %v14787_v14 = vpop.f32.mrf.mxu0  ;;  %v9748_v25 = vrot.slane %v9746_v49, 3  ;;  %v9751_v37 = vrot.slane %v9749_v0, 4  ;;  %v9734_v15 = vor.u32 %v9733_v54, %v9730_v13  ;;  %v10377_v22 = vshrl.u32 %v13385_v17, 16  ;;  %v18655_v0 = vld [vmem:[#allocation3 + $0x7c] sm:$0xff]  }
 0x331   : > { %v18619_v58 = vadd.f32 %v14809_v19, %v7292_v32  ;;  %v18626_v32 = vld [vmem:[#allocation3 + $0x78] sm:$0xf]  ;;  %v10380_v2 = vshll.u32 %v13385_v17, 16  ;;  %v9743_v16 = vor.u32 %v9742_v21, %v9739_v34  ;;  %v10017_v41 = vrot.slane %v10015_v20, 1  ;;  %v18661_v17 = vld [vmem:[#allocation3 + $0x84] sm:$0xf] }
 0x332   : > { %v7603_v30 = vpop.f32.mrf.mxu1  ;;  %v7232_v24 = vpop.f32.mrf.mxu0  ;;  %v13386_v9 = vcombine.low %v18621_v61, %v18626_v32  ;;  %v13387_v31 = vcombine.low %v18647_v55, %v18641_v59  ;;  %v9752_v49 = vor.u32 %v9751_v37, %v9748_v25  ;;  %v10023_v20 = vshll.u32 %v18644_v11, 16 }
 0x333   : > { %v7293_v33 = vadd.f32 %v7232_v24, %v18487_v18  ;;  %v10379_v54 = vrot.slane %v10377_v22, 3  ;;  %v10031_v21 = vshll.u32 %v18655_v0, 16 }
 0x334   : > { %v14812_v7 = vpop.f32.mrf.mxu1  ;;  %v14790_v50 = vpop.f32.mrf.mxu0  ;;  %14975 = vmatmul.mubr.msk.bf16.gmra.mxu1 %vm624_vm1, %v13317_v40  ;;  %v10385_v46 = vshrl.u32 %v13386_v9, 16  ;;  %v10388_v19 = vshll.u32 %v13386_v9, 16  ;;  %v10394_v9 = vshrl.u32 %v13387_v31, 16 }
 0x335   : > { %v18634_v44 = vadd.f32 %v14812_v7, %v7294_v57  ;;  %14997 = vmatmul.mubr.msk.bf16.gmra.mxu0 %vm624_vm1, %v9717_v52  ;;  %14978 = vmatprep.mubr.msk.bf16.mxu1 %vm624_vm1, %v13318_v39  ;;  %v10008_v57 = vshrl.u32 %v18584_v62, 16  ;;  %v13319_v62 = vcombine.low %v18590_v3, %v18594_v4  ;;  %v18663_v7 = vld [vmem:[#allocation3 + $0x88] sm:$0xf]  ;;  %v10382_v4 = vrot.slane %v10380_v2, 4 }
 0x336   : > { %v7615_v18 = vpop.f32.mrf.mxu1  ;;  %15000 = vmatprep.mubr.msk.bf16.mxu0 %vm624_vm1, %v9726_v51  ;;  %v7244_v6 = vpop.f32.mrf.mxu0  ;;  %v10390_v52 = vrot.slane %v10388_v19, 4  ;;  %v10397_v50 = vshll.u32 %v13387_v31, 16  ;;  %v18670_v51 = vld [vmem:[#allocation3 + $0x84] sm:$0xff]   ;;  %v18684_v19 = vld [vmem:[#allocation3 + $0x8c] sm:$0xf]  ;;  %v10396_v31 = vrot.slane %v10394_v9, 3 }
 0x337   : > { %v7295_v23 = vadd.f32 %v7244_v6, %v18503_v35  ;;  %v10013_v14 = vor.u32 %v10012_v42, %v10008_v57  ;;  %v10019_v35 = vshrl.u32 %v18613_v1, 16  ;;  %v9735_v42 = vsel %vm797_vm2, %v9725_v5, %v9734_v15 }
 0x338   : > { %v14813_v53 = vpop.f32.mrf.mxu1  ;;  %v14791_v48 = vpop.f32.mrf.mxu0  ;;  %v10387_v1 = vrot.slane %v10385_v46, 3  ;;  %v9744_v5 = vsel %vm797_vm2, %v9734_v15, %v9743_v16  ;;  %v13388_v18 = vcombine.low %v18661_v17, %v18663_v7  ;;  %v10025_v15 = vrot.slane %v10023_v20, 1  ;;  %v18682_v46 = vld [vmem:[#allocation3 + $0x8c] sm:$0xff]  }
 0x339   : > { %v7297_v40 = vadd.f32 %v14791_v48, %v18509_v27  ;;  %v10021_v6 = vor.u32 %v10019_v35, %v10017_v41  ;;  %v10383_v53 = vor.u32 %v10382_v4, %v10379_v54  ;;  %v18686_v48 = vld [vmem:[#allocation3 + $0x90] sm:$0xf]  ;;  %v10033_v35 = vrot.slane %v10031_v21, 1  ;;  %v18700_v4 = vld [vmem:[#allocation9 + $0x30] sm:$0xff]  }
 0x33a   : > { %v7617_v30 = vpop.f32.mrf.mxu1  ;;  %v7247_v13 = vpop.f32.mrf.mxu0  ;;  %v10391_v2 = vor.u32 %v10390_v52, %v10387_v1  ;;  %v10406_v54 = vshll.u32 %v13388_v18, 16 }
 0x33b   : > { %v18657_v24 = vadd.f32 %v7617_v30, %v7293_v33  ;;  %v7296_v27 = vadd.f32 %v7247_v13, %v18517_v36  ;;  %v10018_v33 = vsel %vm1167_vm3, %v10013_v14, %v10017_v41  ;;  %v10039_v41 = vshll.u32 %v18670_v51, 16  ;;  %v18693_v13 = vld [vmem:[#allocation3 + $0x94] sm:$0xf] }
 0x33c   : > { %v14816_v3 = vpop.f32.mrf.mxu1  ;;  %v14794_v39 = vpop.f32.mrf.mxu0  ;;  %14979 = vmatmul.mubr.msk.bf16.gmra.mxu1 %vm624_vm1, %v13319_v62  ;;  %v10399_v62 = vrot.slane %v10397_v50, 4 }
 0x33d   : > { %15001 = vmatmul.mubr.msk.bf16.gmra.mxu0 %vm624_vm1, %v9735_v42  ;;  %v7299_v34 = vadd.f32 %v14794_v39, %v18523_v29  ;;  %15010 = vmatprep.mubr.msk.bf16.mxu1 %vm624_vm1, %v10018_v33  ;;  %v9753_v29 = vsel %vm797_vm2, %v9743_v16, %v9752_v49  ;;  %v10027_v16 = vshrl.u32 %v18644_v11, 16  ;;  %v10403_v49 = vshrl.u32 %v13388_v18, 16 }
 0x33e   : > { %v7629_v36 = vpop.f32.mrf.mxu1  ;;  %15004 = vmatprep.mubr.msk.bf16.mxu0 %vm624_vm1, %v9744_v5  ;;  %v7259_v37 = vpop.f32.mrf.mxu0  ;;  %v13389_v3 = vcombine.low %v18684_v19, %v18686_v48  ;;  %v10035_v11 = vshrl.u32 %v18655_v0, 16  ;;  %v10047_v39 = vshll.u32 %v18682_v46, 16  ;;  %v18705_v5 = vld [vmem:[#allocation3 + $0x98] sm:$0xf]  ;;  %v10400_v9 = vor.u32 %v10399_v62, %v10396_v31  ;;  %v18724_v62 = vld [vmem:[#allocation3 + $0x9c] sm:$0xff]  }
 0x33f   : > { %v18678_v25 = vadd.f32 %v7629_v36, %v7295_v23  ;;  %v7298_v57 = vadd.f32 %v7259_v37, %v18531_v26  ;;  %v10029_v52 = vor.u32 %v10027_v16, %v10025_v15  ;;  %v10041_v50 = vrot.slane %v10039_v41, 1  ;;  %v18726_v41 = vld [vmem:[#allocation3 + $0xa0] sm:$0xf] }
 0x340   : > { %v14817_v22 = vpop.f32.mrf.mxu1  ;;  %v14795_v23 = vpop.f32.mrf.mxu0  ;;  %v13390_v36 = vcombine.low %v18693_v13, %v18705_v5  ;;  %v10405_v37 = vrot.slane %v10403_v49, 3  ;;  %v10043_v31 = vshrl.u32 %v18670_v51, 16  ;;  %v10401_v16 = vsel %vm797_vm2, %v10391_v2, %v10400_v9 }
 0x341   : > { %v18688_v14 = vadd.f32 %v14817_v22, %v7297_v40  ;;  %v7300_v26 = vadd.f32 %v14795_v23, %v18535_v45  ;;  %v10026_v40 = vsel %vm1167_vm3, %v10021_v6, %v10025_v15  ;;  %v10392_v45 = vsel %vm797_vm2, %v10383_v53, %v10391_v2  ;;  %v18717_v6 = vld [vmem:[#allocation3 + $0x94] sm:$0xff]  }
 0x342   : > { %v7632_v30 = vpop.f32.mrf.mxu1  ;;  %v7262_v20 = vpop.f32.mrf.mxu0  ;;  %v10034_v0 = vsel %vm1167_vm3, %v10029_v52, %v10033_v35  ;;  %v10412_v53 = vshrl.u32 %v13389_v3, 16  ;;  %v10415_v23 = vshll.u32 %v13389_v3, 16  ;;  %v10424_v49 = vshll.u32 %v13390_v36, 16 }
 0x343   : > { %v18695_v42 = vadd.f32 %v7632_v30, %v7296_v27  ;;  %v18731_v20 = vld [vmem:[#allocation3 + $0xa4] sm:$0xf]  ;;  %v10045_v3 = vor.u32 %v10043_v31, %v10041_v50  ;;  %v10051_v51 = vshrl.u32 %v18682_v46, 16  ;;  %v10063_v46 = vshll.u32 %v18724_v62, 16 }
 0x344   : > { %v14820_v1 = vpop.f32.mrf.mxu1  ;;  %v14798_v33 = vpop.f32.mrf.mxu0  ;;  %15011 = vmatmul.mubr.msk.bf16.vlgmr.msra.gmra.mxu1 %vm624_vm1, %v10026_v40 }
 0x345   : > { %v18707_v27 = vadd.f32 %v14820_v1, %v7299_v34  ;;  %15005 = vmatmul.mubr.msk.bf16.gmra.mxu0 %vm624_vm1, %v9753_v29  ;;  %v7302_v21 = vadd.f32 %v14798_v33, %v18545_v47  ;;  %15061 = vmatpush3.bf16.msra.mxu1 %v18511_v56  ;;  %v10037_v34 = vor.u32 %v10035_v11, %v10033_v35  ;;  %v10408_v29 = vrot.slane %v10406_v54, 4  ;;  %v18740_v33 = vld [vmem:[#allocation3 + $0xa8] sm:$0xf] }
 0x346   : > { %v7644_v18 = vpop.f32.mrf.mxu1  ;;  %15036 = vmatprep.mubr.msk.bf16.mxu0 %vm624_vm1, %v10392_v45  ;;  %v7274_v22 = vpop.f32.mrf.mxu0  ;;  %15014 = vmatprep.mubr.msk.bf16.mxu1 %vm624_vm1, %v10034_v0  ;;  %v10049_v56 = vrot.slane %v10047_v39, 1  ;;  %v10421_v35 = vshrl.u32 %v13390_v36, 16  ;;  %v10055_v1 = vshll.u32 %v18717_v6, 16  ;;  %v18736_v45 = vld [vmem:[#allocation3 + $0x9c] sm:$0xf]  ;;  %v10414_v11 = vrot.slane %v10412_v53, 3 }
 0x347   : > { %v18719_v15 = vadd.f32 %v7644_v18, %v7298_v57  ;;  %15112 = vmatprep.subr.bf16.mxu1 %v18700_v4  ;;  %v10042_v54 = vsel %vm1167_vm3, %v10037_v34, %v10041_v50  ;;  %v10417_v39 = vrot.slane %v10415_v23, 4  ;;  %v13391_v2 = vcombine.low %v18736_v45, %v18726_v41  ;;  %v18747_v34 = vld [vmem:[#allocation9 + $0x38] sm:$0xff]  }
 0x348   : > { %v14821_v47 = vpop.f32.mrf.mxu1  ;;  %v14799_v57 = vpop.f32.mrf.mxu0  ;;  %v10050_v50 = vsel %vm1167_vm3, %v10045_v3, %v10049_v56  ;;  %v13392_v0 = vcombine.low %v18731_v20, %v18740_v33  ;;  %v10426_v53 = vrot.slane %v10424_v49, 4  ;;  %v18754_v23 = vld [vmem:[#allocation3 + $0xa4] sm:$0xff]   ;;  %v10057_v31 = vrot.slane %v10055_v1, 1 }
 0x349   : > { %v18728_v30 = vadd.f32 %v14821_v47, %v7300_v26  ;;  %v10409_v26 = vor.u32 %v10408_v29, %v10405_v37  ;;  %v10059_v3 = vshrl.u32 %v18717_v6, 16  ;;  %v10433_v49 = vshll.u32 %v13391_v2, 16  ;;  %v18767_v6 = vld [vmem:[#allocation3 + $0xac] sm:$0xff]  }
 0x34a   : > { %v7647_v40 = vpop.f32.mrf.mxu1  ;;  %v7276_v52 = vpop.f32.mrf.mxu0 }
 0x34b   : > { %v7301_v36 = vadd.f32 %v7276_v52, %v18562_v28  ;;  %v10410_v29 = vsel %vm797_vm2, %v10400_v9, %v10409_v26  ;;  %v10423_v28 = vrot.slane %v10421_v35, 3  ;;  %v10418_v40 = vor.u32 %v10417_v39, %v10414_v11 }
 0x34c   : > { %v14824_v18 = vpop.f32.mrf.mxu1  ;;  %v14830_v22 = vpop.f32.mrf.mxu0  ;;  %15015 = vmatmul.mubr.msk.bf16.gmra.mxu1 %vm624_vm1, %v10042_v54  ;;  %v10439_v54 = vshrl.u32 %v13392_v0, 16  ;;  %v10442_v52 = vshll.u32 %v13392_v0, 16  ;;  %v10061_v39 = vor.u32 %v10059_v3, %v10057_v31  ;;  %v18772_v0 = vld [vmem:[#allocation3 + $0xac] sm:$0xf] }
 0x34d   : > { %v18749_v37 = vadd.f32 %v14824_v18, %v7302_v21  ;;  %15037 = vmatmul.mubr.msk.bf16.vlgmr.msra.gmra.mxu0 %vm624_vm1, %v10401_v16  ;;  %15018 = vmatprep.mubr.msk.bf16.mxu1 %vm624_vm1, %v10050_v50  ;;  %v10053_v21 = vor.u32 %v10051_v51, %v10049_v56  ;;  %v10430_v16 = vshrl.u32 %v13391_v2, 16  ;;  %v18761_v18 = vld [vmem:[#allocation3 + $0xb0] sm:$0xf]  ;;  %v18764_v1 = vor.u32 %v10426_v53, %v10423_v28 }
 0x34e   : > { %v7659_v47 = vpop.f32.mrf.mxu1  ;;  %15040 = vmatprep.mubr.msk.bf16.mxu0 %vm624_vm1, %v10410_v29  ;;  %v7778_v57 = vpop.f32.mrf.mxu0  ;;  %15087 = vmatpush3.bf16.msra.mxu0 %v18543_v38  ;;  %19813 = vst [vmem:[#allocation23_spill] sm:$0xff] %v18761_v18  ;;  %v10065_v56 = vrot.slane %v10063_v46, 1  ;;  %v10071_v51 = vshll.u32 %v18754_v23, 16  ;;  %v10067_v2 = vshrl.u32 %v18724_v62, 16  ;;  %v10419_v28 = vsel %vm797_vm2, %v10409_v26, %v10418_v40 }
 0x34f   : > { %v7865_v9 = vadd.f32 %v7778_v57, %v18577_v12  ;;  %15138 = vmatprep.subr.bf16.mxu0 %v18747_v34  ;;  %v10058_v12 = vsel %vm1167_vm3, %v10053_v21, %v10057_v31  ;;  %v10432_v46 = vrot.slane %v10430_v16, 3  ;;  %v13393_v53 = vcombine.low %v18772_v0, %v18761_v18  ;;  %v18779_v47 = vld [vmem:[#allocation3 + $0xb4] sm:$0xf] }
 0x350   : > { %v14825_v35 = vpop.f32.mrf.mxu1  ;;  %v14831_v50 = vpop.f32.mrf.mxu0  ;;  %19814 = vst [vmem:[#allocation22_spill] sm:$0xff] %v18779_v47  ;;  %v10435_v21 = vrot.slane %v10433_v49, 4  ;;  %v10441_v62 = vrot.slane %v10439_v54, 3  ;;  %v10444_v3 = vrot.slane %v10442_v52, 4  ;;  %v10428_v26 = vsel %vm797_vm2, %v10418_v40, %v18764_v1  ;;  %v18797_v52 = vld [vmem:[#allocation3 + $0xbc] sm:$0xff]  }
 0x351   : > { %v7867_v38 = vadd.f32 %v14831_v50, %v18582_v60  ;;  %v18781_v60 = vld [vmem:[#allocation3 + $0xb8] sm:$0xf]  ;;  %v10073_v16 = vrot.slane %v10071_v51, 1  ;;  %v10079_v50 = vshll.u32 %v18767_v6, 16  ;;  %v10069_v51 = vor.u32 %v10067_v2, %v10065_v56 }
 0x352   : > { %v7661_v11 = vpop.f32.mrf.mxu1  ;;  %v7781_v29 = vpop.f32.mrf.mxu0  ;;  %19815 = vst [vmem:[#allocation35_spill] sm:$0xff] %v18781_v60  ;;  %v13394_v54 = vcombine.low %v18779_v47, %v18781_v60 }
 0x353   : > { %v18774_v22 = vadd.f32 %v7661_v11, %v7301_v36  ;;  %v7866_v57 = vadd.f32 %v7781_v29, %v18592_v10  ;;  %v10066_v36 = vsel %vm1167_vm3, %v10061_v39, %v10065_v56  ;;  %v18790_v11 = vld [vmem:[#allocation3 + $0xb4] sm:$0xff]   ;;  %v10448_v39 = vshrl.u32 %v13393_v53, 16  ;;  %v18809_v56 = vld [vmem:[#allocation3 + $0xc0] sm:$0xf] }
 0x354   : > { %v14856_v31 = vpop.f32.mrf.mxu1  ;;  %v14834_v35 = vpop.f32.mrf.mxu0  ;;  %15019 = vmatmul.mubr.msk.bf16.gmra.mxu1 %vm624_vm1, %v10058_v12  ;;  %v10451_v29 = vshll.u32 %v13393_v53, 16  ;;  %v10074_v60 = vsel %vm1167_vm3, %v10069_v51, %v10073_v16  ;;  %v10081_v47 = vrot.slane %v10079_v50, 1 }
 0x355   : > { %15041 = vmatmul.mubr.msk.bf16.gmra.mxu0 %vm624_vm1, %v10419_v28  ;;  %v7869_v10 = vadd.f32 %v14834_v35, %v18601_v8  ;;  %15022 = vmatprep.mubr.msk.bf16.mxu1 %vm624_vm1, %v10066_v36  ;;  %v10436_v8 = vor.u32 %v10435_v21, %v10432_v46  ;;  %v10445_v35 = vor.u32 %v10444_v3, %v10441_v62  ;;  %v10457_v46 = vshrl.u32 %v13394_v54, 16 }
 0x356   : > { %v8147_v49 = vpop.f32.mrf.mxu1  ;;  %15044 = vmatprep.mubr.msk.bf16.mxu0 %vm624_vm1, %v10428_v26  ;;  %v7793_v12 = vpop.f32.mrf.mxu0  ;;  %v10075_v26 = vshrl.u32 %v18754_v23, 16  ;;  %v10095_v21 = vshll.u32 %v18797_v52, 16  ;;  %v18813_v23 = vld [vmem:[#allocation3 + $0xc4] sm:$0xf]  ;;  %v10450_v3 = vrot.slane %v10448_v39, 3  ;;  %v10453_v50 = vrot.slane %v10451_v29, 4 }
 0x357   : > { %v18799_v40 = vadd.f32 %v8147_v49, %v7865_v9  ;;  %v7868_v28 = vadd.f32 %v7793_v12, %v18615_v63  ;;  %v10087_v9 = vshll.u32 %v18790_v11, 16  ;;  %v18807_v49 = vld [vmem:[#allocation3 + $0xbc] sm:$0xf]  ;;  %v10460_v12 = vshll.u32 %v13394_v54, 16 }
 0x358   : > { %v14857_v31 = vpop.f32.mrf.mxu1  ;;  %v14835_v36 = vpop.f32.mrf.mxu0  ;;  %v10077_v53 = vor.u32 %v10075_v26, %v10073_v16  ;;  %v13395_v16 = vcombine.low %v18807_v49, %v18809_v56  ;;  %v18823_v26 = vld [vmem:[#allocation3 + $0xc8] sm:$0xf] }
 0x359   : > { %19816 = vst [vmem:[#allocation26_spill] sm:$0xff] %v18799_v40  ;;  %v18803_v18 = vadd.f32 %v14857_v31, %v7867_v38  ;;  %v7870_v2 = vadd.f32 %v14835_v36, %v18619_v58  ;;  %v10437_v31 = vsel %vm797_vm2, %v18764_v1, %v10436_v8  ;;  %v10083_v58 = vshrl.u32 %v18767_v6, 16 }
 0x35a   : > { %v8150_v63 = vpop.f32.mrf.mxu1  ;;  %v7796_v62 = vpop.f32.mrf.mxu0  ;;  %v10082_v54 = vsel %vm1167_vm3, %v10077_v53, %v10081_v47  ;;  %v10089_v39 = vrot.slane %v10087_v9, 1  ;;  %v13396_v1 = vcombine.low %v18813_v23, %v18823_v26  ;;  %v10459_v53 = vrot.slane %v10457_v46, 3 }
 0x35b   : > { %19817 = vst [vmem:[#allocation24_spill] sm:$0xff] %v18803_v18  ;;  %v18815_v38 = vadd.f32 %v8150_v63, %v7866_v57  ;;  %v10446_v18 = vsel %vm797_vm2, %v10436_v8, %v10445_v35  ;;  %v10085_v8 = vor.u32 %v10083_v58, %v10081_v47  ;;  %v10097_v63 = vrot.slane %v10095_v21, 1 }
 0x35c   : > { %v14860_v51 = vpop.f32.mrf.mxu1  ;;  %v14838_v57 = vpop.f32.mrf.mxu0  ;;  %15023 = vmatmul.mubr.msk.bf16.gmra.mxu1 %vm624_vm1, %v10074_v60  ;;  %v10462_v9 = vrot.slane %v10460_v12, 4  ;;  %v10469_v40 = vshll.u32 %v13395_v16, 16  ;;  %v10475_v47 = vshrl.u32 %v13396_v1, 16  ;;  %v10478_v58 = vshll.u32 %v13396_v1, 16 }
 0x35d   : > { %19818 = vst [vmem:[#allocation14_spill] sm:$0xff] %v18815_v38  ;;  %v18825_v36 = vadd.f32 %v14860_v51, %v7869_v10  ;;  %15045 = vmatmul.mubr.msk.bf16.gmra.mxu0 %vm624_vm1, %v10437_v31  ;;  %v7872_v6 = vadd.f32 %v14838_v57, %v18634_v44  ;;  %15026 = vmatprep.mubr.msk.bf16.mxu1 %vm624_vm1, %v10082_v54  ;;  %v10091_v10 = vshrl.u32 %v18790_v11, 16  ;;  %v15635_v31 = vld [vmem:[#allocation3 + $0xc4] ss:$0 sps:$4 sm:$0x11]   ;;  %v10466_v38 = vshrl.u32 %v13395_v16, 16 }
 0x35e   : > { %v8162_v29 = vpop.f32.mrf.mxu1  ;;  %15048 = vmatprep.mubr.msk.bf16.mxu0 %vm624_vm1, %v10446_v18  ;;  %v7808_v60 = vpop.f32.mrf.mxu0  ;;  %v10454_v51 = vor.u32 %v10453_v50, %v10450_v3  ;;  %v10090_v11 = vsel %vm1167_vm3, %v10085_v8, %v10089_v39  ;;  %v10103_v3 = vshll.u32 %v15635_v31, 16  ;;  %v18843_v50 = vld [vmem:[#allocation3 + $0xcc] sm:$0xf]  ;;  %v10477_v8 = vrot.slane %v10475_v47, 3 }
 0x35f   : > { %19819 = vst [vmem:[#allocation28_spill] sm:$0xff] %v18825_v36  ;;  %v18836_v62 = vadd.f32 %v8162_v29, %v7868_v28  ;;  %v10093_v18 = vor.u32 %v10091_v10, %v10089_v39  ;;  %v10463_v29 = vor.u32 %v10462_v9, %v10459_v53  ;;  %v10468_v16 = vrot.slane %v10466_v38, 3  ;;  %v15641_v53 = vld [vmem:[#allocation3 + $0x70] sm:$0xff]  }
 0x360   : > { %v14861_v36 = vpop.f32.mrf.mxu1  ;;  %v14839_v57 = vpop.f32.mrf.mxu0  ;;  %v10455_v28 = vsel %vm797_vm2, %v10445_v35, %v10454_v51  ;;  %v13397_v1 = vcombine.low %v18843_v50, %v18843_v50  ;;  %v10480_v60 = vrot.slane %v10478_v58, 4  ;;  %v10105_v38 = vrot.slane %v10103_v3, 1 }
 0x361   : > { %v18838_v44 = vadd.f32 %v14861_v36, %v7870_v2  ;;  %v10098_v46 = vsel %vm1167_vm3, %v10093_v18, %v10097_v63  ;;  %v10471_v36 = vrot.slane %v10469_v40, 4  ;;  %v10464_v35 = vsel %vm797_vm2, %v10454_v51, %v10463_v29 }
 0x362   : > { %v8165_v54 = vpop.f32.mrf.mxu1  ;;  %v7810_v21 = vpop.f32.mrf.mxu0  ;;  %v10099_v40 = vshrl.u32 %v18797_v52, 16  ;;  %v10484_v18 = vshrl.u32 %v13397_v1, 16  ;;  %v10481_v47 = vor.u32 %v10480_v60, %v10477_v8  ;;  %v10957_v58 = vshll.u32 %v15641_v53, 16  ;;  %v15644_v8 = vld [vmem:[#allocation3 + $0x80] sm:$0xff]  }
 0x363   : > { %v7871_v12 = vadd.f32 %v7810_v21, %v18657_v24  ;;  %v10472_v57 = vor.u32 %v10471_v36, %v10468_v16  ;;  %v10487_v54 = vshll.u32 %v13397_v1, 16  ;;  %v13411_v52 = vcombine.low %v18617_v43, %v18621_v61 }
 0x364   : > { %v14864_v2 = vpop.f32.mrf.mxu1  ;;  %v14842_v39 = vpop.f32.mrf.mxu0  ;;  %15027 = vmatmul.mubr.msk.bf16.gmra.mxu1 %vm624_vm1, %v10090_v11  ;;  %v10101_v11 = vor.u32 %v10099_v40, %v10097_v63  ;;  %v10486_v36 = vrot.slane %v10484_v18, 3  ;;  %v10955_v60 = vshrl.u32 %v15641_v53, 16 }
 0x365   : > { %v18848_v10 = vadd.f32 %v14864_v2, %v7872_v6  ;;  %15049 = vmatmul.mubr.msk.bf16.gmra.mxu0 %vm624_vm1, %v10455_v28  ;;  %15030 = vmatprep.mubr.msk.bf16.mxu1 %vm624_vm1, %v10098_v46  ;;  %v10473_v63 = vsel %vm797_vm2, %v10463_v29, %v10472_v57  ;;  %v10489_v1 = vrot.slane %v10487_v54, 4  ;;  %v15646_v54 = vld [vmem:[#allocation3 + $0x88] sm:$0xff]  }
 0x366   : > { %v8177_v9 = vpop.f32.mrf.mxu1  ;;  %15052 = vmatprep.mubr.msk.bf16.mxu0 %vm624_vm1, %v10464_v35  ;;  %v7822_v24 = vpop.f32.mrf.mxu0  ;;  %v10106_v39 = vsel %vm1167_vm3, %v10101_v11, %v10105_v38 }
 0x367   : > { %v7873_v6 = vadd.f32 %v7822_v24, %v18678_v25  ;;  %v18863_v25 = vld [vmem:[#allocation3 + $0x78] sm:$0xff]   ;;  %v10490_v38 = vor.u32 %v10489_v1, %v10486_v36 }
 0x368   : > { %v14865_v31 = vpop.f32.mrf.mxu1  ;;  %v14843_v51 = vpop.f32.mrf.mxu0  ;;  %v10962_v9 = vshll.u32 %v18863_v25, 16  ;;  %v10966_v1 = vshrl.u32 %v18863_v25, 16  ;;  %v13415_v25 = vcombine.low %v18686_v48, %v18693_v13  ;;  %v10982_v48 = vshrl.u32 %v15646_v54, 16 }
 0x369   : > { %v7875_v21 = vadd.f32 %v14843_v51, %v18688_v14  ;;  %v10482_v14 = vsel %vm797_vm2, %v10472_v57, %v10481_v47 }
 0x36a   : > { %v8179_v28 = vpop.f32.mrf.mxu1  ;;  %v7825_v46 = vpop.f32.mrf.mxu0 }
 0x36b   : > { %v18858_v2 = vadd.f32 %v8179_v28, %v7871_v12  ;;  %v7874_v3 = vadd.f32 %v7825_v46, %v18695_v42  ;;  %v10959_v12 = vrot.slane %v10957_v58, 1  ;;  %v10964_v28 = vrot.slane %v10962_v9, 1  ;;  %v18884_v46 = vld [vmem:[#allocation9 + $0x40] sm:$0xff]  }
 0x36c   : > { %v14868_v16 = vpop.f32.mrf.mxu1  ;;  %v14846_v35 = vpop.f32.mrf.mxu0  ;;  %15031 = vmatmul.mubr.msk.bf16.gmra.mxu1 %vm624_vm1, %v10106_v39  ;;  %v13413_v39 = vcombine.low %v18641_v59, %v18661_v17  ;;  %v13414_v9 = vcombine.low %v18663_v7, %v18684_v19 }
 0x36d   : > { %15053 = vmatmul.mubr.msk.bf16.gmra.mxu0 %vm624_vm1, %v10473_v63  ;;  %v7877_v43 = vadd.f32 %v14846_v35, %v18707_v27  ;;  %15062 = vmatprep.mubr.msk.bf16.mxu1 %vm624_vm1, %v13411_v52  ;;  %v10960_v18 = vor.u32 %v10959_v12, %v10955_v60  ;;  %v10970_v27 = vshll.u32 %v15644_v8, 16 }
 0x36e   : > { %v8191_v61 = vpop.f32.mrf.mxu1  ;;  %15056 = vmatprep.mubr.msk.bf16.mxu0 %vm624_vm1, %v10482_v14  ;;  %v7837_v29 = vpop.f32.mrf.mxu0 }
 0x36f   : > { %v18873_v42 = vadd.f32 %v8191_v61, %v7873_v6  ;;  %v7876_v24 = vadd.f32 %v7837_v29, %v18719_v15  ;;  %v13412_v6 = vcombine.low %v18626_v32, %v18647_v55  ;;  %v10965_v32 = vsel %vm1167_vm3, %v10960_v18, %v10964_v28 }
 0x370   : > { %v14869_v40 = vpop.f32.mrf.mxu1  ;;  %v14847_v57 = vpop.f32.mrf.mxu0  ;;  %v10972_v55 = vrot.slane %v10970_v27, 1  ;;  %v10968_v29 = vor.u32 %v10966_v1, %v10964_v28  ;;  %v15652_v27 = vld [vmem:[#allocation3 + $0xa0] sm:$0xff]   ;;  %v13416_v28 = vcombine.low %v18705_v5, %v18736_v45 }
 0x371   : > { %v18877_v31 = vadd.f32 %v14869_v40, %v7875_v21  ;;  %v7878_v11 = vadd.f32 %v14847_v57, %v18728_v30  ;;  %v10491_v21 = vsel %vm797_vm2, %v10481_v47, %v10490_v38  ;;  %v10978_v30 = vshll.u32 %v15646_v54, 16  ;;  %v18944_v1 = vld [vmem:[#allocation3 + $0x80] sm:$0xf] }
 0x372   : > { %v8194_v51 = vpop.f32.mrf.mxu1  ;;  %v7840_v53 = vpop.f32.mrf.mxu0  ;;  %v10974_v47 = vshrl.u32 %v15644_v8, 16  ;;  %v10973_v40 = vsel %vm1167_vm3, %v10968_v29, %v10972_v55  ;;  %v11006_v45 = vshrl.u32 %v15652_v27, 16  ;;  %v19825_v29 = vld [vmem:[#allocation22_spill] sm:$0xff] }
 0x373   : > { %v18882_v58 = vadd.f32 %v8194_v51, %v7874_v3  ;;  %v15648_v3 = vld [vmem:[#allocation3 + $0x90] sm:$0xff]   ;;  %v11002_v51 = vshll.u32 %v15652_v27, 16 }
 0x374   : > { %v14872_v15 = vpop.f32.mrf.mxu1  ;;  %v14850_v16 = vpop.f32.mrf.mxu0  ;;  %15063 = vmatmul.mubr.msk.bf16.vlgmr.msra.gmra.mxu1 %vm624_vm1, %v13412_v6  ;;  %v10976_v12 = vor.u32 %v10974_v47, %v10972_v55  ;;  %v10986_v61 = vshll.u32 %v15648_v3, 16  ;;  %v10990_v19 = vshrl.u32 %v15648_v3, 16  ;;  %v15656_v55 = vld [vmem:[#allocation3 + $0xb0] sm:$0xff]  }
 0x375   : > { %v18889_v52 = vadd.f32 %v14872_v15, %v7877_v43  ;;  %15057 = vmatmul.mubr.msk.bf16.gmra.mxu0 %vm624_vm1, %v10491_v21  ;;  %v18895_v63 = vadd.f32 %v14850_v16, %v18749_v37  ;;  %15113 = vmatpush3.bf16.msra.mxu1 %v18700_v4  ;;  %v10980_v43 = vrot.slane %v10978_v30, 1  ;;  %v15654_v21 = vld [vmem:[#allocation3 + $0xa8] sm:$0xff]   ;;  %v13417_v16 = vcombine.low %v18726_v41, %v18731_v20  ;;  %v18940_v41 = vld [vmem:[#allocation3 + $0xb8] sm:$0xff]  }
 0x376   : > { %v8206_v36 = vpop.f32.mrf.mxu1  ;;  %15088 = vmatprep.mubr.msk.bf16.mxu0 %vm624_vm1, %v10965_v32  ;;  %v7852_v17 = vpop.f32.mrf.mxu0  ;;  %15066 = vmatprep.mubr.msk.bf16.mxu1 %vm624_vm1, %v13413_v39  ;;  %v10988_v18 = vrot.slane %v10986_v61, 1  ;;  %v11004_v54 = vrot.slane %v11002_v51, 1  ;;  %v11010_v30 = vshll.u32 %v15654_v21, 16  ;;  %v11022_v27 = vshrl.u32 %v15656_v55, 16 }
 0x377   : > { %19820 = vst [vmem:[#allocation19_spill] sm:$0xff] %v18889_v52  ;;  %19821 = vst [vmem:[#allocation27_spill] sm:$0xff] %v18895_v63  ;;  %v18899_v59 = vadd.f32 %v8206_v36, %v7876_v24  ;;  %15164 = vmatprep.subr.bf16.mxu1 %v18884_v46  ;;  %v15650_v24 = vld [vmem:[#allocation3 + $0x98] sm:$0xff]   ;;  %v10981_v57 = vsel %vm1167_vm3, %v10976_v12, %v10980_v43  ;;  %v10984_v6 = vor.u32 %v10982_v48, %v10980_v43 }
 0x378   : > { %v14873_v35 = vpop.f32.mrf.mxu1  ;;  %v14851_v37 = vpop.f32.mrf.mxu0  ;;  %v10998_v3 = vshrl.u32 %v15650_v24, 16  ;;  %v11008_v36 = vor.u32 %v11006_v45, %v11004_v54  ;;  %v11018_v17 = vshll.u32 %v15656_v55, 16  ;;  %v11012_v12 = vrot.slane %v11010_v30, 1  ;;  %v11233_v43 = vld [vmem:[#allocation3 + $0x78] sm:$0x8] }
 0x379   : > { %19822 = vst [vmem:[#allocation18_spill] sm:$0xff] %v18899_v59  ;;  %v18904_v14 = vadd.f32 %v14873_v35, %v7878_v11  ;;  %v10992_v11 = vor.u32 %v10990_v19, %v10988_v18  ;;  %v10989_v39 = vsel %vm1167_vm3, %v10984_v6, %v10988_v18  ;;  %v13418_v37 = vcombine.low %v18740_v33, %v18772_v0  ;;  %v19827_v30 = vld [vmem:[#allocation35_spill] sm:$0xff]  ;;  %v19837_v59 = vld [vmem:[#allocation24_spill] sm:$0xff] }
 0x37a   : > { %v8209_v60 = vpop.f32.mrf.mxu1  ;;  %v7854_v4 = vpop.f32.mrf.mxu0  ;;  %v11013_v33 = vsel %vm1167_vm3, %v11008_v36, %v11012_v12  ;;  %v11020_v0 = vrot.slane %v11018_v17, 1  ;;  %v13420_v55 = vcombine.low %v19827_v30, %v18807_v49  ;;  %v18976_v17 = vld [vmem:[#allocation3 + $0x94] sm:$0xf]  ;;  %v13267_v63 = vld [vmem:[%s16026_s30 + $0x18] sm:$0xff] }
 0x37b   : > { %19823 = vst [vmem:[#allocation36_spill] sm:$0xff] %v18904_v14  ;;  %v18909_v8 = vadd.f32 %v7854_v4, %v18774_v22  ;;  %v10994_v22 = vshll.u32 %v15650_v24, 16  ;;  %v19826_v60 = vld [vmem:[#allocation23_spill] sm:$0xff] }
 0x37c   : > { %v14882_v38 = vpop.f32.mrf.mxu0  ;;  %15067 = vmatmul.mubr.msk.bf16.gmra.mxu1 %vm624_vm1, %v13414_v9  ;;  %v13419_v4 = vcombine.low %v19826_v60, %v19825_v29  ;;  %v11026_v9 = vshll.u32 %v18940_v41, 16  ;;  %v18952_v24 = vld [vmem:[#allocation3 + $0x7c] sm:$0xf]  ;;  %v11024_v6 = vor.u32 %v11022_v27, %v11020_v0  ;;  %v18984_v29 = vld [vmem:[#allocation3 + $0x90] sm:$0xf]  ;;  %v11030_v27 = vshrl.u32 %v18940_v41, 16 }
 0x37d   : > { %19824 = vst [vmem:[#allocation15_spill] sm:$0xff] %v18909_v8  ;;  %15089 = vmatmul.mubr.msk.bf16.vlgmr.msra.gmra.mxu0 %vm624_vm1, %v10973_v40  ;;  %15070 = vmatprep.mubr.msk.bf16.mxu1 %vm624_vm1, %v13415_v25  ;;  %v10996_v15 = vrot.slane %v10994_v22, 1  ;;  %v18954_v40 = vld [vmem:[#allocation3 + $0x84] sm:$0xf]  ;;  %v13462_v19 = vcombine.low %v11233_v43, %v18952_v24  ;;  %v11014_v22 = vshrl.u32 %v15654_v21, 16 }
 0x37e   : > { %15092 = vmatprep.mubr.msk.bf16.mxu0 %vm624_vm1, %v10981_v57  ;;  %v18919_v7 = vpop.f32.mrf.mxu0  ;;  %15139 = vmatpush3.bf16.msra.mxu0 %v18747_v34  ;;  %v15660_v38 = vld [vmem:[#allocation3 + $0xc0] sm:$0xff]   ;;  %v13463_v57 = vcombine.low %v18944_v1, %v18954_v40  ;;  %v11028_v48 = vrot.slane %v11026_v9, 1  ;;  %v15668_v9 = vld [vmem:[#allocation3 + $0xd0] ss:$0 sps:$4 sm:$0x11]  }
 0x37f   : > { %v10997_v34 = vsel %vm1167_vm3, %v10992_v11, %v10996_v15  ;;  %v11000_v47 = vor.u32 %v10998_v3, %v10996_v15  ;;  %v18966_v11 = vld [vmem:[#allocation3 + $0x8c] sm:$0xf]  ;;  %v11324_v3 = vshrl.u32 %v13462_v19, 16  ;;  %v11327_v36 = vshll.u32 %v13462_v19, 16  ;;  %v19061_v8 = vld [vmem:[#allocation3 + $0xc4] sm:$0xf] }
 0x380   : > { %v18922_v13 = vpop.f32.mrf.mxu0  ;;  %v11332_v15 = vshrl.u32 %v13463_v57, 16  ;;  %v11038_v60 = vshrl.u32 %v15660_v38, 16 }
 0x381   : > { %v11005_v61 = vsel %vm1167_vm3, %v11000_v47, %v11004_v54  ;;  %v18968_v54 = vld [vmem:[#allocation3 + $0x88] sm:$0xf] }
 0x382   : > { %v18924_v53 = vpop.f32.mrf.mxu0  ;;  %v13464_v21 = vcombine.low %v18968_v54, %v18966_v11  ;;  %v11334_v43 = vrot.slane %v11332_v15, 3  ;;  %v11032_v15 = vor.u32 %v11030_v27, %v11028_v48 }
 0x384   : > { %v18931_v32 = vpop.f32.mrf.mxu0  ;;  %15071 = vmatmul.mubr.msk.bf16.gmra.mxu1 %vm624_vm1, %v13416_v28  ;;  %v11034_v28 = vshll.u32 %v15660_v38, 16 }
 0x385   : > { %15093 = vmatmul.mubr.msk.bf16.gmra.mxu0 %vm624_vm1, %v10989_v39  ;;  %15074 = vmatprep.mubr.msk.bf16.mxu1 %vm624_vm1, %v13417_v16  ;;  %v11335_v39 = vshll.u32 %v13463_v57, 16  ;;  %v11016_v16 = vor.u32 %v11014_v22, %v11012_v12  ;;  %v11029_v12 = vsel %vm1167_vm3, %v11024_v6, %v11028_v48  ;;  %v11341_v57 = vshrl.u32 %v13464_v21, 16  ;;  %v18997_v6 = vld [vmem:[#allocation3 + $0x98] sm:$0xf] }
 0x386   : > { %15096 = vmatprep.mubr.msk.bf16.mxu0 %vm624_vm1, %v10997_v34  ;;  %v18938_v5 = vpop.f32.mrf.mxu0  ;;  %v15662_v34 = vld [vmem:[#allocation3 + $0xc8] sm:$0xff]   ;;  %v11036_v49 = vrot.slane %v11034_v28, 1  ;;  %v13422_v22 = vcombine.low %v18823_v26, %v18843_v50  ;;  %v18999_v28 = vld [vmem:[#allocation3 + $0x9c] sm:$0xf] }
 0x387   : > { %v11021_v47 = vsel %vm1167_vm3, %v11016_v16, %v11020_v0  ;;  %v11329_v0 = vrot.slane %v11327_v36, 4  ;;  %v11343_v36 = vrot.slane %v11341_v57, 3  ;;  %v13466_v50 = vcombine.low %v18997_v6, %v18999_v28 }
 0x388   : > { %v18942_v20 = vpop.f32.mrf.mxu0  ;;  %v11037_v26 = vsel %vm1167_vm3, %v11032_v15, %v11036_v49 }
 0x389   : > { %v11362_v27 = vshll.u32 %v13466_v50, 16 }
 0x38a   : > { %v8550_v35 = vpop.f32.mrf.mxu0 }
 0x38b   : > { %v13421_v35 = vcombine.low %v18809_v56, %v18813_v23  ;;  %v13465_v56 = vcombine.low %v18984_v29, %v18976_v17 }
 0x38c   : > { %v18956_v25 = vpop.f32.mrf.mxu0  ;;  %15075 = vmatmul.mubr.msk.bf16.gmra.mxu1 %vm624_vm1, %v13418_v37 }
 0x38d   : > { %15097 = vmatmul.mubr.msk.bf16.gmra.mxu0 %vm624_vm1, %v11005_v61  ;;  %15078 = vmatprep.mubr.msk.bf16.mxu1 %vm624_vm1, %v13419_v4  ;;  %v11337_v61 = vrot.slane %v11335_v39, 4  ;;  %v11042_v4 = vshll.u32 %v15662_v34, 16  ;;  %v11050_v39 = vshll.u32 %v15668_v9, 16  ;;  %v11350_v16 = vshrl.u32 %v13465_v56, 16 }
 0x38e   : > { %15100 = vmatprep.mubr.msk.bf16.mxu0 %vm624_vm1, %v11013_v33  ;;  %v8562_v18 = vpop.f32.mrf.mxu0  ;;  %v11326_v33 = vrot.slane %v11324_v3, 3  ;;  %v11353_v30 = vshll.u32 %v13465_v56, 16 }
 0x38f   : > { %v11344_v18 = vshll.u32 %v13464_v21, 16  ;;  %v11338_v38 = vor.u32 %v11337_v61, %v11334_v43  ;;  %v11044_v41 = vrot.slane %v11042_v4, 1  ;;  %v11046_v43 = vshrl.u32 %v15662_v34, 16  ;;  %v19024_v34 = vld [vmem:[#allocation3 + $0xa8] sm:$0xf] }
 0x390   : > { %v14891_v51 = vpop.f32.mrf.mxu0  ;;  %v11330_v3 = vor.u32 %v11329_v0, %v11326_v33  ;;  %v11355_v4 = vrot.slane %v11353_v30, 4  ;;  %v11052_v0 = vrot.slane %v11050_v39, 1  ;;  %v19032_v30 = vld [vmem:[#allocation3 + $0xbc] sm:$0xf] }
 0x391   : > { %v11040_v51 = vor.u32 %v11038_v60, %v11036_v49  ;;  %v11352_v60 = vrot.slane %v11350_v16, 3  ;;  %v11048_v9 = vor.u32 %v11046_v43, %v11044_v41 }
 0x392   : > { %v18970_v45 = vpop.f32.mrf.mxu0  ;;  %v11339_v61 = vsel %vm797_vm2, %v11330_v3, %v11338_v38 }
 0x393   : > { %v11356_v16 = vor.u32 %v11355_v4, %v11352_v60  ;;  %v11053_v39 = vsel %vm1167_vm3, %v11048_v9, %v11052_v0  ;;  %v19046_v4 = vld [vmem:[#allocation3 + $0xb8] sm:$0xf] }
 0x394   : > { %v14894_v37 = vpop.f32.mrf.mxu0  ;;  %15079 = vmatmul.mubr.msk.bf16.gmra.mxu1 %vm624_vm1, %v13420_v55  ;;  %v19001_v55 = vld [vmem:[#allocation3 + $0xa4] sm:$0xf]  ;;  %v13470_v0 = vcombine.low %v19046_v4, %v19032_v30 }
 0x395   : > { %15101 = vmatmul.mubr.msk.bf16.gmra.mxu0 %vm624_vm1, %v11021_v47  ;;  %15082 = vmatprep.mubr.msk.bf16.mxu1 %vm624_vm1, %v13421_v35  ;;  %v11346_v47 = vrot.slane %v11344_v18, 4  ;;  %v19008_v35 = vld [vmem:[#allocation3 + $0xa0] sm:$0xf]  ;;  %v11359_v18 = vshrl.u32 %v13466_v50, 16  ;;  %v19040_v50 = vld [vmem:[#allocation3 + $0xb4] sm:$0xf] }
 0x396   : > { %15104 = vmatprep.mubr.msk.bf16.mxu0 %vm624_vm1, %v11029_v12  ;;  %v18990_v23 = vpop.f32.mrf.mxu0  ;;  %v11045_v12 = vsel %vm1167_vm3, %v11040_v51, %v11044_v41  ;;  %v13467_v49 = vcombine.low %v19008_v35, %v19001_v55 }
 0x397   : > { %v11347_v57 = vor.u32 %v11346_v47, %v11343_v36  ;;  %v13488_v47 = vcombine.low %v18952_v24, %v18944_v1 }
 0x398   : > { %v18993_v19 = vpop.f32.mrf.mxu0  ;;  %v11368_v15 = vshrl.u32 %v13467_v49, 16  ;;  %v11371_v3 = vshll.u32 %v13467_v49, 16  ;;  %v11364_v49 = vrot.slane %v11362_v27, 4 }
 0x399   : > { %v11348_v36 = vsel %vm797_vm2, %v11338_v38, %v11347_v57 }
 0x39a   : > { %v19003_v21 = vpop.f32.mrf.mxu0  ;;  %v11370_v24 = vrot.slane %v11368_v15, 3  ;;  %v11373_v38 = vrot.slane %v11371_v3, 4 }
 0x39b   : > { %19828 = vst [vmem:[#allocation37_spill] sm:$0xff] %v19003_v21  ;;  %v19839_v21 = vld [vmem:[#allocation28_spill] sm:$0xff] }
 0x39c   : > { %v19010_v37 = vpop.f32.mrf.mxu0  ;;  %v19013_v48 = vpop.f32.mrf.mxu1  ;;  %15083 = vmatmul.mubr.msk.bf16.gmra.mxu1 %vm624_vm1, %v13422_v22 }
 0x39d   : > { %19829 = vst [vmem:[#allocation42_spill] sm:$0xff] %v19010_v37  ;;  %15105 = vmatmul.mubr.msk.bf16.gmra.mxu0 %vm624_vm1, %v11037_v26  ;;  %19830 = vst [vmem:[#allocation40_spill] sm:$0xff] %v19013_v48  ;;  %15114 = vmatprep.mubr.msk.bf16.mxu1 %vm624_vm1, %v11339_v61  ;;  %v19028_v26 = vld [vmem:[#allocation3 + $0xac] sm:$0xf]  ;;  %v11361_v61 = vrot.slane %v11359_v18, 3  ;;  %v11357_v18 = vsel %vm797_vm2, %v11347_v57, %v11356_v16  ;;  %v19063_v48 = vor.u32 %v11373_v38, %v11370_v24 }
 0x39e   : > { %15108 = vmatprep.mubr.msk.bf16.mxu0 %vm624_vm1, %v11045_v12  ;;  %v19022_v56 = vpop.f32.mrf.mxu0  ;;  %v8221_v33 = vpop.f32.mrf.mxu1  ;;  %v19030_v12 = vld [vmem:[#allocation3 + $0xb0] sm:$0xf]  ;;  %v11395_v57 = vshrl.u32 %v13470_v0, 16  ;;  %v8621_v37 = vadd.f32 %v18922_v13, %v19837_v59  ;;  %v19111_v59 = vld [vmem:[%s19635_s4] ss:$0 sm:$0xff] }
 0x39f   : > { %19831 = vst [vmem:[#allocation16_spill] sm:$0xff] %v19022_v56  ;;  %v13468_v33 = vcombine.low %v19024_v34, %v19028_v26  ;;  %v13469_v60 = vcombine.low %v19030_v12, %v19040_v50 }
 0x3a0   : > { %v19026_v22 = vpop.f32.mrf.mxu0  ;;  %v14877_v51 = vpop.f32.mrf.mxu1 }
 0x3a1   : > { %19832 = vst [vmem:[#allocation20_spill] sm:$0xff] %v19026_v22  ;;  %v11386_v15 = vshrl.u32 %v13469_v60, 16  ;;  %v11389_v3 = vshll.u32 %v13469_v60, 16 }
 0x3a2   : > { %v8594_v41 = vpop.f32.mrf.mxu0  ;;  %v19034_v43 = vpop.f32.mrf.mxu1 }
 0x3a3   : > { %19833 = vst [vmem:[#allocation29_spill] sm:$0xff] %v19034_v43  ;;  %v9220_v41 = vld [vmem:[%s16026_s30] sm:$0xff]  ;;  %v9221_v43 = vld [vmem:[%s16026_s30 + $0x8] sm:$0xff]  ;;  %v11388_v22 = vrot.slane %v11386_v15, 3 }
 0x3a4   : > { %v14908_v1 = vpop.f32.mrf.mxu1  ;;  %15115 = vmatmul.mubr.msk.bf16.vlgmr.msra.gmra.mxu1 %vm624_vm1, %v11348_v36  ;;  %v11377_v36 = vshrl.u32 %v13468_v33, 16  ;;  %v19104_v15 = vld [vmem:[#allocation3 + $0xc8] sm:$0xf] }
 0x3a5   : > { %v19048_v9 = vpop.f32.mrf.mxu0  ;;  %15109 = vmatmul.mubr.msk.bf16.gmra.mxu0 %vm624_vm1, %v11053_v39  ;;  %15165 = vmatpush3.bf16.msra.mxu1 %v18884_v46  ;;  %v13266_v39 = vld [vmem:[%s16026_s30 + $0x10] sm:$0xff]  ;;  %v11365_v1 = vor.u32 %v11364_v49, %v11361_v61  ;;  %v11380_v46 = vshll.u32 %v13468_v33, 16  ;;  %v13490_v61 = vcombine.low %v18966_v11, %v18984_v29  ;;  %v19070_v49 = vsel %vm624_vm1, %v9220_v41, 0.0 }
 0x3a6   : > { %19834 = vst [vmem:[#allocation45_spill] sm:$0xff] %v19048_v9  ;;  %15140 = vmatprep.mubr.msk.bf16.mxu0 %vm624_vm1, %v13488_v47  ;;  %15118 = vmatprep.mubr.msk.bf16.mxu1 %vm624_vm1, %v11357_v18  ;;  %v8725_v51 = vpop.f32.mrf.mxu1  ;;  %v13489_v18 = vcombine.low %v18954_v40, %v18968_v54  ;;  %v19073_v60 = vsel %vm624_vm1, %v13266_v39, 0.0  ;;  %v13272_v40 = vld [vmem:[%s16026_s30 + $0x20] sm:$0xff]  ;;  %v13491_v11 = vcombine.low %v18976_v17, %v18997_v6  ;;  %v19836_v29 = vld [vmem:[#allocation26_spill] sm:$0xff]  ;;  %v11379_v39 = vrot.slane %v11377_v36, 3 }
 0x3a7   : > { %v8606_v27 = vpop.f32.mrf.mxu0  ;;  %v11366_v38 = vsel %vm797_vm2, %v11356_v16, %v11365_v1  ;;  %v8619_v41 = vadd.f32 %v18919_v7, %v19836_v29  ;;  %v11382_v17 = vrot.slane %v11380_v46, 4  ;;  %v11397_v6 = vrot.slane %v11395_v57, 3  ;;  %v19122_v29 = vld [vmem:[#allocation3 + $0xd4] sm:$0xf] }
 0x3a8   : > { %v14909_v47 = vpop.f32.mrf.mxu1  ;;  %v11398_v27 = vshll.u32 %v13470_v0, 16  ;;  %v19081_v0 = vsel %vm624_vm1, %v9221_v43, 0.0  ;;  %v11375_v43 = vsel %vm797_vm2, %v11365_v1, %v19063_v48  ;;  %v13492_v36 = vcombine.low %v18999_v28, %v19008_v35  ;;  %v19106_v1 = vld [vmem:[#allocation3 + $0xcc] sm:$0xf]  ;;  %v19838_v28 = vld [vmem:[#allocation14_spill] sm:$0xff] }
 0x3a9   : > { %v14903_v9 = vpop.f32.mrf.mxu0  ;;  %v8812_v7 = vadd.f32 %v8725_v51, %v8619_v41  ;;  %v19114_v51 = vsel %vm624_vm1, %v13267_v63, 0.0  ;;  %v8620_v35 = vadd.f32 %v18924_v53, %v19838_v28  ;;  %v11383_v63 = vor.u32 %v11382_v17, %v11379_v39 }
 0x3aa   : > { %v19075_v9 = vld [vmem:[#allocation3 + $0xc0] sm:$0xf]  ;;  %v8728_v33 = vpop.f32.mrf.mxu1  ;;  %v11400_v56 = vrot.slane %v11398_v27, 4  ;;  %v8623_v53 = vadd.f32 %v18931_v32, %v19839_v21 }
 0x3ab   : > { %v19077_v24 = vpop.f32.mrf.mxu0  ;;  %v13471_v54 = vcombine.low %v19075_v9, %v19061_v8  ;;  %v11384_v32 = vsel %vm797_vm2, %v19063_v48, %v11383_v63 }
 0x3ac   : > { %19835 = vst [vmem:[#allocation32_spill] sm:$0xff] %v19077_v24  ;;  %v11391_v24 = vrot.slane %v11389_v3, 4  ;;  %v14912_v16 = vpop.f32.mrf.mxu1  ;;  %15119 = vmatmul.mubr.msk.bf16.gmra.mxu1 %vm624_vm1, %v11366_v38  ;;  %v11401_v52 = vor.u32 %v11400_v56, %v11397_v6 }
 0x3ad   : > { %v14934_v14 = vpop.f32.mrf.mxu0  ;;  %15141 = vmatmul.mubr.msk.bf16.vlgmr.msra.gmra.mxu0 %vm624_vm1, %v13489_v18  ;;  %15122 = vmatprep.mubr.msk.bf16.mxu1 %vm624_vm1, %v11375_v43  ;;  %v11404_v57 = vshrl.u32 %v13471_v54, 16  ;;  %v11407_v27 = vshll.u32 %v13471_v54, 16  ;;  %v8814_v18 = vadd.f32 %v14909_v47, %v8621_v37  ;;  %v13472_v54 = vcombine.low %v19104_v15, %v19106_v1 }
 0x3ae   : > { %15144 = vmatprep.mubr.msk.bf16.mxu0 %vm624_vm1, %v13490_v61  ;;  %v19100_v14 = vsel %vm624_vm1, %v13272_v40, 0.0  ;;  %v8740_v13 = vpop.f32.mrf.mxu1  ;;  %v11392_v38 = vor.u32 %v11391_v24, %v11388_v22  ;;  %v19120_v40 = vld [vmem:[#allocation3 + $0xd0] sm:$0xf]  ;;  %v8813_v37 = vadd.f32 %v8728_v33, %v8620_v35  ;;  %v13273_v24 = vld [vmem:[%s16026_s30 + $0x28] sm:$0xff]  ;;  %v8816_v28 = vadd.f32 %v14912_v16, %v8623_v53 }
 0x3af   : > { %v9094_v3 = vpop.f32.mrf.mxu0  ;;  %v11406_v56 = vrot.slane %v11404_v57, 3  ;;  %v11409_v17 = vrot.slane %v11407_v27, 4  ;;  %v13473_v6 = vcombine.low %v19120_v40, %v19122_v29  ;;  %v8624_v33 = vadd.f32 %v18942_v20, %v18838_v44  ;;  %v19149_v20 = vld [vmem:[#allocation3 + $0xd8] sm:$0xf] }
 0x3b0   : > { %v9181_v61 = vadd.f32 %v9094_v3, %v8812_v7  ;;  %v14913_v43 = vpop.f32.mrf.mxu1  ;;  %v8622_v7 = vadd.f32 %v18938_v5, %v18836_v62  ;;  %v11393_v21 = vsel %vm797_vm2, %v11383_v63, %v11392_v38  ;;  %v9260_v16 = vsel %vm624_vm1, %v13273_v24, 0.0 }
 0x3b1   : > { %v14935_v41 = vpop.f32.mrf.mxu0  ;;  %v11413_v44 = vshrl.u32 %v13472_v54, 16  ;;  %v11422_v63 = vshrl.u32 %v13473_v6, 16  ;;  %v8817_v53 = vadd.f32 %v14913_v43, %v8624_v33 }
 0x3b2   : > { %v9204_v22 = vadd.f32 %v19111_v59, %v9181_v61  ;;  %v9183_v47 = vadd.f32 %v14935_v41, %v8814_v18  ;;  %v8743_v39 = vpop.f32.mrf.mxu1  ;;  %v8815_v62 = vadd.f32 %v8740_v13, %v8622_v7  ;;  %v11402_v13 = vsel %vm797_vm2, %v11392_v38, %v11401_v52 }
 0x3b3   : > { %v9097_v3 = vpop.f32.mrf.mxu0  ;;  %v19152_v61 = vor.u32 %v11409_v17, %v11406_v56  ;;  %v11416_v41 = vshll.u32 %v13472_v54, 16  ;;  %v13474_v38 = vcombine.low %v19149_v20, %v19149_v20 }
 0x3b4   : > { %v9182_v46 = vadd.f32 %v9097_v3, %v8813_v37  ;;  %v9224_v35 = vadd.f32 %v19070_v49, %v9204_v22  ;;  %v14916_v57 = vpop.f32.mrf.mxu1  ;;  %15123 = vmatmul.mubr.msk.bf16.gmra.mxu1 %vm624_vm1, %v11384_v32  ;;  %v9206_v27 = vadd.f32 %v19111_v59, %v9183_v47  ;;  %v8626_v22 = vadd.f32 %v18956_v25, %v18848_v10 }
 0x3b5   : > { %v14938_v5 = vpop.f32.mrf.mxu0  ;;  %15145 = vmatmul.mubr.msk.bf16.gmra.mxu0 %vm624_vm1, %v13491_v11  ;;  %15126 = vmatprep.mubr.msk.bf16.mxu1 %vm624_vm1, %v11393_v21  ;;  %v11425_v3 = vshll.u32 %v13473_v6, 16  ;;  %v11411_v10 = vsel %vm797_vm2, %v11401_v52, %v19152_v61  ;;  %v11415_v25 = vrot.slane %v11413_v44, 3  ;;  %v11418_v32 = vrot.slane %v11416_v41, 4  ;;  %v19165_v6 = vld [vmem:[#allocation3 + $0x7c] sm:$0xff]  }
 0x3b6   : > { %v9205_v48 = vadd.f32 %v19111_v59, %v9182_v46  ;;  %v9185_v18 = vadd.f32 %v14938_v5, %v8816_v28  ;;  %15148 = vmatprep.mubr.msk.bf16.mxu0 %vm624_vm1, %v13492_v36  ;;  %v8755_v11 = vpop.f32.mrf.mxu1  ;;  %v9226_v47 = vmax.f32 %v9224_v35, 0.0  ;;  %v9242_v54 = vadd.f32 %v19073_v60, %v9206_v27 }
 0x3b7   : > { %v9109_v49 = vpop.f32.mrf.mxu0  ;;  %v8819_v56 = vadd.f32 %v14916_v57, %v8626_v22  ;;  %v19840_v57 = vcombine.low %v19001_v55, %v19024_v34  ;;  %v11424_v27 = vrot.slane %v11422_v63, 3  ;;  %v11434_v44 = vshll.u32 %v13474_v38, 16  ;;  %v13278_v63 = vld [vmem:[%s16026_s30 + $0x30] sm:$0xff]  ;;  %v13284_v22 = vld [vmem:[%s16026_s30 + $0x40] sm:$0xff] }
 0x3b8   : > { %v9225_v46 = vadd.f32 %v19081_v0, %v9205_v48  ;;  %v9208_v37 = vadd.f32 %v19111_v59, %v9185_v18  ;;  %v9184_v36 = vadd.f32 %v9109_v49, %v8815_v62  ;;  %v14917_v7 = vpop.f32.mrf.mxu1  ;;  %v13279_v62 = vld [vmem:[%s16026_s30 + $0x38] sm:$0xff]  ;;  %v11427_v48 = vrot.slane %v11425_v3, 4 }
 0x3b9   : > { %v14939_v24 = vpop.f32.mrf.mxu0  ;;  %v11431_v18 = vshrl.u32 %v13474_v38, 16  ;;  %v19841_v34 = vcombine.low %v19028_v26, %v19030_v12  ;;  %v9279_v11 = vsel %vm624_vm1, %v13279_v62, 0.0  ;;  %v13290_v38 = vld [vmem:[%s16026_s30 + $0x50] sm:$0xff] }
 0x3ba   : > { %v9227_v43 = vmax.f32 %v9225_v46, 0.0  ;;  %v9207_v39 = vadd.f32 %v19111_v59, %v9184_v36  ;;  %v9186_v0 = vadd.f32 %v14939_v24, %v8817_v53  ;;  %v8757_v28 = vpop.f32.mrf.mxu1  ;;  %v9261_v33 = vadd.f32 %v19100_v14, %v9208_v37  ;;  %v19188_v46 = vld [vmem:[#allocation3 + $0x84] sm:$0xff]  }
 0x3bb   : > { %v9112_v17 = vpop.f32.mrf.mxu0  ;;  %v9244_v14 = vmax.f32 %v9242_v54, 0.0  ;;  %v11419_v53 = vor.u32 %v11418_v32, %v11415_v25  ;;  %v8625_v37 = vadd.f32 %v18970_v45, %v18858_v2  ;;  %v11428_v3 = vor.u32 %v11427_v48, %v11424_v27  ;;  %v13285_v32 = vld [vmem:[%s16026_s30 + $0x48] sm:$0xff] }
 0x3bc   : > { %v13694_v21 = vpack.c.bf16 %v9227_v43, %v9226_v47  ;;  %v9243_v60 = vadd.f32 %v19114_v51, %v9207_v39  ;;  %v9209_v35 = vadd.f32 %v19111_v59, %v9186_v0  ;;  %v14920_v52 = vpop.f32.mrf.mxu1  ;;  %15127 = vmatmul.mubr.msk.bf16.gmra.mxu1 %vm624_vm1, %v11402_v13  ;;  %v9263_v26 = vmax.f32 %v9261_v33, 0.0 }
 0x3bd   : > { %v14942_v5 = vpop.f32.mrf.mxu0  ;;  %15149 = vmatmul.mubr.msk.bf16.gmra.mxu0 %vm624_vm1, %v19840_v57  ;;  %15130 = vmatprep.mubr.msk.bf16.mxu1 %vm624_vm1, %v11411_v10  ;;  %v11433_v54 = vrot.slane %v11431_v18, 3  ;;  %v11436_v43 = vrot.slane %v11434_v44, 4  ;;  %v8818_v0 = vadd.f32 %v8757_v28, %v8625_v37  ;;  %v9278_v2 = vsel %vm624_vm1, %v13278_v63, 0.0  ;;  %v19844_v63 = vld [vmem:[#allocation42_spill] sm:$0xff] }
 0x3be   : > { %13695 = vst [vmem:[%s19178_s6] sm:$0xff] %v13694_v21   ;;  %v9245_v51 = vmax.f32 %v9243_v60, 0.0  ;;  %v9262_v49 = vadd.f32 %v9260_v16, %v9209_v35  ;;  %v9188_v55 = vadd.f32 %v14942_v5, %v8819_v56  ;;  %15152 = vmatprep.mubr.msk.bf16.mxu0 %vm624_vm1, %v19841_v34  ;;  %v8769_v41 = vpop.f32.mrf.mxu1  ;;  %v11904_v16 = vshll.u32 %v19165_v6, 16 }
 0x3bf   : > { %v9124_v13 = vpop.f32.mrf.mxu0  ;;  %v13495_v45 = vcombine.low %v19040_v50, %v19046_v4  ;;  %v13496_v10 = vcombine.low %v19032_v30, %v19075_v9  ;;  %v9297_v25 = vsel %vm624_vm1, %v13284_v22, 0.0  ;;  %v11909_v33 = vshll.u32 %v19188_v46, 16  ;;  %v13296_v4 = vld [vmem:[%s16026_s30 + $0x60] sm:$0xff] }
 0x3c0   : > { %v13699_v12 = vpack.c.bf16 %v9245_v51, %v9244_v14  ;;  %v9264_v36 = vmax.f32 %v9262_v49, 0.0  ;;  %v9211_v47 = vadd.f32 %v19111_v59, %v9188_v55  ;;  %v14921_v7 = vpop.f32.mrf.mxu1  ;;  %v11906_v21 = vrot.slane %v11904_v16, 1  ;;  %v19842_v51 = vld [vmem:[#allocation37_spill] sm:$0xff]  ;;  %v13291_v13 = vld [vmem:[%s16026_s30 + $0x58] sm:$0xff] }
 0x3c1   : > { %v14943_v24 = vpop.f32.mrf.mxu0  ;;  %v8627_v60 = vadd.f32 %v18990_v23, %v18873_v42  ;;  %v11420_v35 = vsel %vm797_vm2, %v19152_v61, %v11419_v53  ;;  %v19211_v50 = vsel %vm624_vm1, %v13290_v38, 0.0  ;;  %v11429_v5 = vsel %vm797_vm2, %v11419_v53, %v11428_v3 }
 0x3c2   : > { %13771 = vst [vmem:[%s19178_s6 + $0x8] sm:$0xff] %v13699_v12   ;;  %v13704_v39 = vpack.c.bf16 %v9264_v36, %v9263_v26  ;;  %v8772_v17 = vpop.f32.mrf.mxu1  ;;  %v9281_v62 = vadd.f32 %v9279_v11, %v9211_v47  ;;  %v11437_v57 = vor.u32 %v11436_v43, %v11433_v54  ;;  %v11902_v42 = vshrl.u32 %v19165_v6, 16  ;;  %v19239_v12 = vld [vmem:[#allocation3 + $0x94] sm:$0xff]  }
 0x3c3   : > { %v9126_v56 = vpop.f32.mrf.mxu0  ;;  %v8629_v23 = vadd.f32 %v18993_v19, %v18877_v31  ;;  %v8820_v61 = vadd.f32 %v8769_v41, %v8627_v60  ;;  %v9298_v27 = vsel %vm624_vm1, %v13285_v32, 0.0  ;;  %v19225_v44 = vsel %vm624_vm1, %v13296_v4, 0.0  ;;  %v19229_v19 = vld [vmem:[#allocation3 + $0x8c] sm:$0xff]   ;;  %v19843_v41 = vld [vmem:[#allocation19_spill] sm:$0xff] }
 0x3c4   : > { %13772 = vst [vmem:[%s19178_s6 + $0x10] sm:$0xff] %v13704_v39   ;;  %v9187_v28 = vadd.f32 %v9126_v56, %v8818_v0  ;;  %v14924_v9 = vpop.f32.mrf.mxu1  ;;  %15131 = vmatmul.mubr.msk.bf16.gmra.mxu1 %vm624_vm1, %v11420_v35  ;;  %v13497_v6 = vcombine.low %v19061_v8, %v19104_v15  ;;  %v11907_v14 = vor.u32 %v11906_v21, %v11902_v42  ;;  %v11911_v31 = vrot.slane %v11909_v33, 1  ;;  %v19845_v24 = vld [vmem:[#allocation18_spill] sm:$0xff]  ;;  %v13297_v0 = vld [vmem:[%s16026_s30 + $0x68] sm:$0xff] }
 0x3c5   : > { %v14946_v30 = vpop.f32.mrf.mxu0  ;;  %15153 = vmatmul.mubr.msk.bf16.gmra.mxu0 %vm624_vm1, %v13495_v45  ;;  %15134 = vmatprep.mubr.msk.bf16.mxu1 %vm624_vm1, %v11429_v5  ;;  %v8628_v49 = vadd.f32 %v19842_v51, %v18882_v58  ;;  %v8822_v55 = vadd.f32 %v14921_v7, %v8629_v23  ;;  %v8631_v53 = vadd.f32 %v19844_v63, %v19843_v41  ;;  %v9283_v16 = vmax.f32 %v9281_v62, 0.0  ;;  %v19846_v7 = vld [vmem:[#allocation16_spill] sm:$0xff] }
 0x3c6   : > { %v9210_v52 = vadd.f32 %v19111_v59, %v9187_v28  ;;  %15156 = vmatprep.mubr.msk.bf16.mxu0 %vm624_vm1, %v13496_v10  ;;  %v8784_v18 = vpop.f32.mrf.mxu1  ;;  %v11438_v8 = vsel %vm797_vm2, %v11428_v3, %v11437_v57  ;;  %v13498_v15 = vcombine.low %v19106_v1, %v19120_v40  ;;  %v8630_v38 = vadd.f32 %v19846_v7, %v19845_v24  ;;  %v19848_v10 = vld [vmem:[#allocation20_spill] sm:$0xff]  ;;  %v19853_v24 = vld [vmem:[#allocation29_spill] sm:$0xff] }
 0x3c7   : > { %v9138_v48 = vpop.f32.mrf.mxu0  ;;  %v8821_v58 = vadd.f32 %v8772_v17, %v8628_v49  ;;  %v9317_v39 = vsel %vm624_vm1, %v13291_v13, 0.0  ;;  %v11913_v3 = vshrl.u32 %v19188_v46, 16  ;;  %v11917_v1 = vshll.u32 %v19229_v19, 16  ;;  %v19847_v17 = vld [vmem:[#allocation36_spill] sm:$0xff]  ;;  %v19851_v49 = vld [vmem:[#allocation45_spill] sm:$0xff] }
 0x3c8   : > { %v9280_v34 = vadd.f32 %v9278_v2, %v9210_v52  ;;  %v9189_v11 = vadd.f32 %v9138_v48, %v8820_v61  ;;  %v14925_v26 = vpop.f32.mrf.mxu1  ;;  %v8824_v2 = vadd.f32 %v14924_v9, %v8631_v53  ;;  %v11912_v56 = vsel %vm1167_vm3, %v11907_v14, %v11911_v31  ;;  %v19850_v9 = vld [vmem:[#allocation40_spill] sm:$0xff] }
 0x3c9   : > { %v14947_v37 = vpop.f32.mrf.mxu0  ;;  %v8632_v32 = vadd.f32 %v19848_v10, %v19847_v17  ;;  %v8823_v33 = vadd.f32 %v8784_v18, %v8630_v38  ;;  %v11925_v46 = vshll.u32 %v19239_v12, 16  ;;  %v9336_v30 = vsel %vm624_vm1, %v13297_v0, 0.0  ;;  %v19264_v48 = vld [vmem:[#allocation3 + $0x9c] sm:$0xff]   ;;  %v19269_v63 = vld [vmem:[#allocation3 + $0xa4] sm:$0xff]   ;;  %v15697_v0 = vld [vmem:[#allocation3 + $0xac] sm:$0xff]  }
 0x3ca   : > { %v9282_v36 = vmax.f32 %v9280_v34, 0.0  ;;  %v9212_v22 = vadd.f32 %v19111_v59, %v9189_v11  ;;  %v9191_v47 = vadd.f32 %v14947_v37, %v8822_v55  ;;  %v8787_v43 = vpop.f32.mrf.mxu1  ;;  %v11915_v42 = vor.u32 %v11913_v3, %v11911_v31  ;;  %v19854_v10 = vld [vmem:[#allocation32_spill] sm:$0xff] }
 0x3cb   : > { %v9141_v54 = vpop.f32.mrf.mxu0  ;;  %v13499_v61 = vcombine.low %v19122_v29, %v19149_v20  ;;  %v11919_v52 = vrot.slane %v11917_v1, 1  ;;  %v8825_v18 = vadd.f32 %v14925_v26, %v8632_v32  ;;  %v11921_v41 = vshrl.u32 %v19229_v19, 16 }
 0x3cc   : > { %v13709_v40 = vpack.c.bf16 %v9283_v16, %v9282_v36  ;;  %v9190_v45 = vadd.f32 %v9141_v54, %v8821_v58  ;;  %v9299_v21 = vadd.f32 %v9297_v25, %v9212_v22  ;;  %v14928_v28 = vpop.f32.mrf.mxu1  ;;  %15135 = vmatmul.mubr.msk.bf16.gmra.mxu1 %vm624_vm1, %v11438_v8  ;;  %v9214_v35 = vadd.f32 %v19111_v59, %v9191_v47  ;;  %v19849_v25 = vld [vmem:[#allocation27_spill] sm:$0xff] }
 0x3cd   : > { %v14950_v60 = vpop.f32.mrf.mxu0  ;;  %15157 = vmatmul.mubr.msk.bf16.gmra.mxu0 %vm624_vm1, %v13497_v6  ;;  %15166 = vmatprep.mubr.msk.bf16.mxu1 %vm624_vm1, %v11912_v56  ;;  %v8249_v5 = vadd.f32 %v19850_v9, %v19849_v25  ;;  %v11927_v31 = vrot.slane %v11925_v46, 1  ;;  %v11920_v8 = vsel %vm1167_vm3, %v11915_v42, %v11919_v52  ;;  %v11933_v36 = vshll.u32 %v19264_v48, 16 }
 0x3ce   : > { %13773 = vst [vmem:[%s19178_s6 + $0x18] sm:$0xff] %v13709_v40   ;;  %v9213_v4 = vadd.f32 %v19111_v59, %v9190_v45  ;;  %v9193_v62 = vadd.f32 %v14950_v60, %v8824_v2  ;;  %15160 = vmatprep.mubr.msk.bf16.mxu0 %vm624_vm1, %v13498_v15  ;;  %v8799_v23 = vpop.f32.mrf.mxu1  ;;  %v9301_v34 = vmax.f32 %v9299_v21, 0.0  ;;  %v9318_v29 = vadd.f32 %v19211_v50, %v9214_v35  ;;  %v19852_v50 = vld [vmem:[#allocation15_spill] sm:$0xff] }
 0x3cf   : > { %v9153_v57 = vpop.f32.mrf.mxu0  ;;  %v8634_v55 = vadd.f32 %v19851_v49, %v8249_v5  ;;  %v11923_v15 = vor.u32 %v11921_v41, %v11919_v52  ;;  %v8248_v7 = vadd.f32 %v19853_v24, %v19852_v50  ;;  %v11941_v3 = vshll.u32 %v19269_v63, 16 }
 0x3d0   : > { %v9300_v6 = vadd.f32 %v9298_v27, %v9213_v4  ;;  %v9216_v14 = vadd.f32 %v19111_v59, %v9193_v62  ;;  %v9192_v51 = vadd.f32 %v9153_v57, %v8823_v33  ;;  %v14929_v13 = vpop.f32.mrf.mxu1  ;;  %v9320_v1 = vmax.f32 %v9318_v29, 0.0  ;;  %v13302_v57 = vld [vmem:[%s16026_s30 + $0x70] sm:$0xff] }
 0x3d1   : > { %v14951_v11 = vpop.f32.mrf.mxu0  ;;  %v8827_v27 = vadd.f32 %v14928_v28, %v8634_v55  ;;  %v11928_v43 = vsel %vm1167_vm3, %v11923_v15, %v11927_v31  ;;  %v11929_v45 = vshrl.u32 %v19239_v12, 16  ;;  %v11935_v17 = vrot.slane %v11933_v36, 1  ;;  %v13303_v28 = vld [vmem:[%s16026_s30 + $0x78] sm:$0xff]  ;;  %v15700_v36 = vld [vmem:[#allocation3 + $0xc4] sm:$0xff]  }
 0x3d2   : > { %v9302_v20 = vmax.f32 %v9300_v6, 0.0  ;;  %v9215_v53 = vadd.f32 %v19111_v59, %v9192_v51  ;;  %v9194_v16 = vadd.f32 %v14951_v11, %v8825_v18  ;;  %v8801_v26 = vpop.f32.mrf.mxu1  ;;  %v9337_v19 = vadd.f32 %v19225_v44, %v9216_v14  ;;  %v15698_v18 = vld [vmem:[#allocation3 + $0xb4] sm:$0xff]  }
 0x3d3   : > { %v9156_v37 = vpop.f32.mrf.mxu0  ;;  %v8633_v32 = vadd.f32 %v19854_v10, %v8248_v7  ;;  %v11937_v4 = vshrl.u32 %v19264_v48, 16  ;;  %v11943_v62 = vrot.slane %v11941_v3, 1  ;;  %v11931_v5 = vor.u32 %v11929_v45, %v11927_v31 }
 0x3d4   : > { %v13714_v58 = vpack.c.bf16 %v9302_v20, %v9301_v34  ;;  %v9319_v22 = vadd.f32 %v9317_v39, %v9215_v53  ;;  %v9217_v47 = vadd.f32 %v19111_v59, %v9194_v16  ;;  %v14960_v54 = vpop.f32.mrf.mxu1  ;;  %15167 = vmatmul.mubr.msk.bf16.vlgmr.msra.gmra.mxu1 %vm624_vm1, %v11920_v8  ;;  %v9339_v21 = vmax.f32 %v9337_v19, 0.0  ;;  %v15699_v53 = vld [vmem:[#allocation3 + $0xbc] sm:$0xff]  }
 0x3d5   : > { %v14954_v38 = vpop.f32.mrf.mxu0  ;;  %15161 = vmatmul.mubr.msk.bf16.gmra.mxu0 %vm624_vm1, %v13499_v61  ;;  %15170 = vmatprep.mubr.msk.bf16.mxu1 %vm624_vm1, %v11928_v43  ;;  %v8826_v9 = vadd.f32 %v8801_v26, %v8633_v32  ;;  %v9355_v42 = vsel %vm624_vm1, %v13303_v28, 0.0  ;;  %v11939_v52 = vor.u32 %v11937_v4, %v11935_v17  ;;  %v11936_v14 = vsel %vm1167_vm3, %v11931_v5, %v11935_v17 }
 0x3d6   : > { %13774 = vst [vmem:[%s19178_s6 + $0x20] sm:$0xff] %v13714_v58   ;;  %v9321_v44 = vmax.f32 %v9319_v22, 0.0  ;;  %v9338_v39 = vadd.f32 %v9336_v30, %v9217_v47  ;;  %v9196_v40 = vadd.f32 %v14954_v38, %v8827_v27  ;;  %v9536_v56 = vpop.f32.mrf.mxu1  ;;  %v11949_v30 = vshll.u32 %v15697_v0, 16 }
 0x3d7   : > { %v9168_v2 = vpop.f32.mrf.mxu0  ;;  %v9354_v48 = vsel %vm624_vm1, %v13302_v57, 0.0  ;;  %v11944_v55 = vsel %vm1167_vm3, %v11939_v52, %v11943_v62  ;;  %v11953_v29 = vshrl.u32 %v15697_v0, 16  ;;  %v11957_v20 = vshll.u32 %v15698_v18, 16 }
 0x3d8   : > { %v13719_v33 = vpack.c.bf16 %v9321_v44, %v9320_v1  ;;  %v9340_v60 = vmax.f32 %v9338_v39, 0.0  ;;  %v14961_v35 = vpop.f32.mrf.mxu1  ;;  %v9219_v12 = vadd.f32 %v19111_v59, %v9196_v40  ;;  %v11951_v34 = vrot.slane %v11949_v30, 1  ;;  %v15701_v44 = vld [vmem:[#allocation3 + $0xcc] sm:$0xff]  }
 0x3d9   : > { %v14955_v46 = vpop.f32.mrf.mxu0  ;;  %v11945_v37 = vshrl.u32 %v19269_v63, 16  ;;  %v11959_v24 = vrot.slane %v11957_v20, 1  ;;  %v11965_v7 = vshll.u32 %v15699_v53, 16  ;;  %v11973_v1 = vshll.u32 %v15700_v36, 16 }
 0x3da   : > { %13775 = vst [vmem:[%s19178_s6 + $0x28] sm:$0xff] %v13719_v33   ;;  %v13724_v25 = vpack.c.bf16 %v9340_v60, %v9339_v21  ;;  %v9539_v61 = vpop.f32.mrf.mxu1  ;;  %v9357_v11 = vadd.f32 %v9355_v42, %v9219_v12  ;;  %v11955_v15 = vor.u32 %v11953_v29, %v11951_v34  ;;  %v11961_v10 = vshrl.u32 %v15698_v18, 16  ;;  %v15703_v18 = vld [vmem:[#allocation3 + $0xdc] ss:$0 sps:$4 sm:$0x11]  }
 0x3db   : > { %v9170_v23 = vpop.f32.mrf.mxu0  ;;  %v11967_v45 = vrot.slane %v11965_v7, 1  ;;  %v11969_v33 = vshrl.u32 %v15699_v53, 16  ;;  %v11975_v60 = vrot.slane %v11973_v1, 1  ;;  %v11981_v28 = vshll.u32 %v15701_v44, 16 }
 0x3dc   : > { %13776 = vst [vmem:[%s19178_s6 + $0x30] sm:$0xff] %v13724_v25   ;;  %v9195_v6 = vadd.f32 %v9170_v23, %v8826_v9  ;;  %v14964_v49 = vpop.f32.mrf.mxu1  ;;  %15171 = vmatmul.mubr.msk.bf16.gmra.mxu1 %vm624_vm1, %v11936_v14  ;;  %v9359_v58 = vmax.f32 %v9357_v11, 0.0  ;;  %v11960_v0 = vsel %vm1167_vm3, %v11955_v15, %v11959_v24  ;;  %v11963_v46 = vor.u32 %v11961_v10, %v11959_v24 }
 0x3dd   : > { %v14986_v51 = vpop.f32.mrf.mxu0  ;;  %15174 = vmatprep.mubr.msk.bf16.mxu1 %vm624_vm1, %v11944_v55  ;;  %v11971_v30 = vor.u32 %v11969_v33, %v11967_v45  ;;  %v11985_v25 = vshrl.u32 %v15701_v44, 16  ;;  %v11983_v23 = vrot.slane %v11981_v28, 1  ;;  %v11977_v52 = vshrl.u32 %v15700_v36, 16 }
 0x3de   : > { %v9218_v13 = vadd.f32 %v19111_v59, %v9195_v6  ;;  %v9551_v31 = vpop.f32.mrf.mxu1  ;;  %v11947_v59 = vor.u32 %v11945_v37, %v11943_v62  ;;  %v11968_v12 = vsel %vm1167_vm3, %v11963_v46, %v11967_v45 }
 0x3df   : > { %v9830_v41 = vpop.f32.mrf.mxu0  ;;  %v11976_v42 = vsel %vm1167_vm3, %v11971_v30, %v11975_v60 }
 0x3e0   : > { %v9356_v16 = vadd.f32 %v9354_v48, %v9218_v13  ;;  %v19300_v27 = vadd.f32 %v9830_v41, %v9536_v56  ;;  %v14965_v8 = vpop.f32.mrf.mxu1  ;;  %v11952_v43 = vsel %vm1167_vm3, %v11947_v59, %v11951_v34  ;;  %v15702_v56 = vld [vmem:[#allocation3 + $0xd4] sm:$0xff]   ;;  %v11987_v48 = vor.u32 %v11985_v25, %v11983_v23 }
 0x3e1   : > { %v14987_v26 = vpop.f32.mrf.mxu0  ;;  %v11989_v9 = vshll.u32 %v15702_v56, 16  ;;  %v11993_v11 = vshrl.u32 %v15702_v56, 16  ;;  %v11997_v13 = vshll.u32 %v15703_v18, 16 }
 0x3e2   : > { %v9358_v19 = vmax.f32 %v9356_v16, 0.0  ;;  %v19303_v22 = vadd.f32 %v14987_v26, %v14961_v35  ;;  %v9554_v50 = vpop.f32.mrf.mxu1 }
 0x3e3   : > { %v9833_v47 = vpop.f32.mrf.mxu0  ;;  %v11991_v51 = vrot.slane %v11989_v9, 1 }
 0x3e4   : > { %v13729_v38 = vpack.c.bf16 %v9359_v58, %v9358_v19  ;;  %v19305_v54 = vadd.f32 %v9833_v47, %v9539_v61  ;;  %v14968_v3 = vpop.f32.mrf.mxu1  ;;  %15175 = vmatmul.mubr.msk.bf16.gmra.mxu1 %vm624_vm1, %v11952_v43 }
 0x3e5   : > { %v14990_v63 = vpop.f32.mrf.mxu0  ;;  %15178 = vmatprep.mubr.msk.bf16.mxu1 %vm624_vm1, %v11960_v0  ;;  %v11992_v29 = vsel %vm1167_vm3, %v11987_v48, %v11991_v51  ;;  %v11995_v26 = vor.u32 %v11993_v11, %v11991_v51 }
 0x3e6   : > { %13777 = vst [vmem:[%s19178_s6 + $0x38] sm:$0xff] %v13729_v38   ;;  %v19311_v39 = vadd.f32 %v14990_v63, %v14964_v49  ;;  %v9566_v2 = vpop.f32.mrf.mxu1  ;;  %v11979_v49 = vor.u32 %v11977_v52, %v11975_v60 }
 0x3e7   : > { %v9845_v40 = vpop.f32.mrf.mxu0 }
 0x3e8   : > { %v19314_v17 = vadd.f32 %v9845_v40, %v9551_v31  ;;  %v14969_v21 = vpop.f32.mrf.mxu1  ;;  %v11984_v53 = vsel %vm1167_vm3, %v11979_v49, %v11983_v23 }
 0x3e9   : > { %v14991_v32 = vpop.f32.mrf.mxu0 }
 0x3ea   : > { %v19316_v35 = vadd.f32 %v14991_v32, %v14965_v8  ;;  %v9568_v62 = vpop.f32.mrf.mxu1  ;;  %v11999_v8 = vrot.slane %v11997_v13, 1 }
 0x3eb   : > { %v9848_v4 = vpop.f32.mrf.mxu0 }
 0x3ec   : > { %v14972_v57 = vpop.f32.mrf.mxu1  ;;  %15179 = vmatmul.mubr.msk.bf16.gmra.mxu1 %vm624_vm1, %v11968_v12  ;;  %v12000_v50 = vsel %vm1167_vm3, %v11995_v26, %v11999_v8 }
 0x3ed   : > { %v14994_v5 = vpop.f32.mrf.mxu0  ;;  %15182 = vmatprep.mubr.msk.bf16.mxu1 %vm624_vm1, %v11976_v42 }
 0x3ee   : > { %v19321_v61 = vadd.f32 %v14994_v5, %v14968_v3  ;;  %v9580_v14 = vpop.f32.mrf.mxu1 }
 0x3ef   : > { %v9860_v6 = vpop.f32.mrf.mxu0 }
 0x3f0   : > { %v14973_v34 = vpop.f32.mrf.mxu1 }
 0x3f1   : > { %v14995_v55 = vpop.f32.mrf.mxu0 }
 0x3f2   : > { %v9583_v31 = vpop.f32.mrf.mxu1 }
 0x3f3   : > { %v9862_v41 = vpop.f32.mrf.mxu0 }
 0x3f4   : > { %v19325_v20 = vadd.f32 %v9862_v41, %v9568_v62  ;;  %v14976_v37 = vpop.f32.mrf.mxu1  ;;  %15183 = vmatmul.mubr.msk.bf16.gmra.mxu1 %vm624_vm1, %v11984_v53 }
 0x3f5   : > { %v14998_v16 = vpop.f32.mrf.mxu0  ;;  %15186 = vmatprep.mubr.msk.bf16.mxu1 %vm624_vm1, %v11992_v29 }
 0x3f6   : > { %v9595_v36 = vpop.f32.mrf.mxu1 }
 0x3f7   : > { %v9874_v15 = vpop.f32.mrf.mxu0 }
 0x3f8   : > { %v19330_v58 = vadd.f32 %v9874_v15, %v9580_v14  ;;  %v14977_v59 = vpop.f32.mrf.mxu1 }
 0x3f9   : > { %v14999_v19 = vpop.f32.mrf.mxu0 }
 0x3fa   : > { %v19332_v47 = vadd.f32 %v14999_v19, %v14973_v34  ;;  %v9598_v7 = vpop.f32.mrf.mxu1 }
 0x3fb   : > { %v9877_v24 = vpop.f32.mrf.mxu0 }
 0x3fc   : > { %v19335_v38 = vadd.f32 %v9877_v24, %v9583_v31  ;;  %v14980_v63 = vpop.f32.mrf.mxu1  ;;  %15187 = vmatmul.mubr.msk.bf16.gmra.mxu1 %vm624_vm1, %v12000_v50 }
 0x3fd   : > { %v15002_v43 = vpop.f32.mrf.mxu0 }
 0x3fe   : > { %v19338_v3 = vadd.f32 %v15002_v43, %v14976_v37  ;;  %v9610_v1 = vpop.f32.mrf.mxu1 }
 0x3ff   : > { %v9889_v0 = vpop.f32.mrf.mxu0 }
 0x400   : > { %v19340_v44 = vadd.f32 %v9889_v0, %v9595_v36  ;;  %v14981_v2 = vpop.f32.mrf.mxu1 }
 0x401   : > { %v15003_v40 = vpop.f32.mrf.mxu0 }
 0x402   : > { %v19342_v45 = vadd.f32 %v15003_v40, %v14977_v59  ;;  %v9612_v10 = vpop.f32.mrf.mxu1 }
 0x403   : > { %v9892_v56 = vpop.f32.mrf.mxu0 }
 0x404   : > { %v15012_v21 = vpop.f32.mrf.mxu1 }
 0x405   : > { %v15006_v32 = vpop.f32.mrf.mxu0 }
 0x406   : > { %v19344_v33 = vadd.f32 %v15006_v32, %v14980_v63  ;;  %v10183_v28 = vpop.f32.mrf.mxu1 }
 0x407   : > { %v9904_v60 = vpop.f32.mrf.mxu0  ;;  %v10270_v46 = vadd.f32 %v10183_v28, %v19300_v27 }
 0x408   : > { %v15013_v62 = vpop.f32.mrf.mxu1 }
 0x409   : > { %v15007_v4 = vpop.f32.mrf.mxu0  ;;  %v10272_v30 = vadd.f32 %v15013_v62, %v19303_v22 }
 0x40a   : > { %v10186_v9 = vpop.f32.mrf.mxu1 }
 0x40b   : > { %v9906_v25 = vpop.f32.mrf.mxu0  ;;  %v10271_v5 = vadd.f32 %v10186_v9, %v19305_v54 }
 0x40c   : > { %v19348_v12 = vadd.f32 %v9906_v25, %v9612_v10  ;;  %v15016_v42 = vpop.f32.mrf.mxu1 }
 0x40d   : > { %v15038_v57 = vpop.f32.mrf.mxu0  ;;  %v10274_v23 = vadd.f32 %v15016_v42, %v19311_v39 }
 0x40e   : > { %v10198_v18 = vpop.f32.mrf.mxu1 }
 0x40f   : > { %v10568_v52 = vpop.f32.mrf.mxu0  ;;  %v10273_v27 = vadd.f32 %v10198_v18, %v19314_v17 }
 0x410   : > { %v19352_v6 = vadd.f32 %v10568_v52, %v10270_v46  ;;  %v15017_v48 = vpop.f32.mrf.mxu1 }
 0x411   : > { %v15039_v14 = vpop.f32.mrf.mxu0  ;;  %v10275_v22 = vadd.f32 %v15017_v48, %v19316_v35 }
 0x412   : > { %v19355_v51 = vadd.f32 %v15039_v14, %v10272_v30  ;;  %v10201_v55 = vpop.f32.mrf.mxu1 }
 0x413   : > { %v10571_v49 = vpop.f32.mrf.mxu0 }
 0x414   : > { %v19358_v34 = vadd.f32 %v10571_v49, %v10271_v5  ;;  %v15020_v11 = vpop.f32.mrf.mxu1 }
 0x415   : > { %v15042_v54 = vpop.f32.mrf.mxu0  ;;  %v10277_v39 = vadd.f32 %v15020_v11, %v19321_v61 }
 0x416   : > { %v19360_v13 = vadd.f32 %v15042_v54, %v10274_v23  ;;  %v10213_v31 = vpop.f32.mrf.mxu1 }
 0x417   : > { %v10583_v41 = vpop.f32.mrf.mxu0 }
 0x418   : > { %v19363_v29 = vadd.f32 %v10583_v41, %v10273_v27  ;;  %v15021_v53 = vpop.f32.mrf.mxu1 }
 0x419   : > { %v15043_v17 = vpop.f32.mrf.mxu0 }
 0x41a   : > { %v19365_v16 = vadd.f32 %v15043_v17, %v10275_v22  ;;  %v10215_v35 = vpop.f32.mrf.mxu1 }
 0x41b   : > { %v10586_v37 = vpop.f32.mrf.mxu0  ;;  %v10276_v26 = vadd.f32 %v10215_v35, %v19325_v20 }
 0x41c   : > { %v15024_v15 = vpop.f32.mrf.mxu1 }
 0x41d   : > { %v15046_v8 = vpop.f32.mrf.mxu0 }
 0x41e   : > { %v19368_v36 = vadd.f32 %v15046_v8, %v10277_v39  ;;  %v10227_v59 = vpop.f32.mrf.mxu1 }
 0x41f   : > { %v10598_v19 = vpop.f32.mrf.mxu0  ;;  %v10278_v61 = vadd.f32 %v10227_v59, %v19330_v58 }
 0x420   : > { %v15025_v24 = vpop.f32.mrf.mxu1 }
 0x421   : > { %v15047_v50 = vpop.f32.mrf.mxu0  ;;  %v10280_v7 = vadd.f32 %v15025_v24, %v19332_v47 }
 0x422   : > { %v10230_v63 = vpop.f32.mrf.mxu1 }
 0x423   : > { %v10600_v43 = vpop.f32.mrf.mxu0  ;;  %v10279_v1 = vadd.f32 %v10230_v63, %v19335_v38 }
 0x424   : > { %v19372_v0 = vadd.f32 %v10600_v43, %v10276_v26  ;;  %v15028_v20 = vpop.f32.mrf.mxu1 }
 0x425   : > { %v15050_v40 = vpop.f32.mrf.mxu0  ;;  %v10282_v2 = vadd.f32 %v15028_v20, %v19338_v3 }
 0x426   : > { %v10242_v10 = vpop.f32.mrf.mxu1 }
 0x427   : > { %v10612_v56 = vpop.f32.mrf.mxu0  ;;  %v10281_v58 = vadd.f32 %v10242_v10, %v19340_v44 }
 0x428   : > { %v19376_v32 = vadd.f32 %v10612_v56, %v10278_v61  ;;  %v15029_v60 = vpop.f32.mrf.mxu1 }
 0x429   : > { %v15051_v21 = vpop.f32.mrf.mxu0  ;;  %v10283_v47 = vadd.f32 %v15029_v60, %v19342_v45 }
 0x42a   : > { %v19379_v28 = vadd.f32 %v15051_v21, %v10280_v7  ;;  %v10245_v4 = vpop.f32.mrf.mxu1 }
 0x42b   : > { %v10615_v46 = vpop.f32.mrf.mxu0 }
 0x42c   : > { %v19382_v62 = vadd.f32 %v10615_v46, %v10279_v1  ;;  %v15032_v30 = vpop.f32.mrf.mxu1 }
 0x42d   : > { %v15054_v38 = vpop.f32.mrf.mxu0  ;;  %v10285_v3 = vadd.f32 %v15032_v30, %v19344_v33 }
 0x42e   : > { %v19384_v25 = vadd.f32 %v15054_v38, %v10282_v2  ;;  %v10257_v5 = vpop.f32.mrf.mxu1 }
 0x42f   : > { %v10627_v9 = vpop.f32.mrf.mxu0 }
 0x430   : > { %v19387_v57 = vadd.f32 %v10627_v9, %v10281_v58  ;;  %v15033_v42 = vpop.f32.mrf.mxu1 }
 0x431   : > { %v15055_v44 = vpop.f32.mrf.mxu0 }
 0x432   : > { %v19389_v23 = vadd.f32 %v15055_v44, %v10283_v47  ;;  %v10259_v45 = vpop.f32.mrf.mxu1 }
 0x433   : > { %v10630_v52 = vpop.f32.mrf.mxu0  ;;  %v10284_v18 = vadd.f32 %v10259_v45, %v19348_v12 }
 0x434   : > { %v15064_v14 = vpop.f32.mrf.mxu1 }
 0x435   : > { %v15058_v27 = vpop.f32.mrf.mxu0 }
 0x436   : > { %v19392_v48 = vadd.f32 %v15058_v27, %v10285_v3  ;;  %v10761_v49 = vpop.f32.mrf.mxu1 }
 0x437   : > { %v10642_v22 = vpop.f32.mrf.mxu0  ;;  %v10848_v33 = vadd.f32 %v10761_v49, %v19352_v6 }
 0x438   : > { %v15065_v54 = vpop.f32.mrf.mxu1 }
 0x439   : > { %v15059_v55 = vpop.f32.mrf.mxu0  ;;  %v10850_v11 = vadd.f32 %v15065_v54, %v19355_v51 }
 0x43a   : > { %v10764_v41 = vpop.f32.mrf.mxu1 }
 0x43b   : > { %v10644_v39 = vpop.f32.mrf.mxu0  ;;  %v10849_v17 = vadd.f32 %v10764_v41, %v19358_v34 }
 0x43c   : > { %v19396_v31 = vadd.f32 %v10644_v39, %v10284_v18  ;;  %v15068_v12 = vpop.f32.mrf.mxu1 }
 0x43d   : > { %v15090_v53 = vpop.f32.mrf.mxu0  ;;  %v10852_v37 = vadd.f32 %v15068_v12, %v19360_v13 }
 0x43e   : > { %v10776_v26 = vpop.f32.mrf.mxu1 }
 0x43f   : > { %v11130_v35 = vpop.f32.mrf.mxu0  ;;  %v10851_v6 = vadd.f32 %v10776_v26, %v19363_v29 }
 0x440   : > { %v19400_v8 = vadd.f32 %v11130_v35, %v10848_v33  ;;  %v15069_v19 = vpop.f32.mrf.mxu1 }
 0x441   : > { %v15091_v15 = vpop.f32.mrf.mxu0  ;;  %v10853_v51 = vadd.f32 %v15069_v19, %v19365_v16 }
 0x442   : > { %v19403_v59 = vadd.f32 %v15091_v15, %v10850_v11  ;;  %v10779_v50 = vpop.f32.mrf.mxu1 }
 0x443   : > { %v11133_v61 = vpop.f32.mrf.mxu0 }
 0x444   : > { %v19406_v24 = vadd.f32 %v11133_v61, %v10849_v17  ;;  %v15072_v7 = vpop.f32.mrf.mxu1 }
 0x445   : > { %v15094_v34 = vpop.f32.mrf.mxu0  ;;  %v10855_v13 = vadd.f32 %v15072_v7, %v19368_v36 }
 0x446   : > { %v19408_v43 = vadd.f32 %v15094_v34, %v10852_v37  ;;  %v10791_v1 = vpop.f32.mrf.mxu1 }
 0x447   : > { %v11145_v63 = vpop.f32.mrf.mxu0 }
 0x448   : > { %v19411_v40 = vadd.f32 %v11145_v63, %v10851_v6  ;;  %v15073_v20 = vpop.f32.mrf.mxu1 }
 0x449   : > { %v15095_v29 = vpop.f32.mrf.mxu0 }
 0x44a   : > { %v19413_v2 = vadd.f32 %v15095_v29, %v10853_v51  ;;  %v10793_v16 = vpop.f32.mrf.mxu1 }
 0x44b   : > { %v11148_v56 = vpop.f32.mrf.mxu0  ;;  %v10854_v10 = vadd.f32 %v10793_v16, %v19372_v0 }
 0x44c   : > { %v15076_v21 = vpop.f32.mrf.mxu1 }
 0x44d   : > { %v15098_v58 = vpop.f32.mrf.mxu0 }
 0x44e   : > { %v19416_v60 = vadd.f32 %v15098_v58, %v10855_v13  ;;  %v10805_v46 = vpop.f32.mrf.mxu1 }
 0x44f   : > { %v11160_v47 = vpop.f32.mrf.mxu0  ;;  %v10856_v36 = vadd.f32 %v10805_v46, %v19376_v32 }
 0x450   : > { %v15077_v38 = vpop.f32.mrf.mxu1 }
 0x451   : > { %v15099_v4 = vpop.f32.mrf.mxu0  ;;  %v10858_v30 = vadd.f32 %v15077_v38, %v19379_v28 }
 0x452   : > { %v10808_v9 = vpop.f32.mrf.mxu1 }
 0x453   : > { %v11162_v3 = vpop.f32.mrf.mxu0  ;;  %v10857_v44 = vadd.f32 %v10808_v9, %v19382_v62 }
 0x454   : > { %v19420_v5 = vadd.f32 %v11162_v3, %v10854_v10  ;;  %v15080_v0 = vpop.f32.mrf.mxu1 }
 0x455   : > { %v15102_v42 = vpop.f32.mrf.mxu0  ;;  %v10860_v52 = vadd.f32 %v15080_v0, %v19384_v25 }
 0x456   : > { %v10820_v18 = vpop.f32.mrf.mxu1 }
 0x457   : > { %v11174_v45 = vpop.f32.mrf.mxu0  ;;  %v10859_v32 = vadd.f32 %v10820_v18, %v19387_v57 }
 0x458   : > { %v19424_v27 = vadd.f32 %v11174_v45, %v10856_v36  ;;  %v15081_v22 = vpop.f32.mrf.mxu1 }
 0x459   : > { %v15103_v14 = vpop.f32.mrf.mxu0  ;;  %v10861_v28 = vadd.f32 %v15081_v22, %v19389_v23 }
 0x45a   : > { %v19427_v49 = vadd.f32 %v15103_v14, %v10858_v30  ;;  %v10823_v55 = vpop.f32.mrf.mxu1 }
 0x45b   : > { %v11177_v33 = vpop.f32.mrf.mxu0 }
 0x45c   : > { %v19430_v54 = vadd.f32 %v11177_v33, %v10857_v44  ;;  %v15084_v11 = vpop.f32.mrf.mxu1 }
 0x45d   : > { %v15106_v62 = vpop.f32.mrf.mxu0  ;;  %v10863_v25 = vadd.f32 %v15084_v11, %v19392_v48 }
 0x45e   : > { %v19432_v39 = vadd.f32 %v15106_v62, %v10860_v52  ;;  %v10835_v17 = vpop.f32.mrf.mxu1 }
 0x45f   : > { %v11189_v41 = vpop.f32.mrf.mxu0 }
 0x460   : > { %v19435_v53 = vadd.f32 %v11189_v41, %v10859_v32  ;;  %v15085_v12 = vpop.f32.mrf.mxu1 }
 0x461   : > { %v15107_v57 = vpop.f32.mrf.mxu0 }
 0x462   : > { %v19437_v37 = vadd.f32 %v15107_v57, %v10861_v28  ;;  %v10837_v23 = vpop.f32.mrf.mxu1 }
 0x463   : > { %v11192_v35 = vpop.f32.mrf.mxu0  ;;  %v10862_v26 = vadd.f32 %v10837_v23, %v19396_v31 }
 0x464   : > { %v15116_v15 = vpop.f32.mrf.mxu1 }
 0x465   : > { %v15110_v6 = vpop.f32.mrf.mxu0 }
 0x466   : > { %v19440_v19 = vadd.f32 %v15110_v6, %v10863_v25  ;;  %v11515_v61 = vpop.f32.mrf.mxu1 }
 0x467   : > { %v11204_v51 = vpop.f32.mrf.mxu0  ;;  %v11602_v6 = vadd.f32 %v11515_v61, %v19400_v8 }
 0x468   : > { %v15117_v48 = vpop.f32.mrf.mxu1 }
 0x469   : > { %v15111_v50 = vpop.f32.mrf.mxu0 }
 0x46a   : > { %v11518_v7 = vpop.f32.mrf.mxu1  ;;  %v11604_v50 = vadd.f32 %v15117_v48, %v19403_v59 }
 0x46b   : > { %v11206_v34 = vpop.f32.mrf.mxu0 }
 0x46c   : > { %v19442_v13 = vadd.f32 %v11206_v34, %v10862_v26  ;;  %v15120_v1 = vpop.f32.mrf.mxu1 }
 0x46d   : > { %v15142_v63 = vpop.f32.mrf.mxu0  ;;  %v11606_v59 = vadd.f32 %v15120_v1, %v19408_v43 }
 0x46e   : > { %v11530_v20 = vpop.f32.mrf.mxu1  ;;  %v13540_v63 = vld [vmem:[%s16026_s30 + $0x80] sm:$0xff] }
 0x46f   : > { %v11708_v29 = vpop.f32.mrf.mxu0  ;;  %v12205_v61 = vsel %vm624_vm1, %v13540_v63, 0.0  ;;  %v13552_v63 = vld [vmem:[%s16026_s30 + $0xa0] sm:$0xff] }
 0x470   : > { %v15121_v16 = vpop.f32.mrf.mxu1  ;;  %v11795_v34 = vadd.f32 %v11708_v29, %v11602_v6 }
 0x471   : > { %v15143_v56 = vpop.f32.mrf.mxu0 }
 0x472   : > { %v11533_v31 = vpop.f32.mrf.mxu1 }
 0x473   : > { %v11711_v10 = vpop.f32.mrf.mxu0 }
 0x474   : > { %v19444_v21 = vpop.f32.mrf.mxu1 }
 0x475   : > { %v15146_v58 = vpop.f32.mrf.mxu0 }
 0x476   : > { %v11545_v46 = vpop.f32.mrf.mxu1 }
 0x477   : > { %v11723_v47 = vpop.f32.mrf.mxu0 }
 0x478   : > { %v15125_v4 = vpop.f32.mrf.mxu1 }
 0x479   : > { %v19446_v36 = vpop.f32.mrf.mxu0  ;;  %v19490_v4 = vld [vmem:[%s19635_s4] ss:$0 sm:$0xff] }
 0x47a   : > { %v19448_v30 = vpop.f32.mrf.mxu1 }
 0x47b   : > { %v11726_v38 = vpop.f32.mrf.mxu0 }
 0x47c   : > { %v15128_v9 = vpop.f32.mrf.mxu1  ;;  %v11603_v38 = vadd.f32 %v11518_v7, %v19406_v24  ;;  %v13546_v24 = vld [vmem:[%s16026_s30 + $0x90] sm:$0xff] }
 0x47d   : > { %v19450_v3 = vpop.f32.mrf.mxu0  ;;  %v11797_v9 = vadd.f32 %v15143_v56, %v11604_v50  ;;  %v11607_v56 = vadd.f32 %v15121_v16, %v19413_v2 }
 0x47e   : > { %v19452_v42 = vpop.f32.mrf.mxu1  ;;  %v11796_v48 = vadd.f32 %v11711_v10, %v11603_v38  ;;  %v13553_v38 = vld [vmem:[%s16026_s30 + $0xa8] sm:$0xff] }
 0x47f   : > { %v11738_v44 = vpop.f32.mrf.mxu0 }
 0x480   : > { %v19454_v52 = vpop.f32.mrf.mxu1 }
 0x481   : > { %v15151_v0 = vpop.f32.mrf.mxu0 }
 0x482   : > { %v19458_v18 = vpop.f32.mrf.mxu1 }
 0x483   : > { %v19456_v45 = vpop.f32.mrf.mxu0 }
 0x484   : > { %v19460_v14 = vpop.f32.mrf.mxu1 }
 0x485   : > { %v15154_v32 = vpop.f32.mrf.mxu0 }
 0x486   : > { %v19464_v28 = vpop.f32.mrf.mxu1 }
 0x487   : > { %v19462_v22 = vpop.f32.mrf.mxu0 }
 0x488   : > { %v19468_v55 = vpop.f32.mrf.mxu1 }
 0x489   : > { %v19466_v33 = vpop.f32.mrf.mxu0 }
 0x48a   : > { %v11577_v11 = vpop.f32.mrf.mxu1 }
 0x48b   : > { %v19470_v62 = vpop.f32.mrf.mxu0  ;;  %v13541_v11 = vld [vmem:[%s16026_s30 + $0x88] sm:$0xff] }
 0x48c   : > { %v19474_v41 = vpop.f32.mrf.mxu1 }
 0x48d   : > { %v19472_v25 = vpop.f32.mrf.mxu0 }
 0x48e   : > { %v11589_v57 = vpop.f32.mrf.mxu1 }
 0x48f   : > { %v19476_v17 = vpop.f32.mrf.mxu0 }
 0x490   : > { %v15137_v35 = vpop.f32.mrf.mxu1 }
 0x491   : > { %v19478_v12 = vpop.f32.mrf.mxu0  ;;  %v11605_v35 = vadd.f32 %v11530_v20, %v19411_v40  ;;  %v12224_v40 = vsel %vm624_vm1, %v13546_v24, 0.0 }
 0x492   : > { %v19480_v26 = vpop.f32.mrf.mxu1 }
 0x493   : > { %v11770_v23 = vpop.f32.mrf.mxu0  ;;  %v11798_v1 = vadd.f32 %v11723_v47, %v11605_v35  ;;  %v11609_v47 = vadd.f32 %v19444_v21, %v19416_v60 }
 0x494   : > { %v15168_v51 = vpop.f32.mrf.mxu1  ;;  %v11799_v23 = vadd.f32 %v15146_v58, %v11606_v59  ;;  %v11800_v58 = vadd.f32 %v19446_v36, %v11607_v56 }
 0x495   : > { %v19483_v15 = vpop.f32.mrf.mxu0  ;;  %v12206_v51 = vsel %vm624_vm1, %v13541_v11, 0.0 }
 0x496   : > { %v12077_v46 = vpop.f32.mrf.mxu1 }
 0x497   : > { %v11782_v31 = vpop.f32.mrf.mxu0  ;;  %v12164_v8 = vadd.f32 %v12077_v46, %v11795_v34 }
 0x498   : > { %v15169_v0 = vpop.f32.mrf.mxu1  ;;  %v13547_v31 = vld [vmem:[%s16026_s30 + $0x98] sm:$0xff] }
 0x499   : > { %v15163_v44 = vpop.f32.mrf.mxu0  ;;  %v12187_v29 = vadd.f32 %v19490_v4, %v12164_v8  ;;  %v12166_v32 = vadd.f32 %v15169_v0, %v11797_v9  ;;  %v12243_v8 = vsel %vm624_vm1, %v13552_v63, 0.0 }
 0x49a   : > { %v12080_v57 = vpop.f32.mrf.mxu1 }
 0x49b   : > { %v12165_v7 = vadd.f32 %v12080_v57, %v11796_v48  ;;  %v12207_v6 = vadd.f32 %v12205_v61, %v12187_v29  ;;  %v12189_v10 = vadd.f32 %v19490_v4, %v12166_v32  ;;  %v12225_v61 = vsel %vm624_vm1, %v13547_v31, 0.0 }
 0x49c   : > { %v15172_v43 = vpop.f32.mrf.mxu1  ;;  %v11802_v29 = vadd.f32 %v19450_v3, %v11609_v47  ;;  %v12244_v32 = vsel %vm624_vm1, %v13553_v38, 0.0  ;;  %v11608_v3 = vadd.f32 %v19448_v30, %v19420_v5 }
 0x49d   : > { %v12188_v50 = vadd.f32 %v19490_v4, %v12165_v7  ;;  %v12168_v34 = vadd.f32 %v15172_v43, %v11799_v23  ;;  %v12209_v9 = vmax.f32 %v12207_v6, 0.0  ;;  %v12226_v0 = vadd.f32 %v12224_v40, %v12189_v10 }
 0x49e   : > { %v12092_v20 = vpop.f32.mrf.mxu1  ;;  %v11801_v63 = vadd.f32 %v19456_v45, %v11608_v3  ;;  %v11612_v45 = vadd.f32 %v19454_v52, %v19427_v49 }
 0x49f   : > { %v12208_v46 = vadd.f32 %v12206_v51, %v12188_v50  ;;  %v12191_v2 = vadd.f32 %v19490_v4, %v12168_v34  ;;  %v12167_v16 = vadd.f32 %v12092_v20, %v11798_v1  ;;  %v12228_v24 = vmax.f32 %v12226_v0, 0.0  ;;  %v13559_v50 = vld [vmem:[%s16026_s30 + $0xb8] sm:$0xff]  ;;  %v13558_v20 = vld [vmem:[%s16026_s30 + $0xb0] sm:$0xff] }
 0x4a0   : > { %v15173_v44 = vpop.f32.mrf.mxu1  ;;  %v12262_v30 = vsel %vm624_vm1, %v13558_v20, 0.0 }
 0x4a1   : > { %v12210_v59 = vmax.f32 %v12208_v46, 0.0  ;;  %v12190_v48 = vadd.f32 %v19490_v4, %v12167_v16  ;;  %v12169_v36 = vadd.f32 %v15173_v44, %v11800_v58  ;;  %v12245_v60 = vadd.f32 %v12243_v8, %v12191_v2  ;;  %v13564_v8 = vld [vmem:[%s16026_s30 + $0xc0] sm:$0xff] }
 0x4a2   : > { %v12095_v11 = vpop.f32.mrf.mxu1  ;;  %v12263_v58 = vsel %vm624_vm1, %v13559_v50, 0.0  ;;  %v11610_v2 = vadd.f32 %v19452_v42, %v19424_v27  ;;  %v11805_v27 = vadd.f32 %v19466_v33, %v11612_v45  ;;  %v12281_v52 = vsel %vm624_vm1, %v13564_v8, 0.0 }
 0x4a3   : > { %v13734_v57 = vpack.c.bf16 %v12210_v59, %v12209_v9  ;;  %v12227_v21 = vadd.f32 %v12225_v61, %v12190_v48  ;;  %v12192_v35 = vadd.f32 %v19490_v4, %v12169_v36  ;;  %v12247_v43 = vmax.f32 %v12245_v60, 0.0 }
 0x4a4   : > { %v15176_v23 = vpop.f32.mrf.mxu1  ;;  %v11803_v38 = vadd.f32 %v19462_v22, %v11610_v2  ;;  %v11611_v61 = vadd.f32 %v19458_v18, %v19430_v54  ;;  %v11614_v59 = vadd.f32 %v19460_v14, %v19432_v39  ;;  %v13565_v18 = vld [vmem:[%s16026_s30 + $0xc8] sm:$0xff]  ;;  %v11616_v8 = vadd.f32 %v19480_v26, %v19442_v13 }
 0x4a5   : > { %13778 = vst [vmem:[%s19178_s6 + $0x40] sm:$0xff] %v13734_v57   ;;  %v12229_v7 = vmax.f32 %v12227_v21, 0.0  ;;  %v12246_v56 = vadd.f32 %v12244_v32, %v12192_v35  ;;  %v12171_v6 = vadd.f32 %v15176_v23, %v11802_v29  ;;  %v11613_v32 = vadd.f32 %v19464_v28, %v19435_v53 }
 0x4a6   : > { %v12107_v51 = vpop.f32.mrf.mxu1  ;;  %v11804_v49 = vadd.f32 %v19470_v62, %v11611_v61  ;;  %v11807_v39 = vadd.f32 %v19472_v25, %v11614_v59  ;;  %v13570_v62 = vld [vmem:[%s16026_s30 + $0xd0] sm:$0xff]  ;;  %v11615_v57 = vadd.f32 %v19468_v55, %v19437_v37  ;;  %v12282_v21 = vsel %vm624_vm1, %v13565_v18, 0.0  ;;  %v13576_v25 = vld [vmem:[%s16026_s30 + $0xe0] sm:$0xff] }
 0x4a7   : > { %v13739_v1 = vpack.c.bf16 %v12229_v7, %v12228_v24  ;;  %v12248_v10 = vmax.f32 %v12246_v56, 0.0  ;;  %v12194_v40 = vadd.f32 %v19490_v4, %v12171_v6  ;;  %v11806_v23 = vadd.f32 %v19476_v17, %v11613_v32  ;;  %v13571_v7 = vld [vmem:[%s16026_s30 + $0xd8] sm:$0xff] }
 0x4a8   : > { %v15177_v34 = vpop.f32.mrf.mxu1  ;;  %v12300_v56 = vsel %vm624_vm1, %v13570_v62, 0.0  ;;  %v11808_v37 = vadd.f32 %v19478_v12, %v11615_v57  ;;  %v11617_v17 = vadd.f32 %v19474_v41, %v19440_v19  ;;  %v12301_v50 = vsel %vm624_vm1, %v13571_v7, 0.0 }
 0x4a9   : > { %13779 = vst [vmem:[%s19178_s6 + $0x48] sm:$0xff] %v13739_v1   ;;  %v13744_v31 = vpack.c.bf16 %v12248_v10, %v12247_v43  ;;  %v12265_v47 = vadd.f32 %v12263_v58, %v12194_v40  ;;  %v13577_v43 = vld [vmem:[%s16026_s30 + $0xe8] sm:$0xff]  ;;  %v12319_v10 = vsel %vm624_vm1, %v13576_v25, 0.0 }
 0x4aa   : > { %v12109_v46 = vpop.f32.mrf.mxu1  ;;  %v11810_v20 = vadd.f32 %v19483_v15, %v11617_v17  ;;  %v12320_v58 = vsel %vm624_vm1, %v13577_v43, 0.0 }
 0x4ab   : > { %13780 = vst [vmem:[%s19178_s6 + $0x50] sm:$0xff] %v13744_v31   ;;  %v12170_v5 = vadd.f32 %v12109_v46, %v11801_v63  ;;  %v12267_v48 = vmax.f32 %v12265_v47, 0.0 }
 0x4ac   : > { %v15180_v16 = vpop.f32.mrf.mxu1 }
 0x4ad   : > { %v12193_v9 = vadd.f32 %v19490_v4, %v12170_v5 }
 0x4ae   : > { %v12121_v44 = vpop.f32.mrf.mxu1 }
 0x4af   : > { %v12264_v42 = vadd.f32 %v12262_v30, %v12193_v9  ;;  %v12172_v0 = vadd.f32 %v12121_v44, %v11803_v38  ;;  %v11784_v9 = vpop.f32.mrf.mxu0 }
 0x4b0   : > { %v15181_v22 = vpop.f32.mrf.mxu1  ;;  %v11809_v59 = vadd.f32 %v11784_v9, %v11616_v8 }
 0x4b1   : > { %v12266_v36 = vmax.f32 %v12264_v42, 0.0  ;;  %v12195_v29 = vadd.f32 %v19490_v4, %v12172_v0  ;;  %v12174_v54 = vadd.f32 %v15181_v22, %v11805_v27  ;;  %v13583_v42 = vld [vmem:[%s16026_s30 + $0xf8] sm:$0xff]  ;;  %v13582_v22 = vld [vmem:[%s16026_s30 + $0xf0] sm:$0xff]  ;;  %s19585_s30 = scalar_lea.hbm %s19636_s5, %s13690_s13 }
 0x4b2   : > { %v12124_v33 = vpop.f32.mrf.mxu1  ;;  %v12338_v26 = vsel %vm624_vm1, %v13582_v22, 0.0 }
 0x4b3   : > { %v13749_v14 = vpack.c.bf16 %v12267_v48, %v12266_v36  ;;  %v12173_v11 = vadd.f32 %v12124_v33, %v11804_v49  ;;  %v12283_v60 = vadd.f32 %v12281_v52, %v12195_v29  ;;  %v12197_v24 = vadd.f32 %v19490_v4, %v12174_v54 }
 0x4b4   : > { %v15184_v35 = vpop.f32.mrf.mxu1  ;;  %v12339_v48 = vsel %vm624_vm1, %v13583_v42, 0.0 }
 0x4b5   : > { %13781 = vst [vmem:[%s19178_s6 + $0x58] sm:$0xff] %v13749_v14   ;;  %v12196_v53 = vadd.f32 %v19490_v4, %v12173_v11  ;;  %v12176_v28 = vadd.f32 %v15184_v35, %v11807_v39  ;;  %v12285_v1 = vmax.f32 %v12283_v60, 0.0  ;;  %v12302_v63 = vadd.f32 %v12300_v56, %v12197_v24 }
 0x4b6   : > { %v12136_v6 = vpop.f32.mrf.mxu1 }
 0x4b7   : > { %v12284_v55 = vadd.f32 %v12282_v21, %v12196_v53  ;;  %v12199_v51 = vadd.f32 %v19490_v4, %v12176_v28  ;;  %v12175_v3 = vadd.f32 %v12136_v6, %v11806_v23  ;;  %v12304_v16 = vmax.f32 %v12302_v63, 0.0 }
 0x4b8   : > { %v15185_v34 = vpop.f32.mrf.mxu1 }
 0x4b9   : > { %v12286_v31 = vmax.f32 %v12284_v55, 0.0  ;;  %v12198_v40 = vadd.f32 %v19490_v4, %v12175_v3  ;;  %v12177_v12 = vadd.f32 %v15185_v34, %v11808_v37  ;;  %v12321_v19 = vadd.f32 %v12319_v10, %v12199_v51 }
 0x4ba   : > { %v12139_v46 = vpop.f32.mrf.mxu1 }
 0x4bb   : > { %v13754_v2 = vpack.c.bf16 %v12286_v31, %v12285_v1  ;;  %v12303_v41 = vadd.f32 %v12301_v50, %v12198_v40  ;;  %v12200_v5 = vadd.f32 %v19490_v4, %v12177_v12  ;;  %v12323_v61 = vmax.f32 %v12321_v19, 0.0 }
 0x4bc   : > { %v15188_v30 = vpop.f32.mrf.mxu1 }
 0x4bd   : > { %13782 = vst [vmem:[%s19178_s6 + $0x60] sm:$0xff] %v13754_v2   ;;  %v12305_v45 = vmax.f32 %v12303_v41, 0.0  ;;  %v12322_v38 = vadd.f32 %v12320_v58, %v12200_v5  ;;  %v12179_v47 = vadd.f32 %v15188_v30, %v11810_v20 }
 0x4be   : > { %v12151_v15 = vpop.f32.mrf.mxu1 }
 0x4bf   : > { %v13759_v44 = vpack.c.bf16 %v12305_v45, %v12304_v16  ;;  %v12324_v27 = vmax.f32 %v12322_v38, 0.0  ;;  %v12202_v52 = vadd.f32 %v19490_v4, %v12179_v47 }
 0x4c0   : > { %v15189_v0 = vpop.f32.mrf.mxu1 }
 0x4c1   : > { %13783 = vst [vmem:[%s19178_s6 + $0x68] sm:$0xff] %v13759_v44   ;;  %v13764_v49 = vpack.c.bf16 %v12324_v27, %v12323_v61  ;;  %v12341_v29 = vadd.f32 %v12339_v48, %v12202_v52 }
 0x4c2   : > { %v12153_v36 = vpop.f32.mrf.mxu1 }
 0x4c3   : > { %13784 = vst [vmem:[%s19178_s6 + $0x70] sm:$0xff] %v13764_v49   ;;  %v12178_v13 = vadd.f32 %v12153_v36, %v11809_v59  ;;  %v12343_v33 = vmax.f32 %v12341_v29, 0.0 }
 0x4c5   : > { %v12201_v54 = vadd.f32 %v19490_v4, %v12178_v13 }
 0x4c7   : > { %v12340_v18 = vadd.f32 %v12338_v26, %v12201_v54 }
 0x4c9   : > { %v12342_v32 = vmax.f32 %v12340_v18, 0.0 }
 0x4cb   : > { %v13769_v39 = vpack.c.bf16 %v12343_v33, %v12342_v32 }
 0x4cd   : > { %13785 = vst [vmem:[%s19178_s6 + $0x78] sm:$0xff] %v13769_v39  }
 0x4ce   : > { %15797 = shalt.err (!%p15794_p9)
}
 0x4cf   : > { %s15798_s11 = scalar_lea.hbm %s19585_s30, 2048  ;;  %s15802_s6 = scalar_lea.hbm %s19636_s5, 4096 }
 0x4d0   : > { %p15799_p13 = scmp.ne.s32.totalorder %s19585_s30, %s15798_s11  ;;  %p15803_p4 = scmp.lt.s32.totalorder %s19585_s30, %s19636_s5 }
 0x4d1   : > { %p15804_p8 = scmp.lt.s32.totalorder %s15802_s6, %s15798_s11 }
 0x4d2   : > { %p15800_p5 = pnand %p15799_p13, %p19855_p10 }
 0x4d3   : > { %p15805_p3 = por %p15804_p8, %p15803_p4 }
 0x4d4   : > { %p15801_p0 = pneg %p15800_p5 }
 0x4d6   : > { %p15806_p11 = pnand %p15805_p3, %p15801_p0 }
 0x4d8   : > { %15809 = shalt.err (!%p15806_p11)
}
 0x4d9   : > { %s15863_s13 = smov 64   ;;  %s15864_s17 = smov 4  }
 0x4da   : > { %15200 = dma.vmem_to_hbm [thread:$0]  (%p19855_p10), %s19587_s14, 2048, %s19585_s30, %s12356_s24, %s15863_s13, %s15863_s13, %s15864_s17  }
 0x4db PF: > { %s12384_s29 = sand.u32 1, %s15840_s18   ;;  %p19856_p1 = scmp.ne.s32.totalorder %s19673_s25, 0 }
 0x4dc   : > { %p19857_p2 = scmp.ge.s32.totalorder %s15852_s21, 2  ;;  %s12385_s26 = scalar_lea.sflag [#allocation6], %s12384_s29 }
 0x4de   : > { %p15214_p6 = pnand %p19857_p2, %p19856_p1 }
 0x4e0   : > { %p15215_p12 = pneg %p15214_p6 }
 0x4e2   : > { %15835 = dma.done.wait (%p15215_p12), %s12385_s26, 2048  }
 0x4e3   : > { %15837 = vsyncadd (%p15215_p12), %s12385_s26, 4294965248  ;;  %p19_p7 = scmp.ge.s32.totalorder %s15967_s15, 4   ;;  %s19858_s18 = smov %s15844_s19 }
 0x4e4   : > { %s19859_s19 = smov %s15848_s20  ;;  %s19860_s20 = smov %s15983_s27 }
 0x4e5   : > { %s19861_s21 = smov %s15967_s15  ;;  %21 = sbr.rel (!%p19_p7) target bundleno = 6 (0x6), region = 123 }
 0x4ea   :  { %12390 = vsyncpa [#allocation5], 1 }
 0x4eb   :  { %12392 = vsyncpa [#allocation5 + $0x1], 1 }
 0x4ec   :  { %12393 = vsyncpa [#allocation8], 1 }
 0x4ed   :  { %12394 = vsyncpa [#allocation6], 1 }
 0x4ee   :  { %12396 = vsyncpa [#allocation6 + $0x1], 1 }

</bundles_post_ra>
